<compile_context>
chip_gen: v6e
topology: v6e:2x2x1
jax: 0.10.0
libtpu: 0.0.40
codegen_flags: <defaults>
</compile_context>

<pallas_src>
import functools

import numpy as np
import jax
import jax.numpy as jnp
from jax import lax
from jax.experimental import pallas as pl
from jax.experimental.pallas import tpu as pltpu


# --------------------------------------------------------------------------
# static geometry helpers
# --------------------------------------------------------------------------
def _block_geometry(h, w, cin, couts):
    blocks = []
    ch, cw, cc = h, w, cin
    for cout in couts:
        assert ch % 2 == 0 and cw % 2 == 0
        ho, wo = ch // 2, cw // 2
        wph = wo + 1                                   # phase width of padded input
        blocks.append(dict(
            Ho=ho, Wo=wo, Cin=cc, C1=cout,
            Wph=wph, PH=(ho + 1) * wph,                # rows per phase image
            L1=(ho - 1) * wph + wo,                    # conv1 slab length
            Wp2=wo + 2,                                # padded width of y1
            L2=(ho - 1) * (wo + 2) + wo,               # conv2 slab length
        ))
        ch, cw, cc = ho, wo, cout
    return blocks


def _phase_select_matrix(ho, wo):
    """0/1 matrix mapping a compact (ho*wo, C) activation to the stacked,
    flattened stride-2 phases of its zero-padded (ho+2, wo+2) image."""
    hph, wph = ho // 2 + 1, wo // 2 + 1
    s = np.zeros((4 * hph * wph, ho * wo), np.float32)
    for a in range(2):
        for b in range(2):
            pidx = 2 * a + b
            for p in range(hph):
                for q in range(wph):
                    yi, yj = 2 * p + a - 1, 2 * q + b - 1
                    if 0 <= yi < ho and 0 <= yj < wo:
                        s[pidx * hph * wph + p * wph + q, yi * wo + yj] = 1.0
    return s


def _space_to_phases(x_nhwc):
    """(N,H,W,C) -> stacked flattened stride-2 phases of the 1-padded input:
       (N, 4*(H/2+1)*(W/2+1), C)."""
    n, h, w, c = x_nhwc.shape
    xp = jnp.pad(x_nhwc, ((0, 0), (1, 1), (1, 1), (0, 0)))
    hph, wph = h // 2 + 1, w // 2 + 1
    phases = [xp[:, a::2, b::2, :].reshape(n, hph * wph, c)
              for a in range(2) for b in range(2)]
    return jnp.concatenate(phases, axis=1)


# --------------------------------------------------------------------------
# fused forward (one pallas_call for the whole network)
# --------------------------------------------------------------------------
def analysis_network_forward(x_nchw, all_params):
    assert len(all_params) == 3
    x = jnp.transpose(x_nchw, (0, 2, 3, 1))            # NCHW -> NHWC
    n, h, w, cin = x.shape
    assert h % 8 == 0 and w % 8 == 0
    couts = [p[0].shape[-1] for p in all_params]
    blocks = _block_geometry(h, w, cin, couts)
    cfg1, cfg2, cfg3 = blocks

    # matmul-ready weights: (3,3,Ci,Co) -> (9*Ci, Co), biases -> (1, Co)
    flat = []
    for bi, (w1, b1, w2, b2, ws, bs) in enumerate(all_params):
        ci, co = blocks[bi]['Cin'], blocks[bi]['C1']
        flat.append([w1.reshape(9 * ci, co), b1.reshape(1, co),
                     w2.reshape(9 * co, co), b2.reshape(1, co),
                     ws.reshape(ci, co), bs.reshape(1, co)])

    s12 = jnp.asarray(_phase_select_matrix(cfg1['Ho'], cfg1['Wo']))   # (4*PH2, M1)
    s23 = jnp.asarray(_phase_select_matrix(cfg2['Ho'], cfg2['Wo']))   # (4*PH3, M2)

    xph = _space_to_phases(x)                          # (N, 4*PH1, Cin)
    args = [xph] + flat[0] + [s12] + flat[1] + [s23] + flat[2]

    m_out = cfg3['Ho'] * cfg3['Wo']
    c_out = cfg3['C1']

    # ---------------------------- kernel ----------------------------------
    def kernel(xph_ref,
               w1a, b1a, w2a, b2a, wsa, bsa, s12_ref,
               w1b, b1b, w2b, b2b, wsb, bsb, s23_ref,
               w1c, b1c, w2c, b2c, wsc, bsc,
               o_ref,
               ph2_ref, ph3_ref,
               im1a, y1pa, im2a, youta,
               im1b, y1pb, im2b, youtb,
               im1c, y1pc, im2c):

        def res_block(cfg, ph, w1, b1, w2, b2, ws, bs, im1, y1p, im2, out_write):
            Ho, Wo, Cin, C1 = cfg['Ho'], cfg['Wo'], cfg['Cin'], cfg['C1']
            Wph, PH, L1 = cfg['Wph'], cfg['PH'], cfg['L1']
            Wp2, L2 = cfg['Wp2'], cfg['L2']

            # conv1 (3x3, stride 2): slab im2col gathered from stacked phases
            for ky in range(3):
                for kx in range(3):
                    t = ky * 3 + kx
                    pidx = (ky % 2) * 2 + (kx % 2)
                    r0 = pidx * PH + (ky // 2) * Wph + (kx // 2)
                    im1[:, t * Cin:(t + 1) * Cin] = ph[r0:r0 + L1, :]

            y1 = jnp.dot(im1[...], w1[...], preferred_element_type=jnp.float32)
            y1 = jnp.maximum(y1 + b1[...], 0.0)

            # skip (1x1, stride 2): its input is exactly im2col tap 4
            xs = im1[:, 4 * Cin:5 * Cin]
            if Cin <= 4:
                # K=3 is near-worst-case for the MXU: do it on the VPU instead.
                skip = jnp.zeros((L1, C1), jnp.float32) + bs[...]
                for c in range(Cin):
                    skip = skip + xs[:, c:c + 1] * ws[c:c + 1, :]
            else:
                skip = jnp.dot(xs, ws[...],
                               preferred_element_type=jnp.float32) + bs[...]

            # zero-pad y1 (valid slab rows) into the flattened padded buffer
            y1p[...] = jnp.zeros_like(y1p)
            for ho in range(Ho):
                d0 = (ho + 1) * Wp2 + 1
                y1p[d0:d0 + Wo, :] = y1[ho * Wph:ho * Wph + Wo, :]

            # conv2 (3x3, stride 1): slab im2col on the flattened padded y1
            for ky in range(3):
                for kx in range(3):
                    t = ky * 3 + kx
                    r0 = ky * Wp2 + kx
                    im2[:, t * C1:(t + 1) * C1] = y1p[r0:r0 + L2, :]

            y2 = jnp.dot(im2[...], w2[...], preferred_element_type=jnp.float32)
            y2 = jnp.maximum(y2 + b2[...], 0.0)

            # residual add + compact write-out
            for ho in range(Ho):
                v = y2[ho * Wp2:ho * Wp2 + Wo, :] + skip[ho * Wph:ho * Wph + Wo, :]
                out_write(ho * Wo, v)

        def writer(ref):
            def _w(r0, v):
                ref[r0:r0 + v.shape[0], :] = v
            return _w

        # block 1
        res_block(cfg1, xph_ref, w1a, b1a, w2a, b2a, wsa, bsa,
                  im1a, y1pa, im2a, writer(youta))
        # re-phase-split (and zero-pad) block-1 output for block 2 on the MXU
        ph2_ref[...] = jnp.dot(s12_ref[...], youta[...],
                               preferred_element_type=jnp.float32)
        # block 2
        res_block(cfg2, ph2_ref, w1b, b1b, w2b, b2b, wsb, bsb,
                  im1b, y1pb, im2b, writer(youtb))
        ph3_ref[...] = jnp.dot(s23_ref[...], youtb[...],
                               preferred_element_type=jnp.float32)
        # block 3 writes straight into the (lane-dense, Cout=128) output
        res_block(cfg3, ph3_ref, w1c, b1c, w2c, b2c, wsc, bsc,
                  im1c, y1pc, im2c, writer(o_ref))

    # ---------------------------- specs ------------------------------------
    def _full_spec(a):
        nd = a.ndim
        return pl.BlockSpec(a.shape, lambda i: (0,) * nd)

    in_specs = ([pl.BlockSpec((None,) + xph.shape[1:], lambda i: (i, 0, 0))]
                + [_full_spec(a) for a in args[1:]])
    out_specs = pl.BlockSpec((None, m_out, c_out), lambda i: (i, 0, 0))

    scratch = [
        pltpu.VMEM((4 * cfg2['PH'], cfg1['C1']), jnp.float32),                    # ph2
        pltpu.VMEM((4 * cfg3['PH'], cfg2['C1']), jnp.float32),                    # ph3
        pltpu.VMEM((cfg1['L1'], 9 * cfg1['Cin']), jnp.float32),                   # im1a
        pltpu.VMEM(((cfg1['Ho'] + 2) * cfg1['Wp2'], cfg1['C1']), jnp.float32),    # y1pa
        pltpu.VMEM((cfg1['L2'], 9 * cfg1['C1']), jnp.float32),                    # im2a
        pltpu.VMEM((cfg1['Ho'] * cfg1['Wo'], cfg1['C1']), jnp.float32),           # youta
        pltpu.VMEM((cfg2['L1'], 9 * cfg2['Cin']), jnp.float32),                   # im1b
        pltpu.VMEM(((cfg2['Ho'] + 2) * cfg2['Wp2'], cfg2['C1']), jnp.float32),    # y1pb
        pltpu.VMEM((cfg2['L2'], 9 * cfg2['C1']), jnp.float32),                    # im2b
        pltpu.VMEM((cfg2['Ho'] * cfg2['Wo'], cfg2['C1']), jnp.float32),           # youtb
        pltpu.VMEM((cfg3['L1'], 9 * cfg3['Cin']), jnp.float32),                   # im1c
        pltpu.VMEM(((cfg3['Ho'] + 2) * cfg3['Wp2'], cfg3['C1']), jnp.float32),    # y1pc
        pltpu.VMEM((cfg3['L2'], 9 * cfg3['C1']), jnp.float32),                    # im2c
    ]

    out_flat = pl.pallas_call(
        kernel,
        out_shape=jax.ShapeDtypeStruct((n, m_out, c_out), jnp.float32),
        grid_spec=pltpu.PrefetchScalarGridSpec(
            num_scalar_prefetch=0,
            grid=(n,),
            in_specs=in_specs,
            out_specs=out_specs,
            scratch_shapes=scratch),
        compiler_params=pltpu.CompilerParams(
            dimension_semantics=("parallel",)),
    )(*args)

    out = out_flat.reshape(n, cfg3['Ho'], cfg3['Wo'], c_out)
    return jnp.transpose(out, (0, 3, 1, 2))            # NHWC -> NCHW


# --------------------------------------------------------------------------
# params & plain-XLA reference
# --------------------------------------------------------------------------
def init_block_params(key, cin, cout):
    k1, k2, k3, k4, k5, k6 = jax.random.split(key, 6)
    w1 = jax.random.normal(k1, (3, 3, cin, cout), jnp.float32) * (2.0 / (9 * cin)) ** 0.5
    b1 = jax.random.normal(k2, (1, cout), jnp.float32) * 0.01
    w2 = jax.random.normal(k3, (3, 3, cout, cout), jnp.float32) * (2.0 / (9 * cout)) ** 0.5
    b2 = jax.random.normal(k4, (1, cout), jnp.float32) * 0.01
    ws = jax.random.normal(k5, (1, 1, cin, cout), jnp.float32) * (2.0 / cin) ** 0.5
    bs = jax.random.normal(k6, (1, cout), jnp.float32) * 0.01
    return (w1, b1, w2, b2, ws, bs)


def _ref_block(x_nhwc, params):
    w1, b1, w2, b2, ws, bs = params
    dn = ('NHWC', 'HWIO', 'NHWC')
    y = lax.conv_general_dilated(x_nhwc, w1, (2, 2), ((1, 1), (1, 1)),
                                 dimension_numbers=dn) + b1.reshape(1, 1, 1, -1)
    y = jnp.maximum(y, 0.0)
    y = lax.conv_general_dilated(y, w2, (1, 1), ((1, 1), (1, 1)),
                                 dimension_numbers=dn) + b2.reshape(1, 1, 1, -1)
    y = jnp.maximum(y, 0.0)
    s = lax.conv_general_dilated(x_nhwc, ws, (2, 2), ((0, 0), (0, 0)),
                                 dimension_numbers=dn) + bs.reshape(1, 1, 1, -1)
    return y + s


def _ref_forward(x_nchw, all_params):
    x = jnp.transpose(x_nchw, (0, 2, 3, 1))
    for p in all_params:
        x = _ref_block(x, p)
    return jnp.transpose(x, (0, 3, 1, 2))


# --------------------------------------------------------------------------
if __name__ == "__main__":
    key = jax.random.PRNGKey(0)
    kx, k1, k2, k3 = jax.random.split(key, 4)

    # QuantizableSimpleAnalysisNetwork2(target_channels=128, in_ch=3, in_ch1=64, in_ch2=96)
    in_ch, in_ch1, in_ch2, target_channels = 3, 64, 96, 128
    params = [
        init_block_params(k1, in_ch, in_ch1),
        init_block_params(k2, in_ch1, in_ch2),
        init_block_params(k3, in_ch2, target_channels),
    ]

    # PyTorch-style NCHW input: (N=2, C=3, H=16, W=16)
    x = jax.random.normal(kx, (2, 3, 16, 16), jnp.float32)

    fwd = jax.jit(functools.partial(analysis_network_forward, all_params=params))
    out = fwd(x)
    jax.block_until_ready(out)

    assert out.shape == (2, target_channels, 2, 2), out.shape

    ref = _ref_forward(x, params)
    jax.block_until_ready(ref)
    err = float(jnp.max(jnp.abs(out - ref)))
    assert jnp.allclose(out, ref, rtol=1e-3, atol=1e-3), err

    print("KERNEL_OK")
</pallas_src>

<mosaic_0001>
module attributes {stable_mosaic.version = 11 : i64} {
  func.func @kernel(%arg0: i32, %arg1: memref<1x324x3xf32, #tpu.memory_space<vmem>>, %arg2: memref<27x64xf32, #tpu.memory_space<vmem>>, %arg3: memref<1x64xf32, #tpu.memory_space<vmem>>, %arg4: memref<576x64xf32, #tpu.memory_space<vmem>>, %arg5: memref<1x64xf32, #tpu.memory_space<vmem>>, %arg6: memref<3x64xf32, #tpu.memory_space<vmem>>, %arg7: memref<1x64xf32, #tpu.memory_space<vmem>>, %arg8: memref<100x64xf32, #tpu.memory_space<vmem>>, %arg9: memref<576x96xf32, #tpu.memory_space<vmem>>, %arg10: memref<1x96xf32, #tpu.memory_space<vmem>>, %arg11: memref<864x96xf32, #tpu.memory_space<vmem>>, %arg12: memref<1x96xf32, #tpu.memory_space<vmem>>, %arg13: memref<64x96xf32, #tpu.memory_space<vmem>>, %arg14: memref<1x96xf32, #tpu.memory_space<vmem>>, %arg15: memref<36x16xf32, #tpu.memory_space<vmem>>, %arg16: memref<864x128xf32, #tpu.memory_space<vmem>>, %arg17: memref<1x128xf32, #tpu.memory_space<vmem>>, %arg18: memref<1152x128xf32, #tpu.memory_space<vmem>>, %arg19: memref<1x128xf32, #tpu.memory_space<vmem>>, %arg20: memref<96x128xf32, #tpu.memory_space<vmem>>, %arg21: memref<1x128xf32, #tpu.memory_space<vmem>>, %arg22: memref<1x4x128xf32, #tpu.memory_space<vmem>>, %arg23: memref<100x64xf32, #tpu.memory_space<vmem>>, %arg24: memref<36x96xf32, #tpu.memory_space<vmem>>, %arg25: memref<71x27xf32, #tpu.memory_space<vmem>>, %arg26: memref<100x64xf32, #tpu.memory_space<vmem>>, %arg27: memref<78x576xf32, #tpu.memory_space<vmem>>, %arg28: memref<64x64xf32, #tpu.memory_space<vmem>>, %arg29: memref<19x576xf32, #tpu.memory_space<vmem>>, %arg30: memref<36x96xf32, #tpu.memory_space<vmem>>, %arg31: memref<22x864xf32, #tpu.memory_space<vmem>>, %arg32: memref<16x96xf32, #tpu.memory_space<vmem>>, %arg33: memref<5x864xf32, #tpu.memory_space<vmem>>, %arg34: memref<16x128xf32, #tpu.memory_space<vmem>>, %arg35: memref<6x1152xf32, #tpu.memory_space<vmem>>) attributes {dimension_semantics = [#tpu.dimension_semantics<parallel>], iteration_bounds = array<i64: 2>, scalar_prefetch = 0 : i64, scratch_operands = 13 : i64, tpu.core_type = #tpu.core_type<tc>, window_params = [{transform_indices = @transform_0, window_bounds = array<i64: 1, 324, 3>}, {pipeline_mode = #tpu.pipeline_mode<synchronous>, transform_indices = @transform_1, window_bounds = array<i64: 27, 64>}, {pipeline_mode = #tpu.pipeline_mode<synchronous>, transform_indices = @transform_2, window_bounds = array<i64: 1, 64>}, {pipeline_mode = #tpu.pipeline_mode<synchronous>, transform_indices = @transform_3, window_bounds = array<i64: 576, 64>}, {pipeline_mode = #tpu.pipeline_mode<synchronous>, transform_indices = @transform_4, window_bounds = array<i64: 1, 64>}, {pipeline_mode = #tpu.pipeline_mode<synchronous>, transform_indices = @transform_5, window_bounds = array<i64: 3, 64>}, {pipeline_mode = #tpu.pipeline_mode<synchronous>, transform_indices = @transform_6, window_bounds = array<i64: 1, 64>}, {pipeline_mode = #tpu.pipeline_mode<synchronous>, transform_indices = @transform_7, window_bounds = array<i64: 100, 64>}, {pipeline_mode = #tpu.pipeline_mode<synchronous>, transform_indices = @transform_8, window_bounds = array<i64: 576, 96>}, {pipeline_mode = #tpu.pipeline_mode<synchronous>, transform_indices = @transform_9, window_bounds = array<i64: 1, 96>}, {pipeline_mode = #tpu.pipeline_mode<synchronous>, transform_indices = @transform_10, window_bounds = array<i64: 864, 96>}, {pipeline_mode = #tpu.pipeline_mode<synchronous>, transform_indices = @transform_11, window_bounds = array<i64: 1, 96>}, {pipeline_mode = #tpu.pipeline_mode<synchronous>, transform_indices = @transform_12, window_bounds = array<i64: 64, 96>}, {pipeline_mode = #tpu.pipeline_mode<synchronous>, transform_indices = @transform_13, window_bounds = array<i64: 1, 96>}, {pipeline_mode = #tpu.pipeline_mode<synchronous>, transform_indices = @transform_14, window_bounds = array<i64: 36, 16>}, {pipeline_mode = #tpu.pipeline_mode<synchronous>, transform_indices = @transform_15, window_bounds = array<i64: 864, 128>}, {pipeline_mode = #tpu.pipeline_mode<synchronous>, transform_indices = @transform_16, window_bounds = array<i64: 1, 128>}, {pipeline_mode = #tpu.pipeline_mode<synchronous>, transform_indices = @transform_17, window_bounds = array<i64: 1152, 128>}, {pipeline_mode = #tpu.pipeline_mode<synchronous>, transform_indices = @transform_18, window_bounds = array<i64: 1, 128>}, {pipeline_mode = #tpu.pipeline_mode<synchronous>, transform_indices = @transform_19, window_bounds = array<i64: 96, 128>}, {pipeline_mode = #tpu.pipeline_mode<synchronous>, transform_indices = @transform_20, window_bounds = array<i64: 1, 128>}, {transform_indices = @transform_21, window_bounds = array<i64: 1, 4, 128>}]} {
    %c0 = arith.constant 0 : index
    %c0_0 = arith.constant 0 : index
    %c0_1 = arith.constant 0 : index
    %0 = vector.load %arg1[%c0, %c0_0, %c0_1] : memref<1x324x3xf32, #tpu.memory_space<vmem>>, vector<1x71x3xf32>
    %1 = vector.shape_cast %0 : vector<1x71x3xf32> to vector<71x3xf32>
    %c0_2 = arith.constant 0 : index
    %c0_3 = arith.constant 0 : index
    %2 = vector.load %arg25[%c0_2, %c0_3] : memref<71x27xf32, #tpu.memory_space<vmem>>, vector<71x3xf32>
    tpu.vector_store %arg25[%c0_2, %c0_3], %1 {strides = array<i32>} : memref<71x27xf32, #tpu.memory_space<vmem>>, vector<71x3xf32>,
    %c0_4 = arith.constant 0 : index
    %c81 = arith.constant 81 : index
    %c0_5 = arith.constant 0 : index
    %3 = vector.load %arg1[%c0_4, %c81, %c0_5] : memref<1x324x3xf32, #tpu.memory_space<vmem>>, vector<1x71x3xf32>
    %4 = vector.shape_cast %3 : vector<1x71x3xf32> to vector<71x3xf32>
    %c0_6 = arith.constant 0 : index
    %c3 = arith.constant 3 : index
    %5 = vector.load %arg25[%c0_6, %c3] : memref<71x27xf32, #tpu.memory_space<vmem>>, vector<71x3xf32>
    tpu.vector_store %arg25[%c0_6, %c3], %4 {strides = array<i32>} : memref<71x27xf32, #tpu.memory_space<vmem>>, vector<71x3xf32>,
    %c0_7 = arith.constant 0 : index
    %c1 = arith.constant 1 : index
    %c0_8 = arith.constant 0 : index
    %6 = vector.load %arg1[%c0_7, %c1, %c0_8] : memref<1x324x3xf32, #tpu.memory_space<vmem>>, vector<1x71x3xf32>
    %7 = vector.shape_cast %6 : vector<1x71x3xf32> to vector<71x3xf32>
    %c0_9 = arith.constant 0 : index
    %c6 = arith.constant 6 : index
    %8 = vector.load %arg25[%c0_9, %c6] : memref<71x27xf32, #tpu.memory_space<vmem>>, vector<71x3xf32>
    tpu.vector_store %arg25[%c0_9, %c6], %7 {strides = array<i32>} : memref<71x27xf32, #tpu.memory_space<vmem>>, vector<71x3xf32>,
    %c0_10 = arith.constant 0 : index
    %c162 = arith.constant 162 : index
    %c0_11 = arith.constant 0 : index
    %9 = vector.load %arg1[%c0_10, %c162, %c0_11] : memref<1x324x3xf32, #tpu.memory_space<vmem>>, vector<1x71x3xf32>
    %10 = vector.shape_cast %9 : vector<1x71x3xf32> to vector<71x3xf32>
    %c0_12 = arith.constant 0 : index
    %c9 = arith.constant 9 : index
    %11 = vector.load %arg25[%c0_12, %c9] : memref<71x27xf32, #tpu.memory_space<vmem>>, vector<71x3xf32>
    tpu.vector_store %arg25[%c0_12, %c9], %10 {strides = array<i32>} : memref<71x27xf32, #tpu.memory_space<vmem>>, vector<71x3xf32>,
    %c0_13 = arith.constant 0 : index
    %c243 = arith.constant 243 : index
    %c0_14 = arith.constant 0 : index
    %12 = vector.load %arg1[%c0_13, %c243, %c0_14] : memref<1x324x3xf32, #tpu.memory_space<vmem>>, vector<1x71x3xf32>
    %13 = vector.shape_cast %12 : vector<1x71x3xf32> to vector<71x3xf32>
    %c0_15 = arith.constant 0 : index
    %c12 = arith.constant 12 : index
    %14 = vector.load %arg25[%c0_15, %c12] : memref<71x27xf32, #tpu.memory_space<vmem>>, vector<71x3xf32>
    tpu.vector_store %arg25[%c0_15, %c12], %13 {strides = array<i32>} : memref<71x27xf32, #tpu.memory_space<vmem>>, vector<71x3xf32>,
    %c0_16 = arith.constant 0 : index
    %c163 = arith.constant 163 : index
    %c0_17 = arith.constant 0 : index
    %15 = vector.load %arg1[%c0_16, %c163, %c0_17] : memref<1x324x3xf32, #tpu.memory_space<vmem>>, vector<1x71x3xf32>
    %16 = vector.shape_cast %15 : vector<1x71x3xf32> to vector<71x3xf32>
    %c0_18 = arith.constant 0 : index
    %c15 = arith.constant 15 : index
    %17 = vector.load %arg25[%c0_18, %c15] : memref<71x27xf32, #tpu.memory_space<vmem>>, vector<71x3xf32>
    tpu.vector_store %arg25[%c0_18, %c15], %16 {strides = array<i32>} : memref<71x27xf32, #tpu.memory_space<vmem>>, vector<71x3xf32>,
    %c0_19 = arith.constant 0 : index
    %c9_20 = arith.constant 9 : index
    %c0_21 = arith.constant 0 : index
    %18 = vector.load %arg1[%c0_19, %c9_20, %c0_21] : memref<1x324x3xf32, #tpu.memory_space<vmem>>, vector<1x71x3xf32>
    %19 = vector.shape_cast %18 : vector<1x71x3xf32> to vector<71x3xf32>
    %c0_22 = arith.constant 0 : index
    %c18 = arith.constant 18 : index
    %20 = vector.load %arg25[%c0_22, %c18] : memref<71x27xf32, #tpu.memory_space<vmem>>, vector<71x3xf32>
    tpu.vector_store %arg25[%c0_22, %c18], %19 {strides = array<i32>} : memref<71x27xf32, #tpu.memory_space<vmem>>, vector<71x3xf32>,
    %c0_23 = arith.constant 0 : index
    %c90 = arith.constant 90 : index
    %c0_24 = arith.constant 0 : index
    %21 = vector.load %arg1[%c0_23, %c90, %c0_24] : memref<1x324x3xf32, #tpu.memory_space<vmem>>, vector<1x71x3xf32>
    %22 = vector.shape_cast %21 : vector<1x71x3xf32> to vector<71x3xf32>
    %c0_25 = arith.constant 0 : index
    %c21 = arith.constant 21 : index
    %23 = vector.load %arg25[%c0_25, %c21] : memref<71x27xf32, #tpu.memory_space<vmem>>, vector<71x3xf32>
    tpu.vector_store %arg25[%c0_25, %c21], %22 {strides = array<i32>} : memref<71x27xf32, #tpu.memory_space<vmem>>, vector<71x3xf32>,
    %c0_26 = arith.constant 0 : index
    %c10 = arith.constant 10 : index
    %c0_27 = arith.constant 0 : index
    %24 = vector.load %arg1[%c0_26, %c10, %c0_27] : memref<1x324x3xf32, #tpu.memory_space<vmem>>, vector<1x71x3xf32>
    %25 = vector.shape_cast %24 : vector<1x71x3xf32> to vector<71x3xf32>
    %c0_28 = arith.constant 0 : index
    %c24 = arith.constant 24 : index
    %26 = vector.load %arg25[%c0_28, %c24] : memref<71x27xf32, #tpu.memory_space<vmem>>, vector<71x3xf32>
    tpu.vector_store %arg25[%c0_28, %c24], %25 {strides = array<i32>} : memref<71x27xf32, #tpu.memory_space<vmem>>, vector<71x3xf32>,
    %c0_29 = arith.constant 0 : index
    %c0_30 = arith.constant 0 : index
    %27 = vector.load %arg25[%c0_29, %c0_30] : memref<71x27xf32, #tpu.memory_space<vmem>>, vector<71x27xf32>
    %c0_31 = arith.constant 0 : index
    %c0_32 = arith.constant 0 : index
    %28 = vector.load %arg2[%c0_31, %c0_32] : memref<27x64xf32, #tpu.memory_space<vmem>>, vector<27x64xf32>
    %cst = arith.constant dense<0.000000e+00> : vector<71x64xf32>
    %29 = tpu.matmul %27, %28, %cst {dimension_numbers = #tpu.dot_dimension_numbers<[1], [0], [0], [1], [0, 0, 1, 1], [], []>} : vector<71x27xf32>, vector<27x64xf32>, vector<71x64xf32> -> vector<71x64xf32>
    %c0_33 = arith.constant 0 : index
    %c0_34 = arith.constant 0 : index
    %30 = vector.load %arg3[%c0_33, %c0_34] : memref<1x64xf32, #tpu.memory_space<vmem>>, vector<1x64xf32>
    %31 = vector.broadcast %30 : vector<1x64xf32> to vector<71x64xf32>
    %32 = arith.addf %29, %31 : vector<71x64xf32>
    %cst_35 = arith.constant 0.000000e+00 : f32
    %33 = vector.broadcast %cst_35 : f32 to vector<71x64xf32>
    %34 = arith.maximumf %32, %33 : vector<71x64xf32>
    %c0_36 = arith.constant 0 : index
    %c12_37 = arith.constant 12 : index
    %35 = vector.load %arg25[%c0_36, %c12_37] : memref<71x27xf32, #tpu.memory_space<vmem>>, vector<71x3xf32>
    %cst_38 = arith.constant 0.000000e+00 : f32
    %36 = vector.broadcast %cst_38 : f32 to vector<71x64xf32>
    %c0_39 = arith.constant 0 : index
    %c0_40 = arith.constant 0 : index
    %37 = vector.load %arg7[%c0_39, %c0_40] : memref<1x64xf32, #tpu.memory_space<vmem>>, vector<1x64xf32>
    %38 = vector.broadcast %37 : vector<1x64xf32> to vector<71x64xf32>
    %39 = arith.addf %36, %38 : vector<71x64xf32>
    %40 = vector.extract_strided_slice %35 {offsets = [0, 0], sizes = [71, 1], strides = [1, 1]} : vector<71x3xf32> to vector<71x1xf32>
    %c0_41 = arith.constant 0 : index
    %c0_42 = arith.constant 0 : index
    %41 = vector.load %arg6[%c0_41, %c0_42] : memref<3x64xf32, #tpu.memory_space<vmem>>, vector<1x64xf32>
    %42 = vector.broadcast %40 : vector<71x1xf32> to vector<71x64xf32>
    %43 = vector.broadcast %41 : vector<1x64xf32> to vector<71x64xf32>
    %44 = arith.mulf %42, %43 : vector<71x64xf32>
    %45 = arith.addf %39, %44 : vector<71x64xf32>
    %46 = vector.extract_strided_slice %35 {offsets = [0, 1], sizes = [71, 1], strides = [1, 1]} : vector<71x3xf32> to vector<71x1xf32>
    %c1_43 = arith.constant 1 : index
    %c0_44 = arith.constant 0 : index
    %47 = vector.load %arg6[%c1_43, %c0_44] : memref<3x64xf32, #tpu.memory_space<vmem>>, vector<1x64xf32>
    %48 = vector.broadcast %46 : vector<71x1xf32> to vector<71x64xf32>
    %49 = vector.broadcast %47 : vector<1x64xf32> to vector<71x64xf32>
    %50 = arith.mulf %48, %49 : vector<71x64xf32>
    %51 = arith.addf %45, %50 : vector<71x64xf32>
    %52 = vector.extract_strided_slice %35 {offsets = [0, 2], sizes = [71, 1], strides = [1, 1]} : vector<71x3xf32> to vector<71x1xf32>
    %c2 = arith.constant 2 : index
    %c0_45 = arith.constant 0 : index
    %53 = vector.load %arg6[%c2, %c0_45] : memref<3x64xf32, #tpu.memory_space<vmem>>, vector<1x64xf32>
    %54 = vector.broadcast %52 : vector<71x1xf32> to vector<71x64xf32>
    %55 = vector.broadcast %53 : vector<1x64xf32> to vector<71x64xf32>
    %56 = arith.mulf %54, %55 : vector<71x64xf32>
    %57 = arith.addf %51, %56 : vector<71x64xf32>
    %cst_46 = arith.constant 0.000000e+00 : f32
    %58 = vector.broadcast %cst_46 : f32 to vector<100x64xf32>
    %c0_47 = arith.constant 0 : index
    %c0_48 = arith.constant 0 : index
    %59 = vector.load %arg26[%c0_47, %c0_48] : memref<100x64xf32, #tpu.memory_space<vmem>>, vector<100x64xf32>
    tpu.vector_store %arg26[%c0_47, %c0_48], %58 {strides = array<i32>} : memref<100x64xf32, #tpu.memory_space<vmem>>, vector<100x64xf32>,
    %60 = vector.extract_strided_slice %34 {offsets = [0, 0], sizes = [8, 64], strides = [1, 1]} : vector<71x64xf32> to vector<8x64xf32>
    %c11 = arith.constant 11 : index
    %c0_49 = arith.constant 0 : index
    %61 = vector.load %arg26[%c11, %c0_49] : memref<100x64xf32, #tpu.memory_space<vmem>>, vector<8x64xf32>
    tpu.vector_store %arg26[%c11, %c0_49], %60 {strides = array<i32>} : memref<100x64xf32, #tpu.memory_space<vmem>>, vector<8x64xf32>,
    %62 = vector.extract_strided_slice %34 {offsets = [9, 0], sizes = [8, 64], strides = [1, 1]} : vector<71x64xf32> to vector<8x64xf32>
    %c21_50 = arith.constant 21 : index
    %c0_51 = arith.constant 0 : index
    %63 = vector.load %arg26[%c21_50, %c0_51] : memref<100x64xf32, #tpu.memory_space<vmem>>, vector<8x64xf32>
    tpu.vector_store %arg26[%c21_50, %c0_51], %62 {strides = array<i32>} : memref<100x64xf32, #tpu.memory_space<vmem>>, vector<8x64xf32>,
    %64 = vector.extract_strided_slice %34 {offsets = [18, 0], sizes = [8, 64], strides = [1, 1]} : vector<71x64xf32> to vector<8x64xf32>
    %c31 = arith.constant 31 : index
    %c0_52 = arith.constant 0 : index
    %65 = vector.load %arg26[%c31, %c0_52] : memref<100x64xf32, #tpu.memory_space<vmem>>, vector<8x64xf32>
    tpu.vector_store %arg26[%c31, %c0_52], %64 {strides = array<i32>} : memref<100x64xf32, #tpu.memory_space<vmem>>, vector<8x64xf32>,
    %66 = vector.extract_strided_slice %34 {offsets = [27, 0], sizes = [8, 64], strides = [1, 1]} : vector<71x64xf32> to vector<8x64xf32>
    %c41 = arith.constant 41 : index
    %c0_53 = arith.constant 0 : index
    %67 = vector.load %arg26[%c41, %c0_53] : memref<100x64xf32, #tpu.memory_space<vmem>>, vector<8x64xf32>
    tpu.vector_store %arg26[%c41, %c0_53], %66 {strides = array<i32>} : memref<100x64xf32, #tpu.memory_space<vmem>>, vector<8x64xf32>,
    %68 = vector.extract_strided_slice %34 {offsets = [36, 0], sizes = [8, 64], strides = [1, 1]} : vector<71x64xf32> to vector<8x64xf32>
    %c51 = arith.constant 51 : index
    %c0_54 = arith.constant 0 : index
    %69 = vector.load %arg26[%c51, %c0_54] : memref<100x64xf32, #tpu.memory_space<vmem>>, vector<8x64xf32>
    tpu.vector_store %arg26[%c51, %c0_54], %68 {strides = array<i32>} : memref<100x64xf32, #tpu.memory_space<vmem>>, vector<8x64xf32>,
    %70 = vector.extract_strided_slice %34 {offsets = [45, 0], sizes = [8, 64], strides = [1, 1]} : vector<71x64xf32> to vector<8x64xf32>
    %c61 = arith.constant 61 : index
    %c0_55 = arith.constant 0 : index
    %71 = vector.load %arg26[%c61, %c0_55] : memref<100x64xf32, #tpu.memory_space<vmem>>, vector<8x64xf32>
    tpu.vector_store %arg26[%c61, %c0_55], %70 {strides = array<i32>} : memref<100x64xf32, #tpu.memory_space<vmem>>, vector<8x64xf32>,
    %72 = vector.extract_strided_slice %34 {offsets = [54, 0], sizes = [8, 64], strides = [1, 1]} : vector<71x64xf32> to vector<8x64xf32>
    %c71 = arith.constant 71 : index
    %c0_56 = arith.constant 0 : index
    %73 = vector.load %arg26[%c71, %c0_56] : memref<100x64xf32, #tpu.memory_space<vmem>>, vector<8x64xf32>
    tpu.vector_store %arg26[%c71, %c0_56], %72 {strides = array<i32>} : memref<100x64xf32, #tpu.memory_space<vmem>>, vector<8x64xf32>,
    %74 = vector.extract_strided_slice %34 {offsets = [63, 0], sizes = [8, 64], strides = [1, 1]} : vector<71x64xf32> to vector<8x64xf32>
    %c81_57 = arith.constant 81 : index
    %c0_58 = arith.constant 0 : index
    %75 = vector.load %arg26[%c81_57, %c0_58] : memref<100x64xf32, #tpu.memory_space<vmem>>, vector<8x64xf32>
    tpu.vector_store %arg26[%c81_57, %c0_58], %74 {strides = array<i32>} : memref<100x64xf32, #tpu.memory_space<vmem>>, vector<8x64xf32>,
    %c0_59 = arith.constant 0 : index
    %c0_60 = arith.constant 0 : index
    %76 = vector.load %arg26[%c0_59, %c0_60] : memref<100x64xf32, #tpu.memory_space<vmem>>, vector<78x64xf32>
    %c0_61 = arith.constant 0 : index
    %c0_62 = arith.constant 0 : index
    %77 = vector.load %arg27[%c0_61, %c0_62] : memref<78x576xf32, #tpu.memory_space<vmem>>, vector<78x64xf32>
    tpu.vector_store %arg27[%c0_61, %c0_62], %76 {strides = array<i32>} : memref<78x576xf32, #tpu.memory_space<vmem>>, vector<78x64xf32>,
    %c1_63 = arith.constant 1 : index
    %c0_64 = arith.constant 0 : index
    %78 = vector.load %arg26[%c1_63, %c0_64] : memref<100x64xf32, #tpu.memory_space<vmem>>, vector<78x64xf32>
    %c0_65 = arith.constant 0 : index
    %c64 = arith.constant 64 : index
    %79 = vector.load %arg27[%c0_65, %c64] : memref<78x576xf32, #tpu.memory_space<vmem>>, vector<78x64xf32>
    tpu.vector_store %arg27[%c0_65, %c64], %78 {strides = array<i32>} : memref<78x576xf32, #tpu.memory_space<vmem>>, vector<78x64xf32>,
    %c2_66 = arith.constant 2 : index
    %c0_67 = arith.constant 0 : index
    %80 = vector.load %arg26[%c2_66, %c0_67] : memref<100x64xf32, #tpu.memory_space<vmem>>, vector<78x64xf32>
    %c0_68 = arith.constant 0 : index
    %c128 = arith.constant 128 : index
    %81 = vector.load %arg27[%c0_68, %c128] : memref<78x576xf32, #tpu.memory_space<vmem>>, vector<78x64xf32>
    tpu.vector_store %arg27[%c0_68, %c128], %80 {strides = array<i32>} : memref<78x576xf32, #tpu.memory_space<vmem>>, vector<78x64xf32>,
    %c10_69 = arith.constant 10 : index
    %c0_70 = arith.constant 0 : index
    %82 = vector.load %arg26[%c10_69, %c0_70] : memref<100x64xf32, #tpu.memory_space<vmem>>, vector<78x64xf32>
    %c0_71 = arith.constant 0 : index
    %c192 = arith.constant 192 : index
    %83 = vector.load %arg27[%c0_71, %c192] : memref<78x576xf32, #tpu.memory_space<vmem>>, vector<78x64xf32>
    tpu.vector_store %arg27[%c0_71, %c192], %82 {strides = array<i32>} : memref<78x576xf32, #tpu.memory_space<vmem>>, vector<78x64xf32>,
    %c11_72 = arith.constant 11 : index
    %c0_73 = arith.constant 0 : index
    %84 = vector.load %arg26[%c11_72, %c0_73] : memref<100x64xf32, #tpu.memory_space<vmem>>, vector<78x64xf32>
    %c0_74 = arith.constant 0 : index
    %c256 = arith.constant 256 : index
    %85 = vector.load %arg27[%c0_74, %c256] : memref<78x576xf32, #tpu.memory_space<vmem>>, vector<78x64xf32>
    tpu.vector_store %arg27[%c0_74, %c256], %84 {strides = array<i32>} : memref<78x576xf32, #tpu.memory_space<vmem>>, vector<78x64xf32>,
    %c12_75 = arith.constant 12 : index
    %c0_76 = arith.constant 0 : index
    %86 = vector.load %arg26[%c12_75, %c0_76] : memref<100x64xf32, #tpu.memory_space<vmem>>, vector<78x64xf32>
    %c0_77 = arith.constant 0 : index
    %c320 = arith.constant 320 : index
    %87 = vector.load %arg27[%c0_77, %c320] : memref<78x576xf32, #tpu.memory_space<vmem>>, vector<78x64xf32>
    tpu.vector_store %arg27[%c0_77, %c320], %86 {strides = array<i32>} : memref<78x576xf32, #tpu.memory_space<vmem>>, vector<78x64xf32>,
    %c20 = arith.constant 20 : index
    %c0_78 = arith.constant 0 : index
    %88 = vector.load %arg26[%c20, %c0_78] : memref<100x64xf32, #tpu.memory_space<vmem>>, vector<78x64xf32>
    %c0_79 = arith.constant 0 : index
    %c384 = arith.constant 384 : index
    %89 = vector.load %arg27[%c0_79, %c384] : memref<78x576xf32, #tpu.memory_space<vmem>>, vector<78x64xf32>
    tpu.vector_store %arg27[%c0_79, %c384], %88 {strides = array<i32>} : memref<78x576xf32, #tpu.memory_space<vmem>>, vector<78x64xf32>,
    %c21_80 = arith.constant 21 : index
    %c0_81 = arith.constant 0 : index
    %90 = vector.load %arg26[%c21_80, %c0_81] : memref<100x64xf32, #tpu.memory_space<vmem>>, vector<78x64xf32>
    %c0_82 = arith.constant 0 : index
    %c448 = arith.constant 448 : index
    %91 = vector.load %arg27[%c0_82, %c448] : memref<78x576xf32, #tpu.memory_space<vmem>>, vector<78x64xf32>
    tpu.vector_store %arg27[%c0_82, %c448], %90 {strides = array<i32>} : memref<78x576xf32, #tpu.memory_space<vmem>>, vector<78x64xf32>,
    %c22 = arith.constant 22 : index
    %c0_83 = arith.constant 0 : index
    %92 = vector.load %arg26[%c22, %c0_83] : memref<100x64xf32, #tpu.memory_space<vmem>>, vector<78x64xf32>
    %c0_84 = arith.constant 0 : index
    %c512 = arith.constant 512 : index
    %93 = vector.load %arg27[%c0_84, %c512] : memref<78x576xf32, #tpu.memory_space<vmem>>, vector<78x64xf32>
    tpu.vector_store %arg27[%c0_84, %c512], %92 {strides = array<i32>} : memref<78x576xf32, #tpu.memory_space<vmem>>, vector<78x64xf32>,
    %c0_85 = arith.constant 0 : index
    %c0_86 = arith.constant 0 : index
    %94 = vector.load %arg27[%c0_85, %c0_86] : memref<78x576xf32, #tpu.memory_space<vmem>>, vector<78x576xf32>
    %c0_87 = arith.constant 0 : index
    %c0_88 = arith.constant 0 : index
    %95 = vector.load %arg4[%c0_87, %c0_88] : memref<576x64xf32, #tpu.memory_space<vmem>>, vector<576x64xf32>
    %cst_89 = arith.constant dense<0.000000e+00> : vector<78x64xf32>
    %96 = tpu.matmul %94, %95, %cst_89 {dimension_numbers = #tpu.dot_dimension_numbers<[1], [0], [0], [1], [0, 0, 1, 1], [], []>} : vector<78x576xf32>, vector<576x64xf32>, vector<78x64xf32> -> vector<78x64xf32>
    %c0_90 = arith.constant 0 : index
    %c0_91 = arith.constant 0 : index
    %97 = vector.load %arg5[%c0_90, %c0_91] : memref<1x64xf32, #tpu.memory_space<vmem>>, vector<1x64xf32>
    %98 = vector.broadcast %97 : vector<1x64xf32> to vector<78x64xf32>
    %99 = arith.addf %96, %98 : vector<78x64xf32>
    %cst_92 = arith.constant 0.000000e+00 : f32
    %100 = vector.broadcast %cst_92 : f32 to vector<78x64xf32>
    %101 = arith.maximumf %99, %100 : vector<78x64xf32>
    %102 = vector.extract_strided_slice %101 {offsets = [0, 0], sizes = [8, 64], strides = [1, 1]} : vector<78x64xf32> to vector<8x64xf32>
    %103 = vector.extract_strided_slice %57 {offsets = [0, 0], sizes = [8, 64], strides = [1, 1]} : vector<71x64xf32> to vector<8x64xf32>
    %104 = arith.addf %102, %103 : vector<8x64xf32>
    %c0_93 = arith.constant 0 : index
    %c0_94 = arith.constant 0 : index
    %105 = vector.load %arg28[%c0_93, %c0_94] : memref<64x64xf32, #tpu.memory_space<vmem>>, vector<8x64xf32>
    tpu.vector_store %arg28[%c0_93, %c0_94], %104 {strides = array<i32>} : memref<64x64xf32, #tpu.memory_space<vmem>>, vector<8x64xf32>,
    %106 = vector.extract_strided_slice %101 {offsets = [10, 0], sizes = [8, 64], strides = [1, 1]} : vector<78x64xf32> to vector<8x64xf32>
    %107 = vector.extract_strided_slice %57 {offsets = [9, 0], sizes = [8, 64], strides = [1, 1]} : vector<71x64xf32> to vector<8x64xf32>
    %108 = arith.addf %106, %107 : vector<8x64xf32>
    %c8 = arith.constant 8 : index
    %c0_95 = arith.constant 0 : index
    %109 = vector.load %arg28[%c8, %c0_95] : memref<64x64xf32, #tpu.memory_space<vmem>>, vector<8x64xf32>
    tpu.vector_store %arg28[%c8, %c0_95], %108 {strides = array<i32>} : memref<64x64xf32, #tpu.memory_space<vmem>>, vector<8x64xf32>,
    %110 = vector.extract_strided_slice %101 {offsets = [20, 0], sizes = [8, 64], strides = [1, 1]} : vector<78x64xf32> to vector<8x64xf32>
    %111 = vector.extract_strided_slice %57 {offsets = [18, 0], sizes = [8, 64], strides = [1, 1]} : vector<71x64xf32> to vector<8x64xf32>
    %112 = arith.addf %110, %111 : vector<8x64xf32>
    %c16 = arith.constant 16 : index
    %c0_96 = arith.constant 0 : index
    %113 = vector.load %arg28[%c16, %c0_96] : memref<64x64xf32, #tpu.memory_space<vmem>>, vector<8x64xf32>
    tpu.vector_store %arg28[%c16, %c0_96], %112 {strides = array<i32>} : memref<64x64xf32, #tpu.memory_space<vmem>>, vector<8x64xf32>,
    %114 = vector.extract_strided_slice %101 {offsets = [30, 0], sizes = [8, 64], strides = [1, 1]} : vector<78x64xf32> to vector<8x64xf32>
    %115 = vector.extract_strided_slice %57 {offsets = [27, 0], sizes = [8, 64], strides = [1, 1]} : vector<71x64xf32> to vector<8x64xf32>
    %116 = arith.addf %114, %115 : vector<8x64xf32>
    %c24_97 = arith.constant 24 : index
    %c0_98 = arith.constant 0 : index
    %117 = vector.load %arg28[%c24_97, %c0_98] : memref<64x64xf32, #tpu.memory_space<vmem>>, vector<8x64xf32>
    tpu.vector_store %arg28[%c24_97, %c0_98], %116 {strides = array<i32>} : memref<64x64xf32, #tpu.memory_space<vmem>>, vector<8x64xf32>,
    %118 = vector.extract_strided_slice %101 {offsets = [40, 0], sizes = [8, 64], strides = [1, 1]} : vector<78x64xf32> to vector<8x64xf32>
    %119 = vector.extract_strided_slice %57 {offsets = [36, 0], sizes = [8, 64], strides = [1, 1]} : vector<71x64xf32> to vector<8x64xf32>
    %120 = arith.addf %118, %119 : vector<8x64xf32>
    %c32 = arith.constant 32 : index
    %c0_99 = arith.constant 0 : index
    %121 = vector.load %arg28[%c32, %c0_99] : memref<64x64xf32, #tpu.memory_space<vmem>>, vector<8x64xf32>
    tpu.vector_store %arg28[%c32, %c0_99], %120 {strides = array<i32>} : memref<64x64xf32, #tpu.memory_space<vmem>>, vector<8x64xf32>,
    %122 = vector.extract_strided_slice %101 {offsets = [50, 0], sizes = [8, 64], strides = [1, 1]} : vector<78x64xf32> to vector<8x64xf32>
    %123 = vector.extract_strided_slice %57 {offsets = [45, 0], sizes = [8, 64], strides = [1, 1]} : vector<71x64xf32> to vector<8x64xf32>
    %124 = arith.addf %122, %123 : vector<8x64xf32>
    %c40 = arith.constant 40 : index
    %c0_100 = arith.constant 0 : index
    %125 = vector.load %arg28[%c40, %c0_100] : memref<64x64xf32, #tpu.memory_space<vmem>>, vector<8x64xf32>
    tpu.vector_store %arg28[%c40, %c0_100], %124 {strides = array<i32>} : memref<64x64xf32, #tpu.memory_space<vmem>>, vector<8x64xf32>,
    %126 = vector.extract_strided_slice %101 {offsets = [60, 0], sizes = [8, 64], strides = [1, 1]} : vector<78x64xf32> to vector<8x64xf32>
    %127 = vector.extract_strided_slice %57 {offsets = [54, 0], sizes = [8, 64], strides = [1, 1]} : vector<71x64xf32> to vector<8x64xf32>
    %128 = arith.addf %126, %127 : vector<8x64xf32>
    %c48 = arith.constant 48 : index
    %c0_101 = arith.constant 0 : index
    %129 = vector.load %arg28[%c48, %c0_101] : memref<64x64xf32, #tpu.memory_space<vmem>>, vector<8x64xf32>
    tpu.vector_store %arg28[%c48, %c0_101], %128 {strides = array<i32>} : memref<64x64xf32, #tpu.memory_space<vmem>>, vector<8x64xf32>,
    %130 = vector.extract_strided_slice %101 {offsets = [70, 0], sizes = [8, 64], strides = [1, 1]} : vector<78x64xf32> to vector<8x64xf32>
    %131 = vector.extract_strided_slice %57 {offsets = [63, 0], sizes = [8, 64], strides = [1, 1]} : vector<71x64xf32> to vector<8x64xf32>
    %132 = arith.addf %130, %131 : vector<8x64xf32>
    %c56 = arith.constant 56 : index
    %c0_102 = arith.constant 0 : index
    %133 = vector.load %arg28[%c56, %c0_102] : memref<64x64xf32, #tpu.memory_space<vmem>>, vector<8x64xf32>
    tpu.vector_store %arg28[%c56, %c0_102], %132 {strides = array<i32>} : memref<64x64xf32, #tpu.memory_space<vmem>>, vector<8x64xf32>,
    %c0_103 = arith.constant 0 : index
    %c0_104 = arith.constant 0 : index
    %134 = vector.load %arg8[%c0_103, %c0_104] : memref<100x64xf32, #tpu.memory_space<vmem>>, vector<100x64xf32>
    %c0_105 = arith.constant 0 : index
    %c0_106 = arith.constant 0 : index
    %135 = vector.load %arg28[%c0_105, %c0_106] : memref<64x64xf32, #tpu.memory_space<vmem>>, vector<64x64xf32>
    %cst_107 = arith.constant dense<0.000000e+00> : vector<100x64xf32>
    %136 = tpu.matmul %134, %135, %cst_107 {dimension_numbers = #tpu.dot_dimension_numbers<[1], [0], [0], [1], [0, 0, 1, 1], [], []>} : vector<100x64xf32>, vector<64x64xf32>, vector<100x64xf32> -> vector<100x64xf32>
    %c0_108 = arith.constant 0 : index
    %c0_109 = arith.constant 0 : index
    %137 = vector.load %arg23[%c0_108, %c0_109] : memref<100x64xf32, #tpu.memory_space<vmem>>, vector<100x64xf32>
    tpu.vector_store %arg23[%c0_108, %c0_109], %136 {strides = array<i32>} : memref<100x64xf32, #tpu.memory_space<vmem>>, vector<100x64xf32>,
    %c0_110 = arith.constant 0 : index
    %c0_111 = arith.constant 0 : index
    %138 = vector.load %arg23[%c0_110, %c0_111] : memref<100x64xf32, #tpu.memory_space<vmem>>, vector<19x64xf32>
    %c0_112 = arith.constant 0 : index
    %c0_113 = arith.constant 0 : index
    %139 = vector.load %arg29[%c0_112, %c0_113] : memref<19x576xf32, #tpu.memory_space<vmem>>, vector<19x64xf32>
    tpu.vector_store %arg29[%c0_112, %c0_113], %138 {strides = array<i32>} : memref<19x576xf32, #tpu.memory_space<vmem>>, vector<19x64xf32>,
    %c25 = arith.constant 25 : index
    %c0_114 = arith.constant 0 : index
    %140 = vector.load %arg23[%c25, %c0_114] : memref<100x64xf32, #tpu.memory_space<vmem>>, vector<19x64xf32>
    %c0_115 = arith.constant 0 : index
    %c64_116 = arith.constant 64 : index
    %141 = vector.load %arg29[%c0_115, %c64_116] : memref<19x576xf32, #tpu.memory_space<vmem>>, vector<19x64xf32>
    tpu.vector_store %arg29[%c0_115, %c64_116], %140 {strides = array<i32>} : memref<19x576xf32, #tpu.memory_space<vmem>>, vector<19x64xf32>,
    %c1_117 = arith.constant 1 : index
    %c0_118 = arith.constant 0 : index
    %142 = vector.load %arg23[%c1_117, %c0_118] : memref<100x64xf32, #tpu.memory_space<vmem>>, vector<19x64xf32>
    %c0_119 = arith.constant 0 : index
    %c128_120 = arith.constant 128 : index
    %143 = vector.load %arg29[%c0_119, %c128_120] : memref<19x576xf32, #tpu.memory_space<vmem>>, vector<19x64xf32>
    tpu.vector_store %arg29[%c0_119, %c128_120], %142 {strides = array<i32>} : memref<19x576xf32, #tpu.memory_space<vmem>>, vector<19x64xf32>,
    %c50 = arith.constant 50 : index
    %c0_121 = arith.constant 0 : index
    %144 = vector.load %arg23[%c50, %c0_121] : memref<100x64xf32, #tpu.memory_space<vmem>>, vector<19x64xf32>
    %c0_122 = arith.constant 0 : index
    %c192_123 = arith.constant 192 : index
    %145 = vector.load %arg29[%c0_122, %c192_123] : memref<19x576xf32, #tpu.memory_space<vmem>>, vector<19x64xf32>
    tpu.vector_store %arg29[%c0_122, %c192_123], %144 {strides = array<i32>} : memref<19x576xf32, #tpu.memory_space<vmem>>, vector<19x64xf32>,
    %c75 = arith.constant 75 : index
    %c0_124 = arith.constant 0 : index
    %146 = vector.load %arg23[%c75, %c0_124] : memref<100x64xf32, #tpu.memory_space<vmem>>, vector<19x64xf32>
    %c0_125 = arith.constant 0 : index
    %c256_126 = arith.constant 256 : index
    %147 = vector.load %arg29[%c0_125, %c256_126] : memref<19x576xf32, #tpu.memory_space<vmem>>, vector<19x64xf32>
    tpu.vector_store %arg29[%c0_125, %c256_126], %146 {strides = array<i32>} : memref<19x576xf32, #tpu.memory_space<vmem>>, vector<19x64xf32>,
    %c51_127 = arith.constant 51 : index
    %c0_128 = arith.constant 0 : index
    %148 = vector.load %arg23[%c51_127, %c0_128] : memref<100x64xf32, #tpu.memory_space<vmem>>, vector<19x64xf32>
    %c0_129 = arith.constant 0 : index
    %c320_130 = arith.constant 320 : index
    %149 = vector.load %arg29[%c0_129, %c320_130] : memref<19x576xf32, #tpu.memory_space<vmem>>, vector<19x64xf32>
    tpu.vector_store %arg29[%c0_129, %c320_130], %148 {strides = array<i32>} : memref<19x576xf32, #tpu.memory_space<vmem>>, vector<19x64xf32>,
    %c5 = arith.constant 5 : index
    %c0_131 = arith.constant 0 : index
    %150 = vector.load %arg23[%c5, %c0_131] : memref<100x64xf32, #tpu.memory_space<vmem>>, vector<19x64xf32>
    %c0_132 = arith.constant 0 : index
    %c384_133 = arith.constant 384 : index
    %151 = vector.load %arg29[%c0_132, %c384_133] : memref<19x576xf32, #tpu.memory_space<vmem>>, vector<19x64xf32>
    tpu.vector_store %arg29[%c0_132, %c384_133], %150 {strides = array<i32>} : memref<19x576xf32, #tpu.memory_space<vmem>>, vector<19x64xf32>,
    %c30 = arith.constant 30 : index
    %c0_134 = arith.constant 0 : index
    %152 = vector.load %arg23[%c30, %c0_134] : memref<100x64xf32, #tpu.memory_space<vmem>>, vector<19x64xf32>
    %c0_135 = arith.constant 0 : index
    %c448_136 = arith.constant 448 : index
    %153 = vector.load %arg29[%c0_135, %c448_136] : memref<19x576xf32, #tpu.memory_space<vmem>>, vector<19x64xf32>
    tpu.vector_store %arg29[%c0_135, %c448_136], %152 {strides = array<i32>} : memref<19x576xf32, #tpu.memory_space<vmem>>, vector<19x64xf32>,
    %c6_137 = arith.constant 6 : index
    %c0_138 = arith.constant 0 : index
    %154 = vector.load %arg23[%c6_137, %c0_138] : memref<100x64xf32, #tpu.memory_space<vmem>>, vector<19x64xf32>
    %c0_139 = arith.constant 0 : index
    %c512_140 = arith.constant 512 : index
    %155 = vector.load %arg29[%c0_139, %c512_140] : memref<19x576xf32, #tpu.memory_space<vmem>>, vector<19x64xf32>
    tpu.vector_store %arg29[%c0_139, %c512_140], %154 {strides = array<i32>} : memref<19x576xf32, #tpu.memory_space<vmem>>, vector<19x64xf32>,
    %c0_141 = arith.constant 0 : index
    %c0_142 = arith.constant 0 : index
    %156 = vector.load %arg29[%c0_141, %c0_142] : memref<19x576xf32, #tpu.memory_space<vmem>>, vector<19x576xf32>
    %c0_143 = arith.constant 0 : index
    %c0_144 = arith.constant 0 : index
    %157 = vector.load %arg9[%c0_143, %c0_144] : memref<576x96xf32, #tpu.memory_space<vmem>>, vector<576x96xf32>
    %cst_145 = arith.constant dense<0.000000e+00> : vector<19x96xf32>
    %158 = tpu.matmul %156, %157, %cst_145 {dimension_numbers = #tpu.dot_dimension_numbers<[1], [0], [0], [1], [0, 0, 1, 1], [], []>} : vector<19x576xf32>, vector<576x96xf32>, vector<19x96xf32> -> vector<19x96xf32>
    %c0_146 = arith.constant 0 : index
    %c0_147 = arith.constant 0 : index
    %159 = vector.load %arg10[%c0_146, %c0_147] : memref<1x96xf32, #tpu.memory_space<vmem>>, vector<1x96xf32>
    %160 = vector.broadcast %159 : vector<1x96xf32> to vector<19x96xf32>
    %161 = arith.addf %158, %160 : vector<19x96xf32>
    %cst_148 = arith.constant 0.000000e+00 : f32
    %162 = vector.broadcast %cst_148 : f32 to vector<19x96xf32>
    %163 = arith.maximumf %161, %162 : vector<19x96xf32>
    %c0_149 = arith.constant 0 : index
    %c256_150 = arith.constant 256 : index
    %164 = vector.load %arg29[%c0_149, %c256_150] : memref<19x576xf32, #tpu.memory_space<vmem>>, vector<19x64xf32>
    %c0_151 = arith.constant 0 : index
    %c0_152 = arith.constant 0 : index
    %165 = vector.load %arg13[%c0_151, %c0_152] : memref<64x96xf32, #tpu.memory_space<vmem>>, vector<64x96xf32>
    %cst_153 = arith.constant dense<0.000000e+00> : vector<19x96xf32>
    %166 = tpu.matmul %164, %165, %cst_153 {dimension_numbers = #tpu.dot_dimension_numbers<[1], [0], [0], [1], [0, 0, 1, 1], [], []>} : vector<19x64xf32>, vector<64x96xf32>, vector<19x96xf32> -> vector<19x96xf32>
    %c0_154 = arith.constant 0 : index
    %c0_155 = arith.constant 0 : index
    %167 = vector.load %arg14[%c0_154, %c0_155] : memref<1x96xf32, #tpu.memory_space<vmem>>, vector<1x96xf32>
    %168 = vector.broadcast %167 : vector<1x96xf32> to vector<19x96xf32>
    %169 = arith.addf %166, %168 : vector<19x96xf32>
    %cst_156 = arith.constant 0.000000e+00 : f32
    %170 = vector.broadcast %cst_156 : f32 to vector<36x96xf32>
    %c0_157 = arith.constant 0 : index
    %c0_158 = arith.constant 0 : index
    %171 = vector.load %arg30[%c0_157, %c0_158] : memref<36x96xf32, #tpu.memory_space<vmem>>, vector<36x96xf32>
    tpu.vector_store %arg30[%c0_157, %c0_158], %170 {strides = array<i32>} : memref<36x96xf32, #tpu.memory_space<vmem>>, vector<36x96xf32>,
    %172 = vector.extract_strided_slice %163 {offsets = [0, 0], sizes = [4, 96], strides = [1, 1]} : vector<19x96xf32> to vector<4x96xf32>
    %c7 = arith.constant 7 : index
    %c0_159 = arith.constant 0 : index
    %173 = vector.load %arg30[%c7, %c0_159] : memref<36x96xf32, #tpu.memory_space<vmem>>, vector<4x96xf32>
    tpu.vector_store %arg30[%c7, %c0_159], %172 {strides = array<i32>} : memref<36x96xf32, #tpu.memory_space<vmem>>, vector<4x96xf32>,
    %174 = vector.extract_strided_slice %163 {offsets = [5, 0], sizes = [4, 96], strides = [1, 1]} : vector<19x96xf32> to vector<4x96xf32>
    %c13 = arith.constant 13 : index
    %c0_160 = arith.constant 0 : index
    %175 = vector.load %arg30[%c13, %c0_160] : memref<36x96xf32, #tpu.memory_space<vmem>>, vector<4x96xf32>
    tpu.vector_store %arg30[%c13, %c0_160], %174 {strides = array<i32>} : memref<36x96xf32, #tpu.memory_space<vmem>>, vector<4x96xf32>,
    %176 = vector.extract_strided_slice %163 {offsets = [10, 0], sizes = [4, 96], strides = [1, 1]} : vector<19x96xf32> to vector<4x96xf32>
    %c19 = arith.constant 19 : index
    %c0_161 = arith.constant 0 : index
    %177 = vector.load %arg30[%c19, %c0_161] : memref<36x96xf32, #tpu.memory_space<vmem>>, vector<4x96xf32>
    tpu.vector_store %arg30[%c19, %c0_161], %176 {strides = array<i32>} : memref<36x96xf32, #tpu.memory_space<vmem>>, vector<4x96xf32>,
    %178 = vector.extract_strided_slice %163 {offsets = [15, 0], sizes = [4, 96], strides = [1, 1]} : vector<19x96xf32> to vector<4x96xf32>
    %c25_162 = arith.constant 25 : index
    %c0_163 = arith.constant 0 : index
    %179 = vector.load %arg30[%c25_162, %c0_163] : memref<36x96xf32, #tpu.memory_space<vmem>>, vector<4x96xf32>
    tpu.vector_store %arg30[%c25_162, %c0_163], %178 {strides = array<i32>} : memref<36x96xf32, #tpu.memory_space<vmem>>, vector<4x96xf32>,
    %c0_164 = arith.constant 0 : index
    %c0_165 = arith.constant 0 : index
    %180 = vector.load %arg30[%c0_164, %c0_165] : memref<36x96xf32, #tpu.memory_space<vmem>>, vector<22x96xf32>
    %c0_166 = arith.constant 0 : index
    %c0_167 = arith.constant 0 : index
    %181 = vector.load %arg31[%c0_166, %c0_167] : memref<22x864xf32, #tpu.memory_space<vmem>>, vector<22x96xf32>
    tpu.vector_store %arg31[%c0_166, %c0_167], %180 {strides = array<i32>} : memref<22x864xf32, #tpu.memory_space<vmem>>, vector<22x96xf32>,
    %c1_168 = arith.constant 1 : index
    %c0_169 = arith.constant 0 : index
    %182 = vector.load %arg30[%c1_168, %c0_169] : memref<36x96xf32, #tpu.memory_space<vmem>>, vector<22x96xf32>
    %c0_170 = arith.constant 0 : index
    %c96 = arith.constant 96 : index
    %183 = vector.load %arg31[%c0_170, %c96] : memref<22x864xf32, #tpu.memory_space<vmem>>, vector<22x96xf32>
    tpu.vector_store %arg31[%c0_170, %c96], %182 {strides = array<i32>} : memref<22x864xf32, #tpu.memory_space<vmem>>, vector<22x96xf32>,
    %c2_171 = arith.constant 2 : index
    %c0_172 = arith.constant 0 : index
    %184 = vector.load %arg30[%c2_171, %c0_172] : memref<36x96xf32, #tpu.memory_space<vmem>>, vector<22x96xf32>
    %c0_173 = arith.constant 0 : index
    %c192_174 = arith.constant 192 : index
    %185 = vector.load %arg31[%c0_173, %c192_174] : memref<22x864xf32, #tpu.memory_space<vmem>>, vector<22x96xf32>
    tpu.vector_store %arg31[%c0_173, %c192_174], %184 {strides = array<i32>} : memref<22x864xf32, #tpu.memory_space<vmem>>, vector<22x96xf32>,
    %c6_175 = arith.constant 6 : index
    %c0_176 = arith.constant 0 : index
    %186 = vector.load %arg30[%c6_175, %c0_176] : memref<36x96xf32, #tpu.memory_space<vmem>>, vector<22x96xf32>
    %c0_177 = arith.constant 0 : index
    %c288 = arith.constant 288 : index
    %187 = vector.load %arg31[%c0_177, %c288] : memref<22x864xf32, #tpu.memory_space<vmem>>, vector<22x96xf32>
    tpu.vector_store %arg31[%c0_177, %c288], %186 {strides = array<i32>} : memref<22x864xf32, #tpu.memory_space<vmem>>, vector<22x96xf32>,
    %c7_178 = arith.constant 7 : index
    %c0_179 = arith.constant 0 : index
    %188 = vector.load %arg30[%c7_178, %c0_179] : memref<36x96xf32, #tpu.memory_space<vmem>>, vector<22x96xf32>
    %c0_180 = arith.constant 0 : index
    %c384_181 = arith.constant 384 : index
    %189 = vector.load %arg31[%c0_180, %c384_181] : memref<22x864xf32, #tpu.memory_space<vmem>>, vector<22x96xf32>
    tpu.vector_store %arg31[%c0_180, %c384_181], %188 {strides = array<i32>} : memref<22x864xf32, #tpu.memory_space<vmem>>, vector<22x96xf32>,
    %c8_182 = arith.constant 8 : index
    %c0_183 = arith.constant 0 : index
    %190 = vector.load %arg30[%c8_182, %c0_183] : memref<36x96xf32, #tpu.memory_space<vmem>>, vector<22x96xf32>
    %c0_184 = arith.constant 0 : index
    %c480 = arith.constant 480 : index
    %191 = vector.load %arg31[%c0_184, %c480] : memref<22x864xf32, #tpu.memory_space<vmem>>, vector<22x96xf32>
    tpu.vector_store %arg31[%c0_184, %c480], %190 {strides = array<i32>} : memref<22x864xf32, #tpu.memory_space<vmem>>, vector<22x96xf32>,
    %c12_185 = arith.constant 12 : index
    %c0_186 = arith.constant 0 : index
    %192 = vector.load %arg30[%c12_185, %c0_186] : memref<36x96xf32, #tpu.memory_space<vmem>>, vector<22x96xf32>
    %c0_187 = arith.constant 0 : index
    %c576 = arith.constant 576 : index
    %193 = vector.load %arg31[%c0_187, %c576] : memref<22x864xf32, #tpu.memory_space<vmem>>, vector<22x96xf32>
    tpu.vector_store %arg31[%c0_187, %c576], %192 {strides = array<i32>} : memref<22x864xf32, #tpu.memory_space<vmem>>, vector<22x96xf32>,
    %c13_188 = arith.constant 13 : index
    %c0_189 = arith.constant 0 : index
    %194 = vector.load %arg30[%c13_188, %c0_189] : memref<36x96xf32, #tpu.memory_space<vmem>>, vector<22x96xf32>
    %c0_190 = arith.constant 0 : index
    %c672 = arith.constant 672 : index
    %195 = vector.load %arg31[%c0_190, %c672] : memref<22x864xf32, #tpu.memory_space<vmem>>, vector<22x96xf32>
    tpu.vector_store %arg31[%c0_190, %c672], %194 {strides = array<i32>} : memref<22x864xf32, #tpu.memory_space<vmem>>, vector<22x96xf32>,
    %c14 = arith.constant 14 : index
    %c0_191 = arith.constant 0 : index
    %196 = vector.load %arg30[%c14, %c0_191] : memref<36x96xf32, #tpu.memory_space<vmem>>, vector<22x96xf32>
    %c0_192 = arith.constant 0 : index
    %c768 = arith.constant 768 : index
    %197 = vector.load %arg31[%c0_192, %c768] : memref<22x864xf32, #tpu.memory_space<vmem>>, vector<22x96xf32>
    tpu.vector_store %arg31[%c0_192, %c768], %196 {strides = array<i32>} : memref<22x864xf32, #tpu.memory_space<vmem>>, vector<22x96xf32>,
    %c0_193 = arith.constant 0 : index
    %c0_194 = arith.constant 0 : index
    %198 = vector.load %arg31[%c0_193, %c0_194] : memref<22x864xf32, #tpu.memory_space<vmem>>, vector<22x864xf32>
    %c0_195 = arith.constant 0 : index
    %c0_196 = arith.constant 0 : index
    %199 = vector.load %arg11[%c0_195, %c0_196] : memref<864x96xf32, #tpu.memory_space<vmem>>, vector<864x96xf32>
    %cst_197 = arith.constant dense<0.000000e+00> : vector<22x96xf32>
    %200 = tpu.matmul %198, %199, %cst_197 {dimension_numbers = #tpu.dot_dimension_numbers<[1], [0], [0], [1], [0, 0, 1, 1], [], []>} : vector<22x864xf32>, vector<864x96xf32>, vector<22x96xf32> -> vector<22x96xf32>
    %c0_198 = arith.constant 0 : index
    %c0_199 = arith.constant 0 : index
    %201 = vector.load %arg12[%c0_198, %c0_199] : memref<1x96xf32, #tpu.memory_space<vmem>>, vector<1x96xf32>
    %202 = vector.broadcast %201 : vector<1x96xf32> to vector<22x96xf32>
    %203 = arith.addf %200, %202 : vector<22x96xf32>
    %cst_200 = arith.constant 0.000000e+00 : f32
    %204 = vector.broadcast %cst_200 : f32 to vector<22x96xf32>
    %205 = arith.maximumf %203, %204 : vector<22x96xf32>
    %206 = vector.extract_strided_slice %205 {offsets = [0, 0], sizes = [4, 96], strides = [1, 1]} : vector<22x96xf32> to vector<4x96xf32>
    %207 = vector.extract_strided_slice %169 {offsets = [0, 0], sizes = [4, 96], strides = [1, 1]} : vector<19x96xf32> to vector<4x96xf32>
    %208 = arith.addf %206, %207 : vector<4x96xf32>
    %c0_201 = arith.constant 0 : index
    %c0_202 = arith.constant 0 : index
    %209 = vector.load %arg32[%c0_201, %c0_202] : memref<16x96xf32, #tpu.memory_space<vmem>>, vector<4x96xf32>
    tpu.vector_store %arg32[%c0_201, %c0_202], %208 {strides = array<i32>} : memref<16x96xf32, #tpu.memory_space<vmem>>, vector<4x96xf32>,
    %210 = vector.extract_strided_slice %205 {offsets = [6, 0], sizes = [4, 96], strides = [1, 1]} : vector<22x96xf32> to vector<4x96xf32>
    %211 = vector.extract_strided_slice %169 {offsets = [5, 0], sizes = [4, 96], strides = [1, 1]} : vector<19x96xf32> to vector<4x96xf32>
    %212 = arith.addf %210, %211 : vector<4x96xf32>
    %c4 = arith.constant 4 : index
    %c0_203 = arith.constant 0 : index
    %213 = vector.load %arg32[%c4, %c0_203] : memref<16x96xf32, #tpu.memory_space<vmem>>, vector<4x96xf32>
    tpu.vector_store %arg32[%c4, %c0_203], %212 {strides = array<i32>} : memref<16x96xf32, #tpu.memory_space<vmem>>, vector<4x96xf32>,
    %214 = vector.extract_strided_slice %205 {offsets = [12, 0], sizes = [4, 96], strides = [1, 1]} : vector<22x96xf32> to vector<4x96xf32>
    %215 = vector.extract_strided_slice %169 {offsets = [10, 0], sizes = [4, 96], strides = [1, 1]} : vector<19x96xf32> to vector<4x96xf32>
    %216 = arith.addf %214, %215 : vector<4x96xf32>
    %c8_204 = arith.constant 8 : index
    %c0_205 = arith.constant 0 : index
    %217 = vector.load %arg32[%c8_204, %c0_205] : memref<16x96xf32, #tpu.memory_space<vmem>>, vector<4x96xf32>
    tpu.vector_store %arg32[%c8_204, %c0_205], %216 {strides = array<i32>} : memref<16x96xf32, #tpu.memory_space<vmem>>, vector<4x96xf32>,
    %218 = vector.extract_strided_slice %205 {offsets = [18, 0], sizes = [4, 96], strides = [1, 1]} : vector<22x96xf32> to vector<4x96xf32>
    %219 = vector.extract_strided_slice %169 {offsets = [15, 0], sizes = [4, 96], strides = [1, 1]} : vector<19x96xf32> to vector<4x96xf32>
    %220 = arith.addf %218, %219 : vector<4x96xf32>
    %c12_206 = arith.constant 12 : index
    %c0_207 = arith.constant 0 : index
    %221 = vector.load %arg32[%c12_206, %c0_207] : memref<16x96xf32, #tpu.memory_space<vmem>>, vector<4x96xf32>
    tpu.vector_store %arg32[%c12_206, %c0_207], %220 {strides = array<i32>} : memref<16x96xf32, #tpu.memory_space<vmem>>, vector<4x96xf32>,
    %c0_208 = arith.constant 0 : index
    %c0_209 = arith.constant 0 : index
    %222 = vector.load %arg15[%c0_208, %c0_209] : memref<36x16xf32, #tpu.memory_space<vmem>>, vector<36x16xf32>
    %c0_210 = arith.constant 0 : index
    %c0_211 = arith.constant 0 : index
    %223 = vector.load %arg32[%c0_210, %c0_211] : memref<16x96xf32, #tpu.memory_space<vmem>>, vector<16x96xf32>
    %cst_212 = arith.constant dense<0.000000e+00> : vector<36x96xf32>
    %224 = tpu.matmul %222, %223, %cst_212 {dimension_numbers = #tpu.dot_dimension_numbers<[1], [0], [0], [1], [0, 0, 1, 1], [], []>} : vector<36x16xf32>, vector<16x96xf32>, vector<36x96xf32> -> vector<36x96xf32>
    %c0_213 = arith.constant 0 : index
    %c0_214 = arith.constant 0 : index
    %225 = vector.load %arg24[%c0_213, %c0_214] : memref<36x96xf32, #tpu.memory_space<vmem>>, vector<36x96xf32>
    tpu.vector_store %arg24[%c0_213, %c0_214], %224 {strides = array<i32>} : memref<36x96xf32, #tpu.memory_space<vmem>>, vector<36x96xf32>,
    %c0_215 = arith.constant 0 : index
    %c0_216 = arith.constant 0 : index
    %226 = vector.load %arg24[%c0_215, %c0_216] : memref<36x96xf32, #tpu.memory_space<vmem>>, vector<5x96xf32>
    %c0_217 = arith.constant 0 : index
    %c0_218 = arith.constant 0 : index
    %227 = vector.load %arg33[%c0_217, %c0_218] : memref<5x864xf32, #tpu.memory_space<vmem>>, vector<5x96xf32>
    tpu.vector_store %arg33[%c0_217, %c0_218], %226 {strides = array<i32>} : memref<5x864xf32, #tpu.memory_space<vmem>>, vector<5x96xf32>,
    %c9_219 = arith.constant 9 : index
    %c0_220 = arith.constant 0 : index
    %228 = vector.load %arg24[%c9_219, %c0_220] : memref<36x96xf32, #tpu.memory_space<vmem>>, vector<5x96xf32>
    %c0_221 = arith.constant 0 : index
    %c96_222 = arith.constant 96 : index
    %229 = vector.load %arg33[%c0_221, %c96_222] : memref<5x864xf32, #tpu.memory_space<vmem>>, vector<5x96xf32>
    tpu.vector_store %arg33[%c0_221, %c96_222], %228 {strides = array<i32>} : memref<5x864xf32, #tpu.memory_space<vmem>>, vector<5x96xf32>,
    %c1_223 = arith.constant 1 : index
    %c0_224 = arith.constant 0 : index
    %230 = vector.load %arg24[%c1_223, %c0_224] : memref<36x96xf32, #tpu.memory_space<vmem>>, vector<5x96xf32>
    %c0_225 = arith.constant 0 : index
    %c192_226 = arith.constant 192 : index
    %231 = vector.load %arg33[%c0_225, %c192_226] : memref<5x864xf32, #tpu.memory_space<vmem>>, vector<5x96xf32>
    tpu.vector_store %arg33[%c0_225, %c192_226], %230 {strides = array<i32>} : memref<5x864xf32, #tpu.memory_space<vmem>>, vector<5x96xf32>,
    %c18_227 = arith.constant 18 : index
    %c0_228 = arith.constant 0 : index
    %232 = vector.load %arg24[%c18_227, %c0_228] : memref<36x96xf32, #tpu.memory_space<vmem>>, vector<5x96xf32>
    %c0_229 = arith.constant 0 : index
    %c288_230 = arith.constant 288 : index
    %233 = vector.load %arg33[%c0_229, %c288_230] : memref<5x864xf32, #tpu.memory_space<vmem>>, vector<5x96xf32>
    tpu.vector_store %arg33[%c0_229, %c288_230], %232 {strides = array<i32>} : memref<5x864xf32, #tpu.memory_space<vmem>>, vector<5x96xf32>,
    %c27 = arith.constant 27 : index
    %c0_231 = arith.constant 0 : index
    %234 = vector.load %arg24[%c27, %c0_231] : memref<36x96xf32, #tpu.memory_space<vmem>>, vector<5x96xf32>
    %c0_232 = arith.constant 0 : index
    %c384_233 = arith.constant 384 : index
    %235 = vector.load %arg33[%c0_232, %c384_233] : memref<5x864xf32, #tpu.memory_space<vmem>>, vector<5x96xf32>
    tpu.vector_store %arg33[%c0_232, %c384_233], %234 {strides = array<i32>} : memref<5x864xf32, #tpu.memory_space<vmem>>, vector<5x96xf32>,
    %c19_234 = arith.constant 19 : index
    %c0_235 = arith.constant 0 : index
    %236 = vector.load %arg24[%c19_234, %c0_235] : memref<36x96xf32, #tpu.memory_space<vmem>>, vector<5x96xf32>
    %c0_236 = arith.constant 0 : index
    %c480_237 = arith.constant 480 : index
    %237 = vector.load %arg33[%c0_236, %c480_237] : memref<5x864xf32, #tpu.memory_space<vmem>>, vector<5x96xf32>
    tpu.vector_store %arg33[%c0_236, %c480_237], %236 {strides = array<i32>} : memref<5x864xf32, #tpu.memory_space<vmem>>, vector<5x96xf32>,
    %c3_238 = arith.constant 3 : index
    %c0_239 = arith.constant 0 : index
    %238 = vector.load %arg24[%c3_238, %c0_239] : memref<36x96xf32, #tpu.memory_space<vmem>>, vector<5x96xf32>
    %c0_240 = arith.constant 0 : index
    %c576_241 = arith.constant 576 : index
    %239 = vector.load %arg33[%c0_240, %c576_241] : memref<5x864xf32, #tpu.memory_space<vmem>>, vector<5x96xf32>
    tpu.vector_store %arg33[%c0_240, %c576_241], %238 {strides = array<i32>} : memref<5x864xf32, #tpu.memory_space<vmem>>, vector<5x96xf32>,
    %c12_242 = arith.constant 12 : index
    %c0_243 = arith.constant 0 : index
    %240 = vector.load %arg24[%c12_242, %c0_243] : memref<36x96xf32, #tpu.memory_space<vmem>>, vector<5x96xf32>
    %c0_244 = arith.constant 0 : index
    %c672_245 = arith.constant 672 : index
    %241 = vector.load %arg33[%c0_244, %c672_245] : memref<5x864xf32, #tpu.memory_space<vmem>>, vector<5x96xf32>
    tpu.vector_store %arg33[%c0_244, %c672_245], %240 {strides = array<i32>} : memref<5x864xf32, #tpu.memory_space<vmem>>, vector<5x96xf32>,
    %c4_246 = arith.constant 4 : index
    %c0_247 = arith.constant 0 : index
    %242 = vector.load %arg24[%c4_246, %c0_247] : memref<36x96xf32, #tpu.memory_space<vmem>>, vector<5x96xf32>
    %c0_248 = arith.constant 0 : index
    %c768_249 = arith.constant 768 : index
    %243 = vector.load %arg33[%c0_248, %c768_249] : memref<5x864xf32, #tpu.memory_space<vmem>>, vector<5x96xf32>
    tpu.vector_store %arg33[%c0_248, %c768_249], %242 {strides = array<i32>} : memref<5x864xf32, #tpu.memory_space<vmem>>, vector<5x96xf32>,
    %c0_250 = arith.constant 0 : index
    %c0_251 = arith.constant 0 : index
    %244 = vector.load %arg33[%c0_250, %c0_251] : memref<5x864xf32, #tpu.memory_space<vmem>>, vector<5x864xf32>
    %c0_252 = arith.constant 0 : index
    %c0_253 = arith.constant 0 : index
    %245 = vector.load %arg16[%c0_252, %c0_253] : memref<864x128xf32, #tpu.memory_space<vmem>>, vector<864x128xf32>
    %cst_254 = arith.constant dense<0.000000e+00> : vector<5x128xf32>
    %246 = tpu.matmul %244, %245, %cst_254 {dimension_numbers = #tpu.dot_dimension_numbers<[1], [0], [0], [1], [0, 0, 1, 1], [], []>} : vector<5x864xf32>, vector<864x128xf32>, vector<5x128xf32> -> vector<5x128xf32>
    %c0_255 = arith.constant 0 : index
    %c0_256 = arith.constant 0 : index
    %247 = vector.load %arg17[%c0_255, %c0_256] : memref<1x128xf32, #tpu.memory_space<vmem>>, vector<1x128xf32>
    %248 = vector.broadcast %247 : vector<1x128xf32> to vector<5x128xf32>
    %249 = arith.addf %246, %248 : vector<5x128xf32>
    %cst_257 = arith.constant 0.000000e+00 : f32
    %250 = vector.broadcast %cst_257 : f32 to vector<5x128xf32>
    %251 = arith.maximumf %249, %250 : vector<5x128xf32>
    %c0_258 = arith.constant 0 : index
    %c384_259 = arith.constant 384 : index
    %252 = vector.load %arg33[%c0_258, %c384_259] : memref<5x864xf32, #tpu.memory_space<vmem>>, vector<5x96xf32>
    %c0_260 = arith.constant 0 : index
    %c0_261 = arith.constant 0 : index
    %253 = vector.load %arg20[%c0_260, %c0_261] : memref<96x128xf32, #tpu.memory_space<vmem>>, vector<96x128xf32>
    %cst_262 = arith.constant dense<0.000000e+00> : vector<5x128xf32>
    %254 = tpu.matmul %252, %253, %cst_262 {dimension_numbers = #tpu.dot_dimension_numbers<[1], [0], [0], [1], [0, 0, 1, 1], [], []>} : vector<5x96xf32>, vector<96x128xf32>, vector<5x128xf32> -> vector<5x128xf32>
    %c0_263 = arith.constant 0 : index
    %c0_264 = arith.constant 0 : index
    %255 = vector.load %arg21[%c0_263, %c0_264] : memref<1x128xf32, #tpu.memory_space<vmem>>, vector<1x128xf32>
    %256 = vector.broadcast %255 : vector<1x128xf32> to vector<5x128xf32>
    %257 = arith.addf %254, %256 : vector<5x128xf32>
    %cst_265 = arith.constant 0.000000e+00 : f32
    %258 = vector.broadcast %cst_265 : f32 to vector<16x128xf32>
    %c0_266 = arith.constant 0 : index
    %c0_267 = arith.constant 0 : index
    %259 = vector.load %arg34[%c0_266, %c0_267] : memref<16x128xf32, #tpu.memory_space<vmem>>, vector<16x128xf32>
    tpu.vector_store %arg34[%c0_266, %c0_267], %258 {strides = array<i32>} : memref<16x128xf32, #tpu.memory_space<vmem>>, vector<16x128xf32>,
    %260 = vector.extract_strided_slice %251 {offsets = [0, 0], sizes = [2, 128], strides = [1, 1]} : vector<5x128xf32> to vector<2x128xf32>
    %c5_268 = arith.constant 5 : index
    %c0_269 = arith.constant 0 : index
    %261 = vector.load %arg34[%c5_268, %c0_269] : memref<16x128xf32, #tpu.memory_space<vmem>>, vector<2x128xf32>
    tpu.vector_store %arg34[%c5_268, %c0_269], %260 {strides = array<i32>} : memref<16x128xf32, #tpu.memory_space<vmem>>, vector<2x128xf32>,
    %262 = vector.extract_strided_slice %251 {offsets = [3, 0], sizes = [2, 128], strides = [1, 1]} : vector<5x128xf32> to vector<2x128xf32>
    %c9_270 = arith.constant 9 : index
    %c0_271 = arith.constant 0 : index
    %263 = vector.load %arg34[%c9_270, %c0_271] : memref<16x128xf32, #tpu.memory_space<vmem>>, vector<2x128xf32>
    tpu.vector_store %arg34[%c9_270, %c0_271], %262 {strides = array<i32>} : memref<16x128xf32, #tpu.memory_space<vmem>>, vector<2x128xf32>,
    %c0_272 = arith.constant 0 : index
    %c0_273 = arith.constant 0 : index
    %264 = vector.load %arg34[%c0_272, %c0_273] : memref<16x128xf32, #tpu.memory_space<vmem>>, vector<6x128xf32>
    %c0_274 = arith.constant 0 : index
    %c0_275 = arith.constant 0 : index
    %265 = vector.load %arg35[%c0_274, %c0_275] : memref<6x1152xf32, #tpu.memory_space<vmem>>, vector<6x128xf32>
    tpu.vector_store %arg35[%c0_274, %c0_275], %264 {strides = array<i32>} : memref<6x1152xf32, #tpu.memory_space<vmem>>, vector<6x128xf32>,
    %c1_276 = arith.constant 1 : index
    %c0_277 = arith.constant 0 : index
    %266 = vector.load %arg34[%c1_276, %c0_277] : memref<16x128xf32, #tpu.memory_space<vmem>>, vector<6x128xf32>
    %c0_278 = arith.constant 0 : index
    %c128_279 = arith.constant 128 : index
    %267 = vector.load %arg35[%c0_278, %c128_279] : memref<6x1152xf32, #tpu.memory_space<vmem>>, vector<6x128xf32>
    tpu.vector_store %arg35[%c0_278, %c128_279], %266 {strides = array<i32>} : memref<6x1152xf32, #tpu.memory_space<vmem>>, vector<6x128xf32>,
    %c2_280 = arith.constant 2 : index
    %c0_281 = arith.constant 0 : index
    %268 = vector.load %arg34[%c2_280, %c0_281] : memref<16x128xf32, #tpu.memory_space<vmem>>, vector<6x128xf32>
    %c0_282 = arith.constant 0 : index
    %c256_283 = arith.constant 256 : index
    %269 = vector.load %arg35[%c0_282, %c256_283] : memref<6x1152xf32, #tpu.memory_space<vmem>>, vector<6x128xf32>
    tpu.vector_store %arg35[%c0_282, %c256_283], %268 {strides = array<i32>} : memref<6x1152xf32, #tpu.memory_space<vmem>>, vector<6x128xf32>,
    %c4_284 = arith.constant 4 : index
    %c0_285 = arith.constant 0 : index
    %270 = vector.load %arg34[%c4_284, %c0_285] : memref<16x128xf32, #tpu.memory_space<vmem>>, vector<6x128xf32>
    %c0_286 = arith.constant 0 : index
    %c384_287 = arith.constant 384 : index
    %271 = vector.load %arg35[%c0_286, %c384_287] : memref<6x1152xf32, #tpu.memory_space<vmem>>, vector<6x128xf32>
    tpu.vector_store %arg35[%c0_286, %c384_287], %270 {strides = array<i32>} : memref<6x1152xf32, #tpu.memory_space<vmem>>, vector<6x128xf32>,
    %c5_288 = arith.constant 5 : index
    %c0_289 = arith.constant 0 : index
    %272 = vector.load %arg34[%c5_288, %c0_289] : memref<16x128xf32, #tpu.memory_space<vmem>>, vector<6x128xf32>
    %c0_290 = arith.constant 0 : index
    %c512_291 = arith.constant 512 : index
    %273 = vector.load %arg35[%c0_290, %c512_291] : memref<6x1152xf32, #tpu.memory_space<vmem>>, vector<6x128xf32>
    tpu.vector_store %arg35[%c0_290, %c512_291], %272 {strides = array<i32>} : memref<6x1152xf32, #tpu.memory_space<vmem>>, vector<6x128xf32>,
    %c6_292 = arith.constant 6 : index
    %c0_293 = arith.constant 0 : index
    %274 = vector.load %arg34[%c6_292, %c0_293] : memref<16x128xf32, #tpu.memory_space<vmem>>, vector<6x128xf32>
    %c0_294 = arith.constant 0 : index
    %c640 = arith.constant 640 : index
    %275 = vector.load %arg35[%c0_294, %c640] : memref<6x1152xf32, #tpu.memory_space<vmem>>, vector<6x128xf32>
    tpu.vector_store %arg35[%c0_294, %c640], %274 {strides = array<i32>} : memref<6x1152xf32, #tpu.memory_space<vmem>>, vector<6x128xf32>,
    %c8_295 = arith.constant 8 : index
    %c0_296 = arith.constant 0 : index
    %276 = vector.load %arg34[%c8_295, %c0_296] : memref<16x128xf32, #tpu.memory_space<vmem>>, vector<6x128xf32>
    %c0_297 = arith.constant 0 : index
    %c768_298 = arith.constant 768 : index
    %277 = vector.load %arg35[%c0_297, %c768_298] : memref<6x1152xf32, #tpu.memory_space<vmem>>, vector<6x128xf32>
    tpu.vector_store %arg35[%c0_297, %c768_298], %276 {strides = array<i32>} : memref<6x1152xf32, #tpu.memory_space<vmem>>, vector<6x128xf32>,
    %c9_299 = arith.constant 9 : index
    %c0_300 = arith.constant 0 : index
    %278 = vector.load %arg34[%c9_299, %c0_300] : memref<16x128xf32, #tpu.memory_space<vmem>>, vector<6x128xf32>
    %c0_301 = arith.constant 0 : index
    %c896 = arith.constant 896 : index
    %279 = vector.load %arg35[%c0_301, %c896] : memref<6x1152xf32, #tpu.memory_space<vmem>>, vector<6x128xf32>
    tpu.vector_store %arg35[%c0_301, %c896], %278 {strides = array<i32>} : memref<6x1152xf32, #tpu.memory_space<vmem>>, vector<6x128xf32>,
    %c10_302 = arith.constant 10 : index
    %c0_303 = arith.constant 0 : index
    %280 = vector.load %arg34[%c10_302, %c0_303] : memref<16x128xf32, #tpu.memory_space<vmem>>, vector<6x128xf32>
    %c0_304 = arith.constant 0 : index
    %c1024 = arith.constant 1024 : index
    %281 = vector.load %arg35[%c0_304, %c1024] : memref<6x1152xf32, #tpu.memory_space<vmem>>, vector<6x128xf32>
    tpu.vector_store %arg35[%c0_304, %c1024], %280 {strides = array<i32>} : memref<6x1152xf32, #tpu.memory_space<vmem>>, vector<6x128xf32>,
    %c0_305 = arith.constant 0 : index
    %c0_306 = arith.constant 0 : index
    %282 = vector.load %arg35[%c0_305, %c0_306] : memref<6x1152xf32, #tpu.memory_space<vmem>>, vector<6x1152xf32>
    %c0_307 = arith.constant 0 : index
    %c0_308 = arith.constant 0 : index
    %283 = vector.load %arg18[%c0_307, %c0_308] : memref<1152x128xf32, #tpu.memory_space<vmem>>, vector<1152x128xf32>
    %cst_309 = arith.constant dense<0.000000e+00> : vector<6x128xf32>
    %284 = tpu.matmul %282, %283, %cst_309 {dimension_numbers = #tpu.dot_dimension_numbers<[1], [0], [0], [1], [0, 0, 1, 1], [], []>} : vector<6x1152xf32>, vector<1152x128xf32>, vector<6x128xf32> -> vector<6x128xf32>
    %c0_310 = arith.constant 0 : index
    %c0_311 = arith.constant 0 : index
    %285 = vector.load %arg19[%c0_310, %c0_311] : memref<1x128xf32, #tpu.memory_space<vmem>>, vector<1x128xf32>
    %286 = vector.broadcast %285 : vector<1x128xf32> to vector<6x128xf32>
    %287 = arith.addf %284, %286 : vector<6x128xf32>
    %cst_312 = arith.constant 0.000000e+00 : f32
    %288 = vector.broadcast %cst_312 : f32 to vector<6x128xf32>
    %289 = arith.maximumf %287, %288 : vector<6x128xf32>
    %290 = vector.extract_strided_slice %289 {offsets = [0, 0], sizes = [2, 128], strides = [1, 1]} : vector<6x128xf32> to vector<2x128xf32>
    %291 = vector.extract_strided_slice %257 {offsets = [0, 0], sizes = [2, 128], strides = [1, 1]} : vector<5x128xf32> to vector<2x128xf32>
    %292 = arith.addf %290, %291 : vector<2x128xf32>
    %c0_313 = arith.constant 0 : index
    %c0_314 = arith.constant 0 : index
    %c0_315 = arith.constant 0 : index
    %293 = vector.load %arg22[%c0_313, %c0_314, %c0_315] : memref<1x4x128xf32, #tpu.memory_space<vmem>>, vector<1x2x128xf32>
    %294 = vector.shape_cast %293 : vector<1x2x128xf32> to vector<2x128xf32>
    %295 = vector.shape_cast %292 : vector<2x128xf32> to vector<1x2x128xf32>
    tpu.vector_store %arg22[%c0_313, %c0_314, %c0_315], %295 {strides = array<i32>} : memref<1x4x128xf32, #tpu.memory_space<vmem>>, vector<1x2x128xf32>,
    %296 = vector.extract_strided_slice %289 {offsets = [4, 0], sizes = [2, 128], strides = [1, 1]} : vector<6x128xf32> to vector<2x128xf32>
    %297 = vector.extract_strided_slice %257 {offsets = [3, 0], sizes = [2, 128], strides = [1, 1]} : vector<5x128xf32> to vector<2x128xf32>
    %298 = arith.addf %296, %297 : vector<2x128xf32>
    %c0_316 = arith.constant 0 : index
    %c2_317 = arith.constant 2 : index
    %c0_318 = arith.constant 0 : index
    %299 = vector.load %arg22[%c0_316, %c2_317, %c0_318] : memref<1x4x128xf32, #tpu.memory_space<vmem>>, vector<1x2x128xf32>
    %300 = vector.shape_cast %299 : vector<1x2x128xf32> to vector<2x128xf32>
    %301 = vector.shape_cast %298 : vector<2x128xf32> to vector<1x2x128xf32>
    tpu.vector_store %arg22[%c0_316, %c2_317, %c0_318], %301 {strides = array<i32>} : memref<1x4x128xf32, #tpu.memory_space<vmem>>, vector<1x2x128xf32>,
    return
  }
  func.func @transform_0(%arg0: i32) -> (i32, i32, i32) {
    %c0_i32 = arith.constant 0 : i32
    %c0_i32_0 = arith.constant 0 : i32
    %c0_i32_1 = arith.constant 0 : i32
    return %arg0, %c0_i32, %c0_i32_0 : i32, i32, i32
  }
  func.func @transform_1(%arg0: i32) -> (i32, i32) {
    %c0_i32 = arith.constant 0 : i32
    %c0_i32_0 = arith.constant 0 : i32
    %c0_i32_1 = arith.constant 0 : i32
    return %c0_i32, %c0_i32_0 : i32, i32
  }
  func.func @transform_2(%arg0: i32) -> (i32, i32) {
    %c0_i32 = arith.constant 0 : i32
    %c0_i32_0 = arith.constant 0 : i32
    %c0_i32_1 = arith.constant 0 : i32
    return %c0_i32, %c0_i32_0 : i32, i32
  }
  func.func @transform_3(%arg0: i32) -> (i32, i32) {
    %c0_i32 = arith.constant 0 : i32
    %c0_i32_0 = arith.constant 0 : i32
    %c0_i32_1 = arith.constant 0 : i32
    return %c0_i32, %c0_i32_0 : i32, i32
  }
  func.func @transform_4(%arg0: i32) -> (i32, i32) {
    %c0_i32 = arith.constant 0 : i32
    %c0_i32_0 = arith.constant 0 : i32
    %c0_i32_1 = arith.constant 0 : i32
    return %c0_i32, %c0_i32_0 : i32, i32
  }
  func.func @transform_5(%arg0: i32) -> (i32, i32) {
    %c0_i32 = arith.constant 0 : i32
    %c0_i32_0 = arith.constant 0 : i32
    %c0_i32_1 = arith.constant 0 : i32
    return %c0_i32, %c0_i32_0 : i32, i32
  }
  func.func @transform_6(%arg0: i32) -> (i32, i32) {
    %c0_i32 = arith.constant 0 : i32
    %c0_i32_0 = arith.constant 0 : i32
    %c0_i32_1 = arith.constant 0 : i32
    return %c0_i32, %c0_i32_0 : i32, i32
  }
  func.func @transform_7(%arg0: i32) -> (i32, i32) {
    %c0_i32 = arith.constant 0 : i32
    %c0_i32_0 = arith.constant 0 : i32
    %c0_i32_1 = arith.constant 0 : i32
    return %c0_i32, %c0_i32_0 : i32, i32
  }
  func.func @transform_8(%arg0: i32) -> (i32, i32) {
    %c0_i32 = arith.constant 0 : i32
    %c0_i32_0 = arith.constant 0 : i32
    %c0_i32_1 = arith.constant 0 : i32
    return %c0_i32, %c0_i32_0 : i32, i32
  }
  func.func @transform_9(%arg0: i32) -> (i32, i32) {
    %c0_i32 = arith.constant 0 : i32
    %c0_i32_0 = arith.constant 0 : i32
    %c0_i32_1 = arith.constant 0 : i32
    return %c0_i32, %c0_i32_0 : i32, i32
  }
  func.func @transform_10(%arg0: i32) -> (i32, i32) {
    %c0_i32 = arith.constant 0 : i32
    %c0_i32_0 = arith.constant 0 : i32
    %c0_i32_1 = arith.constant 0 : i32
    return %c0_i32, %c0_i32_0 : i32, i32
  }
  func.func @transform_11(%arg0: i32) -> (i32, i32) {
    %c0_i32 = arith.constant 0 : i32
    %c0_i32_0 = arith.constant 0 : i32
    %c0_i32_1 = arith.constant 0 : i32
    return %c0_i32, %c0_i32_0 : i32, i32
  }
  func.func @transform_12(%arg0: i32) -> (i32, i32) {
    %c0_i32 = arith.constant 0 : i32
    %c0_i32_0 = arith.constant 0 : i32
    %c0_i32_1 = arith.constant 0 : i32
    return %c0_i32, %c0_i32_0 : i32, i32
  }
  func.func @transform_13(%arg0: i32) -> (i32, i32) {
    %c0_i32 = arith.constant 0 : i32
    %c0_i32_0 = arith.constant 0 : i32
    %c0_i32_1 = arith.constant 0 : i32
    return %c0_i32, %c0_i32_0 : i32, i32
  }
  func.func @transform_14(%arg0: i32) -> (i32, i32) {
    %c0_i32 = arith.constant 0 : i32
    %c0_i32_0 = arith.constant 0 : i32
    %c0_i32_1 = arith.constant 0 : i32
    return %c0_i32, %c0_i32_0 : i32, i32
  }
  func.func @transform_15(%arg0: i32) -> (i32, i32) {
    %c0_i32 = arith.constant 0 : i32
    %c0_i32_0 = arith.constant 0 : i32
    %c0_i32_1 = arith.constant 0 : i32
    return %c0_i32, %c0_i32_0 : i32, i32
  }
  func.func @transform_16(%arg0: i32) -> (i32, i32) {
    %c0_i32 = arith.constant 0 : i32
    %c0_i32_0 = arith.constant 0 : i32
    %c0_i32_1 = arith.constant 0 : i32
    return %c0_i32, %c0_i32_0 : i32, i32
  }
  func.func @transform_17(%arg0: i32) -> (i32, i32) {
    %c0_i32 = arith.constant 0 : i32
    %c0_i32_0 = arith.constant 0 : i32
    %c0_i32_1 = arith.constant 0 : i32
    return %c0_i32, %c0_i32_0 : i32, i32
  }
  func.func @transform_18(%arg0: i32) -> (i32, i32) {
    %c0_i32 = arith.constant 0 : i32
    %c0_i32_0 = arith.constant 0 : i32
    %c0_i32_1 = arith.constant 0 : i32
    return %c0_i32, %c0_i32_0 : i32, i32
  }
  func.func @transform_19(%arg0: i32) -> (i32, i32) {
    %c0_i32 = arith.constant 0 : i32
    %c0_i32_0 = arith.constant 0 : i32
    %c0_i32_1 = arith.constant 0 : i32
    return %c0_i32, %c0_i32_0 : i32, i32
  }
  func.func @transform_20(%arg0: i32) -> (i32, i32) {
    %c0_i32 = arith.constant 0 : i32
    %c0_i32_0 = arith.constant 0 : i32
    %c0_i32_1 = arith.constant 0 : i32
    return %c0_i32, %c0_i32_0 : i32, i32
  }
  func.func @transform_21(%arg0: i32) -> (i32, i32, i32) {
    %c0_i32 = arith.constant 0 : i32
    %c0_i32_0 = arith.constant 0 : i32
    %c0_i32_1 = arith.constant 0 : i32
    return %arg0, %c0_i32, %c0_i32_0 : i32, i32, i32
  }
}

</mosaic_0001>

<bundles_post_ra>
// kernel: analysis_network_forward.1
= control target key start
LH: loop header
LB: loop body
LE: loop exit
PB: predicated region body
PF: predicated region fallthrough
CT: control target
= control target key end

     0   :  { %s9071_s0 = inlined_call_operand.vmem [shape: f32[2,324,3], index: 0, kind: input, shape index: {}]   ;;  %s9072_s1 = inlined_call_operand.hbm [shape: f32[27,64], index: 1, kind: input, shape index: {}]   ;;  %s9073_s2 = inlined_call_operand.vmem [shape: f32[1,64], index: 2, kind: input, shape index: {}]   ;;  %s9074_s3 = inlined_call_operand.hbm [shape: f32[576,64], index: 3, kind: input, shape index: {}]   ;;  %s9075_s4 = inlined_call_operand.vmem [shape: f32[1,64], index: 4, kind: input, shape index: {}]   ;;  %s9076_s5 = inlined_call_operand.vmem [shape: f32[3,64], index: 5, kind: input, shape index: {}]   ;;  %s9077_s6 = inlined_call_operand.vmem [shape: f32[1,64], index: 6, kind: input, shape index: {}]   ;;  %s9078_s7 = inlined_call_operand.vmem [shape: f32[100,64], index: 7, kind: input, shape index: {}]   ;;  %s9079_s8 = inlined_call_operand.hbm [shape: f32[576,96], index: 8, kind: input, shape index: {}]   ;;  %s9080_s9 = inlined_call_operand.vmem [shape: f32[1,96], index: 9, kind: input, shape index: {}]   ;;  %s9081_s10 = inlined_call_operand.vmem [shape: f32[864,96], index: 10, kind: input, shape index: {}]   ;;  %s9082_s11 = inlined_call_operand.vmem [shape: f32[1,96], index: 11, kind: input, shape index: {}]   ;;  %s9083_s12 = inlined_call_operand.vmem [shape: f32[64,96], index: 12, kind: input, shape index: {}]   ;;  %s9084_s13 = inlined_call_operand.vmem [shape: f32[1,96], index: 13, kind: input, shape index: {}]   ;;  %s9085_s14 = inlined_call_operand.hbm [shape: f32[36,16], index: 14, kind: input, shape index: {}]   ;;  %s9086_s15 = inlined_call_operand.hbm [shape: f32[864,128], index: 15, kind: input, shape index: {}]   ;;  %s9087_s16 = inlined_call_operand.vmem [shape: f32[1,128], index: 16, kind: input, shape index: {}]   ;;  %s9088_s17 = inlined_call_operand.vmem [shape: f32[1152,128], index: 17, kind: input, shape index: {}]   ;;  %s9089_s18 = inlined_call_operand.vmem [shape: f32[1,128], index: 18, kind: input, shape index: {}]   ;;  %s9090_s19 = inlined_call_operand.hbm [shape: f32[96,128], index: 19, kind: input, shape index: {}]   ;;  %s9091_s20 = inlined_call_operand.vmem [shape: f32[1,128], index: 20, kind: input, shape index: {}]   ;;  %s9092_s21 = inlined_call_operand.hbm [shape: f32[2,4,128], index: 21, kind: output, shape index: {}]  }
   0x1   :  { %9106 = sst [smem:[#allocation39_spill]] %s9071_s0 }
   0x2   :  { %9107 = sst [smem:[#allocation40_spill]] %s9072_s1 }
   0x3   :  { %9108 = sst [smem:[#allocation41_spill]] %s9073_s2 }
   0x4   :  { %9109 = sst [smem:[#allocation42_spill]] %s9074_s3 }
   0x5   :  { %9110 = sst [smem:[#allocation43_spill]] %s9075_s4 }
   0x6   :  { %9111 = sst [smem:[#allocation44_spill]] %s9076_s5 }
   0x7   :  { %9112 = sst [smem:[#allocation45_spill]] %s9085_s14 }
   0x8   :  { %9113 = sst [smem:[#allocation46_spill]] %s9092_s21 }
   0x9   :  { %26 = vsyncpa [#allocation16], 0 }
   0xa   :  { %27 = vsyncpa [#allocation19], 0 }
   0xb   :  { %28 = vsyncpa [#allocation22], 0 }
   0xc   :  { %29 = vsyncpa [#allocation25], 0 }
   0xd   :  { %30 = vsyncpa [#allocation17], 0 }
   0xe   :  { %32 = vsyncpa [#allocation17 + $0x1], 0  ;;  %s6933_s2 = smov 0   ;;  %s6935_s25 = smov 0  }
   0xf   :  { %s6937_s26 = smov 0   ;;  %s6939_s27 = smov 0  }
  0x10 LB: > { %9114 = sst [smem:[#allocation32_spill]] %s6784_s2  ;;  %s6954_s3 = sadd.s32 4294967295, %s6796_s27   ;;  %s6796_s27 = sphi %s6939_s27, %s9151_s27   ;;  %s6792_s26 = sphi %s6937_s26, %s9156_s26   ;;  %s6788_s25 = sphi %s6935_s25, %s9155_s25   ;;  %s6784_s2 = sphi %s6933_s2, %s9154_s2  }
  0x11   : > { %9115 = sst [smem:[#allocation33_spill]] %s6792_s26  ;;  %s5300_s28 = sadd.s32 4294967294, %s6796_s27  }
  0x12   : > { %9116 = sst [smem:[#allocation34_spill]] %s6796_s27  ;;  %s6958_s29 = sadd.s32 1, %s6796_s27  }
  0x13   : > { %9117 = sst [smem:[#allocation35_spill]] %s6958_s29  ;;  %s491_s0 = sadd.s32 1, %s6792_s26 }
  0x14   : > { %s488_s4 = ssub.s32 %s6796_s27, %s6958_s29  ;;  %p501_p0 = scmp.ne.s32.totalorder %s6792_s26, %s6788_s25 }
  0x15   : > { %p489_p1 = scmp.eq.s32.totalorder %s488_s4, 0  ;;  %p502_p2 = scmp.eq.s32.totalorder %s6954_s3, 1 }
  0x16   : > { %p507_p3 = scmp.ne.s32.totalorder %s6788_s25, %s6784_s2  ;;  %p508_p4 = scmp.eq.s32.totalorder %s5300_s28, 1 }
  0x17   : > { %s6969_s30 = scalar_select %p489_p1, %s6792_s26, %s491_s0  }
  0x18   : > { %p6971_p5 = por %p502_p2, %p501_p0  ;;  %p6975_p6 = por %p508_p4, %p507_p3 }
  0x19   : > { %9118 = sst [smem:[#allocation36_spill]] %s6969_s30  ;;  %p5301_p7 = scmp.ge.s32.totalorder %s6796_s27, 1 }
  0x1a   : > { %s9119_s5 = scalar_select %p6971_p5, 1, 0 }
  0x1b   : > { %s9121_s22 = scalar_select %p6975_p6, 1, 0 }
  0x1c   : > { %9120 = sst [smem:[#allocation37_spill]] %s9119_s5  ;;  %p515_p8 = scmp.lt.s32.totalorder %s6796_s27, 3 }
  0x1d   : > { %9122 = sst [smem:[#allocation38_spill]] %s9121_s22  ;;  %p9103_p9 = scmp.eq.s32.totalorder %s6954_s3, 0 }
  0x1e   : > { %p6982_p10 = pnand %p5301_p7, %p515_p8  ;;  %s6798_s1 = smov [#allocation18]  }
  0x1f   : > { %s543_s24 = sshll.u32 %s6798_s1, 4  ;;  %s6799_s0 = smov [#allocation21]   ;;  %s544_s24 = int_to_ptr.vmem [resolvable:$true] %s543_s24 }
  0x20   : > { %p6443_p11 = pneg %p6982_p10  ;;  %s596_s4 = sshll.u32 %s6799_s0, 4  ;;  %s597_s4 = int_to_ptr.vmem [resolvable:$true] %s596_s4 }
  0x21   : > { %s6800_s30 = smov [#allocation15]   ;;  %s6575_s22 = scalar_lea.vmem %s544_s24, 9216 }
  0x22   : > { %p6990_p12 = pnand %p9103_p9, %p6443_p11  ;;  %s527_s26 = sshll.u32 %s6800_s30, 4  ;;  %s528_s26 = int_to_ptr.vmem [resolvable:$true] %s527_s26 }
  0x23   : > { %p6576_p0 = scmp.ne.s32.totalorder %s544_s24, %s6575_s22  ;;  %p6583_p3 = scmp.lt.s32.totalorder %s544_s24, %s544_s24 }
  0x24   : > { %p6996_p13 = pneg %p6990_p12  ;;  %p6584_p4 = scmp.lt.s32.totalorder %s6575_s22, %s6575_s22 }
  0x26   : > { %p6578_p1 = pnand %p6576_p0, %p6996_p13  ;;  %p6585_p7 = por %p6584_p4, %p6583_p3 }
  0x28   : > { %p6579_p2 = pneg %p6578_p1 }
  0x2a   : > { %p6586_p8 = pnand %p6585_p7, %p6579_p2 }
  0x2c   : > { %6589 = shalt.err (!%p6586_p8)
}
  0x2d   : > { %s6801_s1 = smov 128   ;;  %s6802_s30 = smov 8  }
  0x2e   : > { %s9126_s27 = sld [smem:[#allocation42_spill]]  ;;  %s6601_s21 = scalar_lea.vmem %s597_s4, 640 }
  0x2f   : > { %p6602_p11 = scmp.ne.s32.totalorder %s597_s4, %s6601_s21  ;;  %p6609_p3 = scmp.lt.s32.totalorder %s597_s4, %s597_s4 }
  0x30   : > { %p6610_p2 = scmp.lt.s32.totalorder %s6601_s21, %s6601_s21 }
  0x31   : > { %p6604_p0 = pnand %p6602_p11, %p6996_p13 }
  0x32   : > { %p6611_p4 = por %p6610_p2, %p6609_p3 }
  0x33   : > { %p6605_p1 = pneg %p6604_p0 }
  0x34   : > { %6449 = dma.hbm_to_vmem [thread:$0]  (!%p6990_p12), %s9126_s27, 9216, %s544_s24, [#allocation19], %s6801_s1, %s6801_s1, %s6802_s30  }
  0x35   : > { %p6612_p7 = pnand %p6611_p4, %p6605_p1 }
  0x37   : > { %6615 = shalt.err (!%p6612_p7)
}
  0x38   : > { %s9127_s14 = sld [smem:[#allocation45_spill]]  ;;  %s6627_s2 = scalar_lea.vmem %s528_s26, 512 }
  0x39   : > { %p6628_p8 = scmp.ne.s32.totalorder %s528_s26, %s6627_s2  ;;  %p6635_p9 = scmp.lt.s32.totalorder %s528_s26, %s528_s26 }
  0x3a   : > { %p6636_p3 = scmp.lt.s32.totalorder %s6627_s2, %s6627_s2 }
  0x3b   : > { %p6630_p11 = pnand %p6628_p8, %p6996_p13 }
  0x3c   : > { %p6637_p1 = por %p6636_p3, %p6635_p9 }
  0x3d   : > { %p6631_p0 = pneg %p6630_p11 }
  0x3e   : > { %6455 = dma.hbm_to_vmem [thread:$0]  (!%p6990_p12), %s9127_s14, 640, %s597_s4, [#allocation22], %s6801_s1, %s6801_s1, %s6802_s30  }
  0x3f   : > { %p6638_p2 = pnand %p6637_p1, %p6631_p0 }
  0x41   : > { %6641 = shalt.err (!%p6638_p2)
}
  0x42   : > { %s9128_s5 = sld [smem:[#allocation40_spill]]  ;;  %s6803_s24 = smov [#allocation20]  }
  0x43   : > { %s568_s4 = sshll.u32 %s6803_s24, 4  ;;  %s6804_s0 = smov [#allocation23]   ;;  %s569_s4 = int_to_ptr.vmem [resolvable:$true] %s568_s4 }
  0x44   : > { %s609_s22 = sshll.u32 %s6804_s0, 4  ;;  %s6653_s14 = scalar_lea.vmem %s569_s4, 9216  ;;  %s610_s22 = int_to_ptr.vmem [resolvable:$true] %s609_s22 }
  0x45   : > { %p6654_p4 = scmp.ne.s32.totalorder %s569_s4, %s6653_s14  ;;  %p6661_p8 = scmp.lt.s32.totalorder %s569_s4, %s569_s4 }
  0x46   : > { %p6662_p11 = scmp.lt.s32.totalorder %s6653_s14, %s6653_s14 }
  0x47   : > { %p6656_p9 = pnand %p6654_p4, %p6996_p13 }
  0x48   : > { %6446 = dma.hbm_to_vmem [thread:$0]  (!%p6990_p12), %s9128_s5, 512, %s528_s26, [#allocation16], %s6801_s1, %s6801_s1, %s6802_s30  }
  0x49   : > { %p6657_p7 = pneg %p6656_p9  ;;  %p6663_p0 = por %p6662_p11, %p6661_p8 }
  0x4b   : > { %p6664_p3 = pnand %p6663_p0, %p6657_p7 }
  0x4d   : > { %6667 = shalt.err (!%p6664_p3)
}
  0x4e   : > { %6452 = dma.hbm_to_vmem [thread:$0]  (!%p6990_p12), %s9079_s8, 9216, %s569_s4, [#allocation19], %s6801_s1, %s6801_s1, %s6802_s30  }
  0x4f   : > { %s6679_s21 = scalar_lea.vmem %s610_s22, 13824  ;;  %p6687_p9 = scmp.lt.s32.totalorder %s610_s22, %s610_s22 }
  0x50   : > { %p6680_p1 = scmp.ne.s32.totalorder %s610_s22, %s6679_s21  ;;  %p6688_p8 = scmp.lt.s32.totalorder %s6679_s21, %s6679_s21 }
  0x52   : > { %p6682_p2 = pnand %p6680_p1, %p6996_p13  ;;  %p6689_p7 = por %p6688_p8, %p6687_p9 }
  0x54   : > { %p6683_p4 = pneg %p6682_p2 }
  0x56   : > { %p6690_p11 = pnand %p6689_p7, %p6683_p4 }
  0x58   : > { %6693 = shalt.err (!%p6690_p11)
}
  0x59   : > { %6458 = dma.hbm_to_vmem [thread:$0]  (!%p6990_p12), %s9086_s15, 13824, %s610_s22, [#allocation22], %s6801_s1, %s6801_s1, %s6802_s30  }
  0x5a   : > { %s6805_s5 = smov [#allocation24]  }
  0x5b   : > { %s631_s24 = sshll.u32 %s6805_s5, 4  ;;  %s632_s24 = int_to_ptr.vmem [resolvable:$true] %s631_s24 }
  0x5c   : > { %s6705_s4 = scalar_lea.vmem %s632_s24, 1536  ;;  %p6713_p2 = scmp.lt.s32.totalorder %s632_s24, %s632_s24 }
  0x5d   : > { %p6706_p0 = scmp.ne.s32.totalorder %s632_s24, %s6705_s4  ;;  %p6714_p4 = scmp.lt.s32.totalorder %s6705_s4, %s6705_s4 }
  0x5f   : > { %p6708_p3 = pnand %p6706_p0, %p6996_p13  ;;  %p6715_p9 = por %p6714_p4, %p6713_p2 }
  0x61   : > { %p6709_p1 = pneg %p6708_p3 }
  0x63   : > { %p6716_p8 = pnand %p6715_p9, %p6709_p1 }
  0x65   : > { %6719 = shalt.err (!%p6716_p8)
}
  0x66   : > { %6461 = dma.hbm_to_vmem [thread:$0]  (!%p6990_p12), %s9090_s19, 1536, %s632_s24, [#allocation25], %s6801_s1, %s6801_s1, %s6802_s30  }
  0x67   : > { %658 = sbr.rel (%p6982_p10) target bundleno = 2849 (0xb21), region = 104  ;;  %p9129_p13 = scmp.eq.s32.totalorder (!%p6982_p10), %s6954_s3, 0 }
  0x6c   : > { %6763 = dma.done.wait (%p9129_p13), [#allocation16], 512   ;;  %p9130_p7 = pmov %p9129_p13 }
  0x6e   : > { %6765 = vsyncadd (%p9130_p7), [#allocation16], 4294966784  ;;  %p9131_p11 = pmov %p9130_p7 }
  0x6f   : > { %p9132_p0 = pmov %p9130_p7 }
  0x70   : > { %6767 = dma.done.wait (%p9131_p11), [#allocation19], 18432  }
  0x71   : > { %6769 = vsyncadd (%p9132_p0), [#allocation19], 4294948864  ;;  %p9133_p3 = pmov %p9132_p0 }
  0x72   : > { %p9134_p12 = pmov %p9132_p0 }
  0x73   : > { %6771 = dma.done.wait (%p9133_p3), [#allocation22], 14464  }
  0x74   : > { %6773 = vsyncadd (%p9134_p12), [#allocation22], 4294952832  ;;  %p9135_p10 = pmov %p9132_p0 }
  0x75   : > { %p9136_p1 = pmov %p9132_p0 }
  0x76   : > { %6775 = dma.done.wait (%p9135_p10), [#allocation25], 1536  }
  0x77   : > { %6777 = vsyncadd (%p9136_p1), [#allocation25], 4294965760  ;;  %p738_p2 = scmp.lt.s32.totalorder %s6954_s3, 1  ;;  %s9137_s30 = sld [smem:[#allocation39_spill]]  ;;  %v6810_v6 = vmov 0.0   ;;  %vm1259_vm0 = vcmask 1042432  }
  0x78   : > { %s6806_s2 = smov 9   ;;  %s6807_s21 = smov 3   ;;  %6096 = vmatprep.subr.mxu0 %v6810_v6  ;;  %4627 = vst [vmem:[#allocation13] sm:$0xff] %v6810_v6  ;;  %4628 = vst [vmem:[#allocation13 + $0x8] sm:$0xff] %v6810_v6  ;;  %6408 = vmatprep.subr.mxu1 %v6810_v6  ;;  %v1223_v7 = vld [vmem:[#allocation15 + $0x18] sm:$0x7] }
  0x79   : > { %s739_s29 = scalar_select %p738_p2, %s6954_s3, 1  ;;  %6097 = vmatpush3.msk.msra.mxu0 %vm1259_vm0, %v1223_v7  ;;  %6412 = vmatpush3.msk.msra.mxu1 %vm1259_vm0, %v1223_v7  ;;  %v1222_v9 = vld [vmem:[#allocation15 + $0x10] sm:$0xff]  ;;  %vm6813_vm1 = vmmov 0   ;;  %vm752_vm2 = vcmask 23552   ;;  %v1221_v12 = vld [vmem:[#allocation15 + $0x8] sm:$0xff]  ;;  %v1220_v17 = vld [vmem:[#allocation15] sm:$0xff] }
  0x7a   : > { %s6808_s14 = smov 12   ;;  %s6809_s27 = smov 6   ;;  %6098 = vmatprep.subr.mxu0 %v6810_v6  ;;  %6409 = vmatprep.subr.mxu1 %v6810_v6  ;;  %vm808_vm3 = vcmask 48152   ;;  %vm761_vm4 = vcmask 22528   ;;  %vm864_vm5 = vcmask 72752   ;;  %vm920_vm6 = vcmask 97352  }
  0x7b   : > { %s6416_s23 = smul.u32 328, %s739_s29  ;;  %s6811_s5 = smov 15   ;;  %6099 = vmatpush3.msra.mxu0 %v1222_v9  ;;  %6104 = vmatprep.mubr.msk.f32.mxu0 %vm6813_vm1, %v6810_v6  ;;  %vm976_vm7 = vcmask 121952   ;;  %vm1032_vm8 = vcmask 146552   ;;  %vm1088_vm9 = vcmask 171152   ;;  %vm1144_vm10 = vcmask 195752  }
  0x7c   : > { %s6812_s24 = smov 18   ;;  %6100 = vmatprep.subr.mxu0 %v6810_v6  ;;  %6413 = vmatpush3.msra.mxu1 %v1222_v9  ;;  %s6814_s4 = smov 21   ;;  %vm1200_vm11 = vcmask 220352   ;;  %vm1231_vm12 = vcmask 220160   ;;  %vm1567_vm13 = vcmask 523264   ;;  %vm817_vm14 = vcmask 47128  }
  0x7d   : > { %s7083_s26 = scalar_lea.vmem %s9137_s30, %s6416_s23  ;;  %6410 = vmatprep.subr.mxu1 %v6810_v6  ;;  %6128 = vmatprep.mubr.msk.f32.mxu1 %vm6813_vm1, %v6810_v6  ;;  %s6815_s0 = smov 24   ;;  %1569 = vst.msk [vmem:[#allocation5 + $0x8] sm:$0xff] %vm1567_vm13, %v6810_v6  ;;  %1570 = vst.msk [vmem:[#allocation5 + $0x10] sm:$0xff] %vm1567_vm13, %v6810_v6  ;;  %vm873_vm15 = vcmask 71728  }
  0x7e   : > { %v875_v0 = vld [vmem:[%s7083_s26 + $0xa2] sm:$0xff]  ;;  %v763_v1 = vld [vmem:[%s7083_s26 + $0x51] sm:$0xff]  ;;  %v764_v5 = vld [vmem:[%s7083_s26 + $0x59] sm:$0xff]  ;;  %6101 = vmatpush3.msra.mxu0 %v1221_v12  ;;  %6414 = vmatpush3.msra.mxu1 %v1221_v12  ;;  %1568 = vst.msk [vmem:[#allocation5] sm:$0xff] %vm1567_vm13, %v6810_v6  ;;  %s6816_s22 = smov 64   ;;  %s9138_s28 = sld [smem:[#allocation41_spill]] }
  0x7f   : > { %893 = vrot.lane.b32.xlu1 %v875_v0, %s6806_s2  ;;  %781 = vrot.lane.b32.xlu0 %v763_v1, %s6807_s21  ;;  %v931_v2 = vld [vmem:[%s7083_s26 + $0xf3] sm:$0xff]  ;;  %v819_v3 = vld [vmem:[%s7083_s26 + $0x1] sm:$0xff]  ;;  %1571 = vst.msk [vmem:[#allocation5 + $0x18] sm:$0xff] %vm1567_vm13, %v6810_v6  ;;  %1572 = vst.msk [vmem:[#allocation5 + $0x20] sm:$0xff] %vm1567_vm13, %v6810_v6  ;;  %s9141_s23 = sld [smem:[#allocation43_spill]] }
  0x80   : > { %v987_v4 = vld [vmem:[%s7083_s26 + $0xa3] sm:$0xff]  ;;  %v1099_v10 = vld [vmem:[%s7083_s26 + $0x5a] sm:$0xff]  ;;  %6102 = vmatprep.subr.mxu0 %v6810_v6  ;;  %6411 = vmatprep.subr.mxu1 %v6810_v6  ;;  %v988_v18 = vld [vmem:[%s7083_s26 + $0xab] sm:$0xff]  ;;  %1573 = vst.msk [vmem:[#allocation5 + $0x28] sm:$0xff] %vm1567_vm13, %v6810_v6  ;;  %s9147_s1 = sld [smem:[#allocation46_spill]] }
  0x81   : > { %v1043_v8 = vld [vmem:[%s7083_s26 + $0x9] sm:$0xff]  ;;  %v932_v14 = vld [vmem:[%s7083_s26 + $0xfb] sm:$0xff]  ;;  %6103 = vmatpush3.msra.mxu0 %v1220_v17  ;;  %6415 = vmatpush3.msra.mxu1 %v1220_v17  ;;  %v1044_v21 = vld [vmem:[%s7083_s26 + $0x11] sm:$0xff]  ;;  %1574 = vst.msk [vmem:[#allocation5 + $0x30] sm:$0xff] %vm1567_vm13, %v6810_v6 }
  0x82   : > { %v876_v11 = vld [vmem:[%s7083_s26 + $0xaa] sm:$0xff]  ;;  %v743_v15 = vld [vmem:[%s7083_s26] sm:$0xff]  ;;  %v746_v22 = vld [vmem:[%s7083_s26 + $0x18] sm:$0xff]  ;;  %1575 = vst.msk [vmem:[#allocation5 + $0x38] sm:$0xff] %vm1567_vm13, %v6810_v6 }
  0x83   : > { %949 = vrot.lane.b32.xlu1 %v931_v2, %s6808_s14  ;;  %837 = vrot.lane.b32.xlu0 %v819_v3, %s6809_s27  ;;  %v1155_v13 = vld [vmem:[%s7083_s26 + $0xa] sm:$0xff]  ;;  %753 = vst.msk [vmem:[#allocation4] sm:$0xff] %vm752_vm2, %v743_v15  ;;  %v765_v19 = vld [vmem:[%s7083_s26 + $0x61] sm:$0xff]  ;;  %756 = vst.msk [vmem:[#allocation4 + $0x18] sm:$0xff] %vm752_vm2, %v746_v22 }
  0x84   : > { %v744_v16 = vld [vmem:[%s7083_s26 + $0x8] sm:$0xff]  ;;  %v745_v20 = vld [vmem:[%s7083_s26 + $0x10] sm:$0xff]  ;;  %v1045_v29 = vld [vmem:[%s7083_s26 + $0x19] sm:$0xff]  ;;  %1576 = vst.msk [vmem:[#allocation5 + $0x40] sm:$0xff] %vm1567_vm13, %v6810_v6 }
  0x85   : > { %754 = vst.msk [vmem:[#allocation4 + $0x8] sm:$0xff] %vm752_vm2, %v744_v16  ;;  %755 = vst.msk [vmem:[#allocation4 + $0x10] sm:$0xff] %vm752_vm2, %v745_v20  ;;  %v1100_v23 = vld [vmem:[%s7083_s26 + $0x62] sm:$0xff]  ;;  %v877_v24 = vld [vmem:[%s7083_s26 + $0xb2] sm:$0xff] }
  0x86   : > { %v1156_v25 = vld [vmem:[%s7083_s26 + $0x12] sm:$0xff]  ;;  %v933_v26 = vld [vmem:[%s7083_s26 + $0x103] sm:$0xff]  ;;  %v878_v32 = vld [vmem:[%s7083_s26 + $0xba] sm:$0xff]  ;;  %1577 = vst.msk [vmem:[#allocation5 + $0x48] sm:$0xff] %vm1567_vm13, %v6810_v6 }
  0x87   : > { %1005 = vrot.lane.b32.xlu1 %v987_v4, %s6811_s5  ;;  %783 = vrot.lane.b32.xlu0 %v764_v5, %s6807_s21  ;;  %v989_v27 = vld [vmem:[%s7083_s26 + $0xb3] sm:$0xff]  ;;  %v766_v28 = vld [vmem:[%s7083_s26 + $0x69] sm:$0xff]  ;;  %1578 = vst.msk [vmem:[#allocation5 + $0x50] sm:$0xff] %vm1567_vm13, %v6810_v6  ;;  %1579 = vst.msk [vmem:[#allocation5 + $0x58] sm:$0xff] %vm1567_vm13, %v6810_v6 }
  0x88   : > { %v747_v30 = vld [vmem:[%s7083_s26 + $0x20] sm:$0xff]  ;;  %v1101_v31 = vld [vmem:[%s7083_s26 + $0x6a] sm:$0xff]  ;;  %v1102_v39 = vld [vmem:[%s7083_s26 + $0x72] sm:$0xff] }
  0x89   : > { %757 = vst.msk [vmem:[#allocation4 + $0x20] sm:$0xff] %vm752_vm2, %v747_v30  ;;  %v1157_v33 = vld [vmem:[%s7083_s26 + $0x1a] sm:$0xff]  ;;  %v934_v34 = vld [vmem:[%s7083_s26 + $0x10b] sm:$0xff]  ;;  %v879_v40 = vld [vmem:[%s7083_s26 + $0xc2] sm:$0xff] }
  0x8a   : > { %v990_v35 = vld [vmem:[%s7083_s26 + $0xbb] sm:$0xff]  ;;  %v767_v36 = vld [vmem:[%s7083_s26 + $0x71] sm:$0xff]  ;;  %v748_v38 = vld [vmem:[%s7083_s26 + $0x28] sm:$0xff] }
  0x8b   : > { %1061 = vrot.lane.b32.xlu1 %v1043_v8, %s6812_s24  ;;  %839 = vrot.lane.b32.xlu0 %v1043_v8, %s6809_s27  ;;  %v1046_v37 = vld [vmem:[%s7083_s26 + $0x21] sm:$0xff]  ;;  %758 = vst.msk [vmem:[#allocation4 + $0x28] sm:$0xff] %vm752_vm2, %v748_v38  ;;  %v935_v42 = vld [vmem:[%s7083_s26 + $0x113] sm:$0xff] }
  0x8c   : > { %v1158_v41 = vld [vmem:[%s7083_s26 + $0x22] sm:$0xff]  ;;  %v768_v44 = vld [vmem:[%s7083_s26 + $0x79] sm:$0xff]  ;;  %v749_v46 = vld [vmem:[%s7083_s26 + $0x30] sm:$0xff] }
  0x8d   : > { %v991_v43 = vld [vmem:[%s7083_s26 + $0xc3] sm:$0xff]  ;;  %759 = vst.msk [vmem:[#allocation4 + $0x30] sm:$0xff] %vm752_vm2, %v749_v46  ;;  %v1103_v47 = vld [vmem:[%s7083_s26 + $0x7a] sm:$0xff]  ;;  %v992_v51 = vld [vmem:[%s7083_s26 + $0xcb] sm:$0xff] }
  0x8e   : > { %v1047_v45 = vld [vmem:[%s7083_s26 + $0x29] sm:$0xff]  ;;  %v936_v50 = vld [vmem:[%s7083_s26 + $0x11b] sm:$0xff]  ;;  %v1048_v53 = vld [vmem:[%s7083_s26 + $0x31] sm:$0xff] }
  0x8f   : > { %1117 = vrot.lane.b32.xlu1 %v1099_v10, %s6814_s4  ;;  %895 = vrot.lane.b32.xlu0 %v876_v11, %s6806_s2  ;;  %v880_v48 = vld [vmem:[%s7083_s26 + $0xca] sm:$0xff]  ;;  %v769_v52 = vld [vmem:[%s7083_s26 + $0x81] sm:$0xff] }
  0x90   : > { %v1159_v49 = vld [vmem:[%s7083_s26 + $0x2a] sm:$0xff]  ;;  %v750_v54 = vld [vmem:[%s7083_s26 + $0x38] sm:$0xff]  ;;  %v1104_v55 = vld [vmem:[%s7083_s26 + $0x82] sm:$0xff] }
  0x91   : > { %760 = vst.msk [vmem:[#allocation4 + $0x38] sm:$0xff] %vm752_vm2, %v750_v54  ;;  %v881_v56 = vld [vmem:[%s7083_s26 + $0xd2] sm:$0xff]  ;;  %v937_v58 = vld [vmem:[%s7083_s26 + $0x123] sm:$0xff]  ;;  %v882_v63 = vld [vmem:[%s7083_s26 + $0xda] sm:$0xff]  ;;  %vm929_vm2 = vcmask 96328  }
  0x92   : > { %v1160_v57 = vld [vmem:[%s7083_s26 + $0x32] sm:$0xff]  ;;  %v770_v60 = vld [vmem:[%s7083_s26 + $0x89] sm:$0xff]  ;;  %v1161_v0 = vld [vmem:[%s7083_s26 + $0x3a] sm:$0xff] }
  0x93   : > { %1173 = vrot.lane.b32.xlu1 %v1155_v13, %s6815_s0  ;;  %951 = vrot.lane.b32.xlu0 %v932_v14, %s6808_s14  ;;  %v993_v59 = vld [vmem:[%s7083_s26 + $0xd3] sm:$0xff]  ;;  %v1105_v62 = vld [vmem:[%s7083_s26 + $0x8a] sm:$0xff] }
  0x94   : > { %v1049_v61 = vld [vmem:[%s7083_s26 + $0x39] sm:$0xff]  ;;  %v938_v1 = vld [vmem:[%s7083_s26 + $0x12b] sm:$0xff]  ;;  %v1050_v7 = vld [vmem:[%s7083_s26 + $0x41] sm:$0xff] }
  0x95   : > { %v751_v2 = vld [vmem:[%s7083_s26 + $0x40] sm:$0x7f]  ;;  %v1106_v10 = vld [vmem:[%s7083_s26 + $0x92] sm:$0xff] }
  0x96   : > { %762 = vst.msk [vmem:[#allocation4 + $0x40] sm:$0x7f] %vm761_vm4, %v751_v2  ;;  %v994_v5 = vld [vmem:[%s7083_s26 + $0xdb] sm:$0xff]  ;;  %v771_v14 = vld [vmem:[%s7083_s26 + $0x91] sm:$0x7f]  ;;  %vm1041_vm4 = vcmask 145528  }
  0x97   : > { %1007 = vrot.lane.b32.xlu1 %v988_v18, %s6811_s5  ;;  %785 = vrot.lane.b32.xlu0 %v765_v19, %s6807_s21  ;;  %v1162_v11 = vld [vmem:[%s7083_s26 + $0x42] sm:$0xff]  ;;  %v939_v19 = vld [vmem:[%s7083_s26 + $0x133] sm:$0x7f] }
  0x98   : > { %v827_v15 = vld [vmem:[%s7083_s26 + $0x41] sm:$0x7f] }
  0x99   : > { %v883_v18 = vld [vmem:[%s7083_s26 + $0xe2] sm:$0x7f] }
  0x9a   : > { %v995_v22 = vld [vmem:[%s7083_s26 + $0xe3] sm:$0x7f] }
  0x9b   : > { %1063 = vrot.lane.b32.xlu1 %v1044_v21, %s6812_s24  ;;  %841 = vrot.lane.b32.xlu0 %v1044_v21, %s6809_s27 }
  0x9f   : > { %1119 = vrot.lane.b32.xlu1 %v1100_v23, %s6814_s4  ;;  %897 = vrot.lane.b32.xlu0 %v877_v24, %s6806_s2  ;;  %v1051_v23 = vld [vmem:[%s7083_s26 + $0x49] sm:$0x7f] }
  0xa3   : > { %1175 = vrot.lane.b32.xlu1 %v1156_v25, %s6815_s0  ;;  %953 = vrot.lane.b32.xlu0 %v933_v26, %s6808_s14  ;;  %v1107_v26 = vld [vmem:[%s7083_s26 + $0x9a] sm:$0x7f] }
  0xa7   : > { %1009 = vrot.lane.b32.xlu1 %v989_v27, %s6811_s5  ;;  %787 = vrot.lane.b32.xlu0 %v766_v28, %s6807_s21  ;;  %v1163_v27 = vld [vmem:[%s7083_s26 + $0x4a] sm:$0x7f]  ;;  %s9139_s26 = sld [smem:[#allocation44_spill]] }
  0xab   : > { %1065 = vrot.lane.b32.xlu1 %v1045_v29, %s6812_s24  ;;  %843 = vrot.lane.b32.xlu0 %v1045_v29, %s6809_s27 }
  0xaf   : > { %1121 = vrot.lane.b32.xlu1 %v1101_v31, %s6814_s4  ;;  %899 = vrot.lane.b32.xlu0 %v878_v32, %s6806_s2 }
  0xb3   : > { %1177 = vrot.lane.b32.xlu1 %v1157_v33, %s6815_s0  ;;  %955 = vrot.lane.b32.xlu0 %v934_v34, %s6808_s14 }
  0xb7   : > { %1011 = vrot.lane.b32.xlu1 %v990_v35, %s6811_s5  ;;  %789 = vrot.lane.b32.xlu0 %v767_v36, %s6807_s21 }
  0xbb   : > { %1067 = vrot.lane.b32.xlu1 %v1046_v37, %s6812_s24  ;;  %845 = vrot.lane.b32.xlu0 %v1046_v37, %s6809_s27 }
  0xbf   : > { %1123 = vrot.lane.b32.xlu1 %v1102_v39, %s6814_s4  ;;  %901 = vrot.lane.b32.xlu0 %v879_v40, %s6806_s2 }
  0xc3   : > { %1179 = vrot.lane.b32.xlu1 %v1158_v41, %s6815_s0  ;;  %957 = vrot.lane.b32.xlu0 %v935_v42, %s6808_s14 }
  0xc7   : > { %1013 = vrot.lane.b32.xlu1 %v991_v43, %s6811_s5  ;;  %791 = vrot.lane.b32.xlu0 %v768_v44, %s6807_s21 }
  0xcb   : > { %1069 = vrot.lane.b32.xlu1 %v1047_v45, %s6812_s24  ;;  %847 = vrot.lane.b32.xlu0 %v1047_v45, %s6809_s27 }
  0xcf   : > { %1125 = vrot.lane.b32.xlu1 %v1103_v47, %s6814_s4  ;;  %903 = vrot.lane.b32.xlu0 %v880_v48, %s6806_s2 }
  0xd3   : > { %1181 = vrot.lane.b32.xlu1 %v1159_v49, %s6815_s0  ;;  %959 = vrot.lane.b32.xlu0 %v936_v50, %s6808_s14 }
  0xd7   : > { %1015 = vrot.lane.b32.xlu1 %v992_v51, %s6811_s5  ;;  %793 = vrot.lane.b32.xlu0 %v769_v52, %s6807_s21 }
  0xdb   : > { %1071 = vrot.lane.b32.xlu1 %v1048_v53, %s6812_s24  ;;  %849 = vrot.lane.b32.xlu0 %v1048_v53, %s6809_s27 }
  0xdf   : > { %1127 = vrot.lane.b32.xlu1 %v1104_v55, %s6814_s4  ;;  %905 = vrot.lane.b32.xlu0 %v881_v56, %s6806_s2 }
  0xe3   : > { %1183 = vrot.lane.b32.xlu1 %v1160_v57, %s6815_s0  ;;  %961 = vrot.lane.b32.xlu0 %v937_v58, %s6808_s14 }
  0xe7   : > { %1017 = vrot.lane.b32.xlu1 %v993_v59, %s6811_s5  ;;  %795 = vrot.lane.b32.xlu0 %v770_v60, %s6807_s21 }
  0xeb   : > { %1073 = vrot.lane.b32.xlu1 %v1049_v61, %s6812_s24  ;;  %851 = vrot.lane.b32.xlu0 %v1049_v61, %s6809_s27 }
  0xef   : > { %1129 = vrot.lane.b32.xlu1 %v1105_v62, %s6814_s4  ;;  %907 = vrot.lane.b32.xlu0 %v882_v63, %s6806_s2 }
  0xf1   : > { %v894_v3 = vpop.permute.xlu1 %893  ;;  %v782_v4 = vpop.permute.xlu0 %781 }
  0xf2   : > { %809 = vst.msk [vmem:[#allocation4] sm:$0xff] %vm808_vm3, %v782_v4 }
  0xf3   : > { %1185 = vrot.lane.b32.xlu1 %v1161_v0, %s6815_s0  ;;  %963 = vrot.lane.b32.xlu0 %v938_v1, %s6808_s14 }
  0xf5   : > { %v950_v8 = vpop.permute.xlu1 %949  ;;  %v838_v9 = vpop.permute.xlu0 %837 }
  0xf6   : > { %865 = vst.msk [vmem:[#allocation4] sm:$0xff] %vm864_vm5, %v838_v9 }
  0xf7   : > { %921 = vst.msk [vmem:[#allocation4] sm:$0xff] %vm920_vm6, %v894_v3  ;;  %1019 = vrot.lane.b32.xlu0 %v994_v5, %s6811_s5  ;;  %1075 = vrot.lane.b32.xlu1 %v1050_v7, %s6812_s24 }
  0xf8   : > { %977 = vst.msk [vmem:[#allocation4] sm:$0xff] %vm976_vm7, %v950_v8 }
  0xf9   : > { %v1006_v12 = vpop.permute.xlu1 %1005  ;;  %v784_v13 = vpop.permute.xlu0 %783 }
  0xfa   : > { %1033 = vst.msk [vmem:[#allocation4] sm:$0xff] %vm1032_vm8, %v1006_v12 }
  0xfb   : > { %810 = vst.msk [vmem:[#allocation4 + $0x8] sm:$0xff] %vm808_vm3, %v784_v13  ;;  %1131 = vrot.lane.b32.xlu0 %v1106_v10, %s6814_s4  ;;  %1187 = vrot.lane.b32.xlu1 %v1162_v11, %s6815_s0  ;;  %v1630_v10 = vld [vmem:[#allocation5 + $0x1] sm:$0xff] }
  0xfd   : > { %v1062_v16 = vpop.permute.xlu1 %1061  ;;  %v840_v17 = vpop.permute.xlu0 %839 }
  0xfe   : > { %1089 = vst.msk [vmem:[#allocation4] sm:$0xff] %vm1088_vm9, %v1062_v16 }
  0xff   : > { %866 = vst.msk [vmem:[#allocation4 + $0x8] sm:$0xff] %vm864_vm5, %v840_v17  ;;  %797 = vrot.lane.b32.xlu0 %v771_v14, %s6807_s21  ;;  %853 = vrot.lane.b32.xlu1 %v827_v15, %s6809_s27  ;;  %s9140_s21 = smov %s9139_s26  ;;  %s735_s27 = sand.u32 1, %s6788_s25  }
 0x101   : > { %v1118_v20 = vpop.permute.xlu1 %1117  ;;  %v896_v21 = vpop.permute.xlu0 %895 }
 0x102   : > { %1145 = vst.msk [vmem:[#allocation4] sm:$0xff] %vm1144_vm10, %v1118_v20 }
 0x103   : > { %922 = vst.msk [vmem:[#allocation4 + $0x8] sm:$0xff] %vm920_vm6, %v896_v21  ;;  %909 = vrot.lane.b32.xlu0 %v883_v18, %s6806_s2  ;;  %965 = vrot.lane.b32.xlu1 %v939_v19, %s6808_s14  ;;  %s5168_s2 = scalar_lea.sflag [#allocation17], %s735_s27 }
 0x105   : > { %v1174_v24 = vpop.permute.xlu1 %1173  ;;  %v952_v25 = vpop.permute.xlu0 %951 }
 0x106   : > { %1201 = vst.msk [vmem:[#allocation4] sm:$0xff] %vm1200_vm11, %v1174_v24 }
 0x107   : > { %978 = vst.msk [vmem:[#allocation4 + $0x8] sm:$0xff] %vm976_vm7, %v952_v25  ;;  %1021 = vrot.lane.b32.xlu0 %v995_v22, %s6811_s5  ;;  %1077 = vrot.lane.b32.xlu1 %v1051_v23, %s6812_s24  ;;  %s6821_s24 = smov 32  }
 0x109   : > { %v1008_v28 = vpop.permute.xlu1 %1007  ;;  %v786_v29 = vpop.permute.xlu0 %785 }
 0x10a   : > { %1034 = vst.msk [vmem:[#allocation4 + $0x8] sm:$0xff] %vm1032_vm8, %v1008_v28 }
 0x10b   : > { %811 = vst.msk [vmem:[#allocation4 + $0x10] sm:$0xff] %vm808_vm3, %v786_v29  ;;  %1133 = vrot.lane.b32.xlu0 %v1107_v26, %s6814_s4  ;;  %1189 = vrot.lane.b32.xlu1 %v1163_v27, %s6815_s0  ;;  %s5380_s4 = sshll.u32 %s6954_s3, 6  ;;  %s6822_s3 = smov [#allocation26]  }
 0x10c   : > { %s9036_s30 = scalar_lea.hbm %s9147_s1, %s5380_s4  ;;  %s6724_s5 = sshll.u32 %s6822_s3, 4  ;;  %s6725_s5 = int_to_ptr.vmem [resolvable:$false] %s6724_s5 }
 0x10d   : > { %v1064_v30 = vpop.permute.xlu1 %1063  ;;  %v842_v31 = vpop.permute.xlu0 %841  ;;  %v1211_v32 = vld [vmem:[#allocation4] sm:$0xff] }
 0x10e   : > { %1090 = vst.msk [vmem:[#allocation4 + $0x8] sm:$0xff] %vm1088_vm9, %v1064_v30  ;;  %6105 = vmatmul.mubr.msk.f32.vlgmr.msra.gmra.mxu0 %vm1231_vm12, %v1211_v32 }
 0x10f   : > { %867 = vst.msk [vmem:[#allocation4 + $0x10] sm:$0xff] %vm864_vm5, %v842_v31  ;;  %6107 = vmatprep.mubr.msk.f32.mxu0 %vm6813_vm1, %v6810_v6  ;;  %1650 = vrot.lane.b32.xlu1 %v1630_v10, %s6816_s22  ;;  %v2061_v10 = vld [vmem:[#allocation18 + $0x1d8] sm:$0xff] }
 0x111   : > { %v1120_v33 = vpop.permute.xlu1 %1119  ;;  %v898_v34 = vpop.permute.xlu0 %897 }
 0x112   : > { %1146 = vst.msk [vmem:[#allocation4 + $0x8] sm:$0xff] %vm1144_vm10, %v1120_v33 }
 0x113   : > { %923 = vst.msk [vmem:[#allocation4 + $0x10] sm:$0xff] %vm920_vm6, %v898_v34 }
 0x115   : > { %v1176_v35 = vpop.permute.xlu1 %1175  ;;  %v954_v36 = vpop.permute.xlu0 %953 }
 0x116   : > { %1202 = vst.msk [vmem:[#allocation4 + $0x8] sm:$0xff] %vm1200_vm11, %v1176_v35  ;;  %v7390_v35 = vld [vmem:[%s9138_s28] ss:$0 sm:$0xff] }
 0x117   : > { %979 = vst.msk [vmem:[#allocation4 + $0x10] sm:$0xff] %vm976_vm7, %v954_v36  ;;  %v1610_v36 = vld [vmem:[#allocation5] sm:$0xff] }
 0x118   : > { %1620 = vst.msk [vmem:[#allocation6] sm:$0xff] %vm1567_vm13, %v1610_v36  ;;  %v2057_v36 = vld [vmem:[#allocation18 + $0x1b8] sm:$0xff] }
 0x119   : > { %v1010_v37 = vpop.permute.xlu1 %1009  ;;  %v788_v38 = vpop.permute.xlu0 %787 }
 0x11a   : > { %1035 = vst.msk [vmem:[#allocation4 + $0x10] sm:$0xff] %vm1032_vm8, %v1010_v37 }
 0x11b   : > { %812 = vst.msk [vmem:[#allocation4 + $0x18] sm:$0xff] %vm808_vm3, %v788_v38  ;;  %v1692_v38 = vld [vmem:[#allocation5 + $0x2] sm:$0xff] }
 0x11c   : > { %1702 = vst.msk [vmem:[#allocation6 + $0x8] sm:$0xff] %vm1567_vm13, %v1692_v38  ;;  %v2041_v38 = vld [vmem:[#allocation18 + $0x138] sm:$0xff] }
 0x11d   : > { %v1066_v39 = vpop.permute.xlu1 %1065  ;;  %v844_v40 = vpop.permute.xlu0 %843  ;;  %v1212_v41 = vld [vmem:[#allocation4 + $0x8] sm:$0xff] }
 0x11e   : > { %1091 = vst.msk [vmem:[#allocation4 + $0x10] sm:$0xff] %vm1088_vm9, %v1066_v39  ;;  %6108 = vmatmul.mubr.msk.f32.gmra.mxu0 %vm1231_vm12, %v1212_v41 }
 0x11f   : > { %868 = vst.msk [vmem:[#allocation4 + $0x18] sm:$0xff] %vm864_vm5, %v844_v40  ;;  %6110 = vmatprep.mubr.msk.f32.mxu0 %vm6813_vm1, %v6810_v6 }
 0x121   : > { %v1122_v42 = vpop.permute.xlu1 %1121  ;;  %v900_v43 = vpop.permute.xlu0 %899 }
 0x122   : > { %1147 = vst.msk [vmem:[#allocation4 + $0x10] sm:$0xff] %vm1144_vm10, %v1122_v42  ;;  %v2033_v42 = vld [vmem:[#allocation18 + $0xf8] sm:$0xff] }
 0x123   : > { %924 = vst.msk [vmem:[#allocation4 + $0x18] sm:$0xff] %vm920_vm6, %v900_v43  ;;  %v2017_v43 = vld [vmem:[#allocation18 + $0x78] sm:$0xff]  ;;  %5396 = vmatprep.subr.mxu1 %v2033_v42  ;;  %v2040_v42 = vld [vmem:[#allocation18 + $0x130] sm:$0xff] }
 0x125   : > { %v1178_v44 = vpop.permute.xlu1 %1177  ;;  %v956_v45 = vpop.permute.xlu0 %955 }
 0x126   : > { %1203 = vst.msk [vmem:[#allocation4 + $0x10] sm:$0xff] %vm1200_vm11, %v1178_v44  ;;  %v6817_v44 = vmov 12  }
 0x127   : > { %980 = vst.msk [vmem:[#allocation4 + $0x18] sm:$0xff] %vm976_vm7, %v956_v45  ;;  %6535 = vset.pattern.permute.xlu1 %v6817_v44  ;;  %v2032_v45 = vld [vmem:[#allocation18 + $0xf0] sm:$0xff] }
 0x129   : > { %v1012_v46 = vpop.permute.xlu1 %1011  ;;  %v790_v47 = vpop.permute.xlu0 %789 }
 0x12a   : > { %1036 = vst.msk [vmem:[#allocation4 + $0x18] sm:$0xff] %vm1032_vm8, %v1012_v46  ;;  %v2065_v46 = vld [vmem:[#allocation18 + $0x1f8] sm:$0xff] }
 0x12b   : > { %813 = vst.msk [vmem:[#allocation4 + $0x20] sm:$0xff] %vm808_vm3, %v790_v47  ;;  %v2049_v47 = vld [vmem:[#allocation18 + $0x178] sm:$0xff]  ;;  %5458 = vmatprep.subr.mxu0 %v2065_v46  ;;  %v2055_v46 = vld [vmem:[#allocation18 + $0x1a8] sm:$0xff] }
 0x12c   : > { %5459 = vmatpush3.msra.mxu0 %v2049_v47  ;;  %v2006_v47 = vld [vmem:[#allocation18 + $0x20] sm:$0xff] }
 0x12d   : > { %v1068_v48 = vpop.permute.xlu1 %1067  ;;  %v846_v49 = vpop.permute.xlu0 %845  ;;  %v1213_v50 = vld [vmem:[#allocation4 + $0x10] sm:$0xff] }
 0x12e   : > { %1092 = vst.msk [vmem:[#allocation4 + $0x18] sm:$0xff] %vm1088_vm9, %v1068_v48  ;;  %6111 = vmatmul.mubr.msk.f32.gmra.mxu0 %vm1231_vm12, %v1213_v50  ;;  %v2016_v50 = vld [vmem:[#allocation18 + $0x70] sm:$0xff] }
 0x12f   : > { %869 = vst.msk [vmem:[#allocation4 + $0x20] sm:$0xff] %vm864_vm5, %v846_v49  ;;  %6113 = vmatprep.mubr.msk.f32.mxu0 %vm6813_vm1, %v6810_v6 }
 0x131   : > { %v1124_v51 = vpop.permute.xlu1 %1123  ;;  %v902_v52 = vpop.permute.xlu0 %901 }
 0x132   : > { %1148 = vst.msk [vmem:[#allocation4 + $0x18] sm:$0xff] %vm1144_vm10, %v1124_v51 }
 0x133   : > { %925 = vst.msk [vmem:[#allocation4 + $0x20] sm:$0xff] %vm920_vm6, %v902_v52 }
 0x135   : > { %v1180_v53 = vpop.permute.xlu1 %1179  ;;  %v958_v54 = vpop.permute.xlu0 %957 }
 0x136   : > { %1204 = vst.msk [vmem:[#allocation4 + $0x18] sm:$0xff] %vm1200_vm11, %v1180_v53  ;;  %v2031_v53 = vld [vmem:[#allocation18 + $0xe8] sm:$0xff] }
 0x137   : > { %981 = vst.msk [vmem:[#allocation4 + $0x20] sm:$0xff] %vm976_vm7, %v958_v54  ;;  %v2064_v54 = vld [vmem:[#allocation18 + $0x1f0] sm:$0xff] }
 0x138   : > { %5460 = vmatprep.subr.mxu0 %v2064_v54  ;;  %v2038_v54 = vld [vmem:[#allocation18 + $0x120] sm:$0xff] }
 0x139   : > { %v1014_v55 = vpop.permute.xlu1 %1013  ;;  %v792_v56 = vpop.permute.xlu0 %791 }
 0x13a   : > { %1037 = vst.msk [vmem:[#allocation4 + $0x20] sm:$0xff] %vm1032_vm8, %v1014_v55 }
 0x13b   : > { %814 = vst.msk [vmem:[#allocation4 + $0x28] sm:$0xff] %vm808_vm3, %v792_v56 }
 0x13d   : > { %v1070_v57 = vpop.permute.xlu1 %1069  ;;  %v848_v58 = vpop.permute.xlu0 %847  ;;  %v7302_v59 = vld [vmem:[#allocation4 + $0x18] sm:$0xff] }
 0x13e   : > { %1093 = vst.msk [vmem:[#allocation4 + $0x20] sm:$0xff] %vm1088_vm9, %v1070_v57  ;;  %6114 = vmatmul.mubr.msk.f32.gmra.mxu0 %vm1231_vm12, %v7302_v59  ;;  %v2015_v57 = vld [vmem:[#allocation18 + $0x68] sm:$0xff] }
 0x13f   : > { %870 = vst.msk [vmem:[#allocation4 + $0x28] sm:$0xff] %vm864_vm5, %v848_v58  ;;  %6116 = vmatprep.mubr.msk.f32.mxu0 %vm6813_vm1, %v6810_v6  ;;  %v2048_v58 = vld [vmem:[#allocation18 + $0x170] sm:$0xff] }
 0x140   : > { %5461 = vmatpush3.msra.mxu0 %v2048_v58  ;;  %v2037_v58 = vld [vmem:[#allocation18 + $0x118] sm:$0xff] }
 0x141   : > { %v1126_v60 = vpop.permute.xlu1 %1125  ;;  %v904_v61 = vpop.permute.xlu0 %903 }
 0x142   : > { %1149 = vst.msk [vmem:[#allocation4 + $0x20] sm:$0xff] %vm1144_vm10, %v1126_v60  ;;  %v2030_v60 = vld [vmem:[#allocation18 + $0xe0] sm:$0xff] }
 0x143   : > { %926 = vst.msk [vmem:[#allocation4 + $0x28] sm:$0xff] %vm920_vm6, %v904_v61 }
 0x145   : > { %v1182_v62 = vpop.permute.xlu1 %1181  ;;  %v960_v63 = vpop.permute.xlu0 %959 }
 0x146   : > { %1205 = vst.msk [vmem:[#allocation4 + $0x20] sm:$0xff] %vm1200_vm11, %v1182_v62  ;;  %v2063_v62 = vld [vmem:[#allocation18 + $0x1e8] sm:$0xff] }
 0x147   : > { %982 = vst.msk [vmem:[#allocation4 + $0x28] sm:$0xff] %vm976_vm7, %v960_v63  ;;  %v2014_v63 = vld [vmem:[#allocation18 + $0x60] sm:$0xff]  ;;  %5462 = vmatprep.subr.mxu0 %v2063_v62  ;;  %v2003_v62 = vld [vmem:[#allocation18 + $0x8] sm:$0xff] }
 0x149   : > { %v1016_v0 = vpop.permute.xlu1 %1015  ;;  %v794_v1 = vpop.permute.xlu0 %793 }
 0x14a   : > { %1038 = vst.msk [vmem:[#allocation4 + $0x28] sm:$0xff] %vm1032_vm8, %v1016_v0  ;;  %v2047_v0 = vld [vmem:[#allocation18 + $0x168] sm:$0xff] }
 0x14b   : > { %815 = vst.msk [vmem:[#allocation4 + $0x30] sm:$0xff] %vm808_vm3, %v794_v1  ;;  %5463 = vmatpush3.msra.mxu0 %v2047_v0  ;;  %v2018_v0 = vld [vmem:[#allocation18 + $0x80] sm:$0xff] }
 0x14d   : > { %v1072_v2 = vpop.permute.xlu1 %1071  ;;  %v850_v3 = vpop.permute.xlu0 %849  ;;  %v7316_v4 = vld [vmem:[#allocation4 + $0x20] sm:$0xff] }
 0x14e   : > { %1094 = vst.msk [vmem:[#allocation4 + $0x28] sm:$0xff] %vm1088_vm9, %v1072_v2  ;;  %6117 = vmatmul.mubr.msk.f32.gmra.mxu0 %vm1231_vm12, %v7316_v4  ;;  %v2029_v2 = vld [vmem:[#allocation18 + $0xd8] sm:$0xff] }
 0x14f   : > { %871 = vst.msk [vmem:[#allocation4 + $0x30] sm:$0xff] %vm864_vm5, %v850_v3  ;;  %6119 = vmatprep.mubr.msk.f32.mxu0 %vm6813_vm1, %v6810_v6  ;;  %v2062_v3 = vld [vmem:[#allocation18 + $0x1e0] sm:$0xff] }
 0x150   : > { %5464 = vmatprep.subr.mxu0 %v2062_v3  ;;  %v2035_v3 = vld [vmem:[#allocation18 + $0x108] sm:$0xff] }
 0x151   : > { %v1128_v5 = vpop.permute.xlu1 %1127  ;;  %v906_v7 = vpop.permute.xlu0 %905 }
 0x152   : > { %1150 = vst.msk [vmem:[#allocation4 + $0x28] sm:$0xff] %vm1144_vm10, %v1128_v5 }
 0x153   : > { %927 = vst.msk [vmem:[#allocation4 + $0x30] sm:$0xff] %vm920_vm6, %v906_v7  ;;  %v2013_v7 = vld [vmem:[#allocation18 + $0x58] sm:$0xff] }
 0x155   : > { %v1184_v8 = vpop.permute.xlu1 %1183  ;;  %v962_v9 = vpop.permute.xlu0 %961 }
 0x156   : > { %1206 = vst.msk [vmem:[#allocation4 + $0x28] sm:$0xff] %vm1200_vm11, %v1184_v8  ;;  %v2046_v8 = vld [vmem:[#allocation18 + $0x160] sm:$0xff] }
 0x157   : > { %983 = vst.msk [vmem:[#allocation4 + $0x30] sm:$0xff] %vm976_vm7, %v962_v9  ;;  %v2028_v9 = vld [vmem:[#allocation18 + $0xd0] sm:$0xff]  ;;  %5465 = vmatpush3.msra.mxu0 %v2046_v8 }
 0x158   : > { %5466 = vmatprep.subr.mxu0 %v2061_v10 }
 0x159   : > { %v1018_v11 = vpop.permute.xlu1 %1017  ;;  %v796_v12 = vpop.permute.xlu0 %795 }
 0x15a   : > { %1039 = vst.msk [vmem:[#allocation4 + $0x30] sm:$0xff] %vm1032_vm8, %v1018_v11  ;;  %v2012_v11 = vld [vmem:[#allocation18 + $0x50] sm:$0xff] }
 0x15b   : > { %816 = vst.msk [vmem:[#allocation4 + $0x38] sm:$0xff] %vm808_vm3, %v796_v12  ;;  %vm985_vm3 = vcmask 120928   ;;  %v2045_v12 = vld [vmem:[#allocation18 + $0x158] sm:$0xff] }
 0x15c   : > { %5467 = vmatpush3.msra.mxu0 %v2045_v12  ;;  %v2034_v12 = vld [vmem:[#allocation18 + $0x100] sm:$0xff] }
 0x15d   : > { %v1074_v13 = vpop.permute.xlu1 %1073  ;;  %v852_v14 = vpop.permute.xlu0 %851  ;;  %v7355_v15 = vld [vmem:[#allocation4 + $0x28] sm:$0xff] }
 0x15e   : > { %1095 = vst.msk [vmem:[#allocation4 + $0x30] sm:$0xff] %vm1088_vm9, %v1074_v13  ;;  %6120 = vmatmul.mubr.msk.f32.gmra.mxu0 %vm1231_vm12, %v7355_v15  ;;  %v2027_v13 = vld [vmem:[#allocation18 + $0xc8] sm:$0xff] }
 0x15f   : > { %872 = vst.msk [vmem:[#allocation4 + $0x38] sm:$0xff] %vm864_vm5, %v852_v14  ;;  %6122 = vmatprep.mubr.msk.f32.mxu0 %vm6813_vm1, %v6810_v6  ;;  %vm1097_vm5 = vcmask 170128   ;;  %v2060_v14 = vld [vmem:[#allocation18 + $0x1d0] sm:$0xff] }
 0x160   : > { %5468 = vmatprep.subr.mxu0 %v2060_v14 }
 0x161   : > { %v1130_v16 = vpop.permute.xlu1 %1129  ;;  %v908_v17 = vpop.permute.xlu0 %907 }
 0x162   : > { %1151 = vst.msk [vmem:[#allocation4 + $0x30] sm:$0xff] %vm1144_vm10, %v1130_v16  ;;  %v2011_v16 = vld [vmem:[#allocation18 + $0x48] sm:$0xff] }
 0x163   : > { %928 = vst.msk [vmem:[#allocation4 + $0x38] sm:$0xff] %vm920_vm6, %v908_v17  ;;  %vm1153_vm6 = vcmask 194728   ;;  %v2044_v17 = vld [vmem:[#allocation18 + $0x150] sm:$0xff] }
 0x164   : > { %5469 = vmatpush3.msra.mxu0 %v2044_v17 }
 0x165   : > { %v1186_v18 = vpop.permute.xlu1 %1185  ;;  %v964_v19 = vpop.permute.xlu0 %963 }
 0x166   : > { %1207 = vst.msk [vmem:[#allocation4 + $0x30] sm:$0xff] %vm1200_vm11, %v1186_v18  ;;  %v2026_v18 = vld [vmem:[#allocation18 + $0xc0] sm:$0xff] }
 0x167   : > { %984 = vst.msk [vmem:[#allocation4 + $0x38] sm:$0xff] %vm976_vm7, %v964_v19  ;;  %vm1209_vm7 = vcmask 219328   ;;  %v2059_v19 = vld [vmem:[#allocation18 + $0x1c8] sm:$0xff] }
 0x168   : > { %5470 = vmatprep.subr.mxu0 %v2059_v19 }
 0x169   : > { %v1020_v20 = vpop.permute.xlu0 %1019  ;;  %v1076_v21 = vpop.permute.xlu1 %1075 }
 0x16a   : > { %1040 = vst.msk [vmem:[#allocation4 + $0x38] sm:$0xff] %vm1032_vm8, %v1020_v20  ;;  %vm1580_vm8 = vcmask 519168   ;;  %v2010_v20 = vld [vmem:[#allocation18 + $0x40] sm:$0xff] }
 0x16b   : > { %1096 = vst.msk [vmem:[#allocation4 + $0x38] sm:$0xff] %vm1088_vm9, %v1076_v21  ;;  %vm1680_vm9 = vcmask 1048064   ;;  %v2043_v21 = vld [vmem:[#allocation18 + $0x148] sm:$0xff] }
 0x16c   : > { %1581 = vst.msk [vmem:[#allocation5 + $0x60] sm:$0xf] %vm1580_vm8, %v6810_v6  ;;  %5471 = vmatpush3.msra.mxu0 %v2043_v21 }
 0x16d   : > { %v1132_v22 = vpop.permute.xlu0 %1131  ;;  %v1188_v23 = vpop.permute.xlu1 %1187  ;;  %v7369_v24 = vld [vmem:[#allocation4 + $0x30] sm:$0xff] }
 0x16e   : > { %1152 = vst.msk [vmem:[#allocation4 + $0x38] sm:$0xff] %vm1144_vm10, %v1132_v22  ;;  %6123 = vmatmul.mubr.msk.f32.gmra.mxu0 %vm1231_vm12, %v7369_v24  ;;  %vm1583_vm10 = vcmask 523265   ;;  %v2025_v22 = vld [vmem:[#allocation18 + $0xb8] sm:$0xff] }
 0x16f   : > { %1208 = vst.msk [vmem:[#allocation4 + $0x38] sm:$0xff] %vm1200_vm11, %v1188_v23  ;;  %6125 = vmatprep.mubr.msk.f32.mxu0 %vm6813_vm1, %v6810_v6  ;;  %v2058_v23 = vld [vmem:[#allocation18 + $0x1c0] sm:$0xff]  ;;  %vm1585_vm11 = vcmask 516096  }
 0x170   : > { %5472 = vmatprep.subr.mxu0 %v2058_v23 }
 0x171   : > { %v798_v25 = vpop.permute.xlu0 %797  ;;  %v854_v26 = vpop.permute.xlu1 %853 }
 0x172   : > { %818 = vst.msk [vmem:[#allocation4 + $0x40] sm:$0x7f] %vm817_vm14, %v798_v25  ;;  %v2009_v25 = vld [vmem:[#allocation18 + $0x38] sm:$0xff]  ;;  %vm1589_vm14 = vcmask 517120  }
 0x173   : > { %874 = vst.msk [vmem:[#allocation4 + $0x40] sm:$0x7f] %vm873_vm15, %v854_v26  ;;  %v2042_v26 = vld [vmem:[#allocation18 + $0x140] sm:$0xff]  ;;  %vm1591_vm15 = vcmask 523267  }
 0x174   : > { %5473 = vmatpush3.msra.mxu0 %v2042_v26 }
 0x175   : > { %v910_v27 = vpop.permute.xlu0 %909  ;;  %v966_v28 = vpop.permute.xlu1 %965  ;;  %5474 = vmatprep.subr.mxu0 %v2057_v36 }
 0x176   : > { %930 = vst.msk [vmem:[#allocation4 + $0x40] sm:$0x7f] %vm929_vm2, %v910_v27  ;;  %v7377_v29 = vld [vmem:[#allocation4 + $0x38] sm:$0xff]  ;;  %5475 = vmatpush3.msra.mxu0 %v2041_v38  ;;  %vm1593_vm2 = vcmask 518144  }
 0x177   : > { %986 = vst.msk [vmem:[#allocation4 + $0x40] sm:$0x7f] %vm985_vm3, %v966_v28  ;;  %6126 = vmatmul.mubr.msk.f32.gmra.mxu0 %vm1231_vm12, %v7377_v29  ;;  %vm1595_vm3 = vcmask 523268  }
 0x179   : > { %v1022_v30 = vpop.permute.xlu0 %1021  ;;  %v1078_v31 = vpop.permute.xlu1 %1077 }
 0x17a   : > { %1042 = vst.msk [vmem:[#allocation4 + $0x40] sm:$0x7f] %vm1041_vm4, %v1022_v30  ;;  %vm1598_vm4 = vcmask 523269  }
 0x17b   : > { %1098 = vst.msk [vmem:[#allocation4 + $0x40] sm:$0x7f] %vm1097_vm5, %v1078_v31  ;;  %vm9104_vm5 = vcmask 520192  }
 0x17d   : > { %v1134_v32 = vpop.permute.xlu0 %1133  ;;  %v1190_v33 = vpop.permute.xlu1 %1189 }
 0x17e   : > { %1154 = vst.msk [vmem:[#allocation4 + $0x40] sm:$0x7f] %vm1153_vm6, %v1134_v32  ;;  %vm1602_vm6 = vcmask 523270  }
 0x17f   : > { %1210 = vst.msk [vmem:[#allocation4 + $0x40] sm:$0x7f] %vm1209_vm7, %v1190_v33  ;;  %v2024_v33 = vld [vmem:[#allocation18 + $0xb0] sm:$0xff]  ;;  %vm1604_vm7 = vcmask 521216  }
 0x181   : > { %v1651_v37 = vpop.permute.xlu1 %1650 }
 0x182   : > { %1681 = vst.msk [vmem:[#allocation6] sm:$0xff] %vm1680_vm9, %v1651_v37  ;;  %v2008_v37 = vld [vmem:[#allocation18 + $0x30] sm:$0xff] }
 0x186   : > { %v7381_v34 = vld [vmem:[#allocation4 + $0x40] sm:$0x7f] }
 0x187   : > { %6129 = vmatmul.mubr.msk.f32.vlgmr.msra.gmra.mxu1 %vm1231_vm12, %v7381_v34  ;;  %vm1587_vm12 = vcmask 523266  }
 0x188   : > { %5397 = vmatpush3.msra.mxu1 %v2017_v43  ;;  %v2022_v43 = vld [vmem:[#allocation18 + $0xa0] sm:$0xff] }
 0x189   : > { %5398 = vmatprep.subr.mxu1 %v2032_v45 }
 0x18a   : > { %5399 = vmatpush3.msra.mxu1 %v2016_v50  ;;  %v2021_v50 = vld [vmem:[#allocation18 + $0x98] sm:$0xff] }
 0x18b   : > { %5400 = vmatprep.subr.mxu1 %v2031_v53  ;;  %v2005_v53 = vld [vmem:[#allocation18 + $0x18] sm:$0xff] }
 0x18c   : > { %5401 = vmatpush3.msra.mxu1 %v2015_v57  ;;  %v2004_v57 = vld [vmem:[#allocation18 + $0x10] sm:$0xff] }
 0x18d   : > { %5402 = vmatprep.subr.mxu1 %v2030_v60  ;;  %v2019_v60 = vld [vmem:[#allocation18 + $0x88] sm:$0xff] }
 0x18e   : > { %5403 = vmatpush3.msra.mxu1 %v2014_v63  ;;  %v2036_v63 = vld [vmem:[#allocation18 + $0x110] sm:$0xff] }
 0x18f   : > { %5404 = vmatprep.subr.mxu1 %v2029_v2  ;;  %v2002_v2 = vld [vmem:[#allocation18] sm:$0xff] }
 0x190   : > { %5405 = vmatpush3.msra.mxu1 %v2013_v7 }
 0x191   : > { %5406 = vmatprep.subr.mxu1 %v2028_v9 }
 0x192   : > { %5407 = vmatpush3.msra.mxu1 %v2012_v11 }
 0x193   : > { %5408 = vmatprep.subr.mxu1 %v2027_v13  ;;  %v6818_v13 = vmov 14  }
 0x194   : > { %5409 = vmatpush3.msra.mxu1 %v2011_v16  ;;  %6539 = vset.pattern.permute.xlu0 %v6818_v13 }
 0x195   : > { %5410 = vmatprep.subr.mxu1 %v2026_v18  ;;  %v7427_v18 = vld [vmem:[#allocation13] sm:$0xff] }
 0x196   : > { %5411 = vmatpush3.msra.mxu1 %v2010_v20 }
 0x197   : > { %5412 = vmatprep.subr.mxu1 %v2025_v22 }
 0x198   : > { %5413 = vmatpush3.msra.mxu1 %v2009_v25 }
 0x199   : > { %5414 = vmatprep.subr.mxu1 %v2024_v33 }
 0x19a   : > { %5415 = vmatpush3.msra.mxu1 %v2008_v37 }
 0x1ce   : > { %v1329_v39 = vpop.f32.mrf.mxu0 }
 0x1cf   : > { %v1330_v40 = vadd.f32 %v7390_v35, %v1329_v39  ;;  %v2023_v39 = vld [vmem:[#allocation18 + $0xa8] sm:$0xff] }
 0x1d0   : > { %v6106_v41 = vpop.f32.mrf.mxu0  ;;  %5416 = vmatprep.subr.mxu1 %v2023_v39 }
 0x1d1   : > { %v1373_v6 = vmax.f32 %v1330_v40, 0.0  ;;  %v2056_v40 = vld [vmem:[#allocation18 + $0x1b0] sm:$0xff] }
 0x1d2   : > { %5476 = vmatprep.subr.mxu0 %v2056_v40 }
 0x1d3   : > { %1582 = vst.msk [vmem:[#allocation5 + $0xb] sm:$0xff] %vm1567_vm13, %v1373_v6  ;;  %v2007_v6 = vld [vmem:[#allocation18 + $0x28] sm:$0xff]  ;;  %5477 = vmatpush3.msra.mxu0 %v2040_v42 }
 0x1d4   : > { %5417 = vmatpush3.msra.mxu1 %v2007_v6  ;;  %5478 = vmatprep.subr.mxu0 %v2055_v46 }
 0x1d5   : > { %5418 = vmatprep.subr.mxu1 %v2022_v43 }
 0x1d6   : > { %5419 = vmatpush3.msra.mxu1 %v2006_v47 }
 0x1d7   : > { %5420 = vmatprep.subr.mxu1 %v2021_v50 }
 0x1d8   : > { %5421 = vmatpush3.msra.mxu1 %v2005_v53 }
 0x1da   : > { %v1631_v48 = vld [vmem:[#allocation5 + $0x9] sm:$0xff] }
 0x1db   : > { %v1712_v49 = vld [vmem:[#allocation5 + $0xa] sm:$0xff]  ;;  %1652 = vrot.lane.b32.xlu1 %v1631_v48, %s6816_s22 }
 0x1dc   : > { %1732 = vrot.lane.b32.xlu0 %v1712_v49, %s6816_s22  ;;  %v1611_v51 = vld [vmem:[#allocation5 + $0x8] sm:$0xff]  ;;  %1703 = vst.msk [vmem:[#allocation6 + $0x30] sm:$0xff] %vm1567_vm13, %v1712_v49 }
 0x1dd   : > { %v1772_v52 = vld [vmem:[#allocation5 + $0xb] sm:$0xff]  ;;  %1621 = vst.msk [vmem:[#allocation6 + $0x28] sm:$0xff] %vm1567_vm13, %v1611_v51 }
 0x1de   : > { %1782 = vst.msk [vmem:[#allocation6 + $0x10] sm:$0xff] %vm1567_vm13, %v1772_v52  ;;  %v1792_v55 = vld [vmem:[#allocation5 + $0xc] sm:$0xff]  ;;  %v1334_v56 = vpop.f32.mrf.mxu0  ;;  %v2054_v52 = vld [vmem:[#allocation18 + $0x1a0] sm:$0xff] }
 0x1df   : > { %v1335_v61 = vadd.f32 %v7390_v35, %v1334_v56  ;;  %1812 = vrot.lane.b32.xlu1 %v1792_v55, %s6816_s22  ;;  %v2039_v49 = vld [vmem:[#allocation18 + $0x128] sm:$0xff]  ;;  %v2020_v55 = vld [vmem:[#allocation18 + $0x90] sm:$0xff]  ;;  %v2053_v56 = vld [vmem:[#allocation18 + $0x198] sm:$0xff] }
 0x1e0   : > { %v6109_v1 = vpop.f32.mrf.mxu0  ;;  %5479 = vmatpush3.msra.mxu0 %v2039_v49  ;;  %5422 = vmatprep.subr.mxu1 %v2020_v55 }
 0x1e1   : > { %v1374_v5 = vmax.f32 %v1335_v61, 0.0  ;;  %5480 = vmatprep.subr.mxu0 %v2054_v52  ;;  %v2052_v61 = vld [vmem:[#allocation18 + $0x190] sm:$0xff]  ;;  %5423 = vmatpush3.msra.mxu1 %v2004_v57  ;;  %v2051_v1 = vld [vmem:[#allocation18 + $0x188] sm:$0xff] }
 0x1e2   : > { %5481 = vmatpush3.msra.mxu0 %v2038_v54  ;;  %5424 = vmatprep.subr.mxu1 %v2019_v60 }
 0x1e3   : > { %1584 = vst.msk [vmem:[#allocation5 + $0x14] sm:$0xfe] %vm1583_vm10, %v1374_v5  ;;  %5482 = vmatprep.subr.mxu0 %v2053_v56  ;;  %5425 = vmatpush3.msra.mxu1 %v2003_v62  ;;  %v2050_v5 = vld [vmem:[#allocation18 + $0x180] sm:$0xff]  ;;  %vm1606_vm10 = vcmask 523271  }
 0x1e4   : > { %5483 = vmatpush3.msra.mxu0 %v2037_v58  ;;  %5426 = vmatprep.subr.mxu1 %v2018_v0 }
 0x1e5   : > { %5484 = vmatprep.subr.mxu0 %v2052_v61  ;;  %5427 = vmatpush3.msra.mxu1 %v2002_v2 }
 0x1e6   : > { %5485 = vmatpush3.msra.mxu0 %v2036_v63 }
 0x1e7   : > { %5486 = vmatprep.subr.mxu0 %v2051_v1 }
 0x1e8   : > { %5487 = vmatpush3.msra.mxu0 %v2035_v3 }
 0x1e9   : > { %5488 = vmatprep.subr.mxu0 %v2050_v5 }
 0x1ea   : > { %v1632_v27 = vld [vmem:[#allocation5 + $0x11] sm:$0xff]  ;;  %5489 = vmatpush3.msra.mxu0 %v2034_v12 }
 0x1eb   : > { %v1793_v28 = vld [vmem:[#allocation5 + $0x14] sm:$0xff]  ;;  %1654 = vrot.lane.b32.xlu1 %v1632_v27, %s6816_s22  ;;  %6162 = vmatprep.subr.mxu0 %v7427_v18 }
 0x1ec   : > { %v7405_v30 = vld [vmem:[#allocation5 + $0x12] sm:$0xff]  ;;  %1862 = vst.msk [vmem:[#allocation6 + $0x18] sm:$0xff] %vm1567_vm13, %v1793_v28 }
 0x1ed   : > { %v1612_v31 = vld [vmem:[#allocation5 + $0x10] sm:$0xff]  ;;  %1704 = vst.msk [vmem:[#allocation6 + $0x58] sm:$0xff] %vm1567_vm13, %v7405_v30 }
 0x1ee   : > { %v1773_v32 = vld [vmem:[#allocation5 + $0x13] sm:$0xff]  ;;  %1622 = vst.msk [vmem:[#allocation6 + $0x50] sm:$0xff] %vm1567_vm13, %v1612_v31  ;;  %v1339_v41 = vpop.f32.mrf.mxu0 }
 0x1ef   : > { %1783 = vst.msk [vmem:[#allocation6 + $0x38] sm:$0xff] %vm1567_vm13, %v1773_v32  ;;  %v1340_v45 = vadd.f32 %v7390_v35, %v1339_v41  ;;  %1814 = vrot.lane.b32.xlu1 %v1793_v28, %s6816_s22 }
 0x1f0   : > { %v6112_v48 = vpop.f32.mrf.mxu0 }
 0x1f1   : > { %v1375_v51 = vmax.f32 %v1340_v45, 0.0 }
 0x1f3   : > { %1586 = vst.msk [vmem:[#allocation5 + $0x1c] sm:$0x1] %vm1585_vm11, %v1375_v51  ;;  %vm1608_vm11 = vcmask 522240  }
 0x1f4   : > { %1588 = vst.msk [vmem:[#allocation5 + $0x1d] sm:$0xfc] %vm1587_vm12, %v1375_v51 }
 0x1fa   : > { %v1932_v14 = vld [vmem:[#allocation5 + $0x16] sm:$0xff] }
 0x1fb   : > { %v1633_v7 = vld [vmem:[#allocation5 + $0x19] sm:$0xff]  ;;  %1942 = vst.msk [vmem:[#allocation6 + $0x20] sm:$0xff] %vm1567_vm13, %v1932_v14 }
 0x1fc   : > { %1656 = vrot.lane.b32.xlu1 %v1633_v7, %s6816_s22  ;;  %v1794_v8 = vld [vmem:[#allocation5 + $0x1c] sm:$0xff] }
 0x1fd   : > { %v7418_v9 = vld [vmem:[#allocation5 + $0x1a] sm:$0xff]  ;;  %1863 = vst.msk [vmem:[#allocation6 + $0x40] sm:$0xff] %vm1567_vm13, %v1794_v8 }
 0x1fe   : > { %v1613_v10 = vld [vmem:[#allocation5 + $0x18] sm:$0xff]  ;;  %1705 = vst.msk [vmem:[#allocation6 + $0x80] sm:$0xff] %vm1567_vm13, %v7418_v9  ;;  %v1344_v16 = vpop.f32.mrf.mxu0 }
 0x1ff   : > { %1623 = vst.msk [vmem:[#allocation6 + $0x78] sm:$0xff] %vm1567_vm13, %v1613_v10  ;;  %v1774_v11 = vld [vmem:[#allocation5 + $0x1b] sm:$0xff]  ;;  %v1345_v19 = vadd.f32 %v7390_v35, %v1344_v16 }
 0x200   : > { %1784 = vst.msk [vmem:[#allocation6 + $0x60] sm:$0xff] %vm1567_vm13, %v1774_v11  ;;  %v1872_v17 = vld [vmem:[#allocation5 + $0x15] sm:$0xff]  ;;  %v6115_v20 = vpop.f32.mrf.mxu0  ;;  %v1873_v22 = vld [vmem:[#allocation5 + $0x1d] sm:$0xff] }
 0x201   : > { %1892 = vrot.lane.b32.xlu1 %v1872_v17, %s6816_s22  ;;  %v1376_v21 = vmax.f32 %v1345_v19, 0.0 }
 0x203   : > { %1590 = vst.msk [vmem:[#allocation5 + $0x25] sm:$0x3] %vm1589_vm14, %v1376_v21 }
 0x204   : > { %1592 = vst.msk [vmem:[#allocation5 + $0x26] sm:$0xf8] %vm1591_vm15, %v1376_v21  ;;  %vm9105_vm15 = vcmask 1046016  }
 0x205   : > { %1894 = vrot.lane.b32.xlu1 %v1873_v22, %s6816_s22 }
 0x209   : > { %1816 = vrot.lane.b32.xlu1 %v1794_v8, %s6816_s22 }
 0x20a   : > { %v1933_v23 = vld [vmem:[#allocation5 + $0x1e] sm:$0xff] }
 0x20b   : > { %v1874_v25 = vld [vmem:[#allocation5 + $0x25] sm:$0xff]  ;;  %1943 = vst.msk [vmem:[#allocation6 + $0x48] sm:$0xff] %vm1567_vm13, %v1933_v23 }
 0x20c   : > { %v1795_v26 = vld [vmem:[#allocation5 + $0x24] sm:$0xff] }
 0x20d   : > { %1896 = vrot.lane.b32.xlu1 %v1874_v25, %s6816_s22  ;;  %v7437_v27 = vld [vmem:[#allocation5 + $0x22] sm:$0xff]  ;;  %1864 = vst.msk [vmem:[#allocation6 + $0x68] sm:$0xff] %vm1567_vm13, %v1795_v26 }
 0x20e   : > { %v1775_v28 = vld [vmem:[#allocation5 + $0x23] sm:$0xff]  ;;  %1706 = vst.msk [vmem:[#allocation6 + $0xa8] sm:$0xff] %vm1567_vm13, %v7437_v27  ;;  %v1349_v33 = vpop.f32.mrf.mxu0 }
 0x20f   : > { %1785 = vst.msk [vmem:[#allocation6 + $0x88] sm:$0xff] %vm1567_vm13, %v1775_v28  ;;  %v1614_v31 = vld [vmem:[#allocation5 + $0x20] sm:$0xff]  ;;  %v1350_v36 = vadd.f32 %v7390_v35, %v1349_v33 }
 0x210   : > { %v1934_v32 = vld [vmem:[#allocation5 + $0x26] sm:$0xff]  ;;  %1624 = vst.msk [vmem:[#allocation6 + $0xa0] sm:$0xff] %vm1567_vm13, %v1614_v31  ;;  %v6118_v37 = vpop.f32.mrf.mxu0 }
 0x211   : > { %1944 = vst.msk [vmem:[#allocation6 + $0x70] sm:$0xff] %vm1567_vm13, %v1934_v32  ;;  %1818 = vrot.lane.b32.xlu1 %v1795_v26, %s6816_s22  ;;  %v1377_v38 = vmax.f32 %v1350_v36, 0.0 }
 0x213   : > { %1594 = vst.msk [vmem:[#allocation5 + $0x2e] sm:$0x7] %vm1593_vm2, %v1377_v38 }
 0x214   : > { %1596 = vst.msk [vmem:[#allocation5 + $0x2f] sm:$0xf0] %vm1595_vm3, %v1377_v38 }
 0x21a   : > { %v7449_v41 = vld [vmem:[#allocation5 + $0x2a] sm:$0xff] }
 0x21b   : > { %v1875_v39 = vld [vmem:[#allocation5 + $0x2d] sm:$0xff]  ;;  %1707 = vst.msk [vmem:[#allocation6 + $0xd0] sm:$0xff] %vm1567_vm13, %v7449_v41 }
 0x21c   : > { %v1796_v40 = vld [vmem:[#allocation5 + $0x2c] sm:$0xff]  ;;  %1898 = vrot.lane.b32.xlu1 %v1875_v39, %s6816_s22 }
 0x21d   : > { %1865 = vst.msk [vmem:[#allocation6 + $0x90] sm:$0xff] %vm1567_vm13, %v1796_v40  ;;  %v1776_v6 = vld [vmem:[#allocation5 + $0x2b] sm:$0xff] }
 0x21e   : > { %1786 = vst.msk [vmem:[#allocation6 + $0xb0] sm:$0xff] %vm1567_vm13, %v1776_v6  ;;  %v1615_v42 = vld [vmem:[#allocation5 + $0x28] sm:$0xff]  ;;  %v1354_v45 = vpop.f32.mrf.mxu0 }
 0x21f   : > { %v1935_v43 = vld [vmem:[#allocation5 + $0x2e] sm:$0xff]  ;;  %1625 = vst.msk [vmem:[#allocation6 + $0xc8] sm:$0xff] %vm1567_vm13, %v1615_v42  ;;  %v1355_v46 = vadd.f32 %v7390_v35, %v1354_v45 }
 0x220   : > { %1945 = vst.msk [vmem:[#allocation6 + $0x98] sm:$0xff] %vm1567_vm13, %v1935_v43  ;;  %1820 = vrot.lane.b32.xlu1 %v1796_v40, %s6816_s22  ;;  %v6121_v47 = vpop.f32.mrf.mxu0  ;;  %v1634_v43 = vld [vmem:[#allocation5 + $0x21] sm:$0xff] }
 0x221   : > { %v1378_v48 = vmax.f32 %v1355_v46, 0.0 }
 0x223   : > { %1597 = vst.msk [vmem:[#allocation5 + $0x37] sm:$0xf] %vm1580_vm8, %v1378_v48 }
 0x224   : > { %1599 = vst.msk [vmem:[#allocation5 + $0x38] sm:$0xe0] %vm1598_vm4, %v1378_v48  ;;  %vm2481_vm4 = vcmask 1041408  }
 0x22a   : > { %v1876_v49 = vld [vmem:[#allocation5 + $0x35] sm:$0xff] }
 0x22b   : > { %v1797_v50 = vld [vmem:[#allocation5 + $0x34] sm:$0xff]  ;;  %1900 = vrot.lane.b32.xlu1 %v1876_v49, %s6816_s22 }
 0x22c   : > { %v7461_v51 = vld [vmem:[#allocation5 + $0x32] sm:$0xff]  ;;  %1866 = vst.msk [vmem:[#allocation6 + $0xb8] sm:$0xff] %vm1567_vm13, %v1797_v50 }
 0x22d   : > { %v1777_v52 = vld [vmem:[#allocation5 + $0x33] sm:$0xff]  ;;  %1708 = vst.msk [vmem:[#allocation6 + $0xf8] sm:$0xff] %vm1567_vm13, %v7461_v51 }
 0x22e   : > { %v1616_v53 = vld [vmem:[#allocation5 + $0x30] sm:$0xff]  ;;  %1787 = vst.msk [vmem:[#allocation6 + $0xd8] sm:$0xff] %vm1567_vm13, %v1777_v52  ;;  %v1617_v54 = vld [vmem:[#allocation5 + $0x38] sm:$0xff]  ;;  %v1359_v56 = vpop.f32.mrf.mxu0 }
 0x22f   : > { %1626 = vst.msk [vmem:[#allocation6 + $0xf0] sm:$0xff] %vm1567_vm13, %v1616_v53  ;;  %v1936_v55 = vld [vmem:[#allocation5 + $0x36] sm:$0xff]  ;;  %1627 = vst.msk [vmem:[#allocation6 + $0x118] sm:$0xff] %vm1567_vm13, %v1617_v54  ;;  %v1360_v57 = vadd.f32 %v7390_v35, %v1359_v56 }
 0x230   : > { %1946 = vst.msk [vmem:[#allocation6 + $0xc0] sm:$0xff] %vm1567_vm13, %v1936_v55  ;;  %v6124_v58 = vpop.f32.mrf.mxu0  ;;  %v2072_v53 = vld [vmem:[#allocation18 + $0x230] sm:$0xff] }
 0x231   : > { %v1379_v60 = vmax.f32 %v1360_v57, 0.0  ;;  %v2071_v57 = vld [vmem:[#allocation18 + $0x228] sm:$0xff]  ;;  %v2070_v58 = vld [vmem:[#allocation18 + $0x220] sm:$0xff] }
 0x233   : > { %1601 = vst.msk [vmem:[#allocation5 + $0x40] sm:$0x1f] %vm9104_vm5, %v1379_v60  ;;  %vm2521_vm5 = vcmask 1045504  }
 0x234   : > { %1603 = vst.msk [vmem:[#allocation5 + $0x41] sm:$0xc0] %vm1602_vm6, %v1379_v60  ;;  %v2069_v60 = vld [vmem:[#allocation18 + $0x218] sm:$0xff] }
 0x237   : > { %v1364_v61 = vpop.f32.mrf.mxu0 }
 0x238   : > { %v1365_v62 = vadd.f32 %v7390_v35, %v1364_v61 }
 0x239   : > { %v6127_v63 = vpop.f32.mrf.mxu0 }
 0x23a   : > { %v1380_v0 = vmax.f32 %v1365_v62, 0.0  ;;  %v1877_v1 = vld [vmem:[#allocation5 + $0x3d] sm:$0xff]  ;;  %v2068_v63 = vld [vmem:[#allocation18 + $0x210] sm:$0xff] }
 0x23b   : > { %v1798_v2 = vld [vmem:[#allocation5 + $0x3c] sm:$0xff]  ;;  %1902 = vrot.lane.b32.xlu1 %v1877_v1, %s6816_s22 }
 0x23c   : > { %v7475_v3 = vld [vmem:[#allocation5 + $0x3a] sm:$0xff]  ;;  %1867 = vst.msk [vmem:[#allocation6 + $0xe0] sm:$0xff] %vm1567_vm13, %v1798_v2 }
 0x23d   : > { %v1778_v5 = vld [vmem:[#allocation5 + $0x3b] sm:$0xff]  ;;  %1709 = vst.msk [vmem:[#allocation6 + $0x120] sm:$0xff] %vm1567_vm13, %v7475_v3 }
 0x23e   : > { %1605 = vst.msk [vmem:[#allocation5 + $0x49] sm:$0x3f] %vm1604_vm7, %v1380_v0  ;;  %v1618_v7 = vld [vmem:[#allocation5 + $0x40] sm:$0xff] }
 0x23f   : > { %1607 = vst.msk [vmem:[#allocation5 + $0x4a] sm:$0x80] %vm1606_vm10, %v1380_v0  ;;  %v1937_v8 = vld [vmem:[#allocation5 + $0x3e] sm:$0xff]  ;;  %1822 = vrot.lane.b32.xlu1 %v1797_v50, %s6816_s22  ;;  %v6555_v0 = vld [vmem:[#allocation4 + $0x10] sm:$0xff]  ;;  %vm2470_vm10 = vcmask 1040384  }
 0x240   : > { %1788 = vst.msk [vmem:[#allocation6 + $0x100] sm:$0xff] %vm1567_vm13, %v1778_v5  ;;  %1628 = vst.msk [vmem:[#allocation6 + $0x140] sm:$0xff] %vm1567_vm13, %v1618_v7  ;;  %v1637_v50 = vld [vmem:[#allocation5 + $0x39] sm:$0xff]  ;;  %v1638_v55 = vld [vmem:[#allocation5 + $0x41] sm:$0xff] }
 0x241   : > { %1947 = vst.msk [vmem:[#allocation6 + $0xe8] sm:$0xff] %vm1567_vm13, %v1937_v8  ;;  %v7557_v5 = vld [vmem:[#allocation4 + $0x20] sm:$0xff] }
 0x242   : > { %v1861_v8 = vld [vmem:[#allocation5 + $0x5c] sm:$0x3f] }
 0x243   : > { %1824 = vrot.lane.b32.xlu1 %v1798_v2, %s6816_s22  ;;  %v2066_v2 = vld [vmem:[#allocation18 + $0x200] sm:$0xff]  ;;  %1871 = vst.msk [vmem:[#allocation6 + $0x180] sm:$0x3f] %vm1604_vm7, %v1861_v8 }
 0x245   : > { %v1799_v10 = vld [vmem:[#allocation5 + $0x44] sm:$0xff] }
 0x246   : > { %v7487_v11 = vld [vmem:[#allocation5 + $0x42] sm:$0xff]  ;;  %1868 = vst.msk [vmem:[#allocation6 + $0x108] sm:$0xff] %vm1567_vm13, %v1799_v10  ;;  %v1701_v14 = vld [vmem:[#allocation5 + $0x4a] sm:$0x3f] }
 0x247   : > { %v1779_v12 = vld [vmem:[#allocation5 + $0x43] sm:$0xff]  ;;  %1710 = vst.msk [vmem:[#allocation6 + $0x148] sm:$0xff] %vm1567_vm13, %v7487_v11  ;;  %v1369_v19 = vpop.f32.mrf.mxu1  ;;  %1826 = vrot.lane.b32.xlu1 %v1799_v10, %s6816_s22 }
 0x248   : > { %1789 = vst.msk [vmem:[#allocation6 + $0x128] sm:$0xff] %vm1567_vm13, %v1779_v12  ;;  %v1619_v16 = vld [vmem:[#allocation5 + $0x48] sm:$0x3f]  ;;  %v1370_v20 = vadd.f32 %v7390_v35, %v1369_v19 }
 0x249   : > { %1711 = vst.msk [vmem:[#allocation6 + $0x170] sm:$0x3f] %vm1604_vm7, %v1701_v14  ;;  %1629 = vst.msk [vmem:[#allocation6 + $0x168] sm:$0x3f] %vm1604_vm7, %v1619_v16  ;;  %v1938_v17 = vld [vmem:[#allocation5 + $0x46] sm:$0xff]  ;;  %v6130_v21 = vpop.f32.mrf.mxu1 }
 0x24a   : > { %1948 = vst.msk [vmem:[#allocation6 + $0x110] sm:$0xff] %vm1567_vm13, %v1938_v17  ;;  %v1381_v22 = vmax.f32 %v1370_v20, 0.0  ;;  %v1952_v35 = vld [vmem:[#allocation6] sm:$0xff]  ;;  %v1941_v16 = vld [vmem:[#allocation5 + $0x5e] sm:$0x3f]  ;;  %v6557_v17 = vld [vmem:[#allocation4 + $0x18] sm:$0xff] }
 0x24b   : > { %v1720_v62 = vld [vmem:[#allocation5 + $0x4a] sm:$0xff]  ;;  %1951 = vst.msk [vmem:[#allocation6 + $0x188] sm:$0x3f] %vm1604_vm7, %v1941_v16  ;;  %v1881_v20 = vld [vmem:[#allocation5 + $0x5d] sm:$0x3f] }
 0x24c   : > { %1609 = vst.msk [vmem:[#allocation5 + $0x52] sm:$0x7f] %vm1608_vm11, %v1381_v22  ;;  %v1639_v1 = vld [vmem:[#allocation5 + $0x49] sm:$0x3f]  ;;  %v6558_v22 = vld [vmem:[#allocation4 + $0x8] sm:$0xff]  ;;  %vm2502_vm11 = vcmask 1043456  }
 0x24d   : > { %v1653_v23 = vpop.permute.xlu1 %1652  ;;  %v1878_v7 = vld [vmem:[#allocation5 + $0x45] sm:$0xff] }
 0x24e   : > { %v1733_v25 = vpop.permute.xlu0 %1732  ;;  %1682 = vst.msk [vmem:[#allocation6 + $0x28] sm:$0xff] %vm1680_vm9, %v1653_v23  ;;  %v6559_v23 = vld [vmem:[#allocation4] sm:$0xff]  ;;  %v1956_v16 = vld [vmem:[#allocation6 + $0x20] sm:$0xff] }
 0x24f   : > { %1762 = vst.msk [vmem:[#allocation6 + $0x8] sm:$0xff] %vm1680_vm9, %v1733_v25 }
 0x251   : > { %v1813_v26 = vpop.permute.xlu1 %1812 }
 0x252   : > { %1842 = vst.msk [vmem:[#allocation6 + $0x10] sm:$0xff] %vm1680_vm9, %v1813_v26 }
 0x253   : > { %v1721_v28 = vld [vmem:[#allocation5 + $0x52] sm:$0x3f] }
 0x254   : > { %v1800_v31 = vld [vmem:[#allocation5 + $0x4c] sm:$0xff]  ;;  %1750 = vrot.lane.b32.xlu0 %v1721_v28, %s6816_s22  ;;  %v1860_v37 = vld [vmem:[#allocation5 + $0x54] sm:$0xff] }
 0x255   : > { %1828 = vrot.lane.b32.xlu1 %v1800_v31, %s6816_s22  ;;  %v1780_v32 = vld [vmem:[#allocation5 + $0x4b] sm:$0xff]  ;;  %1869 = vst.msk [vmem:[#allocation6 + $0x130] sm:$0xff] %vm1567_vm13, %v1800_v31  ;;  %v1781_v36 = vld [vmem:[#allocation5 + $0x53] sm:$0x3f]  ;;  %1870 = vst.msk [vmem:[#allocation6 + $0x158] sm:$0xff] %vm1567_vm13, %v1860_v37 }
 0x256   : > { %v1953_v33 = vld [vmem:[#allocation6 + $0x8] sm:$0xff]  ;;  %1790 = vst.msk [vmem:[#allocation6 + $0x150] sm:$0xff] %vm1567_vm13, %v1780_v32 }
 0x257   : > { %2175 = vmatprep.mubr.f32.mxu1 %v1953_v33  ;;  %1791 = vst.msk [vmem:[#allocation6 + $0x178] sm:$0x3f] %vm1604_vm7, %v1781_v36  ;;  %v1939_v38 = vld [vmem:[#allocation5 + $0x4e] sm:$0xff]  ;;  %v1940_v39 = vld [vmem:[#allocation5 + $0x56] sm:$0xff] }
 0x258   : > { %v1801_v40 = vld [vmem:[#allocation5 + $0x54] sm:$0x3f]  ;;  %2176 = vmatmul.mubr.f32.vlgmr.msra.gmra.mxu1 %v1952_v35  ;;  %1949 = vst.msk [vmem:[#allocation6 + $0x138] sm:$0xff] %vm1567_vm13, %v1939_v38  ;;  %1950 = vst.msk [vmem:[#allocation6 + $0x160] sm:$0xff] %vm1567_vm13, %v1940_v39  ;;  %1734 = vrot.lane.b32.xlu0 %v7405_v30, %s6816_s22  ;;  %v6819_v30 = vmov 13   ;;  %v6560_v35 = vld [vmem:[#allocation4 + $0x30] sm:$0xff] }
 0x259   : > { %1830 = vrot.lane.b32.xlu1 %v1801_v40, %s6816_s22  ;;  %v1954_v49 = vld [vmem:[#allocation6 + $0x10] sm:$0xff] }
 0x25a   : > { %v1880_v19 = vld [vmem:[#allocation5 + $0x55] sm:$0xff] }
 0x25c   : > { %1736 = vrot.lane.b32.xlu0 %v7418_v9, %s6816_s22  ;;  %v1635_v9 = vld [vmem:[#allocation5 + $0x29] sm:$0xff] }
 0x25d   : > { %1424 = vperm.xlu1 %6535, %v7381_v34   ;;  %v1655_v6 = vpop.permute.xlu1 %1654 }
 0x25e   : > { %1683 = vst.msk [vmem:[#allocation6 + $0x50] sm:$0xff] %vm1680_vm9, %v1655_v6 }
 0x260   : > { %1738 = vrot.lane.b32.xlu0 %v7437_v27, %s6816_s22 }
 0x261   : > { %1416 = vperm.xlu1 %6535, %v7369_v24   ;;  %v1815_v42 = vpop.permute.xlu1 %1814 }
 0x262   : > { %1843 = vst.msk [vmem:[#allocation6 + $0x38] sm:$0xff] %vm1680_vm9, %v1815_v42 }
 0x264   : > { %1658 = vrot.lane.b32.xlu0 %v1634_v43, %s6816_s22 }
 0x265   : > { %6536 = vset.pattern.permute.xlu1 %v6819_v30 }
 0x266   : > { %1483 = vperm.xlu1 %6536, %v7381_v34  }
 0x268   : > { %1740 = vrot.lane.b32.xlu0 %v7449_v41, %s6816_s22  ;;  %v1636_v41 = vld [vmem:[#allocation5 + $0x31] sm:$0xff] }
 0x269   : > { %v1959_v54 = vld [vmem:[#allocation6 + $0x38] sm:$0xff] }
 0x26a   : > { %6537 = vset.pattern.permute.xlu1 %v6817_v44 }
 0x26b   : > { %1412 = vperm.xlu1 %6537, %v7355_v15  }
 0x26c   : > { %1660 = vrot.lane.b32.xlu0 %v1635_v9, %s6816_s22  ;;  %v1962_v9 = vld [vmem:[#allocation6 + $0x50] sm:$0xff] }
 0x26e   : > { %v1657_v27 = vpop.permute.xlu1 %1656 }
 0x26f   : > { %1684 = vst.msk [vmem:[#allocation6 + $0x78] sm:$0xff] %vm1680_vm9, %v1657_v27  ;;  %6538 = vset.pattern.permute.xlu1 %v6818_v13 }
 0x270   : > { %1538 = vperm.xlu1 %6538, %v7377_v29   ;;  %1742 = vrot.lane.b32.xlu0 %v7461_v51, %s6816_s22 }
 0x273   : > { %v1893_v45 = vpop.permute.xlu1 %1892 }
 0x274   : > { %1922 = vst.msk [vmem:[#allocation6 + $0x18] sm:$0xff] %vm1680_vm9, %v1893_v45  ;;  %6540 = vset.pattern.permute.xlu1 %v6817_v44  ;;  %1662 = vrot.lane.b32.xlu0 %v1636_v41, %s6816_s22 }
 0x275   : > { %1408 = vperm.xlu1 %6540, %v7316_v4   ;;  %v2073_v4 = vld [vmem:[#allocation18 + $0x238] sm:$0xff] }
 0x276   : > { %6131 = vmatprep.subr.mxu1 %v2073_v4 }
 0x277   : > { %v1895_v46 = vpop.permute.xlu1 %1894  ;;  %6132 = vmatpush3.msra.mxu1 %v2073_v4 }
 0x278   : > { %1923 = vst.msk [vmem:[#allocation6 + $0x40] sm:$0xff] %vm1680_vm9, %v1895_v46  ;;  %1744 = vrot.lane.b32.xlu0 %v7475_v3, %s6816_s22  ;;  %6133 = vmatprep.subr.mxu1 %v2072_v53  ;;  %v1967_v46 = vld [vmem:[#allocation6 + $0x78] sm:$0xff] }
 0x279   : > { %6541 = vset.pattern.permute.xlu1 %v6819_v30  ;;  %6134 = vmatpush3.msra.mxu1 %v2072_v53 }
 0x27a   : > { %1471 = vperm.xlu1 %6541, %v7355_v15   ;;  %6135 = vmatprep.subr.mxu1 %v2071_v57 }
 0x27b   : > { %v1817_v47 = vpop.permute.xlu1 %1816  ;;  %v1955_v48 = vld [vmem:[#allocation6 + $0x18] sm:$0xff]  ;;  %6136 = vmatpush3.msra.mxu1 %v2071_v57 }
 0x27c   : > { %1844 = vst.msk [vmem:[#allocation6 + $0x60] sm:$0xff] %vm1680_vm9, %v1817_v47  ;;  %2290 = vmatprep.mubr.f32.mxu0 %v1955_v48  ;;  %1664 = vrot.lane.b32.xlu0 %v1637_v50, %s6816_s22  ;;  %v7605_v48 = vld [vmem:[%s9077_s6] ss:$0 sm:$0xff]  ;;  %v7610_v50 = vld [vmem:[%s9140_s21 + $0x1] ss:$0 sm:$0xff] }
 0x27d   : > { %2291 = vmatmul.mubr.f32.vlgmr.msra.gmra.mxu0 %v1954_v49  ;;  %6137 = vmatprep.subr.mxu1 %v2070_v58 }
 0x27e   : > { %6543 = vset.pattern.permute.xlu1 %v6817_v44  ;;  %6138 = vmatpush3.msra.mxu1 %v2070_v58 }
 0x27f   : > { %v1897_v51 = vpop.permute.xlu1 %1896  ;;  %v1960_v52 = vld [vmem:[#allocation6 + $0x40] sm:$0xff]  ;;  %1404 = vperm.xlu1 %6543, %v7302_v59   ;;  %6139 = vmatprep.subr.mxu1 %v2069_v60 }
 0x280   : > { %1924 = vst.msk [vmem:[#allocation6 + $0x68] sm:$0xff] %vm1680_vm9, %v1897_v51  ;;  %2295 = vmatprep.mubr.f32.mxu0 %v1960_v52  ;;  %1666 = vrot.lane.b32.xlu0 %v1638_v55, %s6816_s22 }
 0x281   : > { %2296 = vmatmul.mubr.f32.gmra.mxu0 %v1959_v54  ;;  %6140 = vmatpush3.msra.mxu1 %v2069_v60 }
 0x282   : > { %6141 = vmatprep.subr.mxu1 %v2068_v63 }
 0x283   : > { %v1819_v56 = vpop.permute.xlu1 %1818  ;;  %6544 = vset.pattern.permute.xlu1 %v6818_v13  ;;  %v1964_v61 = vld [vmem:[#allocation6 + $0x60] sm:$0xff]  ;;  %6142 = vmatpush3.msra.mxu1 %v2068_v63 }
 0x284   : > { %1845 = vst.msk [vmem:[#allocation6 + $0x88] sm:$0xff] %vm1680_vm9, %v1819_v56  ;;  %1530 = vperm.xlu1 %6544, %v7355_v15   ;;  %1746 = vrot.lane.b32.xlu0 %v7487_v11, %s6816_s22  ;;  %v2067_v15 = vld [vmem:[#allocation18 + $0x208] sm:$0xff] }
 0x285   : > { %6143 = vmatprep.subr.mxu1 %v2067_v15  ;;  %v1879_v11 = vld [vmem:[#allocation5 + $0x4d] sm:$0xff] }
 0x286   : > { %6144 = vmatpush3.msra.mxu1 %v2067_v15 }
 0x287   : > { %v1965_v59 = vld [vmem:[#allocation6 + $0x68] sm:$0xff]  ;;  %6145 = vmatprep.subr.mxu1 %v2066_v2 }
 0x288   : > { %2300 = vmatprep.mubr.f32.mxu0 %v1965_v59  ;;  %6545 = vset.pattern.permute.xlu1 %v6817_v44 }
 0x289   : > { %2301 = vmatmul.mubr.f32.gmra.mxu0 %v1964_v61  ;;  %1400 = vperm.xlu1 %6545, %v6555_v0  }
 0x28a   : > { %1748 = vrot.lane.b32.xlu0 %v1720_v62, %s6816_s22  ;;  %6146 = vmatpush3.msra.mxu1 %v2066_v2 }
 0x28b   : > { %v1969_v14 = vld [vmem:[#allocation6 + $0x88] sm:$0xff] }
 0x28d   : > { %6546 = vset.pattern.permute.xlu1 %v6818_v13 }
 0x28e   : > { %1668 = vrot.lane.b32.xlu0 %v1639_v1, %s6816_s22  ;;  %v1899_v3 = vpop.permute.xlu1 %1898  ;;  %1526 = vperm.xlu1 %6546, %v7557_v5  }
 0x28f   : > { %1925 = vst.msk [vmem:[#allocation6 + $0x90] sm:$0xff] %vm1680_vm9, %v1899_v3 }
 0x292   : > { %1904 = vrot.lane.b32.xlu0 %v1878_v7, %s6816_s22  ;;  %v1821_v10 = vpop.permute.xlu1 %1820  ;;  %6548 = vset.pattern.permute.xlu1 %v6819_v30 }
 0x293   : > { %1846 = vst.msk [vmem:[#allocation6 + $0xb0] sm:$0xff] %vm1680_vm9, %v1821_v10  ;;  %1459 = vperm.xlu1 %6548, %v6555_v0  }
 0x296   : > { %1906 = vrot.lane.b32.xlu0 %v1879_v11, %s6816_s22  ;;  %v1970_v12 = vld [vmem:[#allocation6 + $0x90] sm:$0xff] }
 0x297   : > { %2305 = vmatprep.mubr.f32.mxu0 %v1970_v12  ;;  %6549 = vset.pattern.permute.xlu1 %v6818_v13 }
 0x298   : > { %2306 = vmatmul.mubr.f32.gmra.mxu0 %v1969_v14  ;;  %1522 = vperm.xlu1 %6549, %v6557_v17  }
 0x29a   : > { %1908 = vrot.lane.b32.xlu0 %v1880_v19, %s6816_s22  ;;  %v1974_v26 = vld [vmem:[#allocation6 + $0xb0] sm:$0xff] }
 0x29c   : > { %1518 = vperm.xlu1 %6549, %v6555_v0  }
 0x29d   : > { %v1901_v21 = vpop.permute.xlu1 %1900 }
 0x29e   : > { %1910 = vrot.lane.b32.xlu0 %v1881_v20, %s6816_s22  ;;  %1926 = vst.msk [vmem:[#allocation6 + $0xb8] sm:$0xff] %vm1680_vm9, %v1901_v21  ;;  %v1961_v21 = vld [vmem:[#allocation6 + $0x48] sm:$0xff] }
 0x2a0   : > { %1514 = vperm.xlu1 %6549, %v6558_v22  }
 0x2a2   : > { %1542 = vperm.xlu0 %6539, %v7381_v34  }
 0x2a4   : > { %6551 = vset.pattern.permute.xlu1 %v6819_v30 }
 0x2a5   : > { %1451 = vperm.xlu1 %6551, %v6559_v23   ;;  %v1975_v25 = vld [vmem:[#allocation6 + $0xb8] sm:$0xff] }
 0x2a6   : > { %1534 = vperm.xlu0 %6539, %v7369_v24   ;;  %2310 = vmatprep.mubr.f32.mxu0 %v1975_v25 }
 0x2a7   : > { %2311 = vmatmul.mubr.f32.gmra.mxu0 %v1974_v26 }
 0x2a9   : > { %6552 = vset.pattern.permute.xlu1 %v6818_v13 }
 0x2aa   : > { %6542 = vset.pattern.permute.xlu0 %v6817_v44  ;;  %1510 = vperm.xlu1 %6552, %v6559_v23  }
 0x2ab   : > { %1420 = vperm.xlu0 %6542, %v7377_v29  }
 0x2ad   : > { %v1903_v28 = vpop.permute.xlu1 %1902 }
 0x2ae   : > { %1927 = vst.msk [vmem:[#allocation6 + $0xe0] sm:$0xff] %vm1680_vm9, %v1903_v28  ;;  %v1971_v28 = vld [vmem:[#allocation6 + $0x98] sm:$0xff] }
 0x2af   : > { %1396 = vperm.xlu0 %6542, %v6558_v22  }
 0x2b1   : > { %v1823_v34 = vpop.permute.xlu1 %1822 }
 0x2b2   : > { %1847 = vst.msk [vmem:[#allocation6 + $0xd8] sm:$0xff] %vm1680_vm9, %v1823_v34  ;;  %v1976_v34 = vld [vmem:[#allocation6 + $0xc0] sm:$0xff] }
 0x2b3   : > { %6547 = vset.pattern.permute.xlu0 %v6819_v30 }
 0x2b4   : > { %1479 = vperm.xlu0 %6547, %v7377_v29  }
 0x2b5   : > { %v1825_v24 = vpop.permute.xlu1 %1824  ;;  %v1980_v31 = vld [vmem:[#allocation6 + $0xe0] sm:$0xff] }
 0x2b6   : > { %1848 = vst.msk [vmem:[#allocation6 + $0x100] sm:$0xff] %vm1680_vm9, %v1825_v24  ;;  %2315 = vmatprep.mubr.f32.mxu0 %v1980_v31 }
 0x2b8   : > { %1475 = vperm.xlu0 %6547, %v6560_v35   ;;  %v1981_v35 = vld [vmem:[#allocation6 + $0xe8] sm:$0xff] }
 0x2b9   : > { %v1827_v32 = vpop.permute.xlu1 %1826  ;;  %v1979_v33 = vld [vmem:[#allocation6 + $0xd8] sm:$0xff] }
 0x2ba   : > { %1849 = vst.msk [vmem:[#allocation6 + $0x128] sm:$0xff] %vm1680_vm9, %v1827_v32  ;;  %2316 = vmatmul.mubr.f32.gmra.mxu0 %v1979_v33  ;;  %v1986_v32 = vld [vmem:[#allocation6 + $0x110] sm:$0xff] }
 0x2bc   : > { %1467 = vperm.xlu0 %6547, %v7557_v5  }
 0x2bd   : > { %v1984_v20 = vld [vmem:[#allocation6 + $0x100] sm:$0xff] }
 0x2c0   : > { %1463 = vperm.xlu0 %6547, %v6557_v17  }
 0x2c1   : > { %v1989_v26 = vld [vmem:[#allocation6 + $0x128] sm:$0xff] }
 0x2c4   : > { %1455 = vperm.xlu0 %6547, %v6558_v22   ;;  %v1966_v22 = vld [vmem:[#allocation6 + $0x70] sm:$0xff] }
 0x2c6   : > { %v1751_v36 = vpop.permute.xlu0 %1750 }
 0x2c7   : > { %v1829_v37 = vpop.permute.xlu1 %1828  ;;  %1771 = vst.msk [vmem:[#allocation6 + $0x170] sm:$0x3f] %vm9105_vm15, %v1751_v36 }
 0x2c8   : > { %6550 = vset.pattern.permute.xlu0 %v6817_v44  ;;  %1850 = vst.msk [vmem:[#allocation6 + $0x150] sm:$0xff] %vm1680_vm9, %v1829_v37  ;;  %v1957_v44 = vld [vmem:[#allocation6 + $0x28] sm:$0xff]  ;;  %v1991_v37 = vld [vmem:[#allocation6 + $0x138] sm:$0xff] }
 0x2c9   : > { %1392 = vperm.xlu0 %6550, %v6559_v23  }
 0x2ca   : > { %v1735_v29 = vpop.permute.xlu0 %1734 }
 0x2cb   : > { %v1831_v38 = vpop.permute.xlu1 %1830  ;;  %1763 = vst.msk [vmem:[#allocation6 + $0x30] sm:$0xff] %vm1680_vm9, %v1735_v29  ;;  %v1996_v29 = vld [vmem:[#allocation6 + $0x160] sm:$0xff] }
 0x2cc   : > { %1851 = vst.msk [vmem:[#allocation6 + $0x178] sm:$0x3f] %vm9105_vm15, %v1831_v38  ;;  %v2001_v38 = vld [vmem:[#allocation6 + $0x188] sm:$0x3f] }
 0x2cd   : > { %6553 = vset.pattern.permute.xlu0 %v6818_v13  ;;  %v7596_v13 = vld [vmem:[%s9139_s26] ss:$0 sm:$0xff]  ;;  %s6820_s26 = smov 96  }
 0x2ce   : > { %v1737_v39 = vpop.permute.xlu0 %1736  ;;  %v1998_v11 = vld [vmem:[#allocation6 + $0x170] sm:$0x3f] }
 0x2cf   : > { %1764 = vst.msk [vmem:[#allocation6 + $0x58] sm:$0xff] %vm1680_vm9, %v1737_v39  ;;  %v1994_v31 = vld [vmem:[#allocation6 + $0x150] sm:$0xff] }
 0x2d2   : > { %v1739_v40 = vpop.permute.xlu0 %1738  ;;  %v1958_v6 = vld [vmem:[#allocation6 + $0x30] sm:$0xff] }
 0x2d3   : > { %1765 = vst.msk [vmem:[#allocation6 + $0x80] sm:$0xff] %vm1680_vm9, %v1739_v40  ;;  %2180 = vmatprep.mubr.f32.mxu1 %v1958_v6  ;;  %v1999_v36 = vld [vmem:[#allocation6 + $0x178] sm:$0x3f] }
 0x2d4   : > { %2181 = vmatmul.mubr.f32.gmra.mxu1 %v1957_v44 }
 0x2d6   : > { %v1659_v42 = vpop.permute.xlu0 %1658  ;;  %v1963_v43 = vld [vmem:[#allocation6 + $0x58] sm:$0xff] }
 0x2d7   : > { %1685 = vst.msk [vmem:[#allocation6 + $0xa0] sm:$0xff] %vm1680_vm9, %v1659_v42  ;;  %2185 = vmatprep.mubr.f32.mxu1 %v1963_v43 }
 0x2d8   : > { %v1425_v30 = vpop.permute.xlu1 %1424  ;;  %2186 = vmatmul.mubr.f32.gmra.mxu1 %v1962_v9 }
 0x2d9   : > { %v1439_v47 = vmul.f32 %v7596_v13, %v1425_v30 }
 0x2da   : > { %v1741_v27 = vpop.permute.xlu0 %1740  ;;  %v1968_v45 = vld [vmem:[#allocation6 + $0x80] sm:$0xff] }
 0x2db   : > { %1766 = vst.msk [vmem:[#allocation6 + $0xa8] sm:$0xff] %vm1680_vm9, %v1741_v27  ;;  %2190 = vmatprep.mubr.f32.mxu1 %v1968_v45  ;;  %v1448_v51 = vadd.f32 %v7605_v48, %v1439_v47 }
 0x2dc   : > { %v7599_v41 = vpop.permute.xlu1 %1416  ;;  %2191 = vmatmul.mubr.f32.gmra.mxu1 %v1967_v46 }
 0x2de   : > { %v1661_v49 = vpop.permute.xlu0 %1660  ;;  %v1972_v56 = vld [vmem:[#allocation6 + $0xa0] sm:$0xff] }
 0x2df   : > { %1686 = vst.msk [vmem:[#allocation6 + $0xc8] sm:$0xff] %vm1680_vm9, %v1661_v49 }
 0x2e1   : > { %v1484_v4 = vpop.permute.xlu1 %1483 }
 0x2e2   : > { %v1498_v52 = vmul.f32 %v7610_v50, %v1484_v4  ;;  %v1743_v53 = vpop.permute.xlu0 %1742  ;;  %v1973_v54 = vld [vmem:[#allocation6 + $0xa8] sm:$0xff] }
 0x2e3   : > { %1767 = vst.msk [vmem:[#allocation6 + $0xd0] sm:$0xff] %vm1680_vm9, %v1743_v53  ;;  %2195 = vmatprep.mubr.f32.mxu1 %v1973_v54 }
 0x2e4   : > { %v7615_v55 = vadd.f32 %v1498_v52, %v1448_v51  ;;  %2196 = vmatmul.mubr.f32.gmra.mxu1 %v1972_v56 }
 0x2e6   : > { %v1663_v57 = vpop.permute.xlu0 %1662  ;;  %v1977_v60 = vld [vmem:[#allocation6 + $0xc8] sm:$0xff]  ;;  %v1413_v39 = vpop.permute.xlu1 %1412 }
 0x2e7   : > { %1687 = vst.msk [vmem:[#allocation6 + $0xf0] sm:$0xff] %vm1680_vm9, %v1663_v57 }
 0x2ea   : > { %v1745_v58 = vpop.permute.xlu0 %1744  ;;  %v1978_v59 = vld [vmem:[#allocation6 + $0xd0] sm:$0xff] }
 0x2eb   : > { %1768 = vst.msk [vmem:[#allocation6 + $0xf8] sm:$0xff] %vm1680_vm9, %v1745_v58  ;;  %2200 = vmatprep.mubr.f32.mxu1 %v1978_v59  ;;  %v7641_v40 = vpop.permute.xlu1 %1538 }
 0x2ec   : > { %2201 = vmatmul.mubr.f32.gmra.mxu1 %v1977_v60 }
 0x2ee   : > { %v1665_v61 = vpop.permute.xlu0 %1664  ;;  %v1982_v0 = vld [vmem:[#allocation6 + $0xf0] sm:$0xff] }
 0x2ef   : > { %1688 = vst.msk [vmem:[#allocation6 + $0x118] sm:$0xff] %vm1680_vm9, %v1665_v61 }
 0x2f0   : > { %v1409_v6 = vpop.permute.xlu1 %1408 }
 0x2f2   : > { %v1667_v62 = vpop.permute.xlu0 %1666  ;;  %v1983_v63 = vld [vmem:[#allocation6 + $0xf8] sm:$0xff] }
 0x2f3   : > { %1689 = vst.msk [vmem:[#allocation6 + $0x140] sm:$0xff] %vm1680_vm9, %v1667_v62  ;;  %2205 = vmatprep.mubr.f32.mxu1 %v1983_v63 }
 0x2f4   : > { %2206 = vmatmul.mubr.f32.gmra.mxu1 %v1982_v0 }
 0x2f5   : > { %v1472_v42 = vpop.permute.xlu1 %1471 }
 0x2f6   : > { %v1747_v15 = vpop.permute.xlu0 %1746  ;;  %v1987_v5 = vld [vmem:[#allocation6 + $0x118] sm:$0xff] }
 0x2f7   : > { %1769 = vst.msk [vmem:[#allocation6 + $0x120] sm:$0xff] %vm1680_vm9, %v1747_v15 }
 0x2fa   : > { %v1992_v10 = vld [vmem:[#allocation6 + $0x140] sm:$0xff]  ;;  %v1405_v30 = vpop.permute.xlu1 %1404 }
 0x2fc   : > { %v1749_v1 = vpop.permute.xlu0 %1748 }
 0x2fd   : > { %1770 = vst.msk [vmem:[#allocation6 + $0x148] sm:$0xff] %vm1680_vm9, %v1749_v1 }
 0x2fe   : > { %v1988_v3 = vld [vmem:[#allocation6 + $0x120] sm:$0xff] }
 0x2ff   : > { %2210 = vmatprep.mubr.f32.mxu1 %v1988_v3  ;;  %v1531_v46 = vpop.permute.xlu1 %1530 }
 0x300   : > { %v1669_v2 = vpop.permute.xlu0 %1668  ;;  %2211 = vmatmul.mubr.f32.gmra.mxu1 %v1987_v5 }
 0x301   : > { %1691 = vst.msk [vmem:[#allocation6 + $0x168] sm:$0x3f] %vm9105_vm15, %v1669_v2 }
 0x304   : > { %v1905_v7 = vpop.permute.xlu0 %1904  ;;  %v1993_v8 = vld [vmem:[#allocation6 + $0x148] sm:$0xff]  ;;  %v1401_v4 = vpop.permute.xlu1 %1400 }
 0x305   : > { %1928 = vst.msk [vmem:[#allocation6 + $0x108] sm:$0xff] %vm1680_vm9, %v1905_v7  ;;  %2215 = vmatprep.mubr.f32.mxu1 %v1993_v8 }
 0x306   : > { %2216 = vmatmul.mubr.f32.gmra.mxu1 %v1992_v10  ;;  %v1436_v10 = vmul.f32 %v7596_v13, %v1413_v39 }
 0x307   : > { %2220 = vmatprep.mubr.f32.mxu1 %v1998_v11 }
 0x308   : > { %v1907_v12 = vpop.permute.xlu0 %1906  ;;  %v1997_v14 = vld [vmem:[#allocation6 + $0x168] sm:$0x3f] }
 0x309   : > { %1929 = vst.msk [vmem:[#allocation6 + $0x130] sm:$0xff] %vm1680_vm9, %v1907_v12  ;;  %v7657_v53 = vpop.permute.xlu1 %1526 }
 0x30a   : > { %2221 = vmatmul.mubr.f32.gmra.mxu1 %v1997_v14  ;;  %v1495_v14 = vmul.f32 %v7610_v50, %v1472_v42 }
 0x30b   : > { %6147 = vmatprep.mubr.msk.f32.mxu1 %vm1567_vm13, %v1956_v16  ;;  %v1433_v16 = vmul.f32 %v7596_v13, %v1401_v4 }
 0x30c   : > { %v1909_v17 = vpop.permute.xlu0 %1908  ;;  %v1985_v19 = vld [vmem:[#allocation6 + $0x108] sm:$0xff] }
 0x30d   : > { %1930 = vst.msk [vmem:[#allocation6 + $0x158] sm:$0xff] %vm1680_vm9, %v1909_v17  ;;  %2320 = vmatprep.mubr.f32.mxu0 %v1985_v19  ;;  %v7691_v17 = vld [vmem:[%s9140_s21 + $0x2] ss:$0 sm:$0xff] }
 0x30e   : > { %2321 = vmatmul.mubr.f32.gmra.mxu0 %v1984_v20  ;;  %6148 = vmatmul.mubr.msk.f32.vlgmr.msra.gmra.mxu1 %vm1567_vm13, %v1961_v21  ;;  %v1460_v59 = vpop.permute.xlu1 %1459  ;;  %v1445_v21 = vadd.f32 %v7605_v48, %v1436_v10 }
 0x30f   : > { %6150 = vmatprep.mubr.msk.f32.mxu1 %vm1567_vm13, %v1966_v22  ;;  %v1554_v22 = vmul.f32 %v7691_v17, %v1531_v46 }
 0x310   : > { %v1911_v23 = vpop.permute.xlu0 %1910  ;;  %v1990_v25 = vld [vmem:[#allocation6 + $0x130] sm:$0xff] }
 0x311   : > { %1931 = vst.msk [vmem:[#allocation6 + $0x180] sm:$0x3f] %vm9105_vm15, %v1911_v23  ;;  %2325 = vmatprep.mubr.f32.mxu0 %v1990_v25  ;;  %v1492_v23 = vmul.f32 %v7610_v50, %v1460_v59  ;;  %vm2510_vm15 = vcmask 1044480  }
 0x312   : > { %2326 = vmatmul.mubr.f32.gmra.mxu0 %v1989_v26  ;;  %6151 = vmatmul.mubr.msk.f32.gmra.mxu1 %vm1567_vm13, %v1971_v28  ;;  %v1437_v26 = vmul.f32 %v7596_v13, %v7599_v41 }
 0x313   : > { %6153 = vmatprep.mubr.msk.f32.mxu1 %vm1567_vm13, %v1976_v34  ;;  %v1523_v15 = vpop.permute.xlu1 %1522  ;;  %v1435_v34 = vmul.f32 %v7596_v13, %v1409_v6 }
 0x314   : > { %v1995_v24 = vld [vmem:[#allocation6 + $0x158] sm:$0xff]  ;;  %v1446_v46 = vadd.f32 %v7605_v48, %v1437_v26 }
 0x315   : > { %2330 = vmatprep.mubr.f32.mxu0 %v1995_v24  ;;  %v1504_v24 = vadd.f32 %v1495_v14, %v1445_v21  ;;  %v1444_v4 = vadd.f32 %v7605_v48, %v1435_v34 }
 0x316   : > { %2331 = vmatmul.mubr.f32.gmra.mxu0 %v1994_v31  ;;  %6154 = vmatmul.mubr.msk.f32.gmra.mxu1 %vm1567_vm13, %v1981_v35  ;;  %v1442_v31 = vadd.f32 %v7605_v48, %v1433_v16 }
 0x317   : > { %6156 = vmatprep.mubr.msk.f32.mxu1 %vm1567_vm13, %v1986_v32  ;;  %v1519_v8 = vpop.permute.xlu1 %1518  ;;  %v1434_v32 = vmul.f32 %v7596_v13, %v1405_v30  ;;  %v1556_v30 = vmul.f32 %v7691_v17, %v7641_v40 }
 0x318   : > { %v2000_v33 = vld [vmem:[#allocation6 + $0x180] sm:$0x3f]  ;;  %v7647_v9 = vpop.f32.mrf.mxu1  ;;  %v1551_v35 = vmul.f32 %v7691_v17, %v1519_v8 }
 0x319   : > { %2335 = vmatprep.mubr.f32.mxu0 %v2000_v33 }
 0x31a   : > { %2336 = vmatmul.mubr.f32.gmra.mxu0 %v1999_v36  ;;  %6157 = vmatmul.mubr.msk.f32.gmra.mxu1 %vm1567_vm13, %v1991_v37  ;;  %v7649_v27 = vpop.f32.mrf.mxu1  ;;  %v7710_v37 = vadd.f32 %v1554_v22, %v1504_v24 }
 0x31b   : > { %6159 = vmatprep.mubr.msk.f32.mxu1 %vm1567_vm13, %v1996_v29  ;;  %6178 = vmatprep.mubr.msk.f32.mxu0 %vm6813_vm1, %v7427_v18  ;;  %v1515_v28 = vpop.permute.xlu1 %1514  ;;  %v1501_v29 = vadd.f32 %v1492_v23, %v1442_v31  ;;  %v1553_v31 = vmul.f32 %v7691_v17, %v7657_v53 }
 0x31c   : > { %v2504_v21 = vrot.slane %v7710_v37, 4  ;;  %v2511_v40 = vrot.slane %v7710_v37, 3 }
 0x31d   : > { %v7643_v44 = vpop.permute.xlu0 %1542  ;;  %v7723_v59 = vadd.f32 %v1551_v35, %v1501_v29  ;;  %v1552_v35 = vmul.f32 %v7691_v17, %v1523_v15  ;;  %v7754_v29 = vld [vmem:[%s9141_s23] ss:$0 sm:$0xff] }
 0x31e   : > { %6160 = vmatmul.mubr.msk.f32.gmra.mxu1 %vm1567_vm13, %v2001_v38 }
 0x31f   : > { %v2482_v15 = vrot.slane %v7723_v59, 6 }
 0x320   : > { %v1452_v10 = vpop.permute.xlu1 %1451 }
 0x321   : > { %v7645_v43 = vpop.permute.xlu0 %1534 }
 0x326   : > { %v1421_v45 = vpop.permute.xlu0 %1420 }
 0x32a   : > { %v1397_v49 = vpop.permute.xlu0 %1396 }
 0x32b   : > { %v1432_v38 = vmul.f32 %v7596_v13, %v1397_v49  ;;  %v1443_v49 = vadd.f32 %v7605_v48, %v1434_v32  ;;  %v2472_v32 = vrot.slane %v7723_v59, 7 }
 0x32d   : > { %v1441_v22 = vadd.f32 %v7605_v48, %v1432_v38 }
 0x32f   : > { %v1480_v52 = vpop.permute.xlu0 %1479 }
 0x330   : > { %v1497_v26 = vmul.f32 %v7610_v50, %v1480_v52 }
 0x333   : > { %v1476_v58 = vpop.permute.xlu0 %1475 }
 0x334   : > { %v1496_v41 = vmul.f32 %v7610_v50, %v1476_v58  ;;  %v1438_v58 = vmul.f32 %v7596_v13, %v1421_v45 }
 0x336   : > { %v1505_v34 = vadd.f32 %v1496_v41, %v1446_v46  ;;  %v1447_v52 = vadd.f32 %v7605_v48, %v1438_v58 }
 0x337   : > { %v1468_v0 = vpop.permute.xlu0 %1467 }
 0x338   : > { %v1494_v39 = vmul.f32 %v7610_v50, %v1468_v0  ;;  %v1506_v46 = vadd.f32 %v1497_v26, %v1447_v52 }
 0x33a   : > { %v1503_v24 = vadd.f32 %v1494_v39, %v1444_v4  ;;  %v1550_v39 = vmul.f32 %v7691_v17, %v1515_v28 }
 0x33b   : > { %v1464_v7 = vpop.permute.xlu0 %1463 }
 0x33c   : > { %v1493_v0 = vmul.f32 %v7610_v50, %v1464_v7 }
 0x33d   : > { %v7661_v56 = vpop.f32.mrf.mxu0 }
 0x33f   : > { %v7665_v60 = vpop.f32.mrf.mxu0  ;;  %v1456_v25 = vpop.permute.xlu0 %1455 }
 0x340   : > { %v1491_v14 = vmul.f32 %v7610_v50, %v1456_v25  ;;  %v5492_v28 = vadd.f32 %v7665_v60, %v7661_v56  ;;  %v7784_v56 = vmul.f32 %v7691_v17, %v7643_v44 }
 0x341   : > { %v7669_v62 = vpop.f32.mrf.mxu0 }
 0x342   : > { %v1500_v38 = vadd.f32 %v1491_v14, %v1441_v22 }
 0x343   : > { %v7673_v1 = vpop.f32.mrf.mxu0 }
 0x344   : > { %v1393_v8 = vpop.permute.xlu0 %1392  ;;  %v5495_v14 = vadd.f32 %v7673_v1, %v7669_v62 }
 0x345   : > { %v1431_v45 = vmul.f32 %v7596_v13, %v1393_v8  ;;  %v1502_v13 = vadd.f32 %v1493_v0, %v1443_v49  ;;  %v7765_v8 = vadd.f32 %v1553_v31, %v1503_v24 }
 0x347   : > { %v1440_v49 = vadd.f32 %v7605_v48, %v1431_v45  ;;  %v7778_v22 = vadd.f32 %v1552_v35, %v1502_v13  ;;  %v2503_v1 = vrot.slane %v7765_v8, 4 }
 0x349   : > { %v7677_v3 = vpop.f32.mrf.mxu0 }
 0x34b   : > { %v7682_v11 = vpop.f32.mrf.mxu0 }
 0x34c   : > { %v5498_v13 = vadd.f32 %v7682_v11, %v7677_v3 }
 0x358   : > { %v7693_v19 = vpop.f32.mrf.mxu0 }
 0x35a   : > { %v7706_v33 = vpop.f32.mrf.mxu0 }
 0x367   : > { %v7715_v6 = vpop.f32.mrf.mxu0 }
 0x369   : > { %v7738_v7 = vpop.f32.mrf.mxu0 }
 0x37a   : > { %v5505_v53 = vpop.f32.mrf.mxu0 }
 0x37c   : > { %v5506_v48 = vpop.f32.mrf.mxu0 }
 0x394   : > { %v7651_v47 = vpop.f32.mrf.mxu1 }
 0x396   : > { %v7653_v18 = vpop.f32.mrf.mxu1 }
 0x397   : > { %v5433_v23 = vadd.f32 %v7653_v18, %v7651_v47  ;;  %v5430_v47 = vadd.f32 %v7649_v27, %v7647_v9  ;;  %v1555_v18 = vmul.f32 %v7691_v17, %v7645_v43  ;;  %v1511_v27 = vpop.permute.xlu1 %1510 }
 0x398   : > { %v7655_v51 = vpop.f32.mrf.mxu1  ;;  %v1549_v60 = vmul.f32 %v7691_v17, %v1511_v27  ;;  %v2483_v17 = vrot.slane %v7778_v22, 6 }
 0x399   : > { %v2183_v9 = vadd.f32 %v5433_v23, %v7754_v29  ;;  %v7763_v4 = vadd.f32 %v1555_v18, %v1505_v34  ;;  %v2178_v0 = vadd.f32 %v5430_v47, %v7754_v29  ;;  %v1559_v23 = vadd.f32 %v1550_v39, %v1500_v38 }
 0x39a   : > { %v7659_v54 = vpop.f32.mrf.mxu1  ;;  %v5507_v39 = vadd.f32 %v5506_v48, %v5505_v53  ;;  %v2484_v11 = vsel %vm2481_vm4, %v2482_v15, %v2483_v17  ;;  %v5504_v48 = vadd.f32 %v7738_v7, %v7715_v6  ;;  %vm3317_vm4 = vcmask 780288  }
 0x39b   : > { %v2293_v31 = vadd.f32 %v5492_v28, %v2178_v0  ;;  %v2471_v47 = vrot.slane %v1559_v23, 7 }
 0x39c   : > { %v7663_v57 = vpop.f32.mrf.mxu1 }
 0x39e   : > { %v7667_v61 = vpop.f32.mrf.mxu1 }
 0x39f   : > { %v5439_v43 = vadd.f32 %v7667_v61, %v7663_v57  ;;  %v5436_v57 = vadd.f32 %v7659_v54, %v7655_v51  ;;  %v1490_v61 = vmul.f32 %v7610_v50, %v1452_v10  ;;  %v2298_v51 = vadd.f32 %v5495_v14, %v2183_v9 }
 0x3a0   : > { %v7788_v54 = vadd.f32 %v1556_v30, %v1506_v46  ;;  %v2522_v50 = vrot.slane %v7763_v4, 2 }
 0x3a1   : > { %v2193_v62 = vadd.f32 %v5439_v43, %v7754_v29  ;;  %v1499_v10 = vadd.f32 %v1490_v61, %v1440_v49  ;;  %v2188_v44 = vadd.f32 %v5436_v57, %v7754_v29 }
 0x3a3   : > { %v1558_v43 = vadd.f32 %v1549_v60, %v1499_v10  ;;  %v2303_v28 = vadd.f32 %v5498_v13, %v2188_v44 }
 0x3a4   : > { %v7671_v63 = vpop.f32.mrf.mxu1 }
 0x3a6   : > { %v7675_v2 = vpop.f32.mrf.mxu1 }
 0x3a7   : > { %v5442_v30 = vadd.f32 %v7675_v2, %v7671_v63  ;;  %v2492_v63 = vrot.slane %v7778_v22, 5 }
 0x3a9   : > { %v2198_v14 = vadd.f32 %v5442_v30, %v7754_v29 }
 0x3ac   : > { %v7679_v5 = vpop.f32.mrf.mxu1 }
 0x3ae   : > { %v7684_v12 = vpop.f32.mrf.mxu1 }
 0x3af   : > { %v5445_v26 = vadd.f32 %v7684_v12, %v7679_v5  ;;  %v5501_v5 = vadd.f32 %v7706_v33, %v7693_v19 }
 0x3b1   : > { %v2203_v35 = vadd.f32 %v5445_v26, %v7754_v29  ;;  %v2308_v33 = vadd.f32 %v5501_v5, %v2193_v62 }
 0x3b3   : > { %v2318_v53 = vadd.f32 %v5507_v39, %v2203_v35 }
 0x3b4   : > { %v7695_v20 = vpop.f32.mrf.mxu1 }
 0x3b6   : > { %v7708_v36 = vpop.f32.mrf.mxu1 }
 0x3b7   : > { %v5448_v3 = vadd.f32 %v7708_v36, %v7695_v20  ;;  %v2473_v36 = vsel %vm2470_vm10, %v2471_v47, %v2472_v32 }
 0x3b9   : > { %v2208_v44 = vadd.f32 %v5448_v3, %v7754_v29 }
 0x3c0   : > { %v7717_v42 = vpop.f32.mrf.mxu1 }
 0x3c2   : > { %v7729_v16 = vpop.f32.mrf.mxu1 }
 0x3c3   : > { %v5451_v9 = vadd.f32 %v7729_v16, %v7717_v42 }
 0x3c5   : > { %v2213_v26 = vadd.f32 %v5451_v9, %v7754_v29 }
 0x3c6   : > { %v7740_v25 = vpop.f32.mrf.mxu1 }
 0x3c8   : > { %v7756_v41 = vpop.f32.mrf.mxu1 }
 0x3c9   : > { %v5454_v6 = vadd.f32 %v7756_v41, %v7740_v25  ;;  %v2505_v25 = vsel %vm2502_vm11, %v2503_v1, %v2504_v21  ;;  %v2512_v21 = vrot.slane %v7763_v4, 3  ;;  %vm3324_vm11 = vcmask 783360  }
 0x3ca   : > { %v7768_v58 = vpop.f32.mrf.mxu1 }
 0x3cc   : > { %v5456_v34 = vpop.f32.mrf.mxu1 }
 0x3cd   : > { %v5457_v7 = vadd.f32 %v5456_v34, %v7768_v58 }
 0x3ce   : > { %v5508_v24 = vpop.f32.mrf.mxu0  ;;  %v6149_v45 = vpop.f32.mrf.mxu1 }
 0x3cf   : > { %v2413_v12 = vadd.f32 %v6149_v45, %v2298_v51  ;;  %v2223_v39 = vadd.f32 %v5457_v7, %v7754_v29  ;;  %v2547_v7 = vld [vmem:[%s9078_s7 + $0x28] sm:$0xff] }
 0x3d0   : > { %v5509_v18 = vpop.f32.mrf.mxu0  ;;  %v2407_v52 = vpop.f32.mrf.mxu1 }
 0x3d1   : > { %v2457_v38 = vmax.f32 %v2413_v12, 0.0  ;;  %v2408_v19 = vadd.f32 %v2407_v52, %v2293_v31  ;;  %v5510_v20 = vadd.f32 %v5509_v18, %v5508_v24  ;;  %v2313_v12 = vadd.f32 %v5504_v48, %v2198_v14 }
 0x3d2   : > { %v5511_v27 = vpop.f32.mrf.mxu0  ;;  %v6152_v46 = vpop.f32.mrf.mxu1  ;;  %v2523_v52 = vrot.slane %v7788_v54, 2 }
 0x3d3   : > { %v2476_v2 = vadd.f32 %v2471_v47, %v2457_v38  ;;  %v2456_v49 = vmax.f32 %v2408_v19, 0.0  ;;  %v2423_v0 = vadd.f32 %v6152_v46, %v2308_v33  ;;  %v2493_v47 = vrot.slane %v7765_v8, 5 }
 0x3d4   : > { %v5512_v42 = vpop.f32.mrf.mxu0  ;;  %v2417_v16 = vpop.f32.mrf.mxu1  ;;  %v2323_v13 = vadd.f32 %v5510_v20, %v2208_v44  ;;  %v2218_v38 = vadd.f32 %v5454_v6, %v7754_v29  ;;  %v1566_v46 = vadd.f32 %v7784_v56, %v7615_v55  ;;  %v2533_v29 = vrot.slane %v7788_v54, 1  ;;  %v2545_v44 = vld [vmem:[%s9078_s7 + $0x18] sm:$0xff]  ;;  %v2546_v6 = vld [vmem:[%s9078_s7 + $0x20] sm:$0xff] }
 0x3d5   : > { %2478 = vst.msk [vmem:[#allocation7 + $0x6] sm:$0xfc] %vm1587_vm12, %v2476_v2  ;;  %v2466_v57 = vadd.f32 %v2456_v49, %v1558_v43  ;;  %v2459_v61 = vmax.f32 %v2423_v0, 0.0  ;;  %v5513_v22 = vadd.f32 %v5512_v42, %v5511_v27  ;;  %v2418_v23 = vadd.f32 %v2417_v16, %v2303_v28 }
 0x3d6   : > { %v5514_v60 = vpop.f32.mrf.mxu0  ;;  %v6155_v62 = vpop.f32.mrf.mxu1  ;;  %v2494_v8 = vsel %vm1259_vm0, %v2492_v63, %v2493_v47  ;;  %v2524_v49 = vsel %vm2521_vm5, %v2522_v50, %v2523_v52  ;;  %v2513_v42 = vsel %vm2510_vm15, %v2511_v40, %v2512_v21  ;;  %vm2532_vm5 = vcmask 1046528   ;;  %v2878_v47 = vld [vmem:[#allocation20 + $0x78] sm:$0xff] }
 0x3d7   : > { %2467 = vst.msk [vmem:[#allocation7] sm:$0xff] %vm1567_vm13, %v2466_v57  ;;  %v2488_v51 = vadd.f32 %v2484_v11, %v2459_v61  ;;  %v2497_v10 = vadd.f32 %v2492_v63, %v2459_v61  ;;  %v2458_v45 = vmax.f32 %v2418_v23, 0.0  ;;  %v2433_v5 = vadd.f32 %v6155_v62, %v2318_v53  ;;  %v7856_v23 = vld [vmem:[#allocation13] sm:$0xff] }
 0x3d8   : > { %v5515_v24 = vpop.f32.mrf.mxu0  ;;  %v2427_v31 = vpop.f32.mrf.mxu1  ;;  %v2328_v35 = vadd.f32 %v5513_v22, %v2213_v26  ;;  %v2534_v16 = vrot.slane %v1566_v46, 1  ;;  %v2906_v46 = vld [vmem:[#allocation20 + $0x158] sm:$0xff]  ;;  %vm3315_vm15 = vcmask 785415  }
 0x3d9   : > { %2490 = vst.msk [vmem:[#allocation7 + $0x14] sm:$0xf] %vm1580_vm8, %v2488_v51  ;;  %v2477_v32 = vadd.f32 %v2473_v36, %v2458_v45  ;;  %v2487_v17 = vadd.f32 %v2482_v15, %v2458_v45  ;;  %v2461_v30 = vmax.f32 %v2433_v5, 0.0  ;;  %v5516_v41 = vadd.f32 %v5515_v24, %v5514_v60  ;;  %v2542_v51 = vld [vmem:[%s9078_s7] sm:$0xff]  ;;  %v2543_v45 = vld [vmem:[%s9078_s7 + $0x8] sm:$0xff]  ;;  %v2544_v5 = vld [vmem:[%s9078_s7 + $0x10] sm:$0xff] }
 0x3da   : > { %2499 = vst.msk [vmem:[#allocation7 + $0x12] sm:$0xc0] %vm1602_vm6, %v2497_v10  ;;  %v2428_v58 = vadd.f32 %v2427_v31, %v2313_v12  ;;  %v5517_v34 = vpop.f32.mrf.mxu0  ;;  %v6158_v18 = vpop.f32.mrf.mxu1  ;;  %v2535_v57 = vsel %vm2532_vm5, %v2533_v29, %v2534_v16  ;;  %v2548_v24 = vld [vmem:[%s9078_s7 + $0x30] sm:$0xff]  ;;  %v2549_v12 = vld [vmem:[%s9078_s7 + $0x38] sm:$0xff]  ;;  %v2550_v31 = vld [vmem:[%s9078_s7 + $0x40] sm:$0xff]  ;;  %vm3387_vm5 = vcmask 1047808  }
 0x3db   : > { %2479 = vst.msk [vmem:[#allocation7 + $0xe] sm:$0x3] %vm1589_vm14, %v2477_v32  ;;  %v2507_v59 = vadd.f32 %v2505_v25, %v2461_v30  ;;  %v2443_v15 = vadd.f32 %v6158_v18, %v2328_v35  ;;  %v2333_v0 = vadd.f32 %v5516_v41, %v2218_v38  ;;  %v2551_v32 = vld [vmem:[%s9078_s7 + $0x48] sm:$0xff]  ;;  %v2553_v30 = vld [vmem:[%s9078_s7 + $0x58] sm:$0xff]  ;;  %v2894_v35 = vld [vmem:[#allocation20 + $0xf8] sm:$0xff] }
 0x3dc   : > { %2489 = vst.msk [vmem:[#allocation7 + $0xc] sm:$0xf0] %vm1595_vm3, %v2487_v17  ;;  %v2460_v19 = vmax.f32 %v2428_v58, 0.0  ;;  %v5518_v1 = vpop.f32.mrf.mxu0  ;;  %v2437_v33 = vpop.f32.mrf.mxu1  ;;  %v2552_v17 = vld [vmem:[%s9078_s7 + $0x50] sm:$0xff]  ;;  %v2893_v25 = vld [vmem:[#allocation20 + $0xf0] sm:$0xff]  ;;  %5559 = vmatprep.subr.mxu1 %v2894_v35  ;;  %v2892_v58 = vld [vmem:[#allocation20 + $0xe8] sm:$0xff] }
 0x3dd   : > { %2508 = vst.msk [vmem:[#allocation7 + $0x20] sm:$0xff] %vm1567_vm13, %v2507_v59  ;;  %v2463_v9 = vmax.f32 %v2443_v15, 0.0  ;;  %v5519_v43 = vadd.f32 %v5518_v1, %v5517_v34  ;;  %v2438_v27 = vadd.f32 %v2437_v33, %v2323_v13  ;;  %v2877_v41 = vld [vmem:[#allocation20 + $0x70] sm:$0xff]  ;;  %5560 = vmatpush3.msra.mxu1 %v2878_v47  ;;  %v2926_v34 = vld [vmem:[#allocation20 + $0x1f8] sm:$0xff]  ;;  %v2891_v15 = vld [vmem:[#allocation20 + $0xe0] sm:$0xff] }
 0x3de   : > { %v2498_v2 = vadd.f32 %v2494_v8, %v2460_v19  ;;  %v6161_v63 = vpop.f32.mrf.mxu1  ;;  %v2555_v10 = vld [vmem:[#allocation7] sm:$0xff]  ;;  %5561 = vmatprep.subr.mxu1 %v2893_v25  ;;  %v2925_v59 = vld [vmem:[#allocation20 + $0x1f0] sm:$0xff]  ;;  %v2924_v38 = vld [vmem:[#allocation20 + $0x1e8] sm:$0xff] }
 0x3df   : > { %v2517_v28 = vadd.f32 %v2512_v21, %v2463_v9  ;;  %v2527_v14 = vadd.f32 %v2524_v49, %v2463_v9  ;;  %v2462_v3 = vmax.f32 %v2438_v27, 0.0  ;;  %v2338_v11 = vadd.f32 %v5519_v43, %v2223_v39  ;;  %v2910_v18 = vld [vmem:[#allocation20 + $0x178] sm:$0xff]  ;;  %5562 = vmatpush3.msra.mxu1 %v2877_v41  ;;  %v2909_v13 = vld [vmem:[#allocation20 + $0x170] sm:$0xff]  ;;  %v2875_v19 = vld [vmem:[#allocation20 + $0x60] sm:$0xff] }
 0x3e0   : > { %2500 = vst.msk [vmem:[#allocation7 + $0x1a] sm:$0x3f] %vm1604_vm7, %v2498_v2  ;;  %v2447_v55 = vpop.f32.mrf.mxu1  ;;  %5563 = vmatprep.subr.mxu1 %v2892_v58  ;;  %v2908_v8 = vld [vmem:[#allocation20 + $0x168] sm:$0xff]  ;;  %v2890_v21 = vld [vmem:[#allocation20 + $0xd8] sm:$0xff]  ;;  %v2923_v1 = vld [vmem:[#allocation20 + $0x1e0] sm:$0xff] }
 0x3e1   : > { %2519 = vst.msk [vmem:[#allocation7 + $0x2e] sm:$0x3] %vm1589_vm14, %v2517_v28  ;;  %v2516_v4 = vadd.f32 %v2513_v42, %v2462_v3  ;;  %v2453_v56 = vadd.f32 %v6161_v63, %v2338_v11  ;;  %v2448_v50 = vadd.f32 %v2447_v55, %v2333_v0  ;;  %v2874_v33 = vld [vmem:[#allocation20 + $0x58] sm:$0xff]  ;;  %v2907_v39 = vld [vmem:[#allocation20 + $0x160] sm:$0xff]  ;;  %v2889_v9 = vld [vmem:[#allocation20 + $0xd0] sm:$0xff]  ;;  %vm3306_vm14 = vcmask 781312  }
 0x3e2   : > { %2529 = vst.msk [vmem:[#allocation7 + $0x2c] sm:$0xf0] %vm1595_vm3, %v2527_v14  ;;  %v2556_v62 = vld [vmem:[#allocation7 + $0x8] sm:$0xff]  ;;  %v2922_v43 = vld [vmem:[#allocation20 + $0x1d8] sm:$0xff]  ;;  %v2873_v27 = vld [vmem:[#allocation20 + $0x50] sm:$0xff]  ;;  %vm3311_vm3 = vcmask 778240  }
 0x3e3   : > { %2518 = vst.msk [vmem:[#allocation7 + $0x26] sm:$0xfc] %vm1587_vm12, %v2516_v4  ;;  %v2465_v53 = vmax.f32 %v2453_v56, 0.0  ;;  %v2464_v54 = vmax.f32 %v2448_v50, 0.0  ;;  %v2557_v60 = vld [vmem:[#allocation7 + $0x10] sm:$0xff]  ;;  %v2921_v49 = vld [vmem:[#allocation20 + $0x1d0] sm:$0xff] }
 0x3e4   : > { %v2559_v20 = vld [vmem:[#allocation7 + $0x20] sm:$0xff]  ;;  %v2888_v2 = vld [vmem:[#allocation20 + $0xc8] sm:$0xff]  ;;  %v2905_v0 = vld [vmem:[#allocation20 + $0x150] sm:$0xff]  ;;  %vm3301_vm12 = vcmask 785408   ;;  %3307 = vst.msk [vmem:[#allocation9 + $0x20] sm:$0xf] %vm3306_vm14, %v7856_v23 }
 0x3e5   : > { %v2539_v61 = vadd.f32 %v2534_v16, %v2465_v53  ;;  %v2528_v22 = vadd.f32 %v2523_v52, %v2464_v54  ;;  %v2538_v37 = vadd.f32 %v2535_v57, %v2464_v54  ;;  %v2876_v52 = vld [vmem:[#allocation20 + $0x68] sm:$0xff]  ;;  %v2887_v28 = vld [vmem:[#allocation20 + $0xc0] sm:$0xff]  ;;  %v2886_v29 = vld [vmem:[#allocation20 + $0xb8] sm:$0xff]  ;;  %3302 = vst.msk [vmem:[#allocation9] sm:$0xff] %vm3301_vm12, %v7856_v23 }
 0x3e6   : > { %5564 = vmatpush3.msra.mxu1 %v2876_v52  ;;  %v2872_v63 = vld [vmem:[#allocation20 + $0x48] sm:$0xff]  ;;  %v2871_v3 = vld [vmem:[#allocation20 + $0x40] sm:$0xff]  ;;  %v2870_v55 = vld [vmem:[#allocation20 + $0x38] sm:$0xff]  ;;  %3303 = vst.msk [vmem:[#allocation9 + $0x8] sm:$0xff] %vm3301_vm12, %v7856_v23 }
 0x3e7   : > { %2541 = vst.msk [vmem:[#allocation7 + $0x3a] sm:$0x3f] %vm1604_vm7, %v2539_v61  ;;  %v2558_v36 = vld [vmem:[#allocation7 + $0x18] sm:$0xff]  ;;  %5565 = vmatprep.subr.mxu1 %v2891_v15  ;;  %v2920_v14 = vld [vmem:[#allocation20 + $0x1c8] sm:$0xff]  ;;  %v2919_v42 = vld [vmem:[#allocation20 + $0x1c0] sm:$0xff] }
 0x3e8   : > { %2530 = vst.msk [vmem:[#allocation7 + $0x34] sm:$0xf] %vm1580_vm8, %v2528_v22  ;;  %5566 = vmatpush3.msra.mxu1 %v2875_v19  ;;  %v2904_v11 = vld [vmem:[#allocation20 + $0x148] sm:$0xff]  ;;  %v2885_v4 = vld [vmem:[#allocation20 + $0xb0] sm:$0xff]  ;;  %vm2768_vm8 = vcmask 1042944  }
 0x3e9   : > { %2540 = vst.msk [vmem:[#allocation7 + $0x32] sm:$0xc0] %vm1602_vm6, %v2538_v37  ;;  %5567 = vmatprep.subr.mxu1 %v2890_v21  ;;  %v2869_v56 = vld [vmem:[#allocation20 + $0x30] sm:$0xff]  ;;  %v2916_v15 = vld [vmem:[#allocation20 + $0x1a8] sm:$0xff]  ;;  %v2915_v21 = vld [vmem:[#allocation20 + $0x1a0] sm:$0xff]  ;;  %vm3313_vm6 = vcmask 783362  }
 0x3ea   : > { %v2560_v26 = vld [vmem:[#allocation7 + $0x28] sm:$0xff]  ;;  %5568 = vmatpush3.msra.mxu1 %v2874_v33  ;;  %v2901_v52 = vld [vmem:[#allocation20 + $0x130] sm:$0xff]  ;;  %v2900_v19 = vld [vmem:[#allocation20 + $0x128] sm:$0xff]  ;;  %3304 = vst.msk [vmem:[#allocation9 + $0x10] sm:$0xff] %vm3301_vm12, %v7856_v23 }
 0x3eb   : > { %5569 = vmatprep.subr.mxu1 %v2889_v9  ;;  %v2899_v9 = vld [vmem:[#allocation20 + $0x120] sm:$0xff]  ;;  %3305 = vst.msk [vmem:[#allocation9 + $0x18] sm:$0xff] %vm3301_vm12, %v7856_v23 }
 0x3ec   : > { %5570 = vmatpush3.msra.mxu1 %v2873_v27 }
 0x3ed   : > { %5571 = vmatprep.subr.mxu1 %v2888_v2  ;;  %v2879_v2 = vld [vmem:[#allocation20 + $0x80] sm:$0xff] }
 0x3ee   : > { %5572 = vmatpush3.msra.mxu1 %v2872_v63  ;;  %v2863_v63 = vld [vmem:[#allocation20] sm:$0xff] }
 0x3ef   : > { %v2561_v48 = vld [vmem:[#allocation7 + $0x30] sm:$0xff]  ;;  %5573 = vmatprep.subr.mxu1 %v2887_v28 }
 0x3f0   : > { %v2562_v40 = vld [vmem:[#allocation7 + $0x38] sm:$0xff]  ;;  %5574 = vmatpush3.msra.mxu1 %v2871_v3  ;;  %v2554_v3 = vld [vmem:[%s9078_s7 + $0x60] sm:$0xf] }
 0x3f1   : > { %6163 = vmatpush3.msra.mxu0 %v2562_v40  ;;  %5575 = vmatprep.subr.mxu1 %v2886_v29 }
 0x3f2   : > { %6164 = vmatprep.subr.mxu0 %v7856_v23  ;;  %5576 = vmatpush3.msra.mxu1 %v2870_v55  ;;  %v2911_v55 = vld [vmem:[#allocation20 + $0x180] sm:$0xff] }
 0x3f3   : > { %6165 = vmatpush3.msra.mxu0 %v2561_v48  ;;  %5577 = vmatprep.subr.mxu1 %v2885_v4  ;;  %v2884_v48 = vld [vmem:[#allocation20 + $0xa8] sm:$0xff] }
 0x3f4   : > { %6166 = vmatprep.subr.mxu0 %v7856_v23  ;;  %5578 = vmatpush3.msra.mxu1 %v2869_v56 }
 0x3f5   : > { %6167 = vmatpush3.msra.mxu0 %v2560_v26  ;;  %v2903_v26 = vld [vmem:[#allocation20 + $0x140] sm:$0xff]  ;;  %5579 = vmatprep.subr.mxu1 %v2884_v48 }
 0x3f6   : > { %6168 = vmatprep.subr.mxu0 %v7856_v23 }
 0x3f7   : > { %6169 = vmatpush3.msra.mxu0 %v2559_v20  ;;  %v2868_v20 = vld [vmem:[#allocation20 + $0x28] sm:$0xff] }
 0x3f8   : > { %6170 = vmatprep.subr.mxu0 %v7856_v23  ;;  %5580 = vmatpush3.msra.mxu1 %v2868_v20 }
 0x3f9   : > { %6171 = vmatpush3.msra.mxu0 %v2558_v36  ;;  %v2918_v36 = vld [vmem:[#allocation20 + $0x1b8] sm:$0xff] }
 0x3fa   : > { %6172 = vmatprep.subr.mxu0 %v7856_v23 }
 0x3fb   : > { %6173 = vmatpush3.msra.mxu0 %v2557_v60  ;;  %v2883_v60 = vld [vmem:[#allocation20 + $0xa0] sm:$0xff] }
 0x3fc   : > { %6174 = vmatprep.subr.mxu0 %v7856_v23  ;;  %5581 = vmatprep.subr.mxu1 %v2883_v60 }
 0x3fd   : > { %6175 = vmatpush3.msra.mxu0 %v2556_v62 }
 0x3fe   : > { %6176 = vmatprep.subr.mxu0 %v7856_v23 }
 0x3ff   : > { %6177 = vmatpush3.msra.mxu0 %v2555_v10  ;;  %v2867_v10 = vld [vmem:[#allocation20 + $0x20] sm:$0xff] }
 0x400   : > { %6179 = vmatmul.mubr.msk.f32.vlgmr.msra.gmra.mxu0 %vm1567_vm13, %v2542_v51  ;;  %5600 = vmatprep.subr.mxu0 %v2926_v34  ;;  %v2902_v51 = vld [vmem:[#allocation20 + $0x138] sm:$0xff] }
 0x401   : > { %6181 = vmatprep.mubr.msk.f32.mxu0 %vm6813_vm1, %v7856_v23  ;;  %5601 = vmatpush3.msra.mxu0 %v2910_v18  ;;  %v2882_v18 = vld [vmem:[#allocation20 + $0x98] sm:$0xff] }
 0x402   : > { %5602 = vmatprep.subr.mxu0 %v2925_v59  ;;  %5582 = vmatpush3.msra.mxu1 %v2867_v10  ;;  %v2866_v59 = vld [vmem:[#allocation20 + $0x18] sm:$0xff] }
 0x403   : > { %5603 = vmatpush3.msra.mxu0 %v2909_v13  ;;  %5583 = vmatprep.subr.mxu1 %v2882_v18 }
 0x404   : > { %6182 = vmatmul.mubr.msk.f32.gmra.mxu0 %vm1567_vm13, %v2543_v45  ;;  %5604 = vmatprep.subr.mxu0 %v2924_v38  ;;  %v2917_v45 = vld [vmem:[#allocation20 + $0x1b0] sm:$0xff] }
 0x405   : > { %6184 = vmatprep.mubr.msk.f32.mxu0 %vm6813_vm1, %v7856_v23  ;;  %5605 = vmatpush3.msra.mxu0 %v2908_v8  ;;  %v2881_v38 = vld [vmem:[#allocation20 + $0x90] sm:$0xff] }
 0x406   : > { %5606 = vmatprep.subr.mxu0 %v2923_v1  ;;  %5584 = vmatpush3.msra.mxu1 %v2866_v59  ;;  %v2865_v8 = vld [vmem:[#allocation20 + $0x10] sm:$0xff] }
 0x407   : > { %5607 = vmatpush3.msra.mxu0 %v2907_v39  ;;  %5585 = vmatprep.subr.mxu1 %v2881_v38  ;;  %v2880_v39 = vld [vmem:[#allocation20 + $0x88] sm:$0xff] }
 0x408   : > { %6185 = vmatmul.mubr.msk.f32.gmra.mxu0 %vm1567_vm13, %v2544_v5  ;;  %5608 = vmatprep.subr.mxu0 %v2922_v43  ;;  %v2864_v43 = vld [vmem:[#allocation20 + $0x8] sm:$0xff] }
 0x409   : > { %6187 = vmatprep.mubr.msk.f32.mxu0 %vm6813_vm1, %v7856_v23  ;;  %5609 = vmatpush3.msra.mxu0 %v2906_v46  ;;  %v2914_v46 = vld [vmem:[#allocation20 + $0x198] sm:$0xff] }
 0x40a   : > { %5610 = vmatprep.subr.mxu0 %v2921_v49  ;;  %5586 = vmatpush3.msra.mxu1 %v2865_v8  ;;  %v2898_v49 = vld [vmem:[#allocation20 + $0x118] sm:$0xff] }
 0x40b   : > { %5611 = vmatpush3.msra.mxu0 %v2905_v0  ;;  %5587 = vmatprep.subr.mxu1 %v2880_v39  ;;  %v2913_v0 = vld [vmem:[#allocation20 + $0x190] sm:$0xff]  ;;  %v2927_v39 = vld [vmem:[#allocation20 + $0x200] sm:$0xff] }
 0x40c   : > { %6188 = vmatmul.mubr.msk.f32.gmra.mxu0 %vm1567_vm13, %v2545_v44  ;;  %5612 = vmatprep.subr.mxu0 %v2920_v14  ;;  %v2897_v14 = vld [vmem:[#allocation20 + $0x110] sm:$0xff] }
 0x40d   : > { %6190 = vmatprep.mubr.msk.f32.mxu0 %vm6813_vm1, %v7856_v23  ;;  %5613 = vmatpush3.msra.mxu0 %v2904_v11  ;;  %v2912_v11 = vld [vmem:[#allocation20 + $0x188] sm:$0xff] }
 0x40e   : > { %5614 = vmatprep.subr.mxu0 %v2919_v42  ;;  %5588 = vmatpush3.msra.mxu1 %v2864_v43  ;;  %v2896_v42 = vld [vmem:[#allocation20 + $0x108] sm:$0xff] }
 0x40f   : > { %5615 = vmatpush3.msra.mxu0 %v2903_v26  ;;  %5589 = vmatprep.subr.mxu1 %v2879_v2  ;;  %v3203_v2 = vld [vmem:[%s9083_s12 + $0x30] sm:$0xff] }
 0x410   : > { %6191 = vmatmul.mubr.msk.f32.gmra.mxu0 %vm1567_vm13, %v2546_v6  ;;  %5616 = vmatprep.subr.mxu0 %v2918_v36 }
 0x411   : > { %6193 = vmatprep.mubr.msk.f32.mxu0 %vm6813_vm1, %v7856_v23  ;;  %5617 = vmatpush3.msra.mxu0 %v2902_v51 }
 0x412   : > { %5618 = vmatprep.subr.mxu0 %v2917_v45  ;;  %5590 = vmatpush3.msra.mxu1 %v2863_v63 }
 0x413   : > { %5619 = vmatpush3.msra.mxu0 %v2901_v52  ;;  %6217 = vmatprep.subr.mxu1 %v7856_v23  ;;  %v2931_v52 = vld [vmem:[#allocation20 + $0x220] sm:$0xff] }
 0x414   : > { %6194 = vmatmul.mubr.msk.f32.gmra.mxu0 %vm1567_vm13, %v2547_v7  ;;  %5620 = vmatprep.subr.mxu0 %v2916_v15 }
 0x415   : > { %6196 = vmatprep.mubr.msk.f32.mxu0 %vm6813_vm1, %v7856_v23  ;;  %5621 = vmatpush3.msra.mxu0 %v2900_v19  ;;  %v2929_v19 = vld [vmem:[#allocation20 + $0x210] sm:$0xff] }
 0x416   : > { %5622 = vmatprep.subr.mxu0 %v2915_v21 }
 0x417   : > { %5623 = vmatpush3.msra.mxu0 %v2899_v9 }
 0x418   : > { %6197 = vmatmul.mubr.msk.f32.gmra.mxu0 %vm1567_vm13, %v2548_v24  ;;  %5624 = vmatprep.subr.mxu0 %v2914_v46 }
 0x419   : > { %6199 = vmatprep.mubr.msk.f32.mxu0 %vm6813_vm1, %v7856_v23  ;;  %5625 = vmatpush3.msra.mxu0 %v2898_v49 }
 0x41a   : > { %5626 = vmatprep.subr.mxu0 %v2913_v0  ;;  %v3202_v0 = vld [vmem:[%s9083_s12 + $0x28] sm:$0xff] }
 0x41b   : > { %5627 = vmatpush3.msra.mxu0 %v2897_v14  ;;  %v3201_v14 = vld [vmem:[%s9083_s12 + $0x20] sm:$0xff] }
 0x41c   : > { %6200 = vmatmul.mubr.msk.f32.gmra.mxu0 %vm1567_vm13, %v2549_v12  ;;  %5628 = vmatprep.subr.mxu0 %v2912_v11 }
 0x41d   : > { %6202 = vmatprep.mubr.msk.f32.mxu0 %vm6813_vm1, %v7856_v23  ;;  %5629 = vmatpush3.msra.mxu0 %v2896_v42  ;;  %v3198_v42 = vld [vmem:[%s9083_s12 + $0x8] sm:$0xff] }
 0x41e   : > { %5630 = vmatprep.subr.mxu0 %v2911_v55  ;;  %v3197_v55 = vld [vmem:[%s9083_s12] sm:$0xff] }
 0x420   : > { %6203 = vmatmul.mubr.msk.f32.gmra.mxu0 %vm1567_vm13, %v2550_v31 }
 0x421   : > { %6205 = vmatprep.mubr.msk.f32.mxu0 %vm6813_vm1, %v7856_v23 }
 0x424   : > { %6206 = vmatmul.mubr.msk.f32.gmra.mxu0 %vm1567_vm13, %v2551_v32 }
 0x425   : > { %6208 = vmatprep.mubr.msk.f32.mxu0 %vm6813_vm1, %v7856_v23 }
 0x428   : > { %6209 = vmatmul.mubr.msk.f32.gmra.mxu0 %vm1567_vm13, %v2552_v17 }
 0x429   : > { %6211 = vmatprep.mubr.msk.f32.mxu0 %vm6813_vm1, %v7856_v23 }
 0x42c   : > { %6212 = vmatmul.mubr.msk.f32.gmra.mxu0 %vm1567_vm13, %v2553_v30 }
 0x42d   : > { %6214 = vmatprep.mubr.msk.f32.mxu0 %vm6813_vm1, %v7856_v23 }
 0x430   : > { %6215 = vmatmul.mubr.msk.f32.gmra.mxu0 %vm1567_vm13, %v2554_v3  ;;  %v3200_v3 = vld [vmem:[%s9083_s12 + $0x18] sm:$0xff] }
 0x4c0   : > { %v2668_v50 = vpop.f32.mrf.mxu0 }
 0x4c1   : > { %2732 = vst.msk [vmem:[#allocation2] sm:$0xff] %vm1567_vm13, %v2668_v50 }
 0x4c2   : > { %v6180_v16 = vpop.f32.mrf.mxu0 }
 0x4c3   : > { %v2895_v16 = vld [vmem:[#allocation20 + $0x100] sm:$0xff] }
 0x4c4   : > { %v2673_v53 = vpop.f32.mrf.mxu0  ;;  %5631 = vmatpush3.msra.mxu0 %v2895_v16  ;;  %v3516_v16 = vld [vmem:[%s9081_s10 + $0xf8] sm:$0xff] }
 0x4c5   : > { %2733 = vst.msk [vmem:[#allocation2 + $0x8] sm:$0xff] %vm1567_vm13, %v2673_v53  ;;  %5663 = vmatprep.subr.mxu0 %v3516_v16 }
 0x4c6   : > { %v6183_v54 = vpop.f32.mrf.mxu0 }
 0x4c8   : > { %v2678_v57 = vpop.f32.mrf.mxu0  ;;  %v2745_v61 = vld [vmem:[#allocation2] sm:$0xff] }
 0x4c9   : > { %2734 = vst.msk [vmem:[#allocation2 + $0x10] sm:$0xff] %vm1567_vm13, %v2678_v57  ;;  %2748 = vst.msk [vmem:[#allocation8] sm:$0xff] %vm1567_vm13, %v2745_v61 }
 0x4ca   : > { %v6186_v22 = vpop.f32.mrf.mxu0 }
 0x4cc   : > { %v2842_v37 = vld [vmem:[#allocation2 + $0x6] sm:$0xff]  ;;  %v2683_v40 = vpop.f32.mrf.mxu0 }
 0x4cd   : > { %2845 = vst.msk [vmem:[#allocation8 + $0x20] sm:$0xff] %vm1567_vm13, %v2842_v37  ;;  %2735 = vst.msk [vmem:[#allocation2 + $0x18] sm:$0xff] %vm1567_vm13, %v2683_v40  ;;  %v2746_v5 = vld [vmem:[#allocation2 + $0x8] sm:$0xff] }
 0x4ce   : > { %v6189_v62 = vpop.f32.mrf.mxu0  ;;  %v2770_v44 = vld [vmem:[#allocation2 + $0x1] sm:$0xff]  ;;  %2749 = vst.msk [vmem:[#allocation8 + $0x28] sm:$0xff] %vm1567_vm13, %v2746_v5 }
 0x4cf   : > { %v2818_v6 = vld [vmem:[#allocation2 + $0x5] sm:$0xff]  ;;  %2773 = vst.msk [vmem:[#allocation8 + $0x8] sm:$0xff] %vm1567_vm13, %v2770_v44 }
 0x4d0   : > { %v2843_v7 = vld [vmem:[#allocation2 + $0xe] sm:$0xff]  ;;  %v2688_v24 = vpop.f32.mrf.mxu0  ;;  %2821 = vst.msk [vmem:[#allocation8 + $0x18] sm:$0xff] %vm1567_vm13, %v2818_v6 }
 0x4d1   : > { %v2747_v12 = vld [vmem:[#allocation2 + $0x10] sm:$0x7]  ;;  %2846 = vst.msk [vmem:[#allocation8 + $0x48] sm:$0xff] %vm1567_vm13, %v2843_v7  ;;  %2736 = vst.msk [vmem:[#allocation2 + $0x20] sm:$0xff] %vm1567_vm13, %v2688_v24  ;;  %v2820_v30 = vld [vmem:[#allocation2 + $0x15] sm:$0x7] }
 0x4d2   : > { %v2771_v31 = vld [vmem:[#allocation2 + $0x9] sm:$0xff]  ;;  %2750 = vst.msk [vmem:[#allocation8 + $0x50] sm:$0x7] %vm1593_vm2, %v2747_v12  ;;  %v2772_v32 = vld [vmem:[#allocation2 + $0x11] sm:$0x7]  ;;  %v6192_v35 = vpop.f32.mrf.mxu0 }
 0x4d3   : > { %2774 = vst.msk [vmem:[#allocation8 + $0x30] sm:$0xff] %vm1567_vm13, %v2771_v31  ;;  %v2819_v17 = vld [vmem:[#allocation2 + $0xd] sm:$0xff] }
 0x4d4   : > { %2775 = vst.msk [vmem:[#allocation8 + $0x58] sm:$0x7] %vm1593_vm2, %v2772_v32  ;;  %2823 = vst.msk [vmem:[#allocation8 + $0x68] sm:$0x7] %vm1593_vm2, %v2820_v30  ;;  %v2844_v47 = vld [vmem:[#allocation2 + $0x16] sm:$0x7]  ;;  %v2693_v25 = vpop.f32.mrf.mxu0 }
 0x4d5   : > { %2822 = vst.msk [vmem:[#allocation8 + $0x40] sm:$0xff] %vm1567_vm13, %v2819_v17  ;;  %2737 = vst.msk [vmem:[#allocation2 + $0x28] sm:$0xff] %vm1567_vm13, %v2693_v25  ;;  %v2934_v17 = vld [vmem:[#allocation20 + $0x238] sm:$0xff] }
 0x4d6   : > { %2847 = vst.msk [vmem:[#allocation8 + $0x70] sm:$0x7] %vm1593_vm2, %v2844_v47  ;;  %v6195_v41 = vpop.f32.mrf.mxu0  ;;  %v2933_v47 = vld [vmem:[#allocation20 + $0x230] sm:$0xff]  ;;  %v2852_v46 = vld [vmem:[#allocation8 + $0x20] sm:$0xff] }
 0x4d8   : > { %v2698_v58 = vpop.f32.mrf.mxu0  ;;  %v2751_v34 = vld [vmem:[#allocation2 + $0x19] sm:$0xff] }
 0x4d9   : > { %2738 = vst.msk [vmem:[#allocation2 + $0x30] sm:$0xff] %vm1567_vm13, %v2698_v58  ;;  %2757 = vrot.lane.b32.xlu1 %v2751_v34, %s6816_s22  ;;  %v2824_v54 = vld [vmem:[#allocation2 + $0x1e] sm:$0xff] }
 0x4da   : > { %v6198_v13 = vpop.f32.mrf.mxu0  ;;  %v2932_v58 = vld [vmem:[#allocation20 + $0x228] sm:$0xff] }
 0x4db   : > { %v2930_v13 = vld [vmem:[#allocation20 + $0x218] sm:$0xff] }
 0x4dc   : > { %v2703_v1 = vpop.f32.mrf.mxu0  ;;  %v2752_v33 = vld [vmem:[#allocation2 + $0x21] sm:$0xff]  ;;  %v2753_v57 = vld [vmem:[#allocation2 + $0x29] sm:$0x7] }
 0x4dd   : > { %2739 = vst.msk [vmem:[#allocation2 + $0x38] sm:$0xff] %vm1567_vm13, %v2703_v1  ;;  %2759 = vrot.lane.b32.xlu1 %v2752_v33, %s6816_s22  ;;  %v2825_v62 = vld [vmem:[#allocation2 + $0x26] sm:$0xff]  ;;  %v2862_v11 = vld [vmem:[#allocation8 + $0x70] sm:$0x7] }
 0x4de   : > { %v6201_v27 = vpop.f32.mrf.mxu0  ;;  %v2928_v1 = vld [vmem:[#allocation20 + $0x208] sm:$0xff] }
 0x4df   : > { %v3204_v27 = vld [vmem:[%s9083_s12 + $0x38] sm:$0xff] }
 0x4e0   : > { %v2708_v28 = vpop.f32.mrf.mxu0  ;;  %v2826_v45 = vld [vmem:[#allocation2 + $0x2e] sm:$0x7] }
 0x4e1   : > { %2740 = vst.msk [vmem:[#allocation2 + $0x40] sm:$0xff] %vm1567_vm13, %v2708_v28  ;;  %v2857_v28 = vld [vmem:[#allocation8 + $0x48] sm:$0xff] }
 0x4e2   : > { %v6204_v29 = vpop.f32.mrf.mxu0 }
 0x4e3   : > { %v3199_v29 = vld [vmem:[%s9083_s12 + $0x10] sm:$0xff] }
 0x4e4   : > { %v2776_v4 = vld [vmem:[#allocation2 + $0x32] sm:$0xff]  ;;  %v2713_v50 = vpop.f32.mrf.mxu0 }
 0x4e5   : > { %v2800_v56 = vld [vmem:[#allocation2 + $0x33] sm:$0xff]  ;;  %2782 = vrot.lane.b32.xlu0 %v2776_v4, %s6816_s22  ;;  %2741 = vst.msk [vmem:[#allocation2 + $0x48] sm:$0xff] %vm1567_vm13, %v2713_v50 }
 0x4e6   : > { %2806 = vrot.lane.b32.xlu1 %v2800_v56, %s6816_s22  ;;  %v6207_v53 = vpop.f32.mrf.mxu0 }
 0x4e7   : > { %v3500_v53 = vld [vmem:[%s9081_s10 + $0x78] sm:$0xff] }
 0x4e8   : > { %v2718_v61 = vpop.f32.mrf.mxu0  ;;  %v2777_v37 = vld [vmem:[#allocation2 + $0x3a] sm:$0xff]  ;;  %v2778_v20 = vld [vmem:[#allocation2 + $0x42] sm:$0x7] }
 0x4e9   : > { %2830 = vrot.lane.b32.xlu0 %v2824_v54, %s6816_s22  ;;  %2742 = vst.msk [vmem:[#allocation2 + $0x50] sm:$0xff] %vm1567_vm13, %v2718_v61  ;;  %v2801_v40 = vld [vmem:[#allocation2 + $0x3b] sm:$0xff]  ;;  %v2802_v36 = vld [vmem:[#allocation2 + $0x43] sm:$0x7]  ;;  %v3515_v54 = vld [vmem:[%s9081_s10 + $0xf0] sm:$0xff] }
 0x4ea   : > { %2761 = vrot.lane.b32.xlu1 %v2753_v57, %s6816_s22  ;;  %v6210_v22 = vpop.f32.mrf.mxu0  ;;  %v3499_v57 = vld [vmem:[%s9081_s10 + $0x70] sm:$0xff]  ;;  %v3548_v61 = vld [vmem:[%s9081_s10 + $0x1f8] sm:$0xff] }
 0x4eb   : > { %v3532_v22 = vld [vmem:[%s9081_s10 + $0x178] sm:$0xff] }
 0x4ec   : > { %v2723_v48 = vpop.f32.mrf.mxu0 }
 0x4ed   : > { %2784 = vrot.lane.b32.xlu0 %v2777_v37, %s6816_s22  ;;  %2743 = vst.msk [vmem:[#allocation2 + $0x58] sm:$0xff] %vm1567_vm13, %v2723_v48  ;;  %v3498_v37 = vld [vmem:[%s9081_s10 + $0x68] sm:$0xff]  ;;  %v3513_v48 = vld [vmem:[%s9081_s10 + $0xe0] sm:$0xff] }
 0x4ee   : > { %2808 = vrot.lane.b32.xlu1 %v2801_v40, %s6816_s22  ;;  %v6213_v26 = vpop.f32.mrf.mxu0  ;;  %v3547_v40 = vld [vmem:[%s9081_s10 + $0x1f0] sm:$0xff] }
 0x4ef   : > { %v3531_v26 = vld [vmem:[%s9081_s10 + $0x170] sm:$0xff] }
 0x4f0   : > { %v2794_v60 = vld [vmem:[#allocation2 + $0x4b] sm:$0xff]  ;;  %v2728_v56 = vpop.f32.mrf.mxu0 }
 0x4f1   : > { %2786 = vrot.lane.b32.xlu0 %v2778_v20, %s6816_s22  ;;  %2797 = vst.msk [vmem:[#allocation8 + $0x10] sm:$0xff] %vm1567_vm13, %v2794_v60  ;;  %v3546_v20 = vld [vmem:[%s9081_s10 + $0x1e8] sm:$0xff]  ;;  %v3504_v56 = vld [vmem:[%s9081_s10 + $0x98] sm:$0xff] }
 0x4f2   : > { %2810 = vrot.lane.b32.xlu1 %v2802_v36, %s6816_s22  ;;  %v6216_v50 = vpop.f32.mrf.mxu0  ;;  %v3497_v36 = vld [vmem:[%s9081_s10 + $0x60] sm:$0xff]  ;;  %v3530_v60 = vld [vmem:[%s9081_s10 + $0x168] sm:$0xff] }
 0x4f4   : > { %v2795_v51 = vld [vmem:[#allocation2 + $0x53] sm:$0xff]  ;;  %v2796_v10 = vld [vmem:[#allocation2 + $0x5b] sm:$0x7] }
 0x4f5   : > { %2832 = vrot.lane.b32.xlu0 %v2825_v62, %s6816_s22  ;;  %2798 = vst.msk [vmem:[#allocation8 + $0x38] sm:$0xff] %vm1567_vm13, %v2795_v51  ;;  %v3512_v62 = vld [vmem:[%s9081_s10 + $0xd8] sm:$0xff]  ;;  %v3545_v51 = vld [vmem:[%s9081_s10 + $0x1e0] sm:$0xff] }
 0x4f6   : > { %2799 = vst.msk [vmem:[#allocation8 + $0x60] sm:$0x7] %vm1593_vm2, %v2796_v10  ;;  %v3496_v10 = vld [vmem:[%s9081_s10 + $0x58] sm:$0xff]  ;;  %vm3309_vm2 = vcmask 785413  }
 0x4f9   : > { %2834 = vrot.lane.b32.xlu0 %v2826_v45, %s6816_s22  ;;  %v3529_v45 = vld [vmem:[%s9081_s10 + $0x160] sm:$0xff] }
 0x54b   : > { %v2758_v5 = vpop.permute.xlu1 %2757 }
 0x54c   : > { %2766 = vst.msk [vmem:[#allocation8] sm:$0xff] %vm1680_vm9, %v2758_v5  ;;  %v3511_v5 = vld [vmem:[%s9081_s10 + $0xd0] sm:$0xff] }
 0x54f   : > { %v2760_v44 = vpop.permute.xlu1 %2759 }
 0x550   : > { %2767 = vst.msk [vmem:[#allocation8 + $0x28] sm:$0xff] %vm1680_vm9, %v2760_v44  ;;  %v3544_v44 = vld [vmem:[%s9081_s10 + $0x1d8] sm:$0xff] }
 0x553   : > { %v2848_v35 = vld [vmem:[#allocation8] sm:$0xff] }
 0x557   : > { %v2783_v6 = vpop.permute.xlu0 %2782  ;;  %v2853_v38 = vld [vmem:[#allocation8 + $0x28] sm:$0xff] }
 0x558   : > { %v2807_v7 = vpop.permute.xlu1 %2806  ;;  %2791 = vst.msk [vmem:[#allocation8 + $0x8] sm:$0xff] %vm1680_vm9, %v2783_v6  ;;  %v3495_v6 = vld [vmem:[%s9081_s10 + $0x50] sm:$0xff] }
 0x559   : > { %2815 = vst.msk [vmem:[#allocation8 + $0x10] sm:$0xff] %vm1680_vm9, %v2807_v7  ;;  %v3528_v7 = vld [vmem:[%s9081_s10 + $0x158] sm:$0xff] }
 0x55b   : > { %v2831_v24 = vpop.permute.xlu0 %2830 }
 0x55c   : > { %v2762_v12 = vpop.permute.xlu1 %2761  ;;  %2839 = vst.msk [vmem:[#allocation8 + $0x18] sm:$0xff] %vm1680_vm9, %v2831_v24  ;;  %v3510_v24 = vld [vmem:[%s9081_s10 + $0xc8] sm:$0xff] }
 0x55d   : > { %2769 = vst.msk [vmem:[#allocation8 + $0x50] sm:$0x7] %vm2768_vm8, %v2762_v12  ;;  %v3543_v12 = vld [vmem:[%s9081_s10 + $0x1d0] sm:$0xff] }
 0x55f   : > { %v2785_v31 = vpop.permute.xlu0 %2784  ;;  %v2849_v32 = vld [vmem:[#allocation8 + $0x8] sm:$0xff] }
 0x560   : > { %v2809_v30 = vpop.permute.xlu1 %2808  ;;  %2792 = vst.msk [vmem:[#allocation8 + $0x30] sm:$0xff] %vm1680_vm9, %v2785_v31  ;;  %3015 = vmatprep.mubr.f32.mxu1 %v2849_v32  ;;  %v7991_v18 = vld [vmem:[#allocation8 + $0x10] sm:$0xff]  ;;  %v3494_v31 = vld [vmem:[%s9081_s10 + $0x48] sm:$0xff]  ;;  %v3527_v32 = vld [vmem:[%s9081_s10 + $0x150] sm:$0xff] }
 0x561   : > { %2816 = vst.msk [vmem:[#allocation8 + $0x38] sm:$0xff] %vm1680_vm9, %v2809_v30  ;;  %3016 = vmatmul.mubr.f32.vlgmr.msra.gmra.mxu1 %v2848_v35  ;;  %v3542_v30 = vld [vmem:[%s9081_s10 + $0x1c8] sm:$0xff]  ;;  %v3493_v35 = vld [vmem:[%s9081_s10 + $0x40] sm:$0xff] }
 0x562   : > { %6218 = vmatpush3.msra.mxu1 %v2934_v17  ;;  %v3509_v17 = vld [vmem:[%s9081_s10 + $0xc0] sm:$0xff] }
 0x563   : > { %6219 = vmatprep.subr.mxu1 %v7856_v23  ;;  %v2787_v25 = vpop.permute.xlu0 %2786  ;;  %v2851_v41 = vld [vmem:[#allocation8 + $0x18] sm:$0xff] }
 0x564   : > { %v2811_v34 = vpop.permute.xlu1 %2810  ;;  %6220 = vmatpush3.msra.mxu1 %v2933_v47  ;;  %2793 = vst.msk [vmem:[#allocation8 + $0x58] sm:$0x7] %vm2768_vm8, %v2787_v25  ;;  %3095 = vmatprep.mubr.f32.mxu0 %v2851_v41  ;;  %v2858_v33 = vld [vmem:[#allocation8 + $0x50] sm:$0x7]  ;;  %v3526_v47 = vld [vmem:[%s9081_s10 + $0x148] sm:$0xff]  ;;  %v3508_v25 = vld [vmem:[%s9081_s10 + $0xb8] sm:$0xff] }
 0x565   : > { %2817 = vst.msk [vmem:[#allocation8 + $0x60] sm:$0x7] %vm2768_vm8, %v2811_v34  ;;  %6221 = vmatprep.subr.mxu1 %v7856_v23  ;;  %3096 = vmatmul.mubr.f32.vlgmr.msra.gmra.mxu0 %v7991_v18  ;;  %v3541_v41 = vld [vmem:[%s9081_s10 + $0x1c0] sm:$0xff] }
 0x566   : > { %6222 = vmatpush3.msra.mxu1 %v2932_v58  ;;  %5664 = vmatpush3.msra.mxu0 %v3500_v53  ;;  %v3492_v58 = vld [vmem:[%s9081_s10 + $0x38] sm:$0xff]  ;;  %v3525_v34 = vld [vmem:[%s9081_s10 + $0x140] sm:$0xff] }
 0x567   : > { %6223 = vmatprep.subr.mxu1 %v7856_v23  ;;  %v2833_v59 = vpop.permute.xlu0 %2832  ;;  %v2854_v15 = vld [vmem:[#allocation8 + $0x30] sm:$0xff]  ;;  %5665 = vmatprep.subr.mxu0 %v3515_v54 }
 0x568   : > { %6224 = vmatpush3.msra.mxu1 %v2931_v52  ;;  %2840 = vst.msk [vmem:[#allocation8 + $0x40] sm:$0xff] %vm1680_vm9, %v2833_v59  ;;  %3020 = vmatprep.mubr.f32.mxu1 %v2854_v15  ;;  %v2855_v43 = vld [vmem:[#allocation8 + $0x38] sm:$0xff]  ;;  %v3540_v52 = vld [vmem:[%s9081_s10 + $0x1b8] sm:$0xff]  ;;  %v3491_v59 = vld [vmem:[%s9081_s10 + $0x30] sm:$0xff] }
 0x569   : > { %6225 = vmatprep.subr.mxu1 %v7856_v23  ;;  %3021 = vmatmul.mubr.f32.gmra.mxu1 %v2853_v38  ;;  %v3524_v15 = vld [vmem:[%s9081_s10 + $0x138] sm:$0xff]  ;;  %v3539_v38 = vld [vmem:[%s9081_s10 + $0x1b0] sm:$0xff] }
 0x56a   : > { %6226 = vmatpush3.msra.mxu1 %v2930_v13  ;;  %5666 = vmatpush3.msra.mxu0 %v3499_v57  ;;  %v3506_v13 = vld [vmem:[%s9081_s10 + $0xa8] sm:$0xff] }
 0x56b   : > { %6227 = vmatprep.subr.mxu1 %v7856_v23  ;;  %v2835_v8 = vpop.permute.xlu0 %2834  ;;  %v2859_v21 = vld [vmem:[#allocation8 + $0x58] sm:$0x7] }
 0x56c   : > { %6228 = vmatpush3.msra.mxu1 %v2929_v19  ;;  %2841 = vst.msk [vmem:[#allocation8 + $0x68] sm:$0x7] %vm2768_vm8, %v2835_v8  ;;  %3025 = vmatprep.mubr.f32.mxu1 %v2859_v21  ;;  %v2860_v63 = vld [vmem:[#allocation8 + $0x60] sm:$0x7]  ;;  %v3490_v19 = vld [vmem:[%s9081_s10 + $0x28] sm:$0xff]  ;;  %v3505_v8 = vld [vmem:[%s9081_s10 + $0xa0] sm:$0xff] }
 0x56d   : > { %6229 = vmatprep.subr.mxu1 %v7856_v23  ;;  %3026 = vmatmul.mubr.f32.gmra.mxu1 %v2858_v33  ;;  %v3196_v4 = vld [vmem:[#allocation8 + $0x60] sm:$0x7]  ;;  %v3538_v57 = vld [vmem:[%s9081_s10 + $0x1a8] sm:$0xff]  ;;  %vm3370_vm8 = vcmask 259072  }
 0x56e   : > { %6230 = vmatpush3.msra.mxu1 %v2928_v1  ;;  %6233 = vmatprep.mubr.msk.f32.mxu1 %vm6813_vm1, %v7856_v23 }
 0x56f   : > { %6231 = vmatprep.subr.mxu1 %v7856_v23  ;;  %v2856_v9 = vld [vmem:[#allocation8 + $0x40] sm:$0xff] }
 0x570   : > { %6232 = vmatpush3.msra.mxu1 %v2927_v39  ;;  %3100 = vmatprep.mubr.f32.mxu0 %v2856_v9 }
 0x571   : > { %6242 = vmatprep.subr.mxu1 %v7856_v23  ;;  %3101 = vmatmul.mubr.f32.gmra.mxu0 %v2855_v43 }
 0x572   : > { %6234 = vmatmul.mubr.msk.f32.vlgmr.msra.gmra.mxu1 %vm1567_vm13, %v2852_v46  ;;  %v5357_v46 = vld [vmem:[%s9080_s9] ss:$0 sm:$0xff] }
 0x573   : > { %6243 = vmatpush3.msra.mxu1 %v3204_v27  ;;  %v2861_v49 = vld [vmem:[#allocation8 + $0x68] sm:$0x7]  ;;  %6236 = vmatprep.mubr.msk.f32.mxu1 %vm6813_vm1, %v7856_v23 }
 0x574   : > { %6244 = vmatprep.subr.mxu1 %v7856_v23  ;;  %3105 = vmatprep.mubr.f32.mxu0 %v2861_v49 }
 0x575   : > { %6245 = vmatpush3.msra.mxu1 %v3203_v2  ;;  %3106 = vmatmul.mubr.f32.gmra.mxu0 %v2860_v63 }
 0x576   : > { %6246 = vmatprep.subr.mxu1 %v7856_v23  ;;  %6237 = vmatmul.mubr.msk.f32.gmra.mxu1 %vm1567_vm13, %v2857_v28 }
 0x577   : > { %6247 = vmatpush3.msra.mxu1 %v3202_v0  ;;  %6239 = vmatprep.mubr.msk.f32.mxu1 %vm6813_vm1, %v7856_v23 }
 0x578   : > { %6248 = vmatprep.subr.mxu1 %v7856_v23 }
 0x579   : > { %6249 = vmatpush3.msra.mxu1 %v3201_v14 }
 0x57a   : > { %6250 = vmatprep.subr.mxu1 %v7856_v23  ;;  %6240 = vmatmul.mubr.msk.f32.gmra.mxu1 %vm1567_vm13, %v2862_v11 }
 0x57b   : > { %6251 = vmatpush3.msra.mxu1 %v3200_v3  ;;  %6258 = vmatprep.mubr.msk.f32.mxu1 %vm6813_vm1, %v7856_v23 }
 0x57c   : > { %6252 = vmatprep.subr.mxu1 %v7856_v23 }
 0x57d   : > { %6253 = vmatpush3.msra.mxu1 %v3199_v29 }
 0x57e   : > { %6254 = vmatprep.subr.mxu1 %v7856_v23 }
 0x57f   : > { %6255 = vmatpush3.msra.mxu1 %v3198_v42 }
 0x580   : > { %6256 = vmatprep.subr.mxu1 %v7856_v23 }
 0x581   : > { %6257 = vmatpush3.msra.mxu1 %v3197_v55  ;;  %v3489_v55 = vld [vmem:[%s9081_s10 + $0x20] sm:$0xff] }
 0x582   : > { %6259 = vmatmul.mubr.msk.f32.vlgmr.msra.gmra.mxu1 %vm1567_vm13, %v7991_v18  ;;  %5704 = vmatprep.subr.mxu1 %v3548_v61  ;;  %v3507_v18 = vld [vmem:[%s9081_s10 + $0xb0] sm:$0xff]  ;;  %v3522_v61 = vld [vmem:[%s9081_s10 + $0x128] sm:$0xff] }
 0x583   : > { %6261 = vmatprep.mubr.msk.f32.mxu1 %vm6813_vm1, %v7856_v23  ;;  %5705 = vmatpush3.msra.mxu1 %v3532_v22 }
 0x584   : > { %5706 = vmatprep.subr.mxu1 %v3547_v40  ;;  %v3503_v40 = vld [vmem:[%s9081_s10 + $0x90] sm:$0xff] }
 0x585   : > { %5707 = vmatpush3.msra.mxu1 %v3531_v26 }
 0x586   : > { %6262 = vmatmul.mubr.msk.f32.gmra.mxu1 %vm1567_vm13, %v2855_v43  ;;  %5708 = vmatprep.subr.mxu1 %v3546_v20 }
 0x587   : > { %6264 = vmatprep.mubr.msk.f32.mxu1 %vm6813_vm1, %v7856_v23  ;;  %v3514_v23 = vld [vmem:[%s9081_s10 + $0xe8] sm:$0xff]  ;;  %5709 = vmatpush3.msra.mxu1 %v3530_v60  ;;  %v3521_v60 = vld [vmem:[%s9081_s10 + $0x120] sm:$0xff] }
 0x588   : > { %5667 = vmatprep.subr.mxu0 %v3514_v23  ;;  %5710 = vmatprep.subr.mxu1 %v3545_v51  ;;  %v3488_v23 = vld [vmem:[%s9081_s10 + $0x18] sm:$0xff] }
 0x589   : > { %5668 = vmatpush3.msra.mxu0 %v3498_v37  ;;  %5711 = vmatpush3.msra.mxu1 %v3529_v45  ;;  %v3486_v45 = vld [vmem:[%s9081_s10 + $0x8] sm:$0xff] }
 0x58a   : > { %6265 = vmatmul.mubr.msk.f32.gmra.mxu1 %vm1567_vm13, %v3196_v4  ;;  %5669 = vmatprep.subr.mxu0 %v3513_v48  ;;  %v3523_v4 = vld [vmem:[%s9081_s10 + $0x130] sm:$0xff]  ;;  %v3537_v48 = vld [vmem:[%s9081_s10 + $0x1a0] sm:$0xff] }
 0x58b   : > { %5670 = vmatpush3.msra.mxu0 %v3497_v36  ;;  %5712 = vmatprep.subr.mxu1 %v3544_v44  ;;  %v3487_v36 = vld [vmem:[%s9081_s10 + $0x10] sm:$0xff] }
 0x58c   : > { %5671 = vmatprep.subr.mxu0 %v3512_v62  ;;  %5713 = vmatpush3.msra.mxu1 %v3528_v7  ;;  %v3502_v62 = vld [vmem:[%s9081_s10 + $0x88] sm:$0xff] }
 0x58d   : > { %5672 = vmatpush3.msra.mxu0 %v3496_v10  ;;  %5714 = vmatprep.subr.mxu1 %v3543_v12  ;;  %v3536_v10 = vld [vmem:[%s9081_s10 + $0x198] sm:$0xff]  ;;  %v3501_v12 = vld [vmem:[%s9081_s10 + $0x80] sm:$0xff] }
 0x58e   : > { %5673 = vmatprep.subr.mxu0 %v3511_v5  ;;  %5715 = vmatpush3.msra.mxu1 %v3527_v32  ;;  %v3520_v5 = vld [vmem:[%s9081_s10 + $0x118] sm:$0xff] }
 0x58f   : > { %5674 = vmatpush3.msra.mxu0 %v3495_v6  ;;  %5716 = vmatprep.subr.mxu1 %v3542_v30 }
 0x590   : > { %5675 = vmatprep.subr.mxu0 %v3510_v24  ;;  %5717 = vmatpush3.msra.mxu1 %v3526_v47  ;;  %v3519_v47 = vld [vmem:[%s9081_s10 + $0x110] sm:$0xff] }
 0x591   : > { %5676 = vmatpush3.msra.mxu0 %v3494_v31  ;;  %5718 = vmatprep.subr.mxu1 %v3541_v41  ;;  %v3535_v31 = vld [vmem:[%s9081_s10 + $0x190] sm:$0xff] }
 0x592   : > { %5677 = vmatprep.subr.mxu0 %v3509_v17  ;;  %5719 = vmatpush3.msra.mxu1 %v3525_v34  ;;  %v3580_v34 = vld [vmem:[%s9081_s10 + $0x2f8] sm:$0xff] }
 0x593   : > { %5678 = vmatpush3.msra.mxu0 %v3493_v35  ;;  %5720 = vmatprep.subr.mxu1 %v3540_v52  ;;  %v3485_v35 = vld [vmem:[%s9081_s10] sm:$0xff] }
 0x594   : > { %5679 = vmatprep.subr.mxu0 %v3508_v25  ;;  %5721 = vmatpush3.msra.mxu1 %v3524_v15  ;;  %v3534_v25 = vld [vmem:[%s9081_s10 + $0x188] sm:$0xff]  ;;  %v3533_v52 = vld [vmem:[%s9081_s10 + $0x180] sm:$0xff] }
 0x595   : > { %5680 = vmatpush3.msra.mxu0 %v3492_v58  ;;  %5722 = vmatprep.subr.mxu1 %v3539_v38 }
 0x596   : > { %5681 = vmatprep.subr.mxu0 %v3507_v18  ;;  %5723 = vmatpush3.msra.mxu1 %v3523_v4  ;;  %v3518_v18 = vld [vmem:[%s9081_s10 + $0x108] sm:$0xff] }
 0x597   : > { %5682 = vmatpush3.msra.mxu0 %v3491_v59  ;;  %5724 = vmatprep.subr.mxu1 %v3538_v57 }
 0x598   : > { %5683 = vmatprep.subr.mxu0 %v3506_v13  ;;  %5725 = vmatpush3.msra.mxu1 %v3522_v61 }
 0x599   : > { %5684 = vmatpush3.msra.mxu0 %v3490_v19  ;;  %5726 = vmatprep.subr.mxu1 %v3537_v48 }
 0x59a   : > { %5685 = vmatprep.subr.mxu0 %v3505_v8  ;;  %5727 = vmatpush3.msra.mxu1 %v3521_v60 }
 0x59b   : > { %5686 = vmatpush3.msra.mxu0 %v3489_v55  ;;  %5728 = vmatprep.subr.mxu1 %v3536_v10 }
 0x59c   : > { %5687 = vmatprep.subr.mxu0 %v3504_v56  ;;  %5729 = vmatpush3.msra.mxu1 %v3520_v5 }
 0x59d   : > { %5688 = vmatpush3.msra.mxu0 %v3488_v23  ;;  %5730 = vmatprep.subr.mxu1 %v3535_v31 }
 0x59e   : > { %5689 = vmatprep.subr.mxu0 %v3503_v40  ;;  %5731 = vmatpush3.msra.mxu1 %v3519_v47 }
 0x59f   : > { %5690 = vmatpush3.msra.mxu0 %v3487_v36  ;;  %5732 = vmatprep.subr.mxu1 %v3534_v25 }
 0x5a0   : > { %5691 = vmatprep.subr.mxu0 %v3502_v62  ;;  %5733 = vmatpush3.msra.mxu1 %v3518_v18  ;;  %v3442_v62 = vld [vmem:[#allocation9 + $0x1d] sm:$0x3f] }
 0x5a1   : > { %5692 = vmatpush3.msra.mxu0 %v3486_v45  ;;  %5734 = vmatprep.subr.mxu1 %v3533_v52  ;;  %v3577_v18 = vld [vmem:[%s9081_s10 + $0x2e0] sm:$0xff]  ;;  %v3591_v52 = vld [vmem:[%s9081_s10 + $0x350] sm:$0xff] }
 0x5a2   : > { %5693 = vmatprep.subr.mxu0 %v3501_v12  ;;  %v3564_v12 = vld [vmem:[%s9081_s10 + $0x278] sm:$0xff] }
 0x5a3   : > { %5694 = vmatpush3.msra.mxu0 %v3485_v35 }
 0x5a4   : > { %5745 = vmatprep.subr.mxu0 %v3580_v34  ;;  %v3562_v34 = vld [vmem:[%s9081_s10 + $0x268] sm:$0xff] }
 0x621   : > { %v5591_v21 = vpop.f32.mrf.mxu1 }
 0x623   : > { %v5592_v33 = vpop.f32.mrf.mxu1 }
 0x624   : > { %v5593_v43 = vadd.f32 %v5592_v33, %v5591_v21  ;;  %v3460_v21 = vld [vmem:[#allocation9 + $0x1e] sm:$0x3f]  ;;  %v5361_v33 = vld [vmem:[%s9084_s13] ss:$0 sm:$0xff] }
 0x625   : > { %v5632_v1 = vpop.f32.mrf.mxu0  ;;  %3463 = vst.msk [vmem:[#allocation10 + $0xa0] sm:$0x3f] %vm3324_vm11, %v3460_v21  ;;  %v3560_v21 = vld [vmem:[%s9081_s10 + $0x258] sm:$0xff] }
 0x626   : > { %v3018_v63 = vadd.f32 %v5593_v43, %v5357_v46  ;;  %v8274_v43 = vld [vmem:[#allocation13] sm:$0xff] }
 0x627   : > { %v5633_v9 = vpop.f32.mrf.mxu0 }
 0x628   : > { %v5634_v2 = vadd.f32 %v5633_v9, %v5632_v1  ;;  %v3517_v1 = vld [vmem:[%s9081_s10 + $0x100] sm:$0xff] }
 0x629   : > { %v5594_v39 = vpop.f32.mrf.mxu1  ;;  %5735 = vmatpush3.msra.mxu1 %v3517_v1 }
 0x62a   : > { %v3098_v3 = vadd.f32 %v5634_v2, %v3018_v63  ;;  %6267 = vmatprep.subr.mxu1 %v8274_v43 }
 0x62b   : > { %v5595_v27 = vpop.f32.mrf.mxu1 }
 0x62c   : > { %v5596_v28 = vadd.f32 %v5595_v27, %v5594_v39 }
 0x62d   : > { %v5597_v49 = vpop.f32.mrf.mxu1 }
 0x62e   : > { %v3023_v50 = vadd.f32 %v5596_v28, %v5357_v46 }
 0x62f   : > { %v5598_v0 = vpop.f32.mrf.mxu1 }
 0x630   : > { %v5599_v16 = vadd.f32 %v5598_v0, %v5597_v49 }
 0x631   : > { %v5635_v14 = vpop.f32.mrf.mxu0 }
 0x632   : > { %v3177_v11 = vpop.f32.mrf.mxu1  ;;  %v3028_v44 = vadd.f32 %v5599_v16, %v5357_v46 }
 0x633   : > { %v3178_v29 = vadd.f32 %v3177_v11, %v3098_v3  ;;  %v5636_v42 = vpop.f32.mrf.mxu0 }
 0x634   : > { %v5637_v53 = vadd.f32 %v5636_v42, %v5635_v14  ;;  %v6235_v54 = vpop.f32.mrf.mxu1 }
 0x635   : > { %v3191_v22 = vmax.f32 %v3178_v29, 0.0  ;;  %v5638_v37 = vpop.f32.mrf.mxu0 }
 0x636   : > { %v3103_v26 = vadd.f32 %v5637_v53, %v3023_v50  ;;  %v3182_v20 = vpop.f32.mrf.mxu1 }
 0x637   : > { %3308 = vst.msk [vmem:[#allocation9 + $0x7] sm:$0xf] %vm3306_vm14, %v3191_v22  ;;  %v5639_v51 = vpop.f32.mrf.mxu0 }
 0x638   : > { %3310 = vst.msk [vmem:[#allocation9 + $0x8] sm:$0xe0] %vm3309_vm2, %v3191_v22  ;;  %v3183_v6 = vadd.f32 %v3182_v20, %v3103_v26  ;;  %v5640_v7 = vadd.f32 %v5639_v51, %v5638_v37  ;;  %v6238_v24 = vpop.f32.mrf.mxu1  ;;  %vm3346_vm2 = vcmask 1046272  }
 0x63a   : > { %v3192_v32 = vmax.f32 %v3183_v6, 0.0  ;;  %v3108_v17 = vadd.f32 %v5640_v7, %v3028_v44  ;;  %v3187_v30 = vpop.f32.mrf.mxu1 }
 0x63c   : > { %3312 = vst.msk [vmem:[#allocation9 + $0x10] sm:$0x1] %vm3311_vm3, %v3192_v32  ;;  %v3188_v41 = vadd.f32 %v3187_v30, %v3108_v17  ;;  %v6241_v58 = vpop.f32.mrf.mxu1  ;;  %v3563_v17 = vld [vmem:[%s9081_s10 + $0x270] sm:$0xff]  ;;  %v3578_v30 = vld [vmem:[%s9081_s10 + $0x2e8] sm:$0xff]  ;;  %vm9142_vm3 = vcmask 1046016  }
 0x63d   : > { %3314 = vst.msk [vmem:[#allocation9 + $0x11] sm:$0x3c] %vm3313_vm6, %v3192_v32  ;;  %v3592_v58 = vld [vmem:[%s9081_s10 + $0x358] sm:$0xff] }
 0x63e   : > { %3316 = vst.msk [vmem:[#allocation9 + $0x12] sm:$0x80] %vm3315_vm15, %v3192_v32  ;;  %v3193_v59 = vmax.f32 %v3188_v41, 0.0  ;;  %v3349_v15 = vld [vmem:[#allocation9 + $0x2] sm:$0xff]  ;;  %vm3945_vm15 = vcmask 779264  }
 0x63f   : > { %v3326_v13 = vld [vmem:[#allocation9 + $0x1] sm:$0xff]  ;;  %3355 = vrot.lane.b32.xlu1 %v3349_v15, %s6816_s22 }
 0x640   : > { %3332 = vrot.lane.b32.xlu0 %v3326_v13, %s6820_s26  ;;  %v3398_v38 = vld [vmem:[#allocation9 + $0x8] sm:$0xff]  ;;  %v3319_v19 = vld [vmem:[#allocation9] sm:$0xff]  ;;  %3318 = vst.msk [vmem:[#allocation9 + $0x1a] sm:$0x7] %vm3317_vm4, %v3193_v59  ;;  %v3561_v59 = vld [vmem:[%s9081_s10 + $0x260] sm:$0xff]  ;;  %vm3950_vm4 = vcmask 785412  }
 0x641   : > { %v3392_v8 = vld [vmem:[#allocation9 + $0x7] sm:$0xff]  ;;  %3322 = vst.msk [vmem:[#allocation10] sm:$0xff] %vm3301_vm12, %v3319_v19  ;;  %3323 = vst.msk [vmem:[#allocation10 + $0x38] sm:$0xff] %vm3301_vm12, %v3398_v38 }
 0x642   : > { %3395 = vst.msk [vmem:[#allocation10 + $0x18] sm:$0xff] %vm3301_vm12, %v3392_v8  ;;  %v3287_v39 = vpop.f32.mrf.mxu1  ;;  %v3372_v9 = vld [vmem:[#allocation9 + $0x6] sm:$0xff] }
 0x643   : > { %3378 = vrot.lane.b32.xlu1 %v3372_v9, %s6821_s24  ;;  %v8280_v2 = vadd.f32 %v5361_v33, %v3287_v39  ;;  %v3350_v0 = vld [vmem:[#allocation9 + $0xa] sm:$0xff]  ;;  %v3590_v8 = vld [vmem:[%s9081_s10 + $0x348] sm:$0xff]  ;;  %v3589_v39 = vld [vmem:[%s9081_s10 + $0x340] sm:$0xff] }
 0x644   : > { %v3458_v27 = vld [vmem:[#allocation9 + $0xe] sm:$0xff]  ;;  %3404 = vrot.lane.b32.xlu0 %v3398_v38, %s6820_s26  ;;  %v6260_v46 = vpop.f32.mrf.mxu1 }
 0x645   : > { %3461 = vst.msk [vmem:[#allocation10 + $0x30] sm:$0xff] %vm3301_vm12, %v3458_v27  ;;  %v3321_v49 = vld [vmem:[#allocation9 + $0x10] sm:$0x3f]  ;;  %v3936_v29 = vrot.slane %v8280_v2, 7  ;;  %v3579_v32 = vld [vmem:[%s9081_s10 + $0x2f0] sm:$0xff] }
 0x646   : > { %v3292_v63 = vpop.f32.mrf.mxu1  ;;  %v3327_v28 = vld [vmem:[#allocation9 + $0x9] sm:$0xff]  ;;  %3325 = vst.msk [vmem:[#allocation10 + $0x70] sm:$0x3f] %vm3324_vm11, %v3321_v49  ;;  %v3351_v4 = vld [vmem:[#allocation9 + $0x12] sm:$0x3f] }
 0x647   : > { %v3393_v14 = vld [vmem:[#allocation9 + $0xf] sm:$0xff]  ;;  %v8283_v3 = vadd.f32 %v5361_v33, %v3292_v63  ;;  %3357 = vrot.lane.b32.xlu1 %v3350_v0, %s6816_s22  ;;  %v3394_v16 = vld [vmem:[#allocation9 + $0x17] sm:$0x3f]  ;;  %v3574_v63 = vld [vmem:[%s9081_s10 + $0x2c8] sm:$0xff] }
 0x648   : > { %3334 = vrot.lane.b32.xlu0 %v3327_v28, %s6820_s26  ;;  %3396 = vst.msk [vmem:[#allocation10 + $0x50] sm:$0xff] %vm3301_vm12, %v3393_v14  ;;  %v6263_v11 = vpop.f32.mrf.mxu1  ;;  %v3328_v56 = vld [vmem:[#allocation9 + $0x11] sm:$0x3f]  ;;  %v3400_v20 = vld [vmem:[#allocation9 + $0x18] sm:$0x3f]  ;;  %v3559_v46 = vld [vmem:[%s9081_s10 + $0x250] sm:$0xff] }
 0x649   : > { %v3937_v42 = vrot.slane %v8283_v3, 7  ;;  %3397 = vst.msk [vmem:[#allocation10 + $0x88] sm:$0x3f] %vm3324_vm11, %v3394_v16  ;;  %v3953_v57 = vrot.slane %v8283_v3, 5  ;;  %v3459_v61 = vld [vmem:[#allocation9 + $0x16] sm:$0xff]  ;;  %v3440_v40 = vld [vmem:[#allocation9 + $0xd] sm:$0xff] }
 0x64a   : > { %v3297_v55 = vpop.f32.mrf.mxu1  ;;  %v3399_v22 = vld [vmem:[#allocation9 + $0x10] sm:$0xff]  ;;  %3462 = vst.msk [vmem:[#allocation10 + $0x68] sm:$0xff] %vm3301_vm12, %v3459_v61  ;;  %v3421_v51 = vld [vmem:[#allocation9 + $0x1c] sm:$0x3f]  ;;  %vm4095_vm11 = vcmask 258048  }
 0x64b   : > { %v3298_v50 = vadd.f32 %v5361_v33, %v3297_v55  ;;  %3359 = vrot.lane.b32.xlu1 %v3351_v4, %s6816_s22  ;;  %v8295_v53 = vsel %vm2470_vm10, %v3936_v29, %v3937_v42  ;;  %v3419_v48 = vld [vmem:[#allocation9 + $0xc] sm:$0xff]  ;;  %v3374_v26 = vld [vmem:[#allocation9 + $0x16] sm:$0x3f]  ;;  %vm3341_vm10 = vcmask 1048320   ;;  %v3558_v28 = vld [vmem:[%s9081_s10 + $0x248] sm:$0xff] }
 0x64c   : > { %3336 = vrot.lane.b32.xlu0 %v3328_v56, %s6820_s26  ;;  %v6266_v54 = vpop.f32.mrf.mxu1  ;;  %v3441_v36 = vld [vmem:[#allocation9 + $0x15] sm:$0xff]  ;;  %v3575_v33 = vld [vmem:[%s9081_s10 + $0x2d0] sm:$0xff] }
 0x64d   : > { %v3954_v23 = vrot.slane %v3298_v50, 5  ;;  %v3420_v60 = vld [vmem:[#allocation9 + $0x14] sm:$0xff]  ;;  %v3587_v50 = vld [vmem:[%s9081_s10 + $0x330] sm:$0xff] }
 0x64e   : > { %v3576_v38 = vld [vmem:[%s9081_s10 + $0x2d8] sm:$0xff]  ;;  %v3573_v55 = vld [vmem:[%s9081_s10 + $0x2c0] sm:$0xff] }
 0x64f   : > { %3380 = vrot.lane.b32.xlu1 %v3458_v27, %s6821_s24  ;;  %v8303_v37 = vsel %vm1259_vm0, %v3953_v57, %v3954_v23  ;;  %vm3365_vm0 = vcmask 261120   ;;  %v3588_v0 = vld [vmem:[%s9081_s10 + $0x338] sm:$0xff]  ;;  %v3557_v56 = vld [vmem:[%s9081_s10 + $0x240] sm:$0xff]  ;;  %v3586_v23 = vld [vmem:[%s9081_s10 + $0x328] sm:$0xff] }
 0x650   : > { %3406 = vrot.lane.b32.xlu0 %v3399_v22, %s6820_s26  ;;  %v3572_v54 = vld [vmem:[%s9081_s10 + $0x2b8] sm:$0xff] }
 0x651   : > { %v3556_v57 = vld [vmem:[%s9081_s10 + $0x238] sm:$0xff] }
 0x653   : > { %3446 = vrot.lane.b32.xlu1 %v3440_v40, %s6821_s24  ;;  %v3571_v40 = vld [vmem:[%s9081_s10 + $0x2b0] sm:$0xff] }
 0x654   : > { %3425 = vrot.lane.b32.xlu0 %v3419_v48, %s6816_s22  ;;  %v3555_v48 = vld [vmem:[%s9081_s10 + $0x230] sm:$0xff] }
 0x657   : > { %3382 = vrot.lane.b32.xlu1 %v3374_v26, %s6821_s24  ;;  %v3585_v26 = vld [vmem:[%s9081_s10 + $0x320] sm:$0xff] }
 0x658   : > { %3408 = vrot.lane.b32.xlu0 %v3400_v20, %s6820_s26  ;;  %v3570_v20 = vld [vmem:[%s9081_s10 + $0x2a8] sm:$0xff] }
 0x65b   : > { %3448 = vrot.lane.b32.xlu1 %v3441_v36, %s6821_s24 }
 0x65c   : > { %3427 = vrot.lane.b32.xlu0 %v3420_v60, %s6816_s22  ;;  %v3554_v60 = vld [vmem:[%s9081_s10 + $0x228] sm:$0xff] }
 0x65f   : > { %3450 = vrot.lane.b32.xlu1 %v3442_v62, %s6821_s24  ;;  %v3584_v62 = vld [vmem:[%s9081_s10 + $0x318] sm:$0xff] }
 0x660   : > { %3429 = vrot.lane.b32.xlu0 %v3421_v51, %s6816_s22 }
 0x6b1   : > { %v3356_v10 = vpop.permute.xlu1 %3355 }
 0x6b2   : > { %v3333_v45 = vpop.permute.xlu0 %3332  ;;  %3366 = vst.msk [vmem:[#allocation10 + $0x10] sm:$0xff] %vm3365_vm0, %v3356_v10 }
 0x6b3   : > { %3342 = vst.msk [vmem:[#allocation10] sm:$0xff] %vm3341_vm10, %v3333_v45 }
 0x6b4   : > { %3343 = vst.msk [vmem:[#allocation10 + $0x8] sm:$0xff] %vm1567_vm13, %v3333_v45  ;;  %v3569_v45 = vld [vmem:[%s9081_s10 + $0x2a0] sm:$0xff] }
 0x6b5   : > { %3364 = vst.msk [vmem:[#allocation10 + $0x8] sm:$0xff] %vm1680_vm9, %v3356_v10  ;;  %v3379_v5 = vpop.permute.xlu1 %3378 }
 0x6b6   : > { %v3405_v44 = vpop.permute.xlu0 %3404  ;;  %3388 = vst.msk [vmem:[#allocation10 + $0x10] sm:$0xff] %vm3387_vm5, %v3379_v5 }
 0x6b7   : > { %3413 = vst.msk [vmem:[#allocation10 + $0x18] sm:$0xff] %vm3341_vm10, %v3405_v44 }
 0x6b8   : > { %3414 = vst.msk [vmem:[#allocation10 + $0x20] sm:$0xff] %vm1567_vm13, %v3405_v44  ;;  %v3553_v44 = vld [vmem:[%s9081_s10 + $0x220] sm:$0xff] }
 0x6b9   : > { %v3358_v6 = vpop.permute.xlu1 %3357 }
 0x6ba   : > { %v3335_v7 = vpop.permute.xlu0 %3334  ;;  %3368 = vst.msk [vmem:[#allocation10 + $0x48] sm:$0xff] %vm3365_vm0, %v3358_v6  ;;  %v3464_v31 = vld [vmem:[#allocation10] sm:$0xff] }
 0x6bb   : > { %3344 = vst.msk [vmem:[#allocation10 + $0x38] sm:$0xff] %vm3341_vm10, %v3335_v7 }
 0x6bc   : > { %3345 = vst.msk [vmem:[#allocation10 + $0x40] sm:$0xff] %vm1567_vm13, %v3335_v7  ;;  %v3465_v24 = vld [vmem:[#allocation10 + $0x8] sm:$0xff] }
 0x6bd   : > { %3367 = vst.msk [vmem:[#allocation10 + $0x40] sm:$0xff] %vm1680_vm9, %v3358_v6  ;;  %3673 = vmatprep.mubr.f32.mxu0 %v3465_v24  ;;  %v3360_v35 = vpop.permute.xlu1 %3359  ;;  %v3466_v41 = vld [vmem:[#allocation10 + $0x10] sm:$0xff]  ;;  %v3583_v6 = vld [vmem:[%s9081_s10 + $0x310] sm:$0xff]  ;;  %v3568_v7 = vld [vmem:[%s9081_s10 + $0x298] sm:$0xff] }
 0x6be   : > { %3674 = vmatmul.mubr.f32.vlgmr.msra.gmra.mxu0 %v3464_v31  ;;  %v3337_v47 = vpop.permute.xlu0 %3336  ;;  %v3467_v25 = vld [vmem:[#allocation10 + $0x18] sm:$0xff]  ;;  %3371 = vst.msk [vmem:[#allocation10 + $0x80] sm:$0x3f] %vm3370_vm8, %v3360_v35 }
 0x6bf   : > { %5746 = vmatpush3.msra.mxu0 %v3564_v12  ;;  %3347 = vst.msk [vmem:[#allocation10 + $0x70] sm:$0x3f] %vm3346_vm2, %v3337_v47  ;;  %3753 = vmatprep.mubr.f32.mxu1 %v3467_v25  ;;  %v3552_v12 = vld [vmem:[%s9081_s10 + $0x218] sm:$0xff]  ;;  %v3582_v31 = vld [vmem:[%s9081_s10 + $0x308] sm:$0xff]  ;;  %v3565_v25 = vld [vmem:[%s9081_s10 + $0x280] sm:$0xff] }
 0x6c0   : > { %3348 = vst.msk [vmem:[#allocation10 + $0x78] sm:$0x3f] %vm1604_vm7, %v3337_v47  ;;  %5747 = vmatprep.subr.mxu0 %v3579_v32  ;;  %3754 = vmatmul.mubr.f32.vlgmr.msra.gmra.mxu1 %v3466_v41  ;;  %v3567_v32 = vld [vmem:[%s9081_s10 + $0x290] sm:$0xff]  ;;  %v3550_v47 = vld [vmem:[%s9081_s10 + $0x208] sm:$0xff]  ;;  %v3470_v41 = vld [vmem:[#allocation10 + $0x30] sm:$0xff] }
 0x6c1   : > { %3369 = vst.msk [vmem:[#allocation10 + $0x78] sm:$0x3f] %vm9142_vm3, %v3360_v35  ;;  %5748 = vmatpush3.msra.mxu0 %v3563_v17  ;;  %6268 = vmatpush3.msra.mxu1 %v3592_v58  ;;  %v3381_v15 = vpop.permute.xlu1 %3380  ;;  %v3551_v17 = vld [vmem:[%s9081_s10 + $0x210] sm:$0xff]  ;;  %v3566_v35 = vld [vmem:[%s9081_s10 + $0x288] sm:$0xff]  ;;  %v3549_v58 = vld [vmem:[%s9081_s10 + $0x200] sm:$0xff] }
 0x6c2   : > { %5749 = vmatprep.subr.mxu0 %v3578_v30  ;;  %6269 = vmatprep.subr.mxu1 %v8274_v43  ;;  %v3407_v13 = vpop.permute.xlu0 %3406  ;;  %3389 = vst.msk [vmem:[#allocation10 + $0x48] sm:$0xff] %vm3387_vm5, %v3381_v15  ;;  %v3471_v1 = vld [vmem:[#allocation10 + $0x38] sm:$0xff]  ;;  %v3581_v30 = vld [vmem:[%s9081_s10 + $0x300] sm:$0xff]  ;;  %v3484_v15 = vld [vmem:[#allocation10 + $0xa0] sm:$0x3f] }
 0x6c3   : > { %5750 = vmatpush3.msra.mxu0 %v3562_v34  ;;  %3415 = vst.msk [vmem:[#allocation10 + $0x50] sm:$0xff] %vm3341_vm10, %v3407_v13  ;;  %6270 = vmatpush3.msra.mxu1 %v3591_v52  ;;  %vm4093_vm10 = vcmask 1044992  }
 0x6c4   : > { %3416 = vst.msk [vmem:[#allocation10 + $0x58] sm:$0xff] %vm1567_vm13, %v3407_v13  ;;  %5751 = vmatprep.subr.mxu0 %v3577_v18  ;;  %v3472_v19 = vld [vmem:[#allocation10 + $0x40] sm:$0xff]  ;;  %6271 = vmatprep.subr.mxu1 %v8274_v43  ;;  %vm3390_vm13 = vcmask 1045760   ;;  %v3477_v18 = vld [vmem:[#allocation10 + $0x68] sm:$0xff] }
 0x6c5   : > { %5752 = vmatpush3.msra.mxu0 %v3561_v59  ;;  %3678 = vmatprep.mubr.f32.mxu0 %v3472_v19  ;;  %v3447_v9 = vpop.permute.xlu1 %3446 }
 0x6c6   : > { %5753 = vmatprep.subr.mxu0 %v3576_v38  ;;  %3679 = vmatmul.mubr.f32.gmra.mxu0 %v3471_v1  ;;  %v3426_v27 = vpop.permute.xlu0 %3425  ;;  %v3478_v14 = vld [vmem:[#allocation10 + $0x70] sm:$0x3f] }
 0x6c7   : > { %6272 = vmatpush3.msra.mxu1 %v3590_v8  ;;  %5754 = vmatpush3.msra.mxu0 %v3560_v21  ;;  %3434 = vst.msk [vmem:[#allocation10 + $0x20] sm:$0xff] %vm1680_vm9, %v3426_v27 }
 0x6c8   : > { %6273 = vmatprep.subr.mxu1 %v8274_v43  ;;  %3435 = vst.msk [vmem:[#allocation10 + $0x28] sm:$0xff] %vm3365_vm0, %v3426_v27  ;;  %v3479_v49 = vld [vmem:[#allocation10 + $0x78] sm:$0x3f]  ;;  %5755 = vmatprep.subr.mxu0 %v3575_v33 }
 0x6c9   : > { %3455 = vst.msk [vmem:[#allocation10 + $0x28] sm:$0xff] %vm3387_vm5, %v3447_v9  ;;  %6274 = vmatpush3.msra.mxu1 %v3589_v39  ;;  %5756 = vmatpush3.msra.mxu0 %v3559_v46  ;;  %v3383_v11 = vpop.permute.xlu1 %3382  ;;  %v3473_v16 = vld [vmem:[#allocation10 + $0x48] sm:$0xff] }
 0x6ca   : > { %3683 = vmatprep.mubr.f32.mxu0 %v3479_v49  ;;  %5757 = vmatprep.subr.mxu0 %v3574_v63  ;;  %v3409_v42 = vpop.permute.xlu0 %3408  ;;  %v3474_v4 = vld [vmem:[#allocation10 + $0x50] sm:$0xff]  ;;  %3391 = vst.msk [vmem:[#allocation10 + $0x80] sm:$0x3f] %vm3390_vm13, %v3383_v11 }
 0x6cb   : > { %6275 = vmatprep.subr.mxu1 %v8274_v43  ;;  %3684 = vmatmul.mubr.f32.gmra.mxu0 %v3478_v14  ;;  %3417 = vst.msk [vmem:[#allocation10 + $0x88] sm:$0x3f] %vm3346_vm2, %v3409_v42 }
 0x6cc   : > { %6276 = vmatpush3.msra.mxu1 %v3588_v0  ;;  %3418 = vst.msk [vmem:[#allocation10 + $0x90] sm:$0x3f] %vm1604_vm7, %v3409_v42  ;;  %5758 = vmatpush3.msra.mxu0 %v3558_v28  ;;  %v5365_v28 = vld [vmem:[%s9082_s11] ss:$0 sm:$0xff]  ;;  %vm3943_vm7 = vcmask 785414  }
 0x6cd   : > { %6277 = vmatprep.subr.mxu1 %v8274_v43  ;;  %5759 = vmatprep.subr.mxu0 %v3573_v55  ;;  %v3449_v61 = vpop.permute.xlu1 %3448 }
 0x6ce   : > { %3758 = vmatprep.mubr.f32.mxu1 %v3474_v4  ;;  %5760 = vmatpush3.msra.mxu0 %v3557_v56  ;;  %v3428_v22 = vpop.permute.xlu0 %3427  ;;  %v3468_v34 = vld [vmem:[#allocation10 + $0x20] sm:$0xff] }
 0x6cf   : > { %6278 = vmatpush3.msra.mxu1 %v3587_v50  ;;  %5761 = vmatprep.subr.mxu0 %v3572_v54  ;;  %3436 = vst.msk [vmem:[#allocation10 + $0x58] sm:$0xff] %vm1680_vm9, %v3428_v22  ;;  %vm9143_vm9 = vmmov %vm9142_vm3 }
 0x6d0   : > { %3759 = vmatmul.mubr.f32.gmra.mxu1 %v3473_v16  ;;  %3437 = vst.msk [vmem:[#allocation10 + $0x60] sm:$0xff] %vm3365_vm0, %v3428_v22  ;;  %6279 = vmatprep.subr.mxu1 %v8274_v43  ;;  %v3469_v36 = vld [vmem:[#allocation10 + $0x28] sm:$0xff]  ;;  %vm4085_vm0 = vcmask 1045248  }
 0x6d1   : > { %5762 = vmatpush3.msra.mxu0 %v3556_v57  ;;  %3456 = vst.msk [vmem:[#allocation10 + $0x60] sm:$0xff] %vm3387_vm5, %v3449_v61  ;;  %6280 = vmatpush3.msra.mxu1 %v3586_v23  ;;  %v3451_v10 = vpop.permute.xlu1 %3450  ;;  %v3480_v24 = vld [vmem:[#allocation10 + $0x80] sm:$0x3f]  ;;  %vm9144_vm5 = vcmask 520192  }
 0x6d2   : > { %5763 = vmatprep.subr.mxu0 %v3571_v40  ;;  %6281 = vmatprep.subr.mxu1 %v8274_v43  ;;  %v3430_v51 = vpop.permute.xlu0 %3429  ;;  %v3481_v5 = vld [vmem:[#allocation10 + $0x88] sm:$0x3f]  ;;  %vm9145_vm2 = vmmov %vm9144_vm5 }
 0x6d3   : > { %5764 = vmatpush3.msra.mxu0 %v3555_v48  ;;  %6282 = vmatpush3.msra.mxu1 %v3585_v26  ;;  %3438 = vst.msk [vmem:[#allocation10 + $0x90] sm:$0x3f] %vm9143_vm9, %v3430_v51 }
 0x6d4   : > { %5765 = vmatprep.subr.mxu0 %v3570_v20  ;;  %3439 = vst.msk [vmem:[#allocation10 + $0x98] sm:$0x3f] %vm3370_vm8, %v3430_v51  ;;  %3833 = vmatprep.mubr.f32.mxu0 %v3469_v36  ;;  %vm4102_vm8 = vcmask 1044736  }
 0x6d5   : > { %6283 = vmatprep.subr.mxu1 %v8274_v43  ;;  %3457 = vst.msk [vmem:[#allocation10 + $0x98] sm:$0x3f] %vm3390_vm13, %v3451_v10  ;;  %5766 = vmatpush3.msra.mxu0 %v3554_v60 }
 0x6d6   : > { %6284 = vmatpush3.msra.mxu1 %v3584_v62  ;;  %5767 = vmatprep.subr.mxu0 %v3569_v45  ;;  %v3475_v13 = vld [vmem:[#allocation10 + $0x58] sm:$0xff] }
 0x6d7   : > { %6285 = vmatprep.subr.mxu1 %v8274_v43  ;;  %3763 = vmatprep.mubr.f32.mxu1 %v3481_v5 }
 0x6d8   : > { %5768 = vmatpush3.msra.mxu0 %v3553_v44  ;;  %6286 = vmatpush3.msra.mxu1 %v3583_v6  ;;  %v3476_v52 = vld [vmem:[#allocation10 + $0x60] sm:$0xff] }
 0x6d9   : > { %5769 = vmatprep.subr.mxu0 %v3568_v7  ;;  %3764 = vmatmul.mubr.f32.gmra.mxu1 %v3480_v24 }
 0x6da   : > { %6287 = vmatprep.subr.mxu1 %v8274_v43  ;;  %5770 = vmatpush3.msra.mxu0 %v3552_v12  ;;  %v3482_v38 = vld [vmem:[#allocation10 + $0x90] sm:$0x3f] }
 0x6db   : > { %6288 = vmatpush3.msra.mxu1 %v3582_v31  ;;  %5771 = vmatprep.subr.mxu0 %v3567_v32 }
 0x6dc   : > { %6289 = vmatprep.subr.mxu1 %v8274_v43  ;;  %5772 = vmatpush3.msra.mxu0 %v3551_v17  ;;  %v3483_v59 = vld [vmem:[#allocation10 + $0x98] sm:$0x3f] }
 0x6dd   : > { %6290 = vmatpush3.msra.mxu1 %v3581_v30  ;;  %6291 = vmatprep.mubr.msk.f32.mxu1 %vm6813_vm1, %v8274_v43 }
 0x6de   : > { %5773 = vmatprep.subr.mxu0 %v3566_v35  ;;  %6292 = vmatmul.mubr.msk.f32.vlgmr.msra.gmra.mxu1 %vm3301_vm12, %v3470_v41 }
 0x6df   : > { %5774 = vmatpush3.msra.mxu0 %v3550_v47  ;;  %6294 = vmatprep.mubr.msk.f32.mxu1 %vm6813_vm1, %v8274_v43  ;;  %v3947_v47 = vrot.slane %v8283_v3, 6  ;;  %v3959_v3 = vld [vmem:[#allocation21] sm:$0xff] }
 0x6e0   : > { %5775 = vmatprep.subr.mxu0 %v3565_v25  ;;  %6300 = vmatprep.subr.mxu1 %v8274_v43 }
 0x6e1   : > { %5776 = vmatpush3.msra.mxu0 %v3549_v58 }
 0x6e2   : > { %3834 = vmatmul.mubr.f32.vlgmr.msra.gmra.mxu0 %v3468_v34  ;;  %6295 = vmatmul.mubr.msk.f32.gmra.mxu1 %vm3301_vm12, %v3477_v18 }
 0x6e3   : > { %3838 = vmatprep.mubr.f32.mxu0 %v3476_v52  ;;  %6297 = vmatprep.mubr.msk.f32.mxu1 %vm6813_vm1, %v8274_v43 }
 0x6e6   : > { %3839 = vmatmul.mubr.f32.gmra.mxu0 %v3475_v13  ;;  %6298 = vmatmul.mubr.msk.f32.gmra.mxu1 %vm3301_vm12, %v3484_v15  ;;  %v3962_v15 = vld [vmem:[#allocation21 + $0x18] sm:$0xff]  ;;  %v4166_v13 = vld [vmem:[#allocation23 + $0xf8] sm:$0xff] }
 0x6e7   : > { %3843 = vmatprep.mubr.f32.mxu0 %v3483_v59  ;;  %6304 = vmatprep.mubr.msk.f32.mxu1 %vm6813_vm1, %v8274_v43 }
 0x6e8   : > { %5808 = vmatprep.subr.mxu0 %v4166_v13  ;;  %v4135_v13 = vld [vmem:[#allocation23] sm:$0xff] }
 0x6ea   : > { %3844 = vmatmul.mubr.f32.gmra.mxu0 %v3482_v38  ;;  %v4150_v38 = vld [vmem:[#allocation23 + $0x78] sm:$0xff] }
 0x6eb   : > { %5809 = vmatpush3.msra.mxu0 %v4150_v38  ;;  %v4184_v38 = vld [vmem:[#allocation23 + $0x188] sm:$0xff] }
 0x77e   : > { %v5695_v19 = vpop.f32.mrf.mxu0 }
 0x780   : > { %v5736_v8 = vpop.f32.mrf.mxu1  ;;  %v5696_v21 = vpop.f32.mrf.mxu0 }
 0x781   : > { %v5697_v0 = vadd.f32 %v5696_v21, %v5695_v19  ;;  %v4165_v19 = vld [vmem:[#allocation23 + $0xf0] sm:$0xff]  ;;  %v4198_v21 = vld [vmem:[#allocation23 + $0x1f8] sm:$0xff] }
 0x782   : > { %v5737_v1 = vpop.f32.mrf.mxu1  ;;  %5810 = vmatprep.subr.mxu0 %v4165_v19  ;;  %v3963_v19 = vld [vmem:[#allocation21 + $0x20] sm:$0xf] }
 0x783   : > { %v3676_v42 = vadd.f32 %v5697_v0, %v5365_v28  ;;  %v5738_v55 = vadd.f32 %v5737_v1, %v5736_v8  ;;  %v4149_v8 = vld [vmem:[#allocation23 + $0x70] sm:$0xff]  ;;  %v4164_v1 = vld [vmem:[#allocation23 + $0xe8] sm:$0xff]  ;;  %v4147_v0 = vld [vmem:[#allocation23 + $0x60] sm:$0xff] }
 0x784   : > { %5811 = vmatpush3.msra.mxu0 %v4149_v8 }
 0x785   : > { %v3756_v57 = vadd.f32 %v5738_v55, %v3676_v42  ;;  %5812 = vmatprep.subr.mxu0 %v4164_v1  ;;  %v4146_v42 = vld [vmem:[#allocation23 + $0x58] sm:$0xff] }
 0x786   : > { %v5698_v33 = vpop.f32.mrf.mxu0  ;;  %v4194_v55 = vld [vmem:[#allocation23 + $0x1d8] sm:$0xff] }
 0x788   : > { %v5699_v9 = vpop.f32.mrf.mxu0 }
 0x789   : > { %v5700_v50 = vadd.f32 %v5699_v9, %v5698_v33  ;;  %v4182_v33 = vld [vmem:[#allocation23 + $0x178] sm:$0xff]  ;;  %v4148_v9 = vld [vmem:[#allocation23 + $0x68] sm:$0xff] }
 0x78a   : > { %5813 = vmatpush3.msra.mxu0 %v4148_v9 }
 0x78b   : > { %v5701_v49 = vpop.f32.mrf.mxu0  ;;  %v3681_v26 = vadd.f32 %v5700_v50, %v5365_v28  ;;  %v4145_v50 = vld [vmem:[#allocation23 + $0x50] sm:$0xff] }
 0x78d   : > { %v5702_v11 = vpop.f32.mrf.mxu0 }
 0x78e   : > { %v5703_v40 = vadd.f32 %v5702_v11, %v5701_v49  ;;  %v4196_v49 = vld [vmem:[#allocation23 + $0x1e8] sm:$0xff]  ;;  %v4179_v11 = vld [vmem:[#allocation23 + $0x160] sm:$0xff] }
 0x790   : > { %v5739_v39 = vpop.f32.mrf.mxu1  ;;  %v3686_v44 = vadd.f32 %v5703_v40, %v5365_v28  ;;  %v4195_v28 = vld [vmem:[#allocation23 + $0x1e0] sm:$0xff]  ;;  %v4176_v40 = vld [vmem:[#allocation23 + $0x148] sm:$0xff] }
 0x792   : > { %v5740_v27 = vpop.f32.mrf.mxu1 }
 0x793   : > { %v5741_v23 = vadd.f32 %v5740_v27, %v5739_v39  ;;  %v4197_v39 = vld [vmem:[#allocation23 + $0x1f0] sm:$0xff] }
 0x794   : > { %v4181_v27 = vld [vmem:[#allocation23 + $0x170] sm:$0xff] }
 0x795   : > { %v3761_v51 = vadd.f32 %v5741_v23, %v3681_v26  ;;  %v4144_v23 = vld [vmem:[#allocation23 + $0x48] sm:$0xff]  ;;  %v4191_v26 = vld [vmem:[#allocation23 + $0x1c0] sm:$0xff] }
 0x799   : > { %v5742_v46 = vpop.f32.mrf.mxu1 }
 0x79b   : > { %v5743_v63 = vpop.f32.mrf.mxu1 }
 0x79c   : > { %v5744_v60 = vadd.f32 %v5743_v63, %v5742_v46  ;;  %v4163_v46 = vld [vmem:[#allocation23 + $0xe0] sm:$0xff]  ;;  %v4180_v63 = vld [vmem:[#allocation23 + $0x168] sm:$0xff] }
 0x79d   : > { %5814 = vmatprep.subr.mxu0 %v4163_v46  ;;  %v4167_v46 = vld [vmem:[#allocation23 + $0x100] sm:$0xff] }
 0x79e   : > { %v3915_v14 = vpop.f32.mrf.mxu1  ;;  %v3766_v12 = vadd.f32 %v5744_v60, %v3686_v44  ;;  %5815 = vmatpush3.msra.mxu0 %v4147_v0  ;;  %v4142_v60 = vld [vmem:[#allocation23 + $0x38] sm:$0xff]  ;;  %v4156_v44 = vld [vmem:[#allocation23 + $0xa8] sm:$0xff] }
 0x7a0   : > { %v6293_v4 = vpop.f32.mrf.mxu1 }
 0x7a1   : > { %v4161_v4 = vld [vmem:[#allocation23 + $0xd0] sm:$0xff] }
 0x7a2   : > { %v5777_v56 = vpop.f32.mrf.mxu0  ;;  %v3920_v16 = vpop.f32.mrf.mxu1 }
 0x7a4   : > { %v5778_v54 = vpop.f32.mrf.mxu0  ;;  %v6296_v22 = vpop.f32.mrf.mxu1 }
 0x7a5   : > { %v5779_v61 = vadd.f32 %v5778_v54, %v5777_v56  ;;  %v4178_v56 = vld [vmem:[#allocation23 + $0x158] sm:$0xff]  ;;  %v4160_v54 = vld [vmem:[#allocation23 + $0xc8] sm:$0xff]  ;;  %v4159_v22 = vld [vmem:[#allocation23 + $0xc0] sm:$0xff] }
 0x7a6   : > { %v5780_v48 = vpop.f32.mrf.mxu0  ;;  %v3925_v36 = vpop.f32.mrf.mxu1 }
 0x7a7   : > { %v3836_v20 = vadd.f32 %v5779_v61, %v3756_v57  ;;  %v4177_v57 = vld [vmem:[#allocation23 + $0x150] sm:$0xff]  ;;  %v4192_v61 = vld [vmem:[#allocation23 + $0x1c8] sm:$0xff] }
 0x7a8   : > { %v5781_v62 = vpop.f32.mrf.mxu0  ;;  %v6299_v5 = vpop.f32.mrf.mxu1 }
 0x7a9   : > { %v3916_v10 = vadd.f32 %v3915_v14, %v3836_v20  ;;  %v5782_v45 = vadd.f32 %v5781_v62, %v5780_v48  ;;  %v4162_v14 = vld [vmem:[#allocation23 + $0xd8] sm:$0xff]  ;;  %v4143_v48 = vld [vmem:[#allocation23 + $0x40] sm:$0xff]  ;;  %v4189_v5 = vld [vmem:[#allocation23 + $0x1b0] sm:$0xff] }
 0x7aa   : > { %v5783_v6 = vpop.f32.mrf.mxu0  ;;  %5816 = vmatprep.subr.mxu0 %v4162_v14  ;;  %v4158_v20 = vld [vmem:[#allocation23 + $0xb8] sm:$0xff] }
 0x7ab   : > { %v3929_v7 = vmax.f32 %v3916_v10, 0.0  ;;  %v3841_v24 = vadd.f32 %v5782_v45, %v3761_v51  ;;  %5817 = vmatpush3.msra.mxu0 %v4146_v42  ;;  %v4190_v62 = vld [vmem:[#allocation23 + $0x1b8] sm:$0xff]  ;;  %v4157_v51 = vld [vmem:[#allocation23 + $0xb0] sm:$0xff] }
 0x7ac   : > { %v5784_v31 = vpop.f32.mrf.mxu0  ;;  %5818 = vmatprep.subr.mxu0 %v4161_v4  ;;  %v4174_v10 = vld [vmem:[#allocation23 + $0x138] sm:$0xff]  ;;  %v4141_v45 = vld [vmem:[#allocation23 + $0x30] sm:$0xff] }
 0x7ad   : > { %v3932_v32 = vadd.f32 %v3929_v7, %v8280_v2  ;;  %v3941_v17 = vadd.f32 %v3936_v29, %v3929_v7  ;;  %v3921_v30 = vadd.f32 %v3920_v16, %v3841_v24  ;;  %v5785_v35 = vadd.f32 %v5784_v31, %v5783_v6  ;;  %v4193_v16 = vld [vmem:[#allocation23 + $0x1d0] sm:$0xff]  ;;  %5819 = vmatpush3.msra.mxu0 %v4145_v50  ;;  %v4140_v7 = vld [vmem:[#allocation23 + $0x28] sm:$0xff]  ;;  %v4155_v24 = vld [vmem:[#allocation23 + $0xa0] sm:$0xff] }
 0x7ae   : > { %5820 = vmatprep.subr.mxu0 %v4160_v54  ;;  %v4173_v6 = vld [vmem:[#allocation23 + $0x130] sm:$0xff]  ;;  %v4139_v31 = vld [vmem:[#allocation23 + $0x20] sm:$0xff] }
 0x7af   : > { %3933 = vst.msk [vmem:[#allocation11] sm:$0xf] %vm3306_vm14, %v3932_v32  ;;  %v3930_v25 = vmax.f32 %v3921_v30, 0.0  ;;  %v3846_v41 = vadd.f32 %v5785_v35, %v3766_v12  ;;  %vm3966_vm14 = vcmask 130048   ;;  %5821 = vmatpush3.msra.mxu0 %v4144_v23  ;;  %v4188_v32 = vld [vmem:[#allocation23 + $0x1a8] sm:$0xff]  ;;  %v4138_v35 = vld [vmem:[#allocation23 + $0x18] sm:$0xff] }
 0x7b0   : > { %3944 = vst.msk [vmem:[#allocation11 - $0x2] sm:$0xc0] %vm3943_vm7, %v3941_v17  ;;  %5822 = vmatprep.subr.mxu0 %v4159_v22  ;;  %v4154_v17 = vld [vmem:[#allocation23 + $0x98] sm:$0xff]  ;;  %v4172_v30 = vld [vmem:[#allocation23 + $0x128] sm:$0xff] }
 0x7b1   : > { %v3942_v58 = vadd.f32 %v8295_v53, %v3930_v25  ;;  %v3949_v34 = vadd.f32 %v3947_v47, %v3930_v25  ;;  %v3926_v18 = vadd.f32 %v3925_v36, %v3846_v41  ;;  %v3960_v53 = vld [vmem:[#allocation21 + $0x8] sm:$0xff]  ;;  %5823 = vmatpush3.msra.mxu0 %v4143_v48  ;;  %v4153_v41 = vld [vmem:[#allocation23 + $0x90] sm:$0xff] }
 0x7b2   : > { %v4175_v36 = vld [vmem:[#allocation23 + $0x140] sm:$0xff]  ;;  %5824 = vmatprep.subr.mxu0 %v4158_v20  ;;  %v4213_v48 = vld [vmem:[#allocation23 + $0x270] sm:$0xff] }
 0x7b3   : > { %3946 = vst.msk [vmem:[#allocation11 + $0x6] sm:$0x3] %vm3945_vm15, %v3942_v58  ;;  %v3931_v52 = vmax.f32 %v3926_v18, 0.0  ;;  %5825 = vmatpush3.msra.mxu0 %v4142_v60  ;;  %v4187_v25 = vld [vmem:[#allocation23 + $0x1a0] sm:$0xff]  ;;  %v4137_v18 = vld [vmem:[#allocation23 + $0x10] sm:$0xff]  ;;  %v4242_v60 = vld [vmem:[#allocation23 + $0x358] sm:$0xff] }
 0x7b4   : > { %3951 = vst.msk [vmem:[#allocation11 + $0x4] sm:$0xf0] %vm3950_vm4, %v3949_v34  ;;  %5826 = vmatprep.subr.mxu0 %v4157_v51  ;;  %v4171_v58 = vld [vmem:[#allocation23 + $0x120] sm:$0xff] }
 0x7b5   : > { %v3957_v2 = vadd.f32 %v8303_v37, %v3931_v52  ;;  %v3961_v37 = vld [vmem:[#allocation21 + $0x10] sm:$0xff]  ;;  %5827 = vmatpush3.msra.mxu0 %v4141_v45  ;;  %v4186_v52 = vld [vmem:[#allocation23 + $0x198] sm:$0xff]  ;;  %v4227_v51 = vld [vmem:[#allocation23 + $0x2e0] sm:$0xff] }
 0x7b6   : > { %5828 = vmatprep.subr.mxu0 %v4156_v44  ;;  %v4211_v45 = vld [vmem:[#allocation23 + $0x260] sm:$0xff]  ;;  %v4226_v44 = vld [vmem:[#allocation23 + $0x2d8] sm:$0xff] }
 0x7b7   : > { %3958 = vst.msk [vmem:[#allocation11 + $0xa] sm:$0x3c] %vm3313_vm6, %v3957_v2  ;;  %5829 = vmatpush3.msra.mxu0 %v4140_v7  ;;  %v4152_v2 = vld [vmem:[#allocation23 + $0x88] sm:$0xff]  ;;  %vm4078_vm6 = vcmask 782336   ;;  %v4210_v7 = vld [vmem:[#allocation23 + $0x258] sm:$0xff] }
 0x7b8   : > { %5830 = vmatprep.subr.mxu0 %v4155_v24  ;;  %v4225_v24 = vld [vmem:[#allocation23 + $0x2d0] sm:$0xff] }
 0x7b9   : > { %5831 = vmatpush3.msra.mxu0 %v4139_v31  ;;  %v4209_v31 = vld [vmem:[#allocation23 + $0x250] sm:$0xff] }
 0x7ba   : > { %v3964_v59 = vld [vmem:[#allocation11] sm:$0xff]  ;;  %5832 = vmatprep.subr.mxu0 %v4154_v17 }
 0x7bb   : > { %5833 = vmatpush3.msra.mxu0 %v4138_v35  ;;  %v4238_v17 = vld [vmem:[#allocation23 + $0x338] sm:$0xff]  ;;  %v4223_v35 = vld [vmem:[#allocation23 + $0x2c0] sm:$0xff] }
 0x7bc   : > { %5834 = vmatprep.subr.mxu0 %v4153_v41  ;;  %v4222_v41 = vld [vmem:[#allocation23 + $0x2b8] sm:$0xff] }
 0x7bd   : > { %5835 = vmatpush3.msra.mxu0 %v4137_v18  ;;  %v4221_v18 = vld [vmem:[#allocation23 + $0x2b0] sm:$0xff] }
 0x7be   : > { %v3965_v29 = vld [vmem:[#allocation11 + $0x8] sm:$0xff]  ;;  %5836 = vmatprep.subr.mxu0 %v4152_v2  ;;  %v4205_v2 = vld [vmem:[#allocation23 + $0x230] sm:$0xff] }
 0x7bf   : > { %6301 = vmatpush3.msra.mxu1 %v3965_v29  ;;  %v4170_v29 = vld [vmem:[#allocation23 + $0x118] sm:$0xff] }
 0x7c0   : > { %6302 = vmatprep.subr.mxu1 %v8274_v43 }
 0x7c1   : > { %6303 = vmatpush3.msra.mxu1 %v3964_v59  ;;  %v4185_v59 = vld [vmem:[#allocation23 + $0x190] sm:$0xff] }
 0x7c2   : > { %6305 = vmatmul.mubr.msk.f32.vlgmr.msra.gmra.mxu1 %vm3966_vm14, %v3959_v3  ;;  %5843 = vmatprep.subr.mxu1 %v4198_v21  ;;  %v4136_v3 = vld [vmem:[#allocation23 + $0x8] sm:$0xff] }
 0x7c3   : > { %6307 = vmatprep.mubr.msk.f32.mxu1 %vm6813_vm1, %v8274_v43  ;;  %5844 = vmatpush3.msra.mxu1 %v4182_v33  ;;  %v4168_v33 = vld [vmem:[#allocation23 + $0x108] sm:$0xff] }
 0x7c4   : > { %5845 = vmatprep.subr.mxu1 %v4197_v39  ;;  %5837 = vmatpush3.msra.mxu0 %v4136_v3  ;;  %v4230_v39 = vld [vmem:[#allocation23 + $0x2f8] sm:$0xff] }
 0x7c5   : > { %5846 = vmatpush3.msra.mxu1 %v4181_v27  ;;  %v4183_v27 = vld [vmem:[#allocation23 + $0x180] sm:$0xff]  ;;  %v4234_v3 = vld [vmem:[#allocation23 + $0x318] sm:$0xff] }
 0x7c6   : > { %6308 = vmatmul.mubr.msk.f32.gmra.mxu1 %vm3966_vm14, %v3960_v53  ;;  %5847 = vmatprep.subr.mxu1 %v4196_v49 }
 0x7c7   : > { %6310 = vmatprep.mubr.msk.f32.mxu1 %vm6813_vm1, %v8274_v43  ;;  %5848 = vmatpush3.msra.mxu1 %v4180_v63 }
 0x7c8   : > { %5849 = vmatprep.subr.mxu1 %v4195_v28 }
 0x7c9   : > { %5850 = vmatpush3.msra.mxu1 %v4179_v11 }
 0x7ca   : > { %6311 = vmatmul.mubr.msk.f32.gmra.mxu1 %vm3966_vm14, %v3961_v37  ;;  %5851 = vmatprep.subr.mxu1 %v4194_v55  ;;  %v4151_v37 = vld [vmem:[#allocation23 + $0x80] sm:$0xff] }
 0x7cb   : > { %6313 = vmatprep.mubr.msk.f32.mxu1 %vm6813_vm1, %v8274_v43  ;;  %5852 = vmatpush3.msra.mxu1 %v4178_v56 }
 0x7cc   : > { %5853 = vmatprep.subr.mxu1 %v4193_v16  ;;  %5838 = vmatprep.subr.mxu0 %v4151_v37  ;;  %v4233_v37 = vld [vmem:[#allocation23 + $0x310] sm:$0xff] }
 0x7cd   : > { %5854 = vmatpush3.msra.mxu1 %v4177_v57  ;;  %5839 = vmatpush3.msra.mxu0 %v4135_v13  ;;  %v4218_v13 = vld [vmem:[#allocation23 + $0x298] sm:$0xff] }
 0x7ce   : > { %6314 = vmatmul.mubr.msk.f32.gmra.mxu1 %vm3966_vm14, %v3962_v15  ;;  %5855 = vmatprep.subr.mxu1 %v4192_v61  ;;  %v4169_v15 = vld [vmem:[#allocation23 + $0x110] sm:$0xff]  ;;  %v4214_v61 = vld [vmem:[#allocation23 + $0x278] sm:$0xff] }
 0x7cf   : > { %6316 = vmatprep.mubr.msk.f32.mxu1 %vm6813_vm1, %v8274_v43  ;;  %5856 = vmatpush3.msra.mxu1 %v4176_v40  ;;  %v4229_v40 = vld [vmem:[#allocation23 + $0x2f0] sm:$0xff] }
 0x7d0   : > { %5857 = vmatprep.subr.mxu1 %v4191_v26  ;;  %5878 = vmatprep.subr.mxu0 %v4230_v39  ;;  %v4228_v26 = vld [vmem:[#allocation23 + $0x2e8] sm:$0xff] }
 0x7d1   : > { %5858 = vmatpush3.msra.mxu1 %v4175_v36  ;;  %v4216_v39 = vld [vmem:[#allocation23 + $0x288] sm:$0xff] }
 0x7d2   : > { %5859 = vmatprep.subr.mxu1 %v4190_v62  ;;  %6317 = vmatmul.mubr.msk.f32.gmra.mxu1 %vm3966_vm14, %v3963_v19  ;;  %v4212_v62 = vld [vmem:[#allocation23 + $0x268] sm:$0xff] }
 0x7d3   : > { %5860 = vmatpush3.msra.mxu1 %v4174_v10  ;;  %v4241_v10 = vld [vmem:[#allocation23 + $0x350] sm:$0xff]  ;;  %v4232_v19 = vld [vmem:[#allocation23 + $0x308] sm:$0xff] }
 0x7d4   : > { %5861 = vmatprep.subr.mxu1 %v4189_v5  ;;  %v8538_v5 = vld [vmem:[#allocation13] sm:$0xff] }
 0x7d5   : > { %5862 = vmatpush3.msra.mxu1 %v4173_v6  ;;  %v4240_v6 = vld [vmem:[#allocation23 + $0x348] sm:$0xff] }
 0x7d6   : > { %5863 = vmatprep.subr.mxu1 %v4188_v32  ;;  %v4224_v32 = vld [vmem:[#allocation23 + $0x2c8] sm:$0xff] }
 0x7d7   : > { %5864 = vmatpush3.msra.mxu1 %v4172_v30  ;;  %v4208_v30 = vld [vmem:[#allocation23 + $0x248] sm:$0xff] }
 0x7d8   : > { %5865 = vmatprep.subr.mxu1 %v4187_v25  ;;  %v4207_v25 = vld [vmem:[#allocation23 + $0x240] sm:$0xff] }
 0x7d9   : > { %5866 = vmatpush3.msra.mxu1 %v4171_v58  ;;  %v4236_v58 = vld [vmem:[#allocation23 + $0x328] sm:$0xff] }
 0x7da   : > { %5867 = vmatprep.subr.mxu1 %v4186_v52  ;;  %v4235_v52 = vld [vmem:[#allocation23 + $0x320] sm:$0xff] }
 0x7db   : > { %5868 = vmatpush3.msra.mxu1 %v4170_v29  ;;  %v4220_v29 = vld [vmem:[#allocation23 + $0x2a8] sm:$0xff] }
 0x7dc   : > { %5869 = vmatprep.subr.mxu1 %v4185_v59  ;;  %v4204_v59 = vld [vmem:[#allocation23 + $0x228] sm:$0xff] }
 0x7dd   : > { %5870 = vmatpush3.msra.mxu1 %v4169_v15  ;;  %v4203_v15 = vld [vmem:[#allocation23 + $0x220] sm:$0xff] }
 0x7de   : > { %5871 = vmatprep.subr.mxu1 %v4184_v38 }
 0x7df   : > { %5872 = vmatpush3.msra.mxu1 %v4168_v33  ;;  %v4201_v33 = vld [vmem:[#allocation23 + $0x210] sm:$0xff] }
 0x7e0   : > { %5873 = vmatprep.subr.mxu1 %v4183_v27  ;;  %v4546_v27 = vld [vmem:[#allocation24 + $0x58] sm:$0xff] }
 0x7e1   : > { %5874 = vmatpush3.msra.mxu1 %v4167_v46  ;;  %v4200_v46 = vld [vmem:[#allocation23 + $0x208] sm:$0xff] }
 0x7e2   : > { %6319 = vmatprep.subr.mxu1 %v8274_v43 }
 0x882   : > { %v4048_v12 = vpop.f32.mrf.mxu1 }
 0x883   : > { %4072 = vst.msk [vmem:[#allocation3] sm:$0xff] %vm3301_vm12, %v4048_v12  ;;  %v4239_v12 = vld [vmem:[#allocation23 + $0x340] sm:$0xff] }
 0x884   : > { %v6306_v47 = vpop.f32.mrf.mxu1 }
 0x885   : > { %v4237_v47 = vld [vmem:[#allocation23 + $0x330] sm:$0xff] }
 0x886   : > { %v4053_v34 = vpop.f32.mrf.mxu1 }
 0x887   : > { %4073 = vst.msk [vmem:[#allocation3 + $0x8] sm:$0xff] %vm3301_vm12, %v4053_v34  ;;  %v4206_v34 = vld [vmem:[#allocation23 + $0x238] sm:$0xff] }
 0x888   : > { %v6309_v53 = vpop.f32.mrf.mxu1 }
 0x889   : > { %v4219_v53 = vld [vmem:[#allocation23 + $0x2a0] sm:$0xff] }
 0x88a   : > { %v4058_v8 = vpop.f32.mrf.mxu1  ;;  %v4088_v21 = vld [vmem:[#allocation3 + $0x1] sm:$0x1f] }
 0x88b   : > { %v4077_v1 = vld [vmem:[#allocation3] sm:$0x1f]  ;;  %4074 = vst.msk [vmem:[#allocation3 + $0x10] sm:$0xff] %vm3301_vm12, %v4058_v8  ;;  %4090 = vrot.lane.b32.xlu1 %v4088_v21, %s6816_s22  ;;  %v4202_v8 = vld [vmem:[#allocation23 + $0x218] sm:$0xff]  ;;  %v4217_v21 = vld [vmem:[#allocation23 + $0x290] sm:$0xff] }
 0x88c   : > { %4079 = vst.msk [vmem:[#allocation12] sm:$0x1f] %vm4078_vm6, %v4077_v1  ;;  %v6312_v9 = vpop.f32.mrf.mxu1  ;;  %v4113_v42 = vld [vmem:[#allocation3 + $0x3] sm:$0x1f]  ;;  %v4231_v1 = vld [vmem:[#allocation23 + $0x300] sm:$0xff] }
 0x88e   : > { %v4080_v49 = vld [vmem:[#allocation3 + $0x9] sm:$0x1f]  ;;  %v4063_v63 = vpop.f32.mrf.mxu1  ;;  %v4126_v0 = vld [vmem:[#allocation3 + $0x4] sm:$0x1f] }
 0x88f   : > { %4082 = vrot.lane.b32.xlu0 %v4080_v49, %s6820_s26  ;;  %4075 = vst.msk [vmem:[#allocation3 + $0x18] sm:$0xff] %vm3301_vm12, %v4063_v63  ;;  %v4215_v49 = vld [vmem:[#allocation23 + $0x280] sm:$0xff]  ;;  %v4545_v63 = vld [vmem:[#allocation24 + $0x50] sm:$0xff] }
 0x890   : > { %4127 = vst.msk [vmem:[#allocation12 + $0x30] sm:$0x1f] %vm4078_vm6, %v4126_v0  ;;  %v6315_v28 = vpop.f32.mrf.mxu1  ;;  %v4199_v0 = vld [vmem:[#allocation23 + $0x200] sm:$0xff] }
 0x891   : > { %v4544_v28 = vld [vmem:[#allocation24 + $0x48] sm:$0xff] }
 0x892   : > { %v4106_v14 = vld [vmem:[#allocation3 + $0x13] sm:$0x1f]  ;;  %v4120_v55 = vld [vmem:[#allocation3 + $0xc] sm:$0x1f] }
 0x893   : > { %v4097_v11 = vld [vmem:[#allocation3 + $0x12] sm:$0x1f]  ;;  %4108 = vrot.lane.b32.xlu0 %v4106_v14, %s6820_s26  ;;  %s5316_s26 = sshll.u32 %s735_s27, 2 }
 0x894   : > { %4099 = vrot.lane.b32.xlu1 %v4097_v11, %s6821_s24  ;;  %v4543_v11 = vld [vmem:[#allocation24 + $0x40] sm:$0xff]  ;;  %s737_s0 = scalar_lea.vmem [#allocation26], %s5316_s26 }
 0x895   : > { %s5181_s29 = sshll.u32 %s737_s0, 4  ;;  %s5182_s29 = int_to_ptr.vmem [resolvable:$true] %s5181_s29 }
 0x896   : > { %v4104_v4 = vld [vmem:[#allocation3 + $0x1b] sm:$0x1f]  ;;  %s6720_s14 = scalar_lea.vmem %s5182_s29, 64  ;;  %p6727_p13 = scmp.lt.s32.totalorder %s5182_s29, %s6725_s5 }
 0x897   : > { %4115 = vrot.lane.b32.xlu0 %v4113_v42, %s6816_s22  ;;  %4105 = vst.msk [vmem:[#allocation12 + $0x18] sm:$0x1f] %vm4078_vm6, %v4104_v4  ;;  %v4134_v9 = vld [vmem:[#allocation12 + $0x30] sm:$0x1f]  ;;  %v4540_v4 = vld [vmem:[#allocation24 + $0x28] sm:$0xff]  ;;  %p6721_p4 = scmp.ne.s32.totalorder %s5182_s29, %s6720_s14  ;;  %s6726_s22 = scalar_lea.vmem %s6725_s5, 128 }
 0x898   : > { %4122 = vrot.lane.b32.xlu1 %v4120_v55, %s6821_s24  ;;  %v4542_v42 = vld [vmem:[#allocation24 + $0x38] sm:$0xff]  ;;  %v4541_v55 = vld [vmem:[#allocation24 + $0x30] sm:$0xff]  ;;  %p6728_p7 = scmp.lt.s32.totalorder %s6726_s22, %s6720_s14 }
 0x899   : > { %p6722_p9 = pnand %p6721_p4, %p6971_p5 }
 0x89a   : > { %p6729_p11 = por %p6728_p7, %p6727_p13 }
 0x89b   : > { %p6723_p8 = pneg %p6722_p9 }
 0x89d   : > { %p6730_p0 = pnand %p6729_p11, %p6723_p8 }
 0x8fd   : > { %v4091_v56 = vpop.permute.xlu1 %4090 }
 0x8fe   : > { %4096 = vst.msk [vmem:[#allocation12 + $0x10] sm:$0x1f] %vm4095_vm11, %v4091_v56 }
 0x901   : > { %v4083_v43 = vpop.permute.xlu0 %4082 }
 0x902   : > { %4086 = vst.msk [vmem:[#allocation12] sm:$0x1f] %vm4085_vm0, %v4083_v43 }
 0x903   : > { %4087 = vst.msk [vmem:[#allocation12 + $0x8] sm:$0x1f] %vm9144_vm5, %v4083_v43  ;;  %v4538_v43 = vld [vmem:[#allocation24 + $0x18] sm:$0xff] }
 0x904   : > { %4094 = vst.msk [vmem:[#allocation12 + $0x8] sm:$0x1f] %vm4093_vm10, %v4091_v56  ;;  %v4539_v56 = vld [vmem:[#allocation24 + $0x20] sm:$0xff] }
 0x905   : > { %v4109_v50 = vpop.permute.xlu0 %4108 }
 0x906   : > { %v4100_v16 = vpop.permute.xlu1 %4099  ;;  %4111 = vst.msk [vmem:[#allocation12 + $0x18] sm:$0x1f] %vm4085_vm0, %v4109_v50 }
 0x907   : > { %4112 = vst.msk [vmem:[#allocation12 + $0x20] sm:$0x1f] %vm9145_vm2, %v4109_v50  ;;  %v4537_v50 = vld [vmem:[#allocation24 + $0x10] sm:$0xff] }
 0x908   : > { %4103 = vst.msk [vmem:[#allocation12 + $0x10] sm:$0x1f] %vm4102_vm8, %v4100_v16  ;;  %v4536_v16 = vld [vmem:[#allocation24 + $0x8] sm:$0xff] }
 0x909   : > { %v4116_v54 = vpop.permute.xlu0 %4115  ;;  %v4128_v22 = vld [vmem:[#allocation12] sm:$0x1f] }
 0x90a   : > { %v4123_v57 = vpop.permute.xlu1 %4122  ;;  %4118 = vst.msk [vmem:[#allocation12 + $0x20] sm:$0x1f] %vm4093_vm10, %v4116_v54 }
 0x90b   : > { %v4129_v23 = vld [vmem:[#allocation12 + $0x8] sm:$0x1f]  ;;  %4119 = vst.msk [vmem:[#allocation12 + $0x28] sm:$0x1f] %vm4095_vm11, %v4116_v54  ;;  %v4535_v54 = vld [vmem:[#allocation24] sm:$0xff] }
 0x90c   : > { %4317 = vmatprep.mubr.f32.mxu0 %v4129_v23  ;;  %4125 = vst.msk [vmem:[#allocation12 + $0x28] sm:$0x1f] %vm4102_vm8, %v4123_v57  ;;  %v4068_v23 = vpop.f32.mrf.mxu1 }
 0x90d   : > { %4318 = vmatmul.mubr.f32.vlgmr.msra.gmra.mxu0 %v4128_v22  ;;  %v4131_v20 = vld [vmem:[#allocation12 + $0x18] sm:$0x1f]  ;;  %v4689_v22 = vld [vmem:[%s9088_s17 + $0xf8] sm:$0xff] }
 0x90e   : > { %5879 = vmatpush3.msra.mxu0 %v4214_v61  ;;  %4387 = vmatprep.mubr.f32.mxu1 %v4131_v20  ;;  %v4534_v57 = vld [vmem:[#allocation12 + $0x18] sm:$0x1f]  ;;  %v6318_v61 = vpop.f32.mrf.mxu1  ;;  %v4688_v20 = vld [vmem:[%s9088_s17 + $0xf0] sm:$0xff] }
 0x90f   : > { %v4130_v36 = vld [vmem:[#allocation12 + $0x10] sm:$0x1f]  ;;  %5880 = vmatprep.subr.mxu0 %v4229_v40  ;;  %v4706_v23 = vld [vmem:[%s9088_s17 + $0x180] sm:$0xff] }
 0x910   : > { %5881 = vmatpush3.msra.mxu0 %v4213_v48  ;;  %4388 = vmatmul.mubr.f32.vlgmr.msra.gmra.mxu1 %v4130_v36  ;;  %v4721_v40 = vld [vmem:[%s9088_s17 + $0x1f8] sm:$0xff]  ;;  %v4720_v36 = vld [vmem:[%s9088_s17 + $0x1f0] sm:$0xff]  ;;  %v4658_v61 = vld [vmem:[%s9088_s17] sm:$0xff] }
 0x911   : > { %5882 = vmatprep.subr.mxu0 %v4228_v26  ;;  %6320 = vmatpush3.msra.mxu1 %v4242_v60  ;;  %v4132_v14 = vld [vmem:[#allocation12 + $0x20] sm:$0x1f]  ;;  %v4673_v48 = vld [vmem:[%s9088_s17 + $0x78] sm:$0xff]  ;;  %v4672_v60 = vld [vmem:[%s9088_s17 + $0x70] sm:$0xff] }
 0x912   : > { %5883 = vmatpush3.msra.mxu0 %v4212_v62  ;;  %6321 = vmatprep.subr.mxu1 %v8538_v5  ;;  %v4705_v26 = vld [vmem:[%s9088_s17 + $0x178] sm:$0xff]  ;;  %v4704_v62 = vld [vmem:[%s9088_s17 + $0x170] sm:$0xff] }
 0x913   : > { %5884 = vmatprep.subr.mxu0 %v4227_v51  ;;  %6322 = vmatpush3.msra.mxu1 %v4241_v10  ;;  %v4133_v38 = vld [vmem:[#allocation12 + $0x28] sm:$0x1f]  ;;  %v4687_v51 = vld [vmem:[%s9088_s17 + $0xe8] sm:$0xff] }
 0x914   : > { %5885 = vmatpush3.msra.mxu0 %v4211_v45  ;;  %6323 = vmatprep.subr.mxu1 %v8538_v5  ;;  %v4719_v10 = vld [vmem:[%s9088_s17 + $0x1e8] sm:$0xff] }
 0x915   : > { %5886 = vmatprep.subr.mxu0 %v4226_v44  ;;  %6324 = vmatpush3.msra.mxu1 %v4240_v6  ;;  %v4671_v45 = vld [vmem:[%s9088_s17 + $0x68] sm:$0xff]  ;;  %v4686_v6 = vld [vmem:[%s9088_s17 + $0xe0] sm:$0xff] }
 0x916   : > { %5887 = vmatpush3.msra.mxu0 %v4210_v7  ;;  %6325 = vmatprep.subr.mxu1 %v8538_v5  ;;  %v4703_v44 = vld [vmem:[%s9088_s17 + $0x168] sm:$0xff]  ;;  %v4718_v7 = vld [vmem:[%s9088_s17 + $0x1e0] sm:$0xff] }
 0x917   : > { %5888 = vmatprep.subr.mxu0 %v4225_v24  ;;  %6326 = vmatpush3.msra.mxu1 %v4239_v12  ;;  %v4670_v24 = vld [vmem:[%s9088_s17 + $0x60] sm:$0xff] }
 0x918   : > { %5889 = vmatpush3.msra.mxu0 %v4209_v31  ;;  %6327 = vmatprep.subr.mxu1 %v8538_v5  ;;  %v4702_v12 = vld [vmem:[%s9088_s17 + $0x160] sm:$0xff]  ;;  %v4685_v31 = vld [vmem:[%s9088_s17 + $0xd8] sm:$0xff] }
 0x919   : > { %5890 = vmatprep.subr.mxu0 %v4224_v32  ;;  %6328 = vmatpush3.msra.mxu1 %v4238_v17  ;;  %v4717_v32 = vld [vmem:[%s9088_s17 + $0x1d8] sm:$0xff] }
 0x91a   : > { %5891 = vmatpush3.msra.mxu0 %v4208_v30  ;;  %6329 = vmatprep.subr.mxu1 %v8538_v5  ;;  %v4669_v17 = vld [vmem:[%s9088_s17 + $0x58] sm:$0xff] }
 0x91b   : > { %5892 = vmatprep.subr.mxu0 %v4223_v35  ;;  %6330 = vmatpush3.msra.mxu1 %v4237_v47  ;;  %v4701_v30 = vld [vmem:[%s9088_s17 + $0x158] sm:$0xff]  ;;  %v4684_v35 = vld [vmem:[%s9088_s17 + $0xd0] sm:$0xff] }
 0x91c   : > { %5893 = vmatpush3.msra.mxu0 %v4207_v25  ;;  %6331 = vmatprep.subr.mxu1 %v8538_v5  ;;  %v4716_v47 = vld [vmem:[%s9088_s17 + $0x1d0] sm:$0xff] }
 0x91d   : > { %5894 = vmatprep.subr.mxu0 %v4222_v41  ;;  %6332 = vmatpush3.msra.mxu1 %v4236_v58  ;;  %v4668_v25 = vld [vmem:[%s9088_s17 + $0x50] sm:$0xff]  ;;  %v4683_v58 = vld [vmem:[%s9088_s17 + $0xc8] sm:$0xff] }
 0x91e   : > { %5895 = vmatpush3.msra.mxu0 %v4206_v34  ;;  %6333 = vmatprep.subr.mxu1 %v8538_v5  ;;  %v4700_v41 = vld [vmem:[%s9088_s17 + $0x150] sm:$0xff]  ;;  %v4715_v34 = vld [vmem:[%s9088_s17 + $0x1c8] sm:$0xff] }
 0x91f   : > { %5896 = vmatprep.subr.mxu0 %v4221_v18  ;;  %6334 = vmatpush3.msra.mxu1 %v4235_v52  ;;  %v4667_v18 = vld [vmem:[%s9088_s17 + $0x48] sm:$0xff] }
 0x920   : > { %5897 = vmatpush3.msra.mxu0 %v4205_v2  ;;  %6335 = vmatprep.subr.mxu1 %v8538_v5  ;;  %v4699_v52 = vld [vmem:[%s9088_s17 + $0x148] sm:$0xff]  ;;  %v4682_v2 = vld [vmem:[%s9088_s17 + $0xc0] sm:$0xff] }
 0x921   : > { %5898 = vmatprep.subr.mxu0 %v4220_v29  ;;  %6336 = vmatpush3.msra.mxu1 %v4234_v3  ;;  %v4714_v29 = vld [vmem:[%s9088_s17 + $0x1c0] sm:$0xff] }
 0x922   : > { %5899 = vmatpush3.msra.mxu0 %v4204_v59  ;;  %6337 = vmatprep.subr.mxu1 %v8538_v5  ;;  %v4666_v3 = vld [vmem:[%s9088_s17 + $0x40] sm:$0xff] }
 0x923   : > { %5900 = vmatprep.subr.mxu0 %v4219_v53  ;;  %6338 = vmatpush3.msra.mxu1 %v4233_v37  ;;  %v4698_v59 = vld [vmem:[%s9088_s17 + $0x140] sm:$0xff]  ;;  %v4681_v53 = vld [vmem:[%s9088_s17 + $0xb8] sm:$0xff] }
 0x924   : > { %5901 = vmatpush3.msra.mxu0 %v4203_v15  ;;  %6339 = vmatprep.subr.mxu1 %v8538_v5  ;;  %v4713_v37 = vld [vmem:[%s9088_s17 + $0x1b8] sm:$0xff] }
 0x925   : > { %5902 = vmatprep.subr.mxu0 %v4218_v13  ;;  %4457 = vmatprep.mubr.f32.mxu0 %v4133_v38  ;;  %v4665_v15 = vld [vmem:[%s9088_s17 + $0x38] sm:$0xff]  ;;  %v4680_v38 = vld [vmem:[%s9088_s17 + $0xb0] sm:$0xff] }
 0x926   : > { %6340 = vmatpush3.msra.mxu1 %v4232_v19  ;;  %5903 = vmatpush3.msra.mxu0 %v4202_v8  ;;  %v4697_v13 = vld [vmem:[%s9088_s17 + $0x138] sm:$0xff]  ;;  %v4712_v19 = vld [vmem:[%s9088_s17 + $0x1b0] sm:$0xff] }
 0x927   : > { %6341 = vmatprep.subr.mxu1 %v8538_v5  ;;  %5904 = vmatprep.subr.mxu0 %v4217_v21  ;;  %v4664_v8 = vld [vmem:[%s9088_s17 + $0x30] sm:$0xff] }
 0x928   : > { %6342 = vmatpush3.msra.mxu1 %v4231_v1  ;;  %6343 = vmatprep.mubr.msk.f32.mxu1 %vm6813_vm1, %v8538_v5  ;;  %v4696_v21 = vld [vmem:[%s9088_s17 + $0x130] sm:$0xff]  ;;  %v4679_v1 = vld [vmem:[%s9088_s17 + $0xa8] sm:$0xff] }
 0x929   : > { %5905 = vmatpush3.msra.mxu0 %v4201_v33  ;;  %6344 = vmatmul.mubr.msk.f32.vlgmr.msra.gmra.mxu1 %vm3301_vm12, %v4134_v9  ;;  %v4711_v33 = vld [vmem:[%s9088_s17 + $0x1a8] sm:$0xff] }
 0x92a   : > { %6346 = vmatprep.subr.mxu1 %v8538_v5  ;;  %5906 = vmatprep.subr.mxu0 %v4216_v39  ;;  %v4663_v39 = vld [vmem:[%s9088_s17 + $0x28] sm:$0xff] }
 0x92b   : > { %6347 = vmatpush3.msra.mxu1 %v4546_v27  ;;  %5907 = vmatpush3.msra.mxu0 %v4200_v46  ;;  %v4695_v9 = vld [vmem:[%s9088_s17 + $0x128] sm:$0xff]  ;;  %v4678_v27 = vld [vmem:[%s9088_s17 + $0xa0] sm:$0xff] }
 0x92c   : > { %6348 = vmatprep.subr.mxu1 %v8538_v5  ;;  %5908 = vmatprep.subr.mxu0 %v4215_v49  ;;  %v4710_v46 = vld [vmem:[%s9088_s17 + $0x1a0] sm:$0xff] }
 0x92d   : > { %6349 = vmatpush3.msra.mxu1 %v4545_v63  ;;  %5909 = vmatpush3.msra.mxu0 %v4199_v0  ;;  %v4662_v49 = vld [vmem:[%s9088_s17 + $0x20] sm:$0xff]  ;;  %v4677_v0 = vld [vmem:[%s9088_s17 + $0x98] sm:$0xff] }
 0x92e   : > { %6350 = vmatprep.subr.mxu1 %v8538_v5  ;;  %4458 = vmatmul.mubr.f32.vlgmr.msra.gmra.mxu0 %v4132_v14  ;;  %v4694_v63 = vld [vmem:[%s9088_s17 + $0x120] sm:$0xff]  ;;  %v4661_v14 = vld [vmem:[%s9088_s17 + $0x18] sm:$0xff] }
 0x92f   : > { %6351 = vmatpush3.msra.mxu1 %v4544_v28  ;;  %6370 = vmatprep.mubr.msk.f32.mxu1 %vm6813_vm1, %v8538_v5  ;;  %v4709_v28 = vld [vmem:[%s9088_s17 + $0x198] sm:$0xff] }
 0x930   : > { %6352 = vmatprep.subr.mxu1 %v8538_v5  ;;  %5939 = vmatprep.subr.mxu0 %v4689_v22  ;;  %v4690_v22 = vld [vmem:[%s9088_s17 + $0x100] sm:$0xff] }
 0x931   : > { %6353 = vmatpush3.msra.mxu1 %v4543_v11  ;;  %5940 = vmatpush3.msra.mxu0 %v4673_v48  ;;  %v4693_v11 = vld [vmem:[%s9088_s17 + $0x118] sm:$0xff] }
 0x932   : > { %6354 = vmatprep.subr.mxu1 %v8538_v5  ;;  %5941 = vmatprep.subr.mxu0 %v4688_v20  ;;  %v4785_v48 = vld [vmem:[%s9088_s17 + $0x3f8] sm:$0xff] }
 0x933   : > { %6355 = vmatpush3.msra.mxu1 %v4542_v42  ;;  %5942 = vmatpush3.msra.mxu0 %v4672_v60  ;;  %v4676_v42 = vld [vmem:[%s9088_s17 + $0x90] sm:$0xff] }
 0x934   : > { %6356 = vmatprep.subr.mxu1 %v8538_v5  ;;  %5943 = vmatprep.subr.mxu0 %v4687_v51 }
 0x935   : > { %6357 = vmatpush3.msra.mxu1 %v4541_v55  ;;  %5944 = vmatpush3.msra.mxu0 %v4671_v45  ;;  %v4708_v55 = vld [vmem:[%s9088_s17 + $0x190] sm:$0xff] }
 0x936   : > { %6358 = vmatprep.subr.mxu1 %v8538_v5  ;;  %5945 = vmatprep.subr.mxu0 %v4686_v6 }
 0x937   : > { %6359 = vmatpush3.msra.mxu1 %v4540_v4  ;;  %5946 = vmatpush3.msra.mxu0 %v4670_v24  ;;  %v4660_v4 = vld [vmem:[%s9088_s17 + $0x10] sm:$0xff] }
 0x938   : > { %6360 = vmatprep.subr.mxu1 %v8538_v5  ;;  %5947 = vmatprep.subr.mxu0 %v4685_v31 }
 0x939   : > { %6361 = vmatpush3.msra.mxu1 %v4539_v56  ;;  %5948 = vmatpush3.msra.mxu0 %v4669_v17  ;;  %v4692_v56 = vld [vmem:[%s9088_s17 + $0x110] sm:$0xff] }
 0x93a   : > { %6362 = vmatprep.subr.mxu1 %v8538_v5  ;;  %5949 = vmatprep.subr.mxu0 %v4684_v35 }
 0x93b   : > { %6363 = vmatpush3.msra.mxu1 %v4538_v43  ;;  %5950 = vmatpush3.msra.mxu0 %v4668_v25  ;;  %v4675_v43 = vld [vmem:[%s9088_s17 + $0x88] sm:$0xff] }
 0x93c   : > { %6364 = vmatprep.subr.mxu1 %v8538_v5  ;;  %5951 = vmatprep.subr.mxu0 %v4683_v58 }
 0x93d   : > { %6365 = vmatpush3.msra.mxu1 %v4537_v50  ;;  %5952 = vmatpush3.msra.mxu0 %v4667_v18  ;;  %v4707_v50 = vld [vmem:[%s9088_s17 + $0x188] sm:$0xff] }
 0x93e   : > { %6366 = vmatprep.subr.mxu1 %v8538_v5  ;;  %5953 = vmatprep.subr.mxu0 %v4682_v2 }
 0x93f   : > { %6367 = vmatpush3.msra.mxu1 %v4536_v16  ;;  %5954 = vmatpush3.msra.mxu0 %v4666_v3  ;;  %v4659_v16 = vld [vmem:[%s9088_s17 + $0x8] sm:$0xff] }
 0x940   : > { %6368 = vmatprep.subr.mxu1 %v8538_v5  ;;  %5955 = vmatprep.subr.mxu0 %v4681_v53  ;;  %v4769_v53 = vld [vmem:[%s9088_s17 + $0x378] sm:$0xff] }
 0x941   : > { %6369 = vmatpush3.msra.mxu1 %v4535_v54  ;;  %5956 = vmatpush3.msra.mxu0 %v4665_v15  ;;  %v4691_v54 = vld [vmem:[%s9088_s17 + $0x108] sm:$0xff] }
 0x942   : > { %6371 = vmatmul.mubr.msk.f32.vlgmr.msra.gmra.mxu1 %vm3301_vm12, %v4534_v57  ;;  %5974 = vmatprep.subr.mxu1 %v4721_v40  ;;  %v4674_v57 = vld [vmem:[%s9088_s17 + $0x80] sm:$0xff]  ;;  %v4753_v40 = vld [vmem:[%s9088_s17 + $0x2f8] sm:$0xff] }
 0x943   : > { %5975 = vmatpush3.msra.mxu1 %v4705_v26  ;;  %5957 = vmatprep.subr.mxu0 %v4680_v38 }
 0x944   : > { %5976 = vmatprep.subr.mxu1 %v4720_v36  ;;  %5958 = vmatpush3.msra.mxu0 %v4664_v8  ;;  %v4784_v8 = vld [vmem:[%s9088_s17 + $0x3f0] sm:$0xff] }
 0x945   : > { %5977 = vmatpush3.msra.mxu1 %v4704_v62  ;;  %5959 = vmatprep.subr.mxu0 %v4679_v1  ;;  %v4736_v1 = vld [vmem:[%s9088_s17 + $0x270] sm:$0xff] }
 0x946   : > { %5978 = vmatprep.subr.mxu1 %v4719_v10  ;;  %5960 = vmatpush3.msra.mxu0 %v4663_v39  ;;  %v5374_v10 = vld [vmem:[%s9087_s16] ss:$0 sm:$0xff] }
 0x947   : > { %5979 = vmatpush3.msra.mxu1 %v4703_v44  ;;  %5961 = vmatprep.subr.mxu0 %v4678_v27  ;;  %v4783_v27 = vld [vmem:[%s9088_s17 + $0x3e8] sm:$0xff] }
 0x948   : > { %5980 = vmatprep.subr.mxu1 %v4718_v7  ;;  %5962 = vmatpush3.msra.mxu0 %v4662_v49  ;;  %v4767_v49 = vld [vmem:[%s9088_s17 + $0x368] sm:$0xff] }
 0x949   : > { %5981 = vmatpush3.msra.mxu1 %v4702_v12  ;;  %5963 = vmatprep.subr.mxu0 %v4677_v0  ;;  %v4782_v0 = vld [vmem:[%s9088_s17 + $0x3e0] sm:$0xff] }
 0x94a   : > { %5982 = vmatprep.subr.mxu1 %v4717_v32  ;;  %5964 = vmatpush3.msra.mxu0 %v4661_v14  ;;  %v4766_v14 = vld [vmem:[%s9088_s17 + $0x360] sm:$0xff] }
 0x94b   : > { %5983 = vmatpush3.msra.mxu1 %v4701_v30  ;;  %5965 = vmatprep.subr.mxu0 %v4676_v42  ;;  %v4781_v42 = vld [vmem:[%s9088_s17 + $0x3d8] sm:$0xff] }
 0x94c   : > { %5984 = vmatprep.subr.mxu1 %v4716_v47  ;;  %5966 = vmatpush3.msra.mxu0 %v4660_v4  ;;  %v4765_v4 = vld [vmem:[%s9088_s17 + $0x358] sm:$0xff] }
 0x94d   : > { %5985 = vmatpush3.msra.mxu1 %v4700_v41  ;;  %5967 = vmatprep.subr.mxu0 %v4675_v43  ;;  %v4780_v43 = vld [vmem:[%s9088_s17 + $0x3d0] sm:$0xff] }
 0x94e   : > { %5986 = vmatprep.subr.mxu1 %v4715_v34  ;;  %5968 = vmatpush3.msra.mxu0 %v4659_v16  ;;  %v4764_v16 = vld [vmem:[%s9088_s17 + $0x350] sm:$0xff] }
 0x94f   : > { %5987 = vmatpush3.msra.mxu1 %v4699_v52  ;;  %5969 = vmatprep.subr.mxu0 %v4674_v57  ;;  %v4779_v57 = vld [vmem:[%s9088_s17 + $0x3c8] sm:$0xff] }
 0x950   : > { %5988 = vmatprep.subr.mxu1 %v4714_v29  ;;  %5970 = vmatpush3.msra.mxu0 %v4658_v61  ;;  %v4763_v61 = vld [vmem:[%s9088_s17 + $0x348] sm:$0xff] }
 0x951   : > { %5989 = vmatpush3.msra.mxu1 %v4698_v59  ;;  %6009 = vmatprep.subr.mxu0 %v4753_v40  ;;  %v4737_v59 = vld [vmem:[%s9088_s17 + $0x278] sm:$0xff]  ;;  %v4778_v40 = vld [vmem:[%s9088_s17 + $0x3c0] sm:$0xff] }
 0x952   : > { %5990 = vmatprep.subr.mxu1 %v4713_v37 }
 0x953   : > { %5991 = vmatpush3.msra.mxu1 %v4697_v13 }
 0x954   : > { %5992 = vmatprep.subr.mxu1 %v4712_v19  ;;  %v4752_v19 = vld [vmem:[%s9088_s17 + $0x2f0] sm:$0xff] }
 0x955   : > { %5993 = vmatpush3.msra.mxu1 %v4696_v21 }
 0x956   : > { %5994 = vmatprep.subr.mxu1 %v4711_v33  ;;  %v4768_v33 = vld [vmem:[%s9088_s17 + $0x370] sm:$0xff] }
 0x957   : > { %5995 = vmatpush3.msra.mxu1 %v4695_v9  ;;  %v4751_v9 = vld [vmem:[%s9088_s17 + $0x2e8] sm:$0xff] }
 0x958   : > { %5996 = vmatprep.subr.mxu1 %v4710_v46  ;;  %v4735_v46 = vld [vmem:[%s9088_s17 + $0x268] sm:$0xff] }
 0x959   : > { %5997 = vmatpush3.msra.mxu1 %v4694_v63  ;;  %v4750_v63 = vld [vmem:[%s9088_s17 + $0x2e0] sm:$0xff] }
 0x95a   : > { %5998 = vmatprep.subr.mxu1 %v4709_v28  ;;  %v4734_v28 = vld [vmem:[%s9088_s17 + $0x260] sm:$0xff] }
 0x95b   : > { %5999 = vmatpush3.msra.mxu1 %v4693_v11  ;;  %v4749_v11 = vld [vmem:[%s9088_s17 + $0x2d8] sm:$0xff] }
 0x95c   : > { %6000 = vmatprep.subr.mxu1 %v4708_v55  ;;  %v4733_v55 = vld [vmem:[%s9088_s17 + $0x258] sm:$0xff] }
 0x95d   : > { %6001 = vmatpush3.msra.mxu1 %v4692_v56  ;;  %v4748_v56 = vld [vmem:[%s9088_s17 + $0x2d0] sm:$0xff] }
 0x95e   : > { %6002 = vmatprep.subr.mxu1 %v4707_v50  ;;  %v4732_v50 = vld [vmem:[%s9088_s17 + $0x250] sm:$0xff] }
 0x95f   : > { %6003 = vmatpush3.msra.mxu1 %v4691_v54  ;;  %v4747_v54 = vld [vmem:[%s9088_s17 + $0x2c8] sm:$0xff] }
 0x960   : > { %6004 = vmatprep.subr.mxu1 %v4706_v23  ;;  %v4731_v23 = vld [vmem:[%s9088_s17 + $0x248] sm:$0xff] }
 0x961   : > { %6005 = vmatpush3.msra.mxu1 %v4690_v22  ;;  %v4746_v22 = vld [vmem:[%s9088_s17 + $0x2c0] sm:$0xff] }
 0x962   : > { %6044 = vmatprep.subr.mxu1 %v4785_v48  ;;  %v4730_v48 = vld [vmem:[%s9088_s17 + $0x240] sm:$0xff] }
 0x9cd   : > { %v5840_v26 = vpop.f32.mrf.mxu0 }
 0x9cf   : > { %v5841_v36 = vpop.f32.mrf.mxu0 }
 0x9d0   : > { %v5875_v20 = vpop.f32.mrf.mxu1  ;;  %v5842_v62 = vadd.f32 %v5841_v36, %v5840_v26  ;;  %v4762_v26 = vld [vmem:[%s9088_s17 + $0x340] sm:$0xff]  ;;  %v4777_v36 = vld [vmem:[%s9088_s17 + $0x3b8] sm:$0xff] }
 0x9d2   : > { %v5876_v60 = vpop.f32.mrf.mxu1  ;;  %v4320_v44 = vadd.f32 %v5842_v62, %v5374_v10  ;;  %v4761_v62 = vld [vmem:[%s9088_s17 + $0x338] sm:$0xff]  ;;  %v4776_v10 = vld [vmem:[%s9088_s17 + $0x3b0] sm:$0xff] }
 0x9d3   : > { %v5877_v6 = vadd.f32 %v5876_v60, %v5875_v20  ;;  %v4745_v20 = vld [vmem:[%s9088_s17 + $0x2b8] sm:$0xff] }
 0x9d4   : > { %v4729_v60 = vld [vmem:[%s9088_s17 + $0x238] sm:$0xff] }
 0x9d5   : > { %v4390_v12 = vadd.f32 %v5877_v6, %v4320_v44  ;;  %v4760_v44 = vld [vmem:[%s9088_s17 + $0x330] sm:$0xff]  ;;  %v4743_v6 = vld [vmem:[%s9088_s17 + $0x2a8] sm:$0xff] }
 0x9e9   : > { %v4529_v51 = vpop.f32.mrf.mxu1 }
 0x9eb   : > { %v6345_v45 = vpop.f32.mrf.mxu1 }
 0x9ec   : > { %v4728_v45 = vld [vmem:[%s9088_s17 + $0x230] sm:$0xff] }
 0x9ee   : > { %v5910_v7 = vpop.f32.mrf.mxu0 }
 0x9f0   : > { %v5911_v24 = vpop.f32.mrf.mxu0 }
 0x9f1   : > { %v5912_v31 = vadd.f32 %v5911_v24, %v5910_v7  ;;  %v4775_v7 = vld [vmem:[%s9088_s17 + $0x3a8] sm:$0xff] }
 0x9f2   : > { %v4727_v24 = vld [vmem:[%s9088_s17 + $0x228] sm:$0xff] }
 0x9f3   : > { %v4460_v32 = vadd.f32 %v5912_v31, %v4390_v12  ;;  %v4759_v12 = vld [vmem:[%s9088_s17 + $0x328] sm:$0xff]  ;;  %v4742_v31 = vld [vmem:[%s9088_s17 + $0x2a0] sm:$0xff] }
 0x9f5   : > { %v4530_v17 = vadd.f32 %v4529_v51, %v4460_v32  ;;  %v4744_v51 = vld [vmem:[%s9088_s17 + $0x2b0] sm:$0xff]  ;;  %v4774_v32 = vld [vmem:[%s9088_s17 + $0x3a0] sm:$0xff] }
 0x9f7   : > { %v4533_v30 = vmax.f32 %v4530_v17, 0.0  ;;  %v4726_v17 = vld [vmem:[%s9088_s17 + $0x220] sm:$0xff] }
 0x9f9   : > { %4629 = vst [vmem:[#allocation13 + $0x5] sm:$0x3] %v4533_v30  ;;  %4630 = vst [vmem:[#allocation13 + $0x6] sm:$0x18] %v4533_v30  ;;  %v4758_v30 = vld [vmem:[%s9088_s17 + $0x320] sm:$0xff] }
 0xa00   : > { %v4633_v35 = vld [vmem:[#allocation13 + $0x1] sm:$0x3f]  ;;  %v4645_v34 = vld [vmem:[#allocation13 + $0x9] sm:$0x3f] }
 0xa01   : > { %v4637_v47 = vld [vmem:[#allocation13 + $0x4] sm:$0x3f]  ;;  %4634 = vst [vmem:[#allocation14] sm:$0x3f] %v4633_v35  ;;  %4646 = vst [vmem:[#allocation14 + $0x38] sm:$0x3f] %v4645_v34 }
 0xa02   : > { %v4631_v25 = vld [vmem:[#allocation13] sm:$0x3f]  ;;  %4638 = vst [vmem:[#allocation14 + $0x10] sm:$0x3f] %v4637_v47  ;;  %v4641_v58 = vld [vmem:[#allocation13 + $0x6] sm:$0x3f]  ;;  %v8770_v18 = vpop.f32.mrf.mxu1 }
 0xa03   : > { %4632 = vst [vmem:[#allocation14 + $0x30] sm:$0x3f] %v4631_v25  ;;  %v4635_v41 = vld [vmem:[#allocation13 + $0x2] sm:$0x3f]  ;;  %4642 = vst [vmem:[#allocation14 + $0x28] sm:$0x3f] %v4641_v58 }
 0xa04   : > { %4636 = vst [vmem:[#allocation14 + $0x18] sm:$0x3f] %v4635_v41  ;;  %v4639_v52 = vld [vmem:[#allocation13 + $0x5] sm:$0x3f]  ;;  %v6372_v3 = vpop.f32.mrf.mxu1  ;;  %v4741_v35 = vld [vmem:[%s9088_s17 + $0x298] sm:$0xff]  ;;  %v4740_v58 = vld [vmem:[%s9088_s17 + $0x290] sm:$0xff] }
 0xa05   : > { %v4643_v2 = vld [vmem:[#allocation13 + $0x8] sm:$0x3f]  ;;  %4640 = vst [vmem:[#allocation14 + $0x20] sm:$0x3f] %v4639_v52  ;;  %v4773_v47 = vld [vmem:[%s9088_s17 + $0x398] sm:$0xff]  ;;  %v4772_v34 = vld [vmem:[%s9088_s17 + $0x390] sm:$0xff] }
 0xa06   : > { %v4647_v29 = vld [vmem:[#allocation13 + $0xa] sm:$0x3f]  ;;  %4644 = vst [vmem:[#allocation14 + $0x40] sm:$0x3f] %v4643_v2  ;;  %v4725_v25 = vld [vmem:[%s9088_s17 + $0x218] sm:$0xff]  ;;  %v4724_v52 = vld [vmem:[%s9088_s17 + $0x210] sm:$0xff] }
 0xa07   : > { %4648 = vst [vmem:[#allocation14 + $0x8] sm:$0x3f] %v4647_v29  ;;  %v4757_v41 = vld [vmem:[%s9088_s17 + $0x318] sm:$0xff]  ;;  %v4756_v2 = vld [vmem:[%s9088_s17 + $0x310] sm:$0xff]  ;;  %v4739_v29 = vld [vmem:[%s9088_s17 + $0x288] sm:$0xff] }
 0xa08   : > { %v4650_v37 = vld [vmem:[#allocation14] sm:$0x3f]  ;;  %v4656_v39 = vld [vmem:[#allocation14 + $0x38] sm:$0x3f] }
 0xa09   : > { %v4652_v15 = vld [vmem:[#allocation14 + $0x10] sm:$0x3f]  ;;  %4873 = vmatprep.mubr.f32.mxu0 %v4650_v37  ;;  %v4771_v3 = vld [vmem:[%s9088_s17 + $0x388] sm:$0xff] }
 0xa0a   : > { %v4649_v13 = vld [vmem:[#allocation14 + $0x30] sm:$0x3f]  ;;  %4943 = vmatprep.mubr.f32.mxu1 %v4652_v15  ;;  %v4654_v21 = vld [vmem:[#allocation14 + $0x28] sm:$0x3f] }
 0xa0b   : > { %v4651_v38 = vld [vmem:[#allocation14 + $0x18] sm:$0x3f]  ;;  %4874 = vmatmul.mubr.f32.vlgmr.msra.gmra.mxu0 %v4649_v13  ;;  %v4738_v37 = vld [vmem:[%s9088_s17 + $0x280] sm:$0xff] }
 0xa0c   : > { %4944 = vmatmul.mubr.f32.vlgmr.msra.gmra.mxu1 %v4651_v38  ;;  %6010 = vmatpush3.msra.mxu0 %v4737_v59  ;;  %v4723_v59 = vld [vmem:[%s9088_s17 + $0x208] sm:$0xff]  ;;  %v4770_v15 = vld [vmem:[%s9088_s17 + $0x380] sm:$0xff] }
 0xa0d   : > { %6045 = vmatpush3.msra.mxu1 %v4769_v53  ;;  %6011 = vmatprep.subr.mxu0 %v4752_v19  ;;  %v4755_v53 = vld [vmem:[%s9088_s17 + $0x308] sm:$0xff]  ;;  %v4722_v13 = vld [vmem:[%s9088_s17 + $0x200] sm:$0xff]  ;;  %v4653_v19 = vld [vmem:[#allocation14 + $0x20] sm:$0x3f] }
 0xa0e   : > { %5013 = vmatprep.mubr.f32.mxu0 %v4654_v21  ;;  %6046 = vmatprep.subr.mxu1 %v4784_v8  ;;  %v4754_v38 = vld [vmem:[%s9088_s17 + $0x300] sm:$0xff]  ;;  %v4655_v8 = vld [vmem:[#allocation14 + $0x40] sm:$0x3f]  ;;  %v4801_v21 = vld [vmem:[%s9088_s17 + $0x478] sm:$0xff] }
 0xa0f   : > { %5083 = vmatprep.mubr.f32.mxu1 %v4656_v39  ;;  %6012 = vmatpush3.msra.mxu0 %v4736_v1  ;;  %v4800_v1 = vld [vmem:[%s9088_s17 + $0x470] sm:$0xff]  ;;  %v4798_v39 = vld [vmem:[%s9088_s17 + $0x460] sm:$0xff] }
 0xa10   : > { %6047 = vmatpush3.msra.mxu1 %v4768_v33  ;;  %6013 = vmatprep.subr.mxu0 %v4751_v9  ;;  %v4799_v33 = vld [vmem:[%s9088_s17 + $0x468] sm:$0xff]  ;;  %v4797_v9 = vld [vmem:[%s9088_s17 + $0x458] sm:$0xff] }
 0xa11   : > { %6048 = vmatprep.subr.mxu1 %v4783_v27  ;;  %6014 = vmatpush3.msra.mxu0 %v4735_v46  ;;  %v4796_v27 = vld [vmem:[%s9088_s17 + $0x450] sm:$0xff]  ;;  %v4795_v46 = vld [vmem:[%s9088_s17 + $0x448] sm:$0xff] }
 0xa12   : > { %6049 = vmatpush3.msra.mxu1 %v4767_v49  ;;  %6015 = vmatprep.subr.mxu0 %v4750_v63  ;;  %v4794_v49 = vld [vmem:[%s9088_s17 + $0x440] sm:$0xff]  ;;  %v4793_v63 = vld [vmem:[%s9088_s17 + $0x438] sm:$0xff] }
 0xa13   : > { %6050 = vmatprep.subr.mxu1 %v4782_v0  ;;  %6016 = vmatpush3.msra.mxu0 %v4734_v28  ;;  %v4792_v0 = vld [vmem:[%s9088_s17 + $0x430] sm:$0xff]  ;;  %v4791_v28 = vld [vmem:[%s9088_s17 + $0x428] sm:$0xff] }
 0xa14   : > { %6051 = vmatpush3.msra.mxu1 %v4766_v14  ;;  %6017 = vmatprep.subr.mxu0 %v4749_v11  ;;  %v4790_v14 = vld [vmem:[%s9088_s17 + $0x420] sm:$0xff]  ;;  %v4789_v11 = vld [vmem:[%s9088_s17 + $0x418] sm:$0xff] }
 0xa15   : > { %6052 = vmatprep.subr.mxu1 %v4781_v42  ;;  %6018 = vmatpush3.msra.mxu0 %v4733_v55  ;;  %v4788_v42 = vld [vmem:[%s9088_s17 + $0x410] sm:$0xff]  ;;  %v4787_v55 = vld [vmem:[%s9088_s17 + $0x408] sm:$0xff] }
 0xa16   : > { %6053 = vmatpush3.msra.mxu1 %v4765_v4  ;;  %6019 = vmatprep.subr.mxu0 %v4748_v56  ;;  %v4786_v4 = vld [vmem:[%s9088_s17 + $0x400] sm:$0xff]  ;;  %v4657_v56 = vld [vmem:[#allocation14 + $0x8] sm:$0x3f] }
 0xa17   : > { %6054 = vmatprep.subr.mxu1 %v4780_v43  ;;  %6020 = vmatpush3.msra.mxu0 %v4732_v50 }
 0xa18   : > { %6055 = vmatpush3.msra.mxu1 %v4764_v16  ;;  %6021 = vmatprep.subr.mxu0 %v4747_v54 }
 0xa19   : > { %6056 = vmatprep.subr.mxu1 %v4779_v57  ;;  %6022 = vmatpush3.msra.mxu0 %v4731_v23  ;;  %v5378_v23 = vld [vmem:[%s9089_s18] ss:$0 sm:$0xff] }
 0xa1a   : > { %6057 = vmatpush3.msra.mxu1 %v4763_v61  ;;  %6023 = vmatprep.subr.mxu0 %v4746_v22 }
 0xa1b   : > { %6058 = vmatprep.subr.mxu1 %v4778_v40  ;;  %6024 = vmatpush3.msra.mxu0 %v4730_v48 }
 0xa1c   : > { %6059 = vmatpush3.msra.mxu1 %v4762_v26  ;;  %6025 = vmatprep.subr.mxu0 %v4745_v20 }
 0xa1d   : > { %6060 = vmatprep.subr.mxu1 %v4777_v36  ;;  %6026 = vmatpush3.msra.mxu0 %v4729_v60 }
 0xa1e   : > { %6061 = vmatpush3.msra.mxu1 %v4761_v62  ;;  %6027 = vmatprep.subr.mxu0 %v4744_v51  ;;  %v5376_v62 = vld [vmem:[%s9091_s20] ss:$0 sm:$0xff] }
 0xa1f   : > { %6062 = vmatprep.subr.mxu1 %v4776_v10  ;;  %6028 = vmatpush3.msra.mxu0 %v4728_v45  ;;  %v4624_v10 = vadd.f32 %v5376_v62, %v8770_v18 }
 0xa20   : > { %6063 = vmatpush3.msra.mxu1 %v4760_v44  ;;  %6029 = vmatprep.subr.mxu0 %v4743_v6 }
 0xa21   : > { %6064 = vmatprep.subr.mxu1 %v4775_v7  ;;  %6030 = vmatpush3.msra.mxu0 %v4727_v24  ;;  %v5163_v24 = vrot.slane %v4624_v10, 7 }
 0xa22   : > { %6065 = vmatpush3.msra.mxu1 %v4759_v12  ;;  %6031 = vmatprep.subr.mxu0 %v4742_v31 }
 0xa23   : > { %6066 = vmatprep.subr.mxu1 %v4774_v32  ;;  %6032 = vmatpush3.msra.mxu0 %v4726_v17 }
 0xa24   : > { %6067 = vmatpush3.msra.mxu1 %v4758_v30  ;;  %6033 = vmatprep.subr.mxu0 %v4741_v35 }
 0xa25   : > { %6068 = vmatprep.subr.mxu1 %v4773_v47  ;;  %6034 = vmatpush3.msra.mxu0 %v4725_v25 }
 0xa26   : > { %6069 = vmatpush3.msra.mxu1 %v4757_v41  ;;  %6035 = vmatprep.subr.mxu0 %v4740_v58 }
 0xa27   : > { %6070 = vmatprep.subr.mxu1 %v4772_v34  ;;  %6036 = vmatpush3.msra.mxu0 %v4724_v52 }
 0xa28   : > { %6071 = vmatpush3.msra.mxu1 %v4756_v2  ;;  %6037 = vmatprep.subr.mxu0 %v4739_v29 }
 0xa29   : > { %6072 = vmatprep.subr.mxu1 %v4771_v3  ;;  %6038 = vmatpush3.msra.mxu0 %v4723_v59 }
 0xa2a   : > { %6073 = vmatpush3.msra.mxu1 %v4755_v53  ;;  %6039 = vmatprep.subr.mxu0 %v4738_v37 }
 0xa2b   : > { %6074 = vmatprep.subr.mxu1 %v4770_v15  ;;  %6040 = vmatpush3.msra.mxu0 %v4722_v13 }
 0xa2c   : > { %6075 = vmatpush3.msra.mxu1 %v4754_v38  ;;  %5014 = vmatmul.mubr.f32.vlgmr.msra.gmra.mxu0 %v4653_v19 }
 0xa2d   : > { %5084 = vmatmul.mubr.f32.vlgmr.msra.gmra.mxu1 %v4655_v8  ;;  %6373 = vmatprep.subr.mxu0 %v8538_v5 }
 0xa2e   : > { %6405 = vmatprep.mubr.msk.f32.mxu0 %vm6813_vm1, %v8538_v5  ;;  %6374 = vmatpush3.msra.mxu0 %v4801_v21 }
 0xa2f   : > { %6375 = vmatprep.subr.mxu0 %v8538_v5 }
 0xa30   : > { %6376 = vmatpush3.msra.mxu0 %v4800_v1 }
 0xa31   : > { %6377 = vmatprep.subr.mxu0 %v8538_v5 }
 0xa32   : > { %6378 = vmatpush3.msra.mxu0 %v4799_v33 }
 0xa33   : > { %6379 = vmatprep.subr.mxu0 %v8538_v5 }
 0xa34   : > { %6380 = vmatpush3.msra.mxu0 %v4798_v39 }
 0xa35   : > { %6381 = vmatprep.subr.mxu0 %v8538_v5 }
 0xa36   : > { %6382 = vmatpush3.msra.mxu0 %v4797_v9 }
 0xa37   : > { %6383 = vmatprep.subr.mxu0 %v8538_v5 }
 0xa38   : > { %6384 = vmatpush3.msra.mxu0 %v4796_v27 }
 0xa39   : > { %6385 = vmatprep.subr.mxu0 %v8538_v5 }
 0xa3a   : > { %6386 = vmatpush3.msra.mxu0 %v4795_v46 }
 0xa3b   : > { %6387 = vmatprep.subr.mxu0 %v8538_v5 }
 0xa3c   : > { %6388 = vmatpush3.msra.mxu0 %v4794_v49 }
 0xa3d   : > { %6389 = vmatprep.subr.mxu0 %v8538_v5 }
 0xa3e   : > { %6390 = vmatpush3.msra.mxu0 %v4793_v63 }
 0xa3f   : > { %6391 = vmatprep.subr.mxu0 %v8538_v5 }
 0xa40   : > { %6392 = vmatpush3.msra.mxu0 %v4792_v0 }
 0xa41   : > { %6393 = vmatprep.subr.mxu0 %v8538_v5 }
 0xa42   : > { %6394 = vmatpush3.msra.mxu0 %v4791_v28 }
 0xa43   : > { %6395 = vmatprep.subr.mxu0 %v8538_v5 }
 0xa44   : > { %6396 = vmatpush3.msra.mxu0 %v4790_v14 }
 0xa45   : > { %6397 = vmatprep.subr.mxu0 %v8538_v5 }
 0xa46   : > { %6398 = vmatpush3.msra.mxu0 %v4789_v11 }
 0xa47   : > { %6399 = vmatprep.subr.mxu0 %v8538_v5 }
 0xa48   : > { %6400 = vmatpush3.msra.mxu0 %v4788_v42 }
 0xa49   : > { %6401 = vmatprep.subr.mxu0 %v8538_v5 }
 0xa4a   : > { %6402 = vmatpush3.msra.mxu0 %v4787_v55 }
 0xa4b   : > { %6403 = vmatprep.subr.mxu0 %v8538_v5 }
 0xa4c   : > { %6404 = vmatpush3.msra.mxu0 %v4786_v4 }
 0xa4d   : > { %6406 = vmatmul.mubr.f32.vlgmr.msra.gmra.mxu0 %v4657_v56 }
 0xacb   : > { %v5971_v43 = vpop.f32.mrf.mxu0 }
 0xacc   : > { %v6006_v16 = vpop.f32.mrf.mxu1 }
 0xacd   : > { %v5972_v50 = vpop.f32.mrf.mxu0 }
 0xace   : > { %v5973_v57 = vadd.f32 %v5972_v50, %v5971_v43  ;;  %v6007_v61 = vpop.f32.mrf.mxu1 }
 0xacf   : > { %v6008_v26 = vadd.f32 %v6007_v61, %v6006_v16 }
 0xad0   : > { %v4876_v40 = vadd.f32 %v5973_v57, %v5378_v23 }
 0xad2   : > { %v4946_v20 = vadd.f32 %v6008_v26, %v4876_v40 }
 0xaec   : > { %v6041_v54 = vpop.f32.mrf.mxu0 }
 0xaed   : > { %v6076_v48 = vpop.f32.mrf.mxu1 }
 0xaee   : > { %v6042_v22 = vpop.f32.mrf.mxu0 }
 0xaef   : > { %v6043_v5 = vadd.f32 %v6042_v22, %v6041_v54  ;;  %v6077_v36 = vpop.f32.mrf.mxu1 }
 0xaf0   : > { %v6078_v51 = vadd.f32 %v6077_v36, %v6076_v48 }
 0xaf1   : > { %v5016_v60 = vadd.f32 %v6043_v5, %v4946_v20 }
 0xaf3   : > { %v5086_v45 = vadd.f32 %v6078_v51, %v5016_v60 }
 0xb0d   : > { %v5155_v44 = vpop.f32.mrf.mxu0 }
 0xb0e   : > { %v5156_v6 = vadd.f32 %v5155_v44, %v5086_v45 }
 0xb0f   : > { %v6407_v7 = vpop.f32.mrf.mxu0 }
 0xb10   : > { %v5159_v12 = vmax.f32 %v5156_v6, 0.0 }
 0xb12   : > { %v5160_v31 = vadd.f32 %v5159_v12, %v4624_v10  ;;  %v5165_v32 = vadd.f32 %v5163_v24, %v5159_v12 }
 0xb14   : > { %5161 = vst [vmem:[%s737_s0] sm:$0x3] %v5160_v31  ;;  %5166 = vst [vmem:[%s737_s0 - $0x2] sm:$0x30] %v5165_v32 }
 0xb15   : > { %6733 = shalt.err (!%p6730_p0)
}
 0xb16   : > { %s6734_s26 = scalar_lea.hbm %s9036_s30, 64  ;;  %s6738_s0 = scalar_lea.hbm %s9147_s1, 128 }
 0xb17   : > { %p6735_p3 = scmp.ne.s32.totalorder %s9036_s30, %s6734_s26  ;;  %p6739_p1 = scmp.lt.s32.totalorder %s9036_s30, %s9147_s1 }
 0xb18   : > { %p6740_p2 = scmp.lt.s32.totalorder %s6738_s0, %s6734_s26 }
 0xb19   : > { %p6736_p12 = pnand %p6735_p3, %p6971_p5 }
 0xb1a   : > { %p6741_p4 = por %p6740_p2, %p6739_p1 }
 0xb1b   : > { %p6737_p10 = pneg %p6736_p12 }
 0xb1d   : > { %p6742_p9 = pnand %p6741_p4, %p6737_p10 }
 0xb1f   : > { %6745 = shalt.err (!%p6742_p9)
}
 0xb20   : > { %6441 = dma.vmem_to_hbm [thread:$0]  (%p6971_p5), %s5182_s29, 64, %s9036_s30, %s5168_s2  }
 0xb21 PF: > { %s9148_s14 = sld [smem:[#allocation34_spill]] }
 0xb22   : > { %s9149_s3 = sld [smem:[#allocation32_spill]] }
 0xb27   : > { %p6478_p8 = scmp.ge.s32.totalorder %s9148_s14, 2 }
 0xb28   : > { %s5193_s22 = sand.u32 1, %s9149_s3  }
 0xb29   : > { %p6463_p13 = pnand %p6478_p8, %p6975_p6  ;;  %s5194_s27 = scalar_lea.sflag [#allocation17], %s5193_s22 }
 0xb2b   : > { %p6464_p7 = pneg %p6463_p13 }
 0xb2d   : > { %6779 = dma.done.wait (%p6464_p7), %s5194_s27, 64  }
 0xb2e   : > { %6781 = vsyncadd (%p6464_p7), %s5194_s27, 4294967232  ;;  %s9151_s27 = sld [smem:[#allocation35_spill]]  ;;  %s9154_s2 = smov %s6788_s25 }
 0xb2f   : > { %s9152_s26 = sld [smem:[#allocation33_spill]] }
 0xb30   : > { %s9153_s4 = sld [smem:[#allocation36_spill]] }
 0xb34   : > { %p35_p11 = scmp.ge.s32.totalorder %s9151_s27, 4  }
 0xb35   : > { %s9155_s25 = smov %s9152_s26 }
 0xb36   : > { %s9156_s26 = smov %s9153_s4  ;;  %37 = sbr.rel (!%p35_p11) target bundleno = 16 (0x10), region = 164 }
 0xb3b   :  { %5199 = vsyncpa [#allocation16], 1 }
 0xb3c   :  { %5201 = vsyncpa [#allocation16 + $0x1], 1 }
 0xb3d   :  { %5202 = vsyncpa [#allocation19], 1 }
 0xb3e   :  { %5203 = vsyncpa [#allocation22], 1 }
 0xb3f   :  { %5204 = vsyncpa [#allocation25], 1 }
 0xb40   :  { %5205 = vsyncpa [#allocation17], 1 }
 0xb41   :  { %5207 = vsyncpa [#allocation17 + $0x1], 1 }

</bundles_post_ra>
